<compile_context>
chip_gen: v7x
topology: tpu7x:2x2x1
jax: 0.10.0
libtpu: 0.0.40
codegen_flags: <defaults>
</compile_context>

<pallas_src>
import functools
import re

import jax
import jax.numpy as jnp
from jax.experimental import pallas as pl
from jax.experimental.pallas import tpu as pltpu

D = 8
W = 256
INPUT_CH = 3
OUTPUT_CH = 3
SKIPS = (4,)
OUT_RESCALE = 1.0

PAD_X = 8     # input lanes: 3 real channels zero-padded to 8 (block last dim == full array dim)
PAD_OUT = 8   # output lanes: 3 real channels padded to 8 (16x less writeback/slice than 128)


def _tpu_generation():
    """Best-effort TPU generation from device_kind; 0 if unknown."""
    try:
        kind = jax.devices()[0].device_kind   # e.g. "TPU v5e", "TPU v6 lite", "TPU7x"
        m = re.search(r"(\d+)", kind)
        return int(m.group(1)) if m else 0
    except Exception:
        return 0


# ---------------------------------------------------------------------------
# Kernel
# ---------------------------------------------------------------------------
def _mlp_kernel(x_ref, w0_ref, b0_ref, w5a_ref, w_ref, b_ref, wout_ref, bout_ref,
                o_ref, *, out_rescale, bf16_h):
    f32 = jnp.float32
    bf16 = jnp.bfloat16
    act_dt = bf16 if bf16_h else f32
    x = x_ref[...]                        # (TM, PAD_X) f32; lanes >= INPUT_CH are zero

    def input_fma(w_in_ref):
        # x[:, :3] @ w_in as 3 VPU broadcast FMAs -> keeps the tiny-K contraction
        # off the MXU (rows >= INPUT_CH of w_in are zero / unused).
        acc = x[:, 0:1] * w_in_ref[0:1, :]
        for c in range(1, INPUT_CH):
            acc = acc + x[:, c:c + 1] * w_in_ref[c:c + 1, :]
        return acc                        # (TM, W) f32

    def hidden(h, j):
        # bf16 operands into the MXU, f32 accumulation + f32 bias-add.
        return jnp.dot(h.astype(bf16), w_ref[j],
                       preferred_element_type=f32) + b_ref[j:j + 1, :]

    def relu(t):
        # v6e/v7x: keep h bf16 between layers (halves VPU/ld-st traffic and VMEM
        # intermediates). v5e: no bf16 VALU -> keep f32.
        return jnp.maximum(t, 0.0).astype(act_dt)

    h = relu(input_fma(w0_ref) + b0_ref[...])               # layer 0 (VPU only)
    for j in range(4):                                       # layers 1..4
        h = relu(hidden(h, j))
    # skip layer 5: relu(cat([input, h]) @ W5 + b5) == relu(input@W5[:3] + h@W5[3:] + b5)
    h = relu(hidden(h, 4) + input_fma(w5a_ref))
    for j in (5, 6):                                         # layers 6, 7
        h = relu(hidden(h, j))
    # output layer (no relu); PAD_OUT lanes only
    out = jnp.dot(h.astype(bf16), wout_ref[...],
                  preferred_element_type=f32) + bout_ref[...]
    if out_rescale != 1.0:                # statically skip the multiply when == 1
        out = out * out_rescale
    # TODO(synk): plumb act_fn here if a non-None output activation is ever configured.
    o_ref[...] = out.astype(o_ref.dtype)


# ---------------------------------------------------------------------------
# Wrapper
# ---------------------------------------------------------------------------
def _resident_spec(shape, single_buffer):
    nd = len(shape)
    index_map = lambda i, _nd=nd: (0,) * _nd
    if single_buffer:
        # Block index never changes -> single-buffer the resident weights/biases
        # (saves ~1 MiB of VMEM vs default double buffering; headroom on v7x's 64 MiB).
        return pl.BlockSpec(shape, index_map, pipeline_mode=pl.Buffered(buffer_count=1))
    return pl.BlockSpec(shape, index_map)


def _choose_tm(n):
    # Largest row tile that still leaves >= 4 grid steps (>= 2 per v7x TensorCore, and
    # enough steps to overlap input fetch / output writeback), amortizing the ~0.35us
    # per-step pipeline overhead and the per-layer 256x256 RHS pushes into the MXU.
    for tm in (4096, 2048, 1024, 512, 256, 128):
        if n >= 4 * tm:
            return tm
    return 128


def mlp_decoder_pallas(x, prepped_params, *, out_rescale=OUT_RESCALE):
    """x: (..., INPUT_CH) float32. Returns (..., OUTPUT_CH) float32."""
    lead = x.shape[:-1]
    assert x.shape[-1] == INPUT_CH
    x_flat = x.reshape(-1, INPUT_CH).astype(jnp.float32)
    n = x_flat.shape[0]

    gen = _tpu_generation()
    tm = _choose_tm(n)
    grid = int(pl.cdiv(n, tm))
    if gen >= 7 and grid % 2 == 1:
        grid += 1          # balance v7x's two TensorCores; the extra tile rides the idle core
    n_pad = grid * tm

    # zero-pad: rows to the grid extent, channels to 8 lanes (kernel math relies on zeros).
    x_in = jnp.zeros((n_pad, PAD_X), jnp.float32).at[:n, :INPUT_CH].set(x_flat)

    kernel = functools.partial(_mlp_kernel, out_rescale=out_rescale, bf16_h=(gen >= 6))

    def run(single_buffer):
        in_specs = [pl.BlockSpec((tm, PAD_X), lambda i: (i, 0))]
        in_specs += [_resident_spec(p.shape, single_buffer) for p in prepped_params]
        return pl.pallas_call(
            kernel,
            out_shape=jax.ShapeDtypeStruct((n_pad, PAD_OUT), jnp.float32),
            grid_spec=pltpu.PrefetchScalarGridSpec(
                num_scalar_prefetch=0,
                grid=(grid,),
                in_specs=in_specs,
                out_specs=pl.BlockSpec((tm, PAD_OUT), lambda i: (i, 0)),
            ),
            compiler_params=pltpu.CompilerParams(
                dimension_semantics=("parallel",),
                # Real footprint is ~2-12 MiB depending on TM/dtype; 32 MiB gives slack
                # while staying well under v7x's 64 MiB physical VMEM per TensorCore.
                vmem_limit_bytes=32 * 1024 * 1024,
            ),
        )(x_in, *prepped_params)

    try:
        out = run(single_buffer=True)
    except Exception:
        # Older JAX without single-buffer pipeline_mode support: fall back to default.
        out = run(single_buffer=False)

    return out[:n, :OUTPUT_CH].reshape(*lead, OUTPUT_CH)


# ---------------------------------------------------------------------------
# Parameter construction (deterministic, PyTorch nn.Linear-style uniform init)
# ---------------------------------------------------------------------------
def init_params(key):
    """Unpadded params as list of (w[in,out], b[out]) in forward order:
    8 hidden layers + output layer."""
    dims = [(INPUT_CH, W)]                          # layer 0
    for i in range(D - 1):                          # pts_linears[1..7]
        in_dim = W + INPUT_CH if i in SKIPS else W
        dims.append((in_dim, W))
    dims.append((W, OUTPUT_CH))                     # output_linear

    params = []
    for (fan_in, fan_out) in dims:
        key, kw, kb = jax.random.split(key, 3)
        bound = 1.0 / jnp.sqrt(float(fan_in))
        w = jax.random.uniform(kw, (fan_in, fan_out), jnp.float32, -bound, bound)
        b = jax.random.uniform(kb, (fan_out,), jnp.float32, -bound, bound)
        params.append((w, b))
    return params


def prep_params(params):
    """Pad / split / stack params for the kernel. Returns flat tuple in kernel order."""
    w0, b0 = params[0]
    w0_p = jnp.zeros((PAD_X, W), jnp.float32).at[:INPUT_CH].set(w0)
    b0_p = b0.reshape(1, W).astype(jnp.float32)

    w5, b5 = params[5]                               # (W + INPUT_CH, W): rows = [input, h]
    w5a = jnp.zeros((PAD_X, W), jnp.float32).at[:INPUT_CH].set(w5[:INPUT_CH])
    w5b = w5[INPUT_CH:]                              # (W, W)

    hidden_ws = [params[1][0], params[2][0], params[3][0], params[4][0],
                 w5b, params[6][0], params[7][0]]
    hidden_bs = [params[1][1], params[2][1], params[3][1], params[4][1],
                 b5, params[6][1], params[7][1]]
    w_stack = jnp.stack(hidden_ws).astype(jnp.bfloat16)   # (7, W, W) bf16
    b_stack = jnp.stack(hidden_bs).astype(jnp.float32)    # (7, W) f32

    wout, bout = params[8]
    wout_p = (jnp.zeros((W, PAD_OUT), jnp.float32)
              .at[:, :OUTPUT_CH].set(wout).astype(jnp.bfloat16))
    bout_p = jnp.zeros((1, PAD_OUT), jnp.float32).at[0, :OUTPUT_CH].set(bout)

    return (w0_p, b0_p, w5a, w_stack, b_stack, wout_p, bout_p)


def reference_forward(x, params, out_rescale=OUT_RESCALE):
    """Pure-JAX f32 replica of MLPDecoder.forward on unpadded params."""
    inp = x
    h = inp
    for i in range(D):
        w, b = params[i]
        h = jax.nn.relu(h @ w + b)
        if i in SKIPS:
            h = jnp.concatenate([inp, h], axis=-1)
    wout, bout = params[D]
    return (h @ wout + bout) * out_rescale


if __name__ == "__main__":
    key = jax.random.PRNGKey(0)
    kp, kx = jax.random.split(key)

    params = init_params(kp)
    prepped = prep_params(params)

    # batch of points: (batch=2, num_pts=256, input_ch=3) -> 512 rows -> TM=128, grid=4
    x = jax.random.normal(kx, (2, 256, INPUT_CH), jnp.float32)

    out = mlp_decoder_pallas(x, prepped)
    out = jax.block_until_ready(out)

    ref = reference_forward(x, params)
    # bf16 MXU operands (and bf16 activations on v6e+) with f32 accumulation ->
    # ~1e-2 relative error vs the f32 reference.
    max_err = float(jnp.max(jnp.abs(out - ref)))
    assert jnp.allclose(out, ref, atol=5e-2, rtol=5e-2), max_err

    print("KERNEL_OK")
</pallas_src>

<mosaic_0001>
module attributes {stable_mosaic.version = 11 : i64} {
  func.func @_mlp_kernel(%arg0: i32, %arg1: memref<128x8xf32, #tpu.memory_space<vmem>>, %arg2: memref<8x256xf32, #tpu.memory_space<vmem>>, %arg3: memref<1x256xf32, #tpu.memory_space<vmem>>, %arg4: memref<8x256xf32, #tpu.memory_space<vmem>>, %arg5: memref<7x256x256xbf16, #tpu.memory_space<vmem>>, %arg6: memref<7x256xf32, #tpu.memory_space<vmem>>, %arg7: memref<256x8xbf16, #tpu.memory_space<vmem>>, %arg8: memref<1x8xf32, #tpu.memory_space<vmem>>, %arg9: memref<128x8xf32, #tpu.memory_space<vmem>>) attributes {dimension_semantics = [#tpu.dimension_semantics<parallel>], iteration_bounds = array<i64: 4>, scalar_prefetch = 0 : i64, scratch_operands = 0 : i64, tpu.core_type = #tpu.core_type<tc>, window_params = [{transform_indices = @transform_0, window_bounds = array<i64: 128, 8>}, {pipeline_mode = #tpu.pipeline_mode<synchronous>, transform_indices = @transform_1, window_bounds = array<i64: 8, 256>}, {pipeline_mode = #tpu.pipeline_mode<synchronous>, transform_indices = @transform_2, window_bounds = array<i64: 1, 256>}, {pipeline_mode = #tpu.pipeline_mode<synchronous>, transform_indices = @transform_3, window_bounds = array<i64: 8, 256>}, {pipeline_mode = #tpu.pipeline_mode<synchronous>, transform_indices = @transform_4, window_bounds = array<i64: 7, 256, 256>}, {pipeline_mode = #tpu.pipeline_mode<synchronous>, transform_indices = @transform_5, window_bounds = array<i64: 7, 256>}, {pipeline_mode = #tpu.pipeline_mode<synchronous>, transform_indices = @transform_6, window_bounds = array<i64: 256, 8>}, {pipeline_mode = #tpu.pipeline_mode<synchronous>, transform_indices = @transform_7, window_bounds = array<i64: 1, 8>}, {transform_indices = @transform_8, window_bounds = array<i64: 128, 8>}]} {
    %c0 = arith.constant 0 : index
    %c0_0 = arith.constant 0 : index
    %0 = vector.load %arg1[%c0, %c0_0] : memref<128x8xf32, #tpu.memory_space<vmem>>, vector<128x8xf32>
    %1 = vector.extract_strided_slice %0 {offsets = [0, 0], sizes = [128, 1], strides = [1, 1]} : vector<128x8xf32> to vector<128x1xf32>
    %c0_1 = arith.constant 0 : index
    %c0_2 = arith.constant 0 : index
    %2 = vector.load %arg2[%c0_1, %c0_2] : memref<8x256xf32, #tpu.memory_space<vmem>>, vector<1x256xf32>
    %3 = vector.broadcast %1 : vector<128x1xf32> to vector<128x256xf32>
    %4 = vector.broadcast %2 : vector<1x256xf32> to vector<128x256xf32>
    %5 = arith.mulf %3, %4 : vector<128x256xf32>
    %6 = vector.extract_strided_slice %0 {offsets = [0, 1], sizes = [128, 1], strides = [1, 1]} : vector<128x8xf32> to vector<128x1xf32>
    %c1 = arith.constant 1 : index
    %c0_3 = arith.constant 0 : index
    %7 = vector.load %arg2[%c1, %c0_3] : memref<8x256xf32, #tpu.memory_space<vmem>>, vector<1x256xf32>
    %8 = vector.broadcast %6 : vector<128x1xf32> to vector<128x256xf32>
    %9 = vector.broadcast %7 : vector<1x256xf32> to vector<128x256xf32>
    %10 = arith.mulf %8, %9 : vector<128x256xf32>
    %11 = arith.addf %5, %10 : vector<128x256xf32>
    %12 = vector.extract_strided_slice %0 {offsets = [0, 2], sizes = [128, 1], strides = [1, 1]} : vector<128x8xf32> to vector<128x1xf32>
    %c2 = arith.constant 2 : index
    %c0_4 = arith.constant 0 : index
    %13 = vector.load %arg2[%c2, %c0_4] : memref<8x256xf32, #tpu.memory_space<vmem>>, vector<1x256xf32>
    %14 = vector.broadcast %12 : vector<128x1xf32> to vector<128x256xf32>
    %15 = vector.broadcast %13 : vector<1x256xf32> to vector<128x256xf32>
    %16 = arith.mulf %14, %15 : vector<128x256xf32>
    %17 = arith.addf %11, %16 : vector<128x256xf32>
    %c0_5 = arith.constant 0 : index
    %c0_6 = arith.constant 0 : index
    %18 = vector.load %arg3[%c0_5, %c0_6] : memref<1x256xf32, #tpu.memory_space<vmem>>, vector<1x256xf32>
    %19 = vector.broadcast %18 : vector<1x256xf32> to vector<128x256xf32>
    %20 = arith.addf %17, %19 : vector<128x256xf32>
    %cst = arith.constant 0.000000e+00 : f32
    %21 = vector.broadcast %cst : f32 to vector<128x256xf32>
    %22 = arith.maximumf %20, %21 : vector<128x256xf32>
    %23 = arith.truncf %22 : vector<128x256xf32> to vector<128x256xbf16>
    %c0_7 = arith.constant 0 : index
    %c0_8 = arith.constant 0 : index
    %c0_9 = arith.constant 0 : index
    %24 = vector.load %arg5[%c0_7, %c0_8, %c0_9] : memref<7x256x256xbf16, #tpu.memory_space<vmem>>, vector<1x256x256xbf16>
    %25 = vector.shape_cast %24 : vector<1x256x256xbf16> to vector<256x256xbf16>
    %cst_10 = arith.constant dense<0.000000e+00> : vector<128x256xf32>
    %26 = tpu.matmul %23, %25, %cst_10 {dimension_numbers = #tpu.dot_dimension_numbers<[1], [0], [0], [1], [0, 0, 1, 1], [], []>} : vector<128x256xbf16>, vector<256x256xbf16>, vector<128x256xf32> -> vector<128x256xf32>
    %c0_11 = arith.constant 0 : index
    %c0_12 = arith.constant 0 : index
    %27 = vector.load %arg6[%c0_11, %c0_12] : memref<7x256xf32, #tpu.memory_space<vmem>>, vector<1x256xf32>
    %28 = vector.broadcast %27 : vector<1x256xf32> to vector<128x256xf32>
    %29 = arith.addf %26, %28 : vector<128x256xf32>
    %cst_13 = arith.constant 0.000000e+00 : f32
    %30 = vector.broadcast %cst_13 : f32 to vector<128x256xf32>
    %31 = arith.maximumf %29, %30 : vector<128x256xf32>
    %32 = arith.truncf %31 : vector<128x256xf32> to vector<128x256xbf16>
    %c1_14 = arith.constant 1 : index
    %c0_15 = arith.constant 0 : index
    %c0_16 = arith.constant 0 : index
    %33 = vector.load %arg5[%c1_14, %c0_15, %c0_16] : memref<7x256x256xbf16, #tpu.memory_space<vmem>>, vector<1x256x256xbf16>
    %34 = vector.shape_cast %33 : vector<1x256x256xbf16> to vector<256x256xbf16>
    %cst_17 = arith.constant dense<0.000000e+00> : vector<128x256xf32>
    %35 = tpu.matmul %32, %34, %cst_17 {dimension_numbers = #tpu.dot_dimension_numbers<[1], [0], [0], [1], [0, 0, 1, 1], [], []>} : vector<128x256xbf16>, vector<256x256xbf16>, vector<128x256xf32> -> vector<128x256xf32>
    %c1_18 = arith.constant 1 : index
    %c0_19 = arith.constant 0 : index
    %36 = vector.load %arg6[%c1_18, %c0_19] : memref<7x256xf32, #tpu.memory_space<vmem>>, vector<1x256xf32>
    %37 = vector.broadcast %36 : vector<1x256xf32> to vector<128x256xf32>
    %38 = arith.addf %35, %37 : vector<128x256xf32>
    %cst_20 = arith.constant 0.000000e+00 : f32
    %39 = vector.broadcast %cst_20 : f32 to vector<128x256xf32>
    %40 = arith.maximumf %38, %39 : vector<128x256xf32>
    %41 = arith.truncf %40 : vector<128x256xf32> to vector<128x256xbf16>
    %c2_21 = arith.constant 2 : index
    %c0_22 = arith.constant 0 : index
    %c0_23 = arith.constant 0 : index
    %42 = vector.load %arg5[%c2_21, %c0_22, %c0_23] : memref<7x256x256xbf16, #tpu.memory_space<vmem>>, vector<1x256x256xbf16>
    %43 = vector.shape_cast %42 : vector<1x256x256xbf16> to vector<256x256xbf16>
    %cst_24 = arith.constant dense<0.000000e+00> : vector<128x256xf32>
    %44 = tpu.matmul %41, %43, %cst_24 {dimension_numbers = #tpu.dot_dimension_numbers<[1], [0], [0], [1], [0, 0, 1, 1], [], []>} : vector<128x256xbf16>, vector<256x256xbf16>, vector<128x256xf32> -> vector<128x256xf32>
    %c2_25 = arith.constant 2 : index
    %c0_26 = arith.constant 0 : index
    %45 = vector.load %arg6[%c2_25, %c0_26] : memref<7x256xf32, #tpu.memory_space<vmem>>, vector<1x256xf32>
    %46 = vector.broadcast %45 : vector<1x256xf32> to vector<128x256xf32>
    %47 = arith.addf %44, %46 : vector<128x256xf32>
    %cst_27 = arith.constant 0.000000e+00 : f32
    %48 = vector.broadcast %cst_27 : f32 to vector<128x256xf32>
    %49 = arith.maximumf %47, %48 : vector<128x256xf32>
    %50 = arith.truncf %49 : vector<128x256xf32> to vector<128x256xbf16>
    %c3 = arith.constant 3 : index
    %c0_28 = arith.constant 0 : index
    %c0_29 = arith.constant 0 : index
    %51 = vector.load %arg5[%c3, %c0_28, %c0_29] : memref<7x256x256xbf16, #tpu.memory_space<vmem>>, vector<1x256x256xbf16>
    %52 = vector.shape_cast %51 : vector<1x256x256xbf16> to vector<256x256xbf16>
    %cst_30 = arith.constant dense<0.000000e+00> : vector<128x256xf32>
    %53 = tpu.matmul %50, %52, %cst_30 {dimension_numbers = #tpu.dot_dimension_numbers<[1], [0], [0], [1], [0, 0, 1, 1], [], []>} : vector<128x256xbf16>, vector<256x256xbf16>, vector<128x256xf32> -> vector<128x256xf32>
    %c3_31 = arith.constant 3 : index
    %c0_32 = arith.constant 0 : index
    %54 = vector.load %arg6[%c3_31, %c0_32] : memref<7x256xf32, #tpu.memory_space<vmem>>, vector<1x256xf32>
    %55 = vector.broadcast %54 : vector<1x256xf32> to vector<128x256xf32>
    %56 = arith.addf %53, %55 : vector<128x256xf32>
    %cst_33 = arith.constant 0.000000e+00 : f32
    %57 = vector.broadcast %cst_33 : f32 to vector<128x256xf32>
    %58 = arith.maximumf %56, %57 : vector<128x256xf32>
    %59 = arith.truncf %58 : vector<128x256xf32> to vector<128x256xbf16>
    %c4 = arith.constant 4 : index
    %c0_34 = arith.constant 0 : index
    %c0_35 = arith.constant 0 : index
    %60 = vector.load %arg5[%c4, %c0_34, %c0_35] : memref<7x256x256xbf16, #tpu.memory_space<vmem>>, vector<1x256x256xbf16>
    %61 = vector.shape_cast %60 : vector<1x256x256xbf16> to vector<256x256xbf16>
    %cst_36 = arith.constant dense<0.000000e+00> : vector<128x256xf32>
    %62 = tpu.matmul %59, %61, %cst_36 {dimension_numbers = #tpu.dot_dimension_numbers<[1], [0], [0], [1], [0, 0, 1, 1], [], []>} : vector<128x256xbf16>, vector<256x256xbf16>, vector<128x256xf32> -> vector<128x256xf32>
    %c4_37 = arith.constant 4 : index
    %c0_38 = arith.constant 0 : index
    %63 = vector.load %arg6[%c4_37, %c0_38] : memref<7x256xf32, #tpu.memory_space<vmem>>, vector<1x256xf32>
    %64 = vector.broadcast %63 : vector<1x256xf32> to vector<128x256xf32>
    %65 = arith.addf %62, %64 : vector<128x256xf32>
    %66 = vector.extract_strided_slice %0 {offsets = [0, 0], sizes = [128, 1], strides = [1, 1]} : vector<128x8xf32> to vector<128x1xf32>
    %c0_39 = arith.constant 0 : index
    %c0_40 = arith.constant 0 : index
    %67 = vector.load %arg4[%c0_39, %c0_40] : memref<8x256xf32, #tpu.memory_space<vmem>>, vector<1x256xf32>
    %68 = vector.broadcast %66 : vector<128x1xf32> to vector<128x256xf32>
    %69 = vector.broadcast %67 : vector<1x256xf32> to vector<128x256xf32>
    %70 = arith.mulf %68, %69 : vector<128x256xf32>
    %71 = vector.extract_strided_slice %0 {offsets = [0, 1], sizes = [128, 1], strides = [1, 1]} : vector<128x8xf32> to vector<128x1xf32>
    %c1_41 = arith.constant 1 : index
    %c0_42 = arith.constant 0 : index
    %72 = vector.load %arg4[%c1_41, %c0_42] : memref<8x256xf32, #tpu.memory_space<vmem>>, vector<1x256xf32>
    %73 = vector.broadcast %71 : vector<128x1xf32> to vector<128x256xf32>
    %74 = vector.broadcast %72 : vector<1x256xf32> to vector<128x256xf32>
    %75 = arith.mulf %73, %74 : vector<128x256xf32>
    %76 = arith.addf %70, %75 : vector<128x256xf32>
    %77 = vector.extract_strided_slice %0 {offsets = [0, 2], sizes = [128, 1], strides = [1, 1]} : vector<128x8xf32> to vector<128x1xf32>
    %c2_43 = arith.constant 2 : index
    %c0_44 = arith.constant 0 : index
    %78 = vector.load %arg4[%c2_43, %c0_44] : memref<8x256xf32, #tpu.memory_space<vmem>>, vector<1x256xf32>
    %79 = vector.broadcast %77 : vector<128x1xf32> to vector<128x256xf32>
    %80 = vector.broadcast %78 : vector<1x256xf32> to vector<128x256xf32>
    %81 = arith.mulf %79, %80 : vector<128x256xf32>
    %82 = arith.addf %76, %81 : vector<128x256xf32>
    %83 = arith.addf %65, %82 : vector<128x256xf32>
    %cst_45 = arith.constant 0.000000e+00 : f32
    %84 = vector.broadcast %cst_45 : f32 to vector<128x256xf32>
    %85 = arith.maximumf %83, %84 : vector<128x256xf32>
    %86 = arith.truncf %85 : vector<128x256xf32> to vector<128x256xbf16>
    %c5 = arith.constant 5 : index
    %c0_46 = arith.constant 0 : index
    %c0_47 = arith.constant 0 : index
    %87 = vector.load %arg5[%c5, %c0_46, %c0_47] : memref<7x256x256xbf16, #tpu.memory_space<vmem>>, vector<1x256x256xbf16>
    %88 = vector.shape_cast %87 : vector<1x256x256xbf16> to vector<256x256xbf16>
    %cst_48 = arith.constant dense<0.000000e+00> : vector<128x256xf32>
    %89 = tpu.matmul %86, %88, %cst_48 {dimension_numbers = #tpu.dot_dimension_numbers<[1], [0], [0], [1], [0, 0, 1, 1], [], []>} : vector<128x256xbf16>, vector<256x256xbf16>, vector<128x256xf32> -> vector<128x256xf32>
    %c5_49 = arith.constant 5 : index
    %c0_50 = arith.constant 0 : index
    %90 = vector.load %arg6[%c5_49, %c0_50] : memref<7x256xf32, #tpu.memory_space<vmem>>, vector<1x256xf32>
    %91 = vector.broadcast %90 : vector<1x256xf32> to vector<128x256xf32>
    %92 = arith.addf %89, %91 : vector<128x256xf32>
    %cst_51 = arith.constant 0.000000e+00 : f32
    %93 = vector.broadcast %cst_51 : f32 to vector<128x256xf32>
    %94 = arith.maximumf %92, %93 : vector<128x256xf32>
    %95 = arith.truncf %94 : vector<128x256xf32> to vector<128x256xbf16>
    %c6 = arith.constant 6 : index
    %c0_52 = arith.constant 0 : index
    %c0_53 = arith.constant 0 : index
    %96 = vector.load %arg5[%c6, %c0_52, %c0_53] : memref<7x256x256xbf16, #tpu.memory_space<vmem>>, vector<1x256x256xbf16>
    %97 = vector.shape_cast %96 : vector<1x256x256xbf16> to vector<256x256xbf16>
    %cst_54 = arith.constant dense<0.000000e+00> : vector<128x256xf32>
    %98 = tpu.matmul %95, %97, %cst_54 {dimension_numbers = #tpu.dot_dimension_numbers<[1], [0], [0], [1], [0, 0, 1, 1], [], []>} : vector<128x256xbf16>, vector<256x256xbf16>, vector<128x256xf32> -> vector<128x256xf32>
    %c6_55 = arith.constant 6 : index
    %c0_56 = arith.constant 0 : index
    %99 = vector.load %arg6[%c6_55, %c0_56] : memref<7x256xf32, #tpu.memory_space<vmem>>, vector<1x256xf32>
    %100 = vector.broadcast %99 : vector<1x256xf32> to vector<128x256xf32>
    %101 = arith.addf %98, %100 : vector<128x256xf32>
    %cst_57 = arith.constant 0.000000e+00 : f32
    %102 = vector.broadcast %cst_57 : f32 to vector<128x256xf32>
    %103 = arith.maximumf %101, %102 : vector<128x256xf32>
    %104 = arith.truncf %103 : vector<128x256xf32> to vector<128x256xbf16>
    %c0_58 = arith.constant 0 : index
    %c0_59 = arith.constant 0 : index
    %105 = vector.load %arg7[%c0_58, %c0_59] : memref<256x8xbf16, #tpu.memory_space<vmem>>, vector<256x8xbf16>
    %cst_60 = arith.constant dense<0.000000e+00> : vector<128x8xf32>
    %106 = tpu.matmul %104, %105, %cst_60 {dimension_numbers = #tpu.dot_dimension_numbers<[1], [0], [0], [1], [0, 0, 1, 1], [], []>} : vector<128x256xbf16>, vector<256x8xbf16>, vector<128x8xf32> -> vector<128x8xf32>
    %c0_61 = arith.constant 0 : index
    %c0_62 = arith.constant 0 : index
    %107 = vector.load %arg8[%c0_61, %c0_62] : memref<1x8xf32, #tpu.memory_space<vmem>>, vector<1x8xf32>
    %108 = vector.broadcast %107 : vector<1x8xf32> to vector<128x8xf32>
    %109 = arith.addf %106, %108 : vector<128x8xf32>
    %c0_63 = arith.constant 0 : index
    %c0_64 = arith.constant 0 : index
    %110 = vector.load %arg9[%c0_63, %c0_64] : memref<128x8xf32, #tpu.memory_space<vmem>>, vector<128x8xf32>
    tpu.vector_store %arg9[%c0_63, %c0_64], %109 {strides = array<i32>} : memref<128x8xf32, #tpu.memory_space<vmem>>, vector<128x8xf32>,
    return
  }
  func.func @transform_0(%arg0: i32) -> (i32, i32) {
    %c0_i32 = arith.constant 0 : i32
    %c0_i32_0 = arith.constant 0 : i32
    return %arg0, %c0_i32 : i32, i32
  }
  func.func @transform_1(%arg0: i32) -> (i32, i32) {
    %c0_i32 = arith.constant 0 : i32
    %c0_i32_0 = arith.constant 0 : i32
    %c0_i32_1 = arith.constant 0 : i32
    return %c0_i32, %c0_i32_0 : i32, i32
  }
  func.func @transform_2(%arg0: i32) -> (i32, i32) {
    %c0_i32 = arith.constant 0 : i32
    %c0_i32_0 = arith.constant 0 : i32
    %c0_i32_1 = arith.constant 0 : i32
    return %c0_i32, %c0_i32_0 : i32, i32
  }
  func.func @transform_3(%arg0: i32) -> (i32, i32) {
    %c0_i32 = arith.constant 0 : i32
    %c0_i32_0 = arith.constant 0 : i32
    %c0_i32_1 = arith.constant 0 : i32
    return %c0_i32, %c0_i32_0 : i32, i32
  }
  func.func @transform_4(%arg0: i32) -> (i32, i32, i32) {
    %c0_i32 = arith.constant 0 : i32
    %c0_i32_0 = arith.constant 0 : i32
    %c0_i32_1 = arith.constant 0 : i32
    %c0_i32_2 = arith.constant 0 : i32
    return %c0_i32, %c0_i32_0, %c0_i32_1 : i32, i32, i32
  }
  func.func @transform_5(%arg0: i32) -> (i32, i32) {
    %c0_i32 = arith.constant 0 : i32
    %c0_i32_0 = arith.constant 0 : i32
    %c0_i32_1 = arith.constant 0 : i32
    return %c0_i32, %c0_i32_0 : i32, i32
  }
  func.func @transform_6(%arg0: i32) -> (i32, i32) {
    %c0_i32 = arith.constant 0 : i32
    %c0_i32_0 = arith.constant 0 : i32
    %c0_i32_1 = arith.constant 0 : i32
    return %c0_i32, %c0_i32_0 : i32, i32
  }
  func.func @transform_7(%arg0: i32) -> (i32, i32) {
    %c0_i32 = arith.constant 0 : i32
    %c0_i32_0 = arith.constant 0 : i32
    %c0_i32_1 = arith.constant 0 : i32
    return %c0_i32, %c0_i32_0 : i32, i32
  }
  func.func @transform_8(%arg0: i32) -> (i32, i32) {
    %c0_i32 = arith.constant 0 : i32
    %c0_i32_0 = arith.constant 0 : i32
    return %arg0, %c0_i32 : i32, i32
  }
}

module attributes {stable_mosaic.version = 11 : i64} {
  func.func @_mlp_kernel(%arg0: i32, %arg1: memref<128x8xf32, #tpu.memory_space<vmem>>, %arg2: memref<8x256xf32, #tpu.memory_space<vmem>>, %arg3: memref<1x256xf32, #tpu.memory_space<vmem>>, %arg4: memref<8x256xf32, #tpu.memory_space<vmem>>, %arg5: memref<7x256x256xbf16, #tpu.memory_space<vmem>>, %arg6: memref<7x256xf32, #tpu.memory_space<vmem>>, %arg7: memref<256x8xbf16, #tpu.memory_space<vmem>>, %arg8: memref<1x8xf32, #tpu.memory_space<vmem>>, %arg9: memref<128x8xf32, #tpu.memory_space<vmem>>) attributes {dimension_semantics = [#tpu.dimension_semantics<parallel>], iteration_bounds = array<i64: 4>, scalar_prefetch = 0 : i64, scratch_operands = 0 : i64, tpu.core_type = #tpu.core_type<tc>, window_params = [{transform_indices = @transform_0, window_bounds = array<i64: 128, 8>}, {pipeline_mode = #tpu.pipeline_mode<synchronous>, transform_indices = @transform_1, window_bounds = array<i64: 8, 256>}, {pipeline_mode = #tpu.pipeline_mode<synchronous>, transform_indices = @transform_2, window_bounds = array<i64: 1, 256>}, {pipeline_mode = #tpu.pipeline_mode<synchronous>, transform_indices = @transform_3, window_bounds = array<i64: 8, 256>}, {pipeline_mode = #tpu.pipeline_mode<synchronous>, transform_indices = @transform_4, window_bounds = array<i64: 7, 256, 256>}, {pipeline_mode = #tpu.pipeline_mode<synchronous>, transform_indices = @transform_5, window_bounds = array<i64: 7, 256>}, {pipeline_mode = #tpu.pipeline_mode<synchronous>, transform_indices = @transform_6, window_bounds = array<i64: 256, 8>}, {pipeline_mode = #tpu.pipeline_mode<synchronous>, transform_indices = @transform_7, window_bounds = array<i64: 1, 8>}, {transform_indices = @transform_8, window_bounds = array<i64: 128, 8>}]} {
    %c0 = arith.constant 0 : index
    %c0_0 = arith.constant 0 : index
    %0 = vector.load %arg1[%c0, %c0_0] : memref<128x8xf32, #tpu.memory_space<vmem>>, vector<128x8xf32>
    %1 = vector.extract_strided_slice %0 {offsets = [0, 0], sizes = [128, 1], strides = [1, 1]} : vector<128x8xf32> to vector<128x1xf32>
    %c0_1 = arith.constant 0 : index
    %c0_2 = arith.constant 0 : index
    %2 = vector.load %arg2[%c0_1, %c0_2] : memref<8x256xf32, #tpu.memory_space<vmem>>, vector<1x256xf32>
    %3 = vector.broadcast %1 : vector<128x1xf32> to vector<128x256xf32>
    %4 = vector.broadcast %2 : vector<1x256xf32> to vector<128x256xf32>
    %5 = arith.mulf %3, %4 : vector<128x256xf32>
    %6 = vector.extract_strided_slice %0 {offsets = [0, 1], sizes = [128, 1], strides = [1, 1]} : vector<128x8xf32> to vector<128x1xf32>
    %c1 = arith.constant 1 : index
    %c0_3 = arith.constant 0 : index
    %7 = vector.load %arg2[%c1, %c0_3] : memref<8x256xf32, #tpu.memory_space<vmem>>, vector<1x256xf32>
    %8 = vector.broadcast %6 : vector<128x1xf32> to vector<128x256xf32>
    %9 = vector.broadcast %7 : vector<1x256xf32> to vector<128x256xf32>
    %10 = arith.mulf %8, %9 : vector<128x256xf32>
    %11 = arith.addf %5, %10 : vector<128x256xf32>
    %12 = vector.extract_strided_slice %0 {offsets = [0, 2], sizes = [128, 1], strides = [1, 1]} : vector<128x8xf32> to vector<128x1xf32>
    %c2 = arith.constant 2 : index
    %c0_4 = arith.constant 0 : index
    %13 = vector.load %arg2[%c2, %c0_4] : memref<8x256xf32, #tpu.memory_space<vmem>>, vector<1x256xf32>
    %14 = vector.broadcast %12 : vector<128x1xf32> to vector<128x256xf32>
    %15 = vector.broadcast %13 : vector<1x256xf32> to vector<128x256xf32>
    %16 = arith.mulf %14, %15 : vector<128x256xf32>
    %17 = arith.addf %11, %16 : vector<128x256xf32>
    %c0_5 = arith.constant 0 : index
    %c0_6 = arith.constant 0 : index
    %18 = vector.load %arg3[%c0_5, %c0_6] : memref<1x256xf32, #tpu.memory_space<vmem>>, vector<1x256xf32>
    %19 = vector.broadcast %18 : vector<1x256xf32> to vector<128x256xf32>
    %20 = arith.addf %17, %19 : vector<128x256xf32>
    %cst = arith.constant 0.000000e+00 : f32
    %21 = vector.broadcast %cst : f32 to vector<128x256xf32>
    %22 = arith.maximumf %20, %21 : vector<128x256xf32>
    %23 = arith.truncf %22 : vector<128x256xf32> to vector<128x256xbf16>
    %c0_7 = arith.constant 0 : index
    %c0_8 = arith.constant 0 : index
    %c0_9 = arith.constant 0 : index
    %24 = vector.load %arg5[%c0_7, %c0_8, %c0_9] : memref<7x256x256xbf16, #tpu.memory_space<vmem>>, vector<1x256x256xbf16>
    %25 = vector.shape_cast %24 : vector<1x256x256xbf16> to vector<256x256xbf16>
    %cst_10 = arith.constant dense<0.000000e+00> : vector<128x256xf32>
    %26 = tpu.matmul %23, %25, %cst_10 {dimension_numbers = #tpu.dot_dimension_numbers<[1], [0], [0], [1], [0, 0, 1, 1], [], []>} : vector<128x256xbf16>, vector<256x256xbf16>, vector<128x256xf32> -> vector<128x256xf32>
    %c0_11 = arith.constant 0 : index
    %c0_12 = arith.constant 0 : index
    %27 = vector.load %arg6[%c0_11, %c0_12] : memref<7x256xf32, #tpu.memory_space<vmem>>, vector<1x256xf32>
    %28 = vector.broadcast %27 : vector<1x256xf32> to vector<128x256xf32>
    %29 = arith.addf %26, %28 : vector<128x256xf32>
    %cst_13 = arith.constant 0.000000e+00 : f32
    %30 = vector.broadcast %cst_13 : f32 to vector<128x256xf32>
    %31 = arith.maximumf %29, %30 : vector<128x256xf32>
    %32 = arith.truncf %31 : vector<128x256xf32> to vector<128x256xbf16>
    %c1_14 = arith.constant 1 : index
    %c0_15 = arith.constant 0 : index
    %c0_16 = arith.constant 0 : index
    %33 = vector.load %arg5[%c1_14, %c0_15, %c0_16] : memref<7x256x256xbf16, #tpu.memory_space<vmem>>, vector<1x256x256xbf16>
    %34 = vector.shape_cast %33 : vector<1x256x256xbf16> to vector<256x256xbf16>
    %cst_17 = arith.constant dense<0.000000e+00> : vector<128x256xf32>
    %35 = tpu.matmul %32, %34, %cst_17 {dimension_numbers = #tpu.dot_dimension_numbers<[1], [0], [0], [1], [0, 0, 1, 1], [], []>} : vector<128x256xbf16>, vector<256x256xbf16>, vector<128x256xf32> -> vector<128x256xf32>
    %c1_18 = arith.constant 1 : index
    %c0_19 = arith.constant 0 : index
    %36 = vector.load %arg6[%c1_18, %c0_19] : memref<7x256xf32, #tpu.memory_space<vmem>>, vector<1x256xf32>
    %37 = vector.broadcast %36 : vector<1x256xf32> to vector<128x256xf32>
    %38 = arith.addf %35, %37 : vector<128x256xf32>
    %cst_20 = arith.constant 0.000000e+00 : f32
    %39 = vector.broadcast %cst_20 : f32 to vector<128x256xf32>
    %40 = arith.maximumf %38, %39 : vector<128x256xf32>
    %41 = arith.truncf %40 : vector<128x256xf32> to vector<128x256xbf16>
    %c2_21 = arith.constant 2 : index
    %c0_22 = arith.constant 0 : index
    %c0_23 = arith.constant 0 : index
    %42 = vector.load %arg5[%c2_21, %c0_22, %c0_23] : memref<7x256x256xbf16, #tpu.memory_space<vmem>>, vector<1x256x256xbf16>
    %43 = vector.shape_cast %42 : vector<1x256x256xbf16> to vector<256x256xbf16>
    %cst_24 = arith.constant dense<0.000000e+00> : vector<128x256xf32>
    %44 = tpu.matmul %41, %43, %cst_24 {dimension_numbers = #tpu.dot_dimension_numbers<[1], [0], [0], [1], [0, 0, 1, 1], [], []>} : vector<128x256xbf16>, vector<256x256xbf16>, vector<128x256xf32> -> vector<128x256xf32>
    %c2_25 = arith.constant 2 : index
    %c0_26 = arith.constant 0 : index
    %45 = vector.load %arg6[%c2_25, %c0_26] : memref<7x256xf32, #tpu.memory_space<vmem>>, vector<1x256xf32>
    %46 = vector.broadcast %45 : vector<1x256xf32> to vector<128x256xf32>
    %47 = arith.addf %44, %46 : vector<128x256xf32>
    %cst_27 = arith.constant 0.000000e+00 : f32
    %48 = vector.broadcast %cst_27 : f32 to vector<128x256xf32>
    %49 = arith.maximumf %47, %48 : vector<128x256xf32>
    %50 = arith.truncf %49 : vector<128x256xf32> to vector<128x256xbf16>
    %c3 = arith.constant 3 : index
    %c0_28 = arith.constant 0 : index
    %c0_29 = arith.constant 0 : index
    %51 = vector.load %arg5[%c3, %c0_28, %c0_29] : memref<7x256x256xbf16, #tpu.memory_space<vmem>>, vector<1x256x256xbf16>
    %52 = vector.shape_cast %51 : vector<1x256x256xbf16> to vector<256x256xbf16>
    %cst_30 = arith.constant dense<0.000000e+00> : vector<128x256xf32>
    %53 = tpu.matmul %50, %52, %cst_30 {dimension_numbers = #tpu.dot_dimension_numbers<[1], [0], [0], [1], [0, 0, 1, 1], [], []>} : vector<128x256xbf16>, vector<256x256xbf16>, vector<128x256xf32> -> vector<128x256xf32>
    %c3_31 = arith.constant 3 : index
    %c0_32 = arith.constant 0 : index
    %54 = vector.load %arg6[%c3_31, %c0_32] : memref<7x256xf32, #tpu.memory_space<vmem>>, vector<1x256xf32>
    %55 = vector.broadcast %54 : vector<1x256xf32> to vector<128x256xf32>
    %56 = arith.addf %53, %55 : vector<128x256xf32>
    %cst_33 = arith.constant 0.000000e+00 : f32
    %57 = vector.broadcast %cst_33 : f32 to vector<128x256xf32>
    %58 = arith.maximumf %56, %57 : vector<128x256xf32>
    %59 = arith.truncf %58 : vector<128x256xf32> to vector<128x256xbf16>
    %c4 = arith.constant 4 : index
    %c0_34 = arith.constant 0 : index
    %c0_35 = arith.constant 0 : index
    %60 = vector.load %arg5[%c4, %c0_34, %c0_35] : memref<7x256x256xbf16, #tpu.memory_space<vmem>>, vector<1x256x256xbf16>
    %61 = vector.shape_cast %60 : vector<1x256x256xbf16> to vector<256x256xbf16>
    %cst_36 = arith.constant dense<0.000000e+00> : vector<128x256xf32>
    %62 = tpu.matmul %59, %61, %cst_36 {dimension_numbers = #tpu.dot_dimension_numbers<[1], [0], [0], [1], [0, 0, 1, 1], [], []>} : vector<128x256xbf16>, vector<256x256xbf16>, vector<128x256xf32> -> vector<128x256xf32>
    %c4_37 = arith.constant 4 : index
    %c0_38 = arith.constant 0 : index
    %63 = vector.load %arg6[%c4_37, %c0_38] : memref<7x256xf32, #tpu.memory_space<vmem>>, vector<1x256xf32>
    %64 = vector.broadcast %63 : vector<1x256xf32> to vector<128x256xf32>
    %65 = arith.addf %62, %64 : vector<128x256xf32>
    %66 = vector.extract_strided_slice %0 {offsets = [0, 0], sizes = [128, 1], strides = [1, 1]} : vector<128x8xf32> to vector<128x1xf32>
    %c0_39 = arith.constant 0 : index
    %c0_40 = arith.constant 0 : index
    %67 = vector.load %arg4[%c0_39, %c0_40] : memref<8x256xf32, #tpu.memory_space<vmem>>, vector<1x256xf32>
    %68 = vector.broadcast %66 : vector<128x1xf32> to vector<128x256xf32>
    %69 = vector.broadcast %67 : vector<1x256xf32> to vector<128x256xf32>
    %70 = arith.mulf %68, %69 : vector<128x256xf32>
    %71 = vector.extract_strided_slice %0 {offsets = [0, 1], sizes = [128, 1], strides = [1, 1]} : vector<128x8xf32> to vector<128x1xf32>
    %c1_41 = arith.constant 1 : index
    %c0_42 = arith.constant 0 : index
    %72 = vector.load %arg4[%c1_41, %c0_42] : memref<8x256xf32, #tpu.memory_space<vmem>>, vector<1x256xf32>
    %73 = vector.broadcast %71 : vector<128x1xf32> to vector<128x256xf32>
    %74 = vector.broadcast %72 : vector<1x256xf32> to vector<128x256xf32>
    %75 = arith.mulf %73, %74 : vector<128x256xf32>
    %76 = arith.addf %70, %75 : vector<128x256xf32>
    %77 = vector.extract_strided_slice %0 {offsets = [0, 2], sizes = [128, 1], strides = [1, 1]} : vector<128x8xf32> to vector<128x1xf32>
    %c2_43 = arith.constant 2 : index
    %c0_44 = arith.constant 0 : index
    %78 = vector.load %arg4[%c2_43, %c0_44] : memref<8x256xf32, #tpu.memory_space<vmem>>, vector<1x256xf32>
    %79 = vector.broadcast %77 : vector<128x1xf32> to vector<128x256xf32>
    %80 = vector.broadcast %78 : vector<1x256xf32> to vector<128x256xf32>
    %81 = arith.mulf %79, %80 : vector<128x256xf32>
    %82 = arith.addf %76, %81 : vector<128x256xf32>
    %83 = arith.addf %65, %82 : vector<128x256xf32>
    %cst_45 = arith.constant 0.000000e+00 : f32
    %84 = vector.broadcast %cst_45 : f32 to vector<128x256xf32>
    %85 = arith.maximumf %83, %84 : vector<128x256xf32>
    %86 = arith.truncf %85 : vector<128x256xf32> to vector<128x256xbf16>
    %c5 = arith.constant 5 : index
    %c0_46 = arith.constant 0 : index
    %c0_47 = arith.constant 0 : index
    %87 = vector.load %arg5[%c5, %c0_46, %c0_47] : memref<7x256x256xbf16, #tpu.memory_space<vmem>>, vector<1x256x256xbf16>
    %88 = vector.shape_cast %87 : vector<1x256x256xbf16> to vector<256x256xbf16>
    %cst_48 = arith.constant dense<0.000000e+00> : vector<128x256xf32>
    %89 = tpu.matmul %86, %88, %cst_48 {dimension_numbers = #tpu.dot_dimension_numbers<[1], [0], [0], [1], [0, 0, 1, 1], [], []>} : vector<128x256xbf16>, vector<256x256xbf16>, vector<128x256xf32> -> vector<128x256xf32>
    %c5_49 = arith.constant 5 : index
    %c0_50 = arith.constant 0 : index
    %90 = vector.load %arg6[%c5_49, %c0_50] : memref<7x256xf32, #tpu.memory_space<vmem>>, vector<1x256xf32>
    %91 = vector.broadcast %90 : vector<1x256xf32> to vector<128x256xf32>
    %92 = arith.addf %89, %91 : vector<128x256xf32>
    %cst_51 = arith.constant 0.000000e+00 : f32
    %93 = vector.broadcast %cst_51 : f32 to vector<128x256xf32>
    %94 = arith.maximumf %92, %93 : vector<128x256xf32>
    %95 = arith.truncf %94 : vector<128x256xf32> to vector<128x256xbf16>
    %c6 = arith.constant 6 : index
    %c0_52 = arith.constant 0 : index
    %c0_53 = arith.constant 0 : index
    %96 = vector.load %arg5[%c6, %c0_52, %c0_53] : memref<7x256x256xbf16, #tpu.memory_space<vmem>>, vector<1x256x256xbf16>
    %97 = vector.shape_cast %96 : vector<1x256x256xbf16> to vector<256x256xbf16>
    %cst_54 = arith.constant dense<0.000000e+00> : vector<128x256xf32>
    %98 = tpu.matmul %95, %97, %cst_54 {dimension_numbers = #tpu.dot_dimension_numbers<[1], [0], [0], [1], [0, 0, 1, 1], [], []>} : vector<128x256xbf16>, vector<256x256xbf16>, vector<128x256xf32> -> vector<128x256xf32>
    %c6_55 = arith.constant 6 : index
    %c0_56 = arith.constant 0 : index
    %99 = vector.load %arg6[%c6_55, %c0_56] : memref<7x256xf32, #tpu.memory_space<vmem>>, vector<1x256xf32>
    %100 = vector.broadcast %99 : vector<1x256xf32> to vector<128x256xf32>
    %101 = arith.addf %98, %100 : vector<128x256xf32>
    %cst_57 = arith.constant 0.000000e+00 : f32
    %102 = vector.broadcast %cst_57 : f32 to vector<128x256xf32>
    %103 = arith.maximumf %101, %102 : vector<128x256xf32>
    %104 = arith.truncf %103 : vector<128x256xf32> to vector<128x256xbf16>
    %c0_58 = arith.constant 0 : index
    %c0_59 = arith.constant 0 : index
    %105 = vector.load %arg7[%c0_58, %c0_59] : memref<256x8xbf16, #tpu.memory_space<vmem>>, vector<256x8xbf16>
    %cst_60 = arith.constant dense<0.000000e+00> : vector<128x8xf32>
    %106 = tpu.matmul %104, %105, %cst_60 {dimension_numbers = #tpu.dot_dimension_numbers<[1], [0], [0], [1], [0, 0, 1, 1], [], []>} : vector<128x256xbf16>, vector<256x8xbf16>, vector<128x8xf32> -> vector<128x8xf32>
    %c0_61 = arith.constant 0 : index
    %c0_62 = arith.constant 0 : index
    %107 = vector.load %arg8[%c0_61, %c0_62] : memref<1x8xf32, #tpu.memory_space<vmem>>, vector<1x8xf32>
    %108 = vector.broadcast %107 : vector<1x8xf32> to vector<128x8xf32>
    %109 = arith.addf %106, %108 : vector<128x8xf32>
    %c0_63 = arith.constant 0 : index
    %c0_64 = arith.constant 0 : index
    %110 = vector.load %arg9[%c0_63, %c0_64] : memref<128x8xf32, #tpu.memory_space<vmem>>, vector<128x8xf32>
    tpu.vector_store %arg9[%c0_63, %c0_64], %109 {strides = array<i32>} : memref<128x8xf32, #tpu.memory_space<vmem>>, vector<128x8xf32>,
    return
  }
  func.func @transform_0(%arg0: i32) -> (i32, i32) {
    %c0_i32 = arith.constant 0 : i32
    %c0_i32_0 = arith.constant 0 : i32
    return %arg0, %c0_i32 : i32, i32
  }
  func.func @transform_1(%arg0: i32) -> (i32, i32) {
    %c0_i32 = arith.constant 0 : i32
    %c0_i32_0 = arith.constant 0 : i32
    %c0_i32_1 = arith.constant 0 : i32
    return %c0_i32, %c0_i32_0 : i32, i32
  }
  func.func @transform_2(%arg0: i32) -> (i32, i32) {
    %c0_i32 = arith.constant 0 : i32
    %c0_i32_0 = arith.constant 0 : i32
    %c0_i32_1 = arith.constant 0 : i32
    return %c0_i32, %c0_i32_0 : i32, i32
  }
  func.func @transform_3(%arg0: i32) -> (i32, i32) {
    %c0_i32 = arith.constant 0 : i32
    %c0_i32_0 = arith.constant 0 : i32
    %c0_i32_1 = arith.constant 0 : i32
    return %c0_i32, %c0_i32_0 : i32, i32
  }
  func.func @transform_4(%arg0: i32) -> (i32, i32, i32) {
    %c0_i32 = arith.constant 0 : i32
    %c0_i32_0 = arith.constant 0 : i32
    %c0_i32_1 = arith.constant 0 : i32
    %c0_i32_2 = arith.constant 0 : i32
    return %c0_i32, %c0_i32_0, %c0_i32_1 : i32, i32, i32
  }
  func.func @transform_5(%arg0: i32) -> (i32, i32) {
    %c0_i32 = arith.constant 0 : i32
    %c0_i32_0 = arith.constant 0 : i32
    %c0_i32_1 = arith.constant 0 : i32
    return %c0_i32, %c0_i32_0 : i32, i32
  }
  func.func @transform_6(%arg0: i32) -> (i32, i32) {
    %c0_i32 = arith.constant 0 : i32
    %c0_i32_0 = arith.constant 0 : i32
    %c0_i32_1 = arith.constant 0 : i32
    return %c0_i32, %c0_i32_0 : i32, i32
  }
  func.func @transform_7(%arg0: i32) -> (i32, i32) {
    %c0_i32 = arith.constant 0 : i32
    %c0_i32_0 = arith.constant 0 : i32
    %c0_i32_1 = arith.constant 0 : i32
    return %c0_i32, %c0_i32_0 : i32, i32
  }
  func.func @transform_8(%arg0: i32) -> (i32, i32) {
    %c0_i32 = arith.constant 0 : i32
    %c0_i32_0 = arith.constant 0 : i32
    return %arg0, %c0_i32 : i32, i32
  }
}

</mosaic_0001>

<bundles_post_ra>
// kernel: tpu_custom_call.1
= control target key start
LH: loop header
LB: loop body
LE: loop exit
PB: predicated region body
PF: predicated region fallthrough
CT: control target
= control target key end

     0   :  { %13 = vsyncpa [#allocation3], 0  ;;  %s4776_s27 = smov 0   ;;  %s5760_s0 = inlined_call_operand.vmem [shape: f32[512,8], index: 0, kind: input, shape index: {}]   ;;  %s5761_s1 = inlined_call_operand.vmem [shape: f32[8,256], index: 1, kind: input, shape index: {}]   ;;  %s5762_s2 = inlined_call_operand.vmem [shape: f32[1,256], index: 2, kind: input, shape index: {}]   ;;  %s5763_s3 = inlined_call_operand.vmem [shape: f32[8,256], index: 3, kind: input, shape index: {}]   ;;  %s5764_s4 = inlined_call_operand.hbm [shape: bf16[7,256,256], index: 4, kind: input, shape index: {}]   ;;  %s5765_s5 = inlined_call_operand.vmem [shape: f32[7,256], index: 5, kind: input, shape index: {}]   ;;  %s5766_s6 = inlined_call_operand.vmem [shape: bf16[256,8], index: 6, kind: input, shape index: {}]   ;;  %s5767_s7 = inlined_call_operand.vmem [shape: f32[1,8], index: 7, kind: input, shape index: {}]   ;;  %s5768_s8 = inlined_call_operand.vmem [shape: f32[512,8], index: 8, kind: output, shape index: {}]  }
   0x1 LB: > { %s3953_s28 = sadd.s32 4294967295, %s4723_s27   ;;  %p3955_p0 = scmp.ge.s32.totalorder %s4723_s27, 1  ;;  %s4723_s27 = sphi %s4776_s27, %s19_s27  }
   0x2   : > { %p223_p1 = scmp.lt.s32.totalorder %s4723_s27, 5  ;;  %s4725_s29 = smov [#allocation2]  }
   0x3   : > { %s244_s30 = sshll.u32 %s4725_s29, 4  ;;  %p4790_p3 = scmp.eq.s32.totalorder %s3953_s28, 0  ;;  %s245_s30 = int_to_ptr.vmem [resolvable:$true] %s244_s30 }
   0x4   : > { %p4784_p2 = pnand %p3955_p0, %p223_p1  ;;  %s4685_s14 = scalar_lea.hbm %s5764_s4, 28672 }
   0x5   : > { %s5773_s10 = scalar_select %p4790_p3, 1, 0 }
   0x6   : > { %s5772_s9 = scalar_select %p4784_p2, 1, 0 }
   0x7   : > { %p4285_p4 = pneg %p4784_p2  ;;  %p4686_p6 = scmp.ne.s32.totalorder %s5764_s4, %s4685_s14 }
   0x8   : > { %p4692_p10 = scmp.lt.u32.totalorder %s4685_s14, %s5764_s4 }
   0x9   : > { %p4798_p5 = pnand %p4790_p3, %p4285_p4 }
   0xb   : > { %p4687_p7 = pneg %p4798_p5 }
   0xd   : > { %p4688_p8 = pnand %p4687_p7, %p4686_p6 }
   0xf   : > { %p4689_p9 = pneg %p4688_p8 }
  0x11   : > { %p4694_p11 = pnand %p4692_p10, %p4689_p9 }
  0x13   : > { %4697 = shalt.err (!%p4694_p11)
}
  0x14   : > { %s4698_s19 = scalar_lea.vmem %s245_s30, 28672  ;;  %p4706_p1 = scmp.lt.s32.totalorder %s245_s30, %s245_s30 }
  0x15   : > { %p4699_p12 = scmp.ne.s32.totalorder %s245_s30, %s4698_s19  ;;  %p4707_p4 = scmp.lt.s32.totalorder %s4698_s19, %s4698_s19 }
  0x17   : > { %p4701_p13 = pnand %p4699_p12, %p4687_p7  ;;  %p4708_p3 = por %p4707_p4, %p4706_p1 }
  0x19   : > { %p4702_p0 = pneg %p4701_p13 }
  0x1b   : > { %p4709_p2 = pnand %p4708_p3, %p4702_p0 }
  0x1d   : > { %4712 = shalt.err (!%p4709_p2)
}
  0x1e   : > { %s4726_s20 = smov 128   ;;  %s4727_s21 = smov 8  }
  0x1f   : > { %4288 = dma.hbm_to_vmem [thread:$0]  (!%p4798_p5), %s5764_s4, 28672, %s245_s30, [#allocation3], %s4726_s20, %s4726_s20, %s4727_s21  }
  0x20   : > { %p5775_p6 = scmp.ne.s32.totalorder %s5772_s9, 0 }
  0x22   : > { %278 = sbr.rel (%p5775_p6) target bundleno = 2108 (0x83c), region = 52 }
  0x29   : > { %p5776_p8 = scmp.ne.s32.totalorder %s5773_s10, 0 }
  0x2b   : > { %4718 = dma.done.wait (%p5776_p8), [#allocation3], 28672  }
  0x2c   : > { %4720 = vsyncadd (%p5776_p8), [#allocation3], 4294938624  ;;  %s3960_s24 = sshll.u32 %s3953_s28, 4  ;;  %v4728_v0 = vmov 2   ;;  %v4729_v1 = vmov 1   ;;  %v4730_v13 = vmov 0   ;;  %v423_v51 = vlaneseq }
  0x2d   : > { %4306 = vset.pattern.permute.xlu0 %v4728_v0  ;;  %4305 = vset.pattern.permute.xlu1 %v4729_v1  ;;  %p313_p2 = scmp.lt.s32.totalorder %s3960_s24, 63  ;;  %v4333_v5 = vld [vmem:[#allocation2 + $0x4] ss:$8 sps:$4 sm:$0xff]   ;;  %v4335_v6 = vld [vmem:[#allocation2] ss:$8 sps:$4 sm:$0xff]   ;;  %vm3868_vm0 = vcmask 64512  }
  0x2e   : > { %1043 = vmatprep.subr.bf16.mxu0 %v4333_v5  ;;  %v4336_v8 = vld [vmem:[#allocation2 + $0x14] ss:$8 sps:$4 sm:$0xff]   ;;  %v4338_v9 = vld [vmem:[#allocation2 + $0x10] ss:$8 sps:$4 sm:$0xff]   ;;  %v4339_v10 = vld [vmem:[#allocation2 + $0x24] ss:$8 sps:$4 sm:$0xff]  }
  0x2f   : > { %s5792_s24 = smov (!%p313_p2, %s3960_s24), 63  ;;  %1044 = vmatpush1.bf16.msra.mxu0 %v4335_v6  ;;  %v4341_v11 = vld [vmem:[#allocation2 + $0x20] ss:$8 sps:$4 sm:$0xff]   ;;  %v4342_v12 = vld [vmem:[#allocation2 + $0x34] ss:$8 sps:$4 sm:$0xff]   ;;  %v424_v54 = vshrl.u32 %v423_v51, 7 }
  0x30   : > { %s3961_s25 = sshll.u32 %s5792_s24, 3  ;;  %1045 = vmatprep.subr.bf16.mxu0 %v4336_v8  ;;  %v4344_v14 = vld [vmem:[#allocation2 + $0x30] ss:$8 sps:$4 sm:$0xff]   ;;  %v4345_v15 = vld [vmem:[#allocation2 + $0x44] ss:$8 sps:$4 sm:$0xff]  }
  0x31   : > { %s4836_s30 = scalar_lea.vmem %s5760_s0, %s3961_s25  ;;  %v4347_v17 = vld [vmem:[#allocation2 + $0x40] ss:$8 sps:$4 sm:$0xff]   ;;  %v4348_v18 = vld [vmem:[#allocation2 + $0x54] ss:$8 sps:$4 sm:$0xff]   ;;  %v4350_v20 = vld [vmem:[#allocation2 + $0x50] ss:$8 sps:$4 sm:$0xff]   ;;  %s5707_s15 = scalar_lea.vmem %s5768_s8, %s3961_s25 }
  0x32   : > { %v325_v2 = vld [vmem:[%s4836_s30] sm:$0xff]  ;;  %v327_v3 = vld [vmem:[%s4836_s30 + $0x10] sm:$0xff]  ;;  %v326_v4 = vld [vmem:[%s4836_s30 + $0x8] sm:$0xff]  ;;  %v4896_v57 = vsub.s32 0, %v424_v54  ;;  %v4898_v58 = vsub.s32 1, %v424_v54 }
  0x33   : > { %609 = vperm.xlu0 %4306, %v325_v2   ;;  %468 = vperm.xlu1 %4305, %v325_v2   ;;  %v329_v7 = vld [vmem:[%s4836_s30 + $0x20] sm:$0xff]  ;;  %v328_v16 = vld [vmem:[%s4836_s30 + $0x18] sm:$0xff]  ;;  %v330_v19 = vld [vmem:[%s4836_s30 + $0x28] sm:$0xff] }
  0x34   : > { %1046 = vmatpush1.bf16.msra.mxu0 %v4338_v9  ;;  %v4351_v21 = vld [vmem:[#allocation2 + $0x64] ss:$8 sps:$4 sm:$0xff]   ;;  %v4849_v22 = vld [vmem:[%s4836_s30 + $0x38] sm:$0xff]  ;;  %v4353_v23 = vld [vmem:[#allocation2 + $0x60] ss:$8 sps:$4 sm:$0xff]  }
  0x35   : > { %1047 = vmatprep.subr.bf16.mxu0 %v4339_v10  ;;  %v4354_v24 = vld [vmem:[#allocation2 + $0x74] ss:$8 sps:$4 sm:$0xff]   ;;  %v4853_v25 = vld [vmem:[%s4836_s30 + $0x48] sm:$0xff]  ;;  %v4356_v26 = vld [vmem:[#allocation2 + $0x70] ss:$8 sps:$4 sm:$0xff]  }
  0x36   : > { %v4357_v27 = vld [vmem:[#allocation2 + $0x84] ss:$8 sps:$4 sm:$0xff]   ;;  %v4858_v28 = vld [vmem:[%s4836_s30 + $0x58] sm:$0xff]  ;;  %v4359_v29 = vld [vmem:[#allocation2 + $0x80] ss:$8 sps:$4 sm:$0xff]  }
  0x37   : > { %617 = vperm.xlu0 %4306, %v327_v3   ;;  %472 = vperm.xlu1 %4305, %v326_v4   ;;  %v4360_v30 = vld [vmem:[#allocation2 + $0x94] ss:$8 sps:$4 sm:$0xff]   ;;  %v4362_v31 = vld [vmem:[#allocation2 + $0x90] ss:$8 sps:$4 sm:$0xff]   ;;  %v4363_v32 = vld [vmem:[#allocation2 + $0xa4] ss:$8 sps:$4 sm:$0xff]  }
  0x38   : > { %1048 = vmatpush1.bf16.msra.mxu0 %v4341_v11  ;;  %v331_v33 = vld [vmem:[%s4836_s30 + $0x30] sm:$0xff]  ;;  %v4365_v34 = vld [vmem:[#allocation2 + $0xa0] ss:$8 sps:$4 sm:$0xff]   ;;  %v4369_v38 = vld [vmem:[#allocation2 + $0xc4] ss:$8 sps:$4 sm:$0xff]  }
  0x39   : > { %1049 = vmatprep.subr.bf16.mxu0 %v4342_v12  ;;  %v4366_v35 = vld [vmem:[#allocation2 + $0xb4] ss:$8 sps:$4 sm:$0xff]   ;;  %v333_v36 = vld [vmem:[%s4836_s30 + $0x40] sm:$0xff]  ;;  %v4368_v37 = vld [vmem:[#allocation2 + $0xb0] ss:$8 sps:$4 sm:$0xff]  }
  0x3a   : > { %v335_v39 = vld [vmem:[%s4836_s30 + $0x50] sm:$0xff]  ;;  %v337_v40 = vld [vmem:[%s4836_s30 + $0x60] sm:$0xff]  ;;  %v338_v44 = vld [vmem:[%s4836_s30 + $0x68] sm:$0xff] }
  0x3b   : > { %625 = vperm.xlu0 %4306, %v329_v7   ;;  %4307 = vset.pattern.permute.xlu1 %v4728_v0  ;;  %v4371_v41 = vld [vmem:[#allocation2 + $0xc0] ss:$8 sps:$4 sm:$0xff]   ;;  %v4372_v42 = vld [vmem:[#allocation2 + $0xd4] ss:$8 sps:$4 sm:$0xff]   ;;  %v4374_v43 = vld [vmem:[#allocation2 + $0xd0] ss:$8 sps:$4 sm:$0xff]  }
  0x3c   : > { %613 = vperm.xlu1 %4307, %v326_v4   ;;  %1050 = vmatpush1.bf16.msra.mxu0 %v4344_v14  ;;  %v4375_v45 = vld [vmem:[#allocation2 + $0xe4] ss:$8 sps:$4 sm:$0xff]   ;;  %v4377_v46 = vld [vmem:[#allocation2 + $0xe0] ss:$8 sps:$4 sm:$0xff]   ;;  %v4874_v47 = vld [vmem:[%s4836_s30 + $0x78] sm:$0xff] }
  0x3d   : > { %1051 = vmatprep.subr.bf16.mxu0 %v4345_v15  ;;  %v4378_v48 = vld [vmem:[#allocation2 + $0xf4] ss:$8 sps:$4 sm:$0xff]   ;;  %v4380_v49 = vld [vmem:[#allocation2 + $0xf0] ss:$8 sps:$4 sm:$0xff]  }
  0x3e   : > { %v339_v50 = vld [vmem:[%s4836_s30 + $0x70] sm:$0xff]  ;;  %v3964_v59 = vld [vmem:[%s5761_s1 + $0x1] ss:$8 sm:$0x3] }
  0x3f   : > { %4313 = vset.pattern.permute.xlu0 %v4730_v13  ;;  %v4130_v60 = vld [vmem:[%s5763_s3 + $0x1] ss:$8 sm:$0x3]  ;;  %v341_v61 = vld [vmem:[%s5761_s1] ss:$8 sm:$0x3]  ;;  %v4949_v12 = vrot.slane %v3964_v59, %v4896_v57 }
  0x40   : > { %344 = vperm.xlu0 %4313, %v325_v2   ;;  %4308 = vset.pattern.permute.xlu1 %v4730_v13  ;;  %v2624_v62 = vld [vmem:[%s5763_s3] ss:$8 sm:$0x3]  ;;  %v3965_v63 = vld [vmem:[%s5761_s1 + $0x2] ss:$8 sm:$0x3]  ;;  %v4919_v2 = vrot.slane %v3964_v59, %v4898_v58  ;;  %v4937_v8 = vrot.slane %v341_v61, %v4896_v57  ;;  %v4940_v9 = vrot.slane %v341_v61, %v4898_v58 }
  0x41   : > { %354 = vperm.xlu1 %4308, %v327_v3   ;;  %1052 = vmatpush1.bf16.msra.mxu0 %v4347_v17  ;;  %v4131_v5 = vld [vmem:[%s5763_s3 + $0x2] ss:$8 sm:$0x3]  ;;  %v4943_v10 = vrot.slane %v2624_v62, %v4896_v57  ;;  %v4946_v11 = vrot.slane %v2624_v62, %v4898_v58  ;;  %v4955_v14 = vrot.slane %v3965_v63, %v4898_v58 }
  0x42   : > { %1053 = vmatprep.subr.bf16.mxu0 %v4348_v18  ;;  %v4958_v15 = vrot.slane %v4131_v5, %v4896_v57 }
  0x44   : > { %349 = vperm.xlu0 %4313, %v326_v4   ;;  %v4925_v4 = vrot.slane %v4130_v60, %v4898_v58 }
  0x45   : > { %4309 = vset.pattern.permute.xlu1 %v4729_v1  ;;  %1054 = vmatpush1.bf16.msra.mxu0 %v4350_v20 }
  0x46   : > { %476 = vperm.xlu1 %4309, %v327_v3   ;;  %1055 = vmatprep.subr.bf16.mxu0 %v4351_v21  ;;  %v4922_v3 = vrot.slane %v4130_v60, %v4896_v57 }
  0x48   : > { %359 = vperm.xlu0 %4313, %v328_v16  }
  0x49   : > { %1056 = vmatpush1.bf16.msra.mxu0 %v4353_v23 }
  0x4a   : > { %480 = vperm.xlu1 %4309, %v328_v16   ;;  %1057 = vmatprep.subr.bf16.mxu0 %v4354_v24 }
  0x4c   : > { %369 = vperm.xlu0 %4313, %v330_v19  }
  0x4d   : > { %1058 = vmatpush1.bf16.msra.mxu0 %v4356_v26 }
  0x4e   : > { %4310 = vset.pattern.permute.xlu1 %v4728_v0  ;;  %1059 = vmatprep.subr.bf16.mxu0 %v4357_v27 }
  0x4f   : > { %621 = vperm.xlu1 %4310, %v328_v16   ;;  %v4961_v16 = vrot.slane %v4131_v5, %v4898_v58 }
  0x50   : > { %379 = vperm.xlu0 %4313, %v4849_v22  }
  0x51   : > { %1060 = vmatpush1.bf16.msra.mxu0 %v4359_v29 }
  0x52   : > { %1061 = vmatprep.subr.bf16.mxu0 %v4360_v30 }
  0x53   : > { %4311 = vset.pattern.permute.xlu1 %v4730_v13 }
  0x54   : > { %364 = vperm.xlu1 %4311, %v329_v7   ;;  %389 = vperm.xlu0 %4313, %v4853_v25  }
  0x55   : > { %1062 = vmatpush1.bf16.msra.mxu0 %v4362_v31 }
  0x56   : > { %1063 = vmatprep.subr.bf16.mxu0 %v4363_v32 }
  0x58   : > { %4312 = vset.pattern.permute.xlu1 %v4729_v1  ;;  %399 = vperm.xlu0 %4313, %v4858_v28  }
  0x59   : > { %484 = vperm.xlu1 %4312, %v329_v7   ;;  %1064 = vmatpush1.bf16.msra.mxu0 %v4365_v34  ;;  %v747_v7 = vld [vmem:[%s5762_s2] sm:$0x3] }
  0x5a   : > { %1065 = vmatprep.subr.bf16.mxu0 %v4366_v35  ;;  %v4964_v17 = vrot.slane %v747_v7, %v4896_v57 }
  0x5c   : > { %4322 = vset.pattern.permute.xlu0 %v4728_v0 }
  0x5d   : > { %488 = vperm.xlu1 %4312, %v330_v19   ;;  %633 = vperm.xlu0 %4322, %v331_v33  }
  0x5e   : > { %1066 = vmatpush1.bf16.msra.mxu0 %v4368_v37 }
  0x5f   : > { %1067 = vmatprep.subr.bf16.mxu0 %v4369_v38 }
  0x61   : > { %4314 = vset.pattern.permute.xlu1 %v4728_v0  ;;  %641 = vperm.xlu0 %4322, %v333_v36  }
  0x62   : > { %629 = vperm.xlu1 %4314, %v330_v19   ;;  %1068 = vmatpush1.bf16.msra.mxu0 %v4371_v41 }
  0x63   : > { %1069 = vmatprep.subr.bf16.mxu0 %v4372_v42 }
  0x65   : > { %649 = vperm.xlu0 %4322, %v335_v39  }
  0x66   : > { %4315 = vset.pattern.permute.xlu1 %v4730_v13  ;;  %1070 = vmatpush1.bf16.msra.mxu0 %v4374_v43 }
  0x67   : > { %374 = vperm.xlu1 %4315, %v331_v33   ;;  %1071 = vmatprep.subr.bf16.mxu0 %v4375_v45 }
  0x69   : > { %657 = vperm.xlu0 %4322, %v337_v40  }
  0x6a   : > { %1072 = vmatpush1.bf16.msra.mxu0 %v4377_v46 }
  0x6b   : > { %4316 = vset.pattern.permute.xlu1 %v4729_v1  ;;  %1073 = vmatprep.subr.bf16.mxu0 %v4378_v48 }
  0x6c   : > { %492 = vperm.xlu1 %4316, %v331_v33  }
  0x6d   : > { %4327 = vset.pattern.permute.xlu0 %v4730_v13 }
  0x6e   : > { %409 = vperm.xlu0 %4327, %v338_v44   ;;  %1074 = vmatpush1.bf16.msra.mxu0 %v4380_v49 }
  0x70   : > { %496 = vperm.xlu1 %4316, %v4849_v22  }
  0x72   : > { %419 = vperm.xlu0 %4327, %v4874_v47  }
  0x74   : > { %4317 = vset.pattern.permute.xlu1 %v4728_v0 }
  0x75   : > { %637 = vperm.xlu1 %4317, %v4849_v22   ;;  %v4970_v22 = vrot.slane %v747_v7, %v4898_v58 }
  0x76   : > { %4331 = vset.pattern.permute.xlu0 %v4728_v0 }
  0x77   : > { %665 = vperm.xlu0 %4331, %v339_v50  }
  0x79   : > { %4318 = vset.pattern.permute.xlu1 %v4730_v13 }
  0x7a   : > { %384 = vperm.xlu1 %4318, %v333_v36  }
  0x7e   : > { %4319 = vset.pattern.permute.xlu1 %v4729_v1 }
  0x7f   : > { %500 = vperm.xlu1 %4319, %v333_v36  }
  0x83   : > { %504 = vperm.xlu1 %4319, %v4853_v25  }
  0x87   : > { %4320 = vset.pattern.permute.xlu1 %v4728_v0 }
  0x88   : > { %645 = vperm.xlu1 %4320, %v4853_v25  }
  0x8c   : > { %4321 = vset.pattern.permute.xlu1 %v4730_v13 }
  0x8d   : > { %394 = vperm.xlu1 %4321, %v335_v39  }
  0x91   : > { %4323 = vset.pattern.permute.xlu1 %v4729_v1 }
  0x92   : > { %508 = vperm.xlu1 %4323, %v335_v39  }
  0x96   : > { %512 = vperm.xlu1 %4323, %v4858_v28  }
  0x9a   : > { %4324 = vset.pattern.permute.xlu1 %v4728_v0 }
  0x9b   : > { %653 = vperm.xlu1 %4324, %v4858_v28  }
  0x9f   : > { %4325 = vset.pattern.permute.xlu1 %v4730_v13 }
  0xa0   : > { %404 = vperm.xlu1 %4325, %v337_v40  }
  0xa4   : > { %4326 = vset.pattern.permute.xlu1 %v4729_v1 }
  0xa5   : > { %516 = vperm.xlu1 %4326, %v337_v40  }
  0xa9   : > { %520 = vperm.xlu1 %4326, %v338_v44  }
  0xad   : > { %4328 = vset.pattern.permute.xlu1 %v4728_v0 }
  0xae   : > { %661 = vperm.xlu1 %4328, %v338_v44  }
  0xb2   : > { %4329 = vset.pattern.permute.xlu1 %v4730_v13  ;;  %v469_v52 = vpop.permute.xlu1 %468  ;;  %v610_v53 = vpop.permute.xlu0 %609  ;;  %v4952_v13 = vrot.slane %v3965_v63, %v4896_v57 }
  0xb3   : > { %414 = vperm.xlu1 %4329, %v339_v50   ;;  %v543_v18 = vmul.f32 %v4919_v2, %v469_v52  ;;  %v2681_v19 = vmul.f32 %v4922_v3, %v469_v52  ;;  %v2682_v20 = vmul.f32 %v4925_v4, %v469_v52  ;;  %v542_v28 = vmul.f32 %v4949_v12, %v469_v52 }
  0xb4   : > { %v683_v29 = vmul.f32 %v4952_v13, %v610_v53  ;;  %v2758_v30 = vmul.f32 %v4958_v15, %v610_v53  ;;  %v2759_v31 = vmul.f32 %v4961_v16, %v610_v53  ;;  %v684_v32 = vmul.f32 %v4955_v14, %v610_v53 }
  0xb6   : > { %v473_v55 = vpop.permute.xlu1 %472  ;;  %v618_v56 = vpop.permute.xlu0 %617 }
  0xb7   : > { %4330 = vset.pattern.permute.xlu1 %v4729_v1  ;;  %v544_v36 = vmul.f32 %v4949_v12, %v473_v55  ;;  %v2683_v37 = vmul.f32 %v4922_v3, %v473_v55  ;;  %v4989_v38 = vmul.f32 %v4925_v4, %v473_v55  ;;  %v687_v40 = vmul.f32 %v4952_v13, %v618_v56 }
  0xb8   : > { %524 = vperm.xlu1 %4330, %v339_v50   ;;  %v688_v44 = vmul.f32 %v4955_v14, %v618_v56  ;;  %v4996_v45 = vmul.f32 %v4958_v15, %v618_v56  ;;  %v5005_v49 = vmul.f32 %v4961_v16, %v618_v56 }
  0xba   : > { %v4916_v1 = vpop.permute.xlu0 %625 }
  0xbb   : > { %v4930_v6 = vpop.permute.xlu1 %613  ;;  %v5019_v56 = vmul.f32 %v4952_v13, %v4916_v1  ;;  %v5023_v61 = vmul.f32 %v4955_v14, %v4916_v1 }
  0xbc   : > { %528 = vperm.xlu1 %4330, %v4874_v47   ;;  %v686_v53 = vmul.f32 %v4955_v14, %v4930_v6  ;;  %v685_v5 = vmul.f32 %v4952_v13, %v4930_v6 }
  0xbf   : > { %v345_v21 = vpop.permute.xlu0 %344 }
  0xc0   : > { %v433_v23 = vmul.f32 %v4937_v8, %v345_v21  ;;  %v434_v24 = vmul.f32 %v4940_v9, %v345_v21  ;;  %v2636_v25 = vmul.f32 %v4943_v10, %v345_v21  ;;  %v2637_v26 = vmul.f32 %v4946_v11, %v345_v21  ;;  %4332 = vset.pattern.permute.xlu1 %v4728_v0  ;;  %v4977_v27 = vpop.permute.xlu1 %354 }
  0xc1   : > { %669 = vperm.xlu1 %4332, %v4874_v47   ;;  %v545_v0 = vmul.f32 %v4919_v2, %v473_v55  ;;  %v438_v54 = vmul.f32 %v4940_v9, %v4977_v27  ;;  %v437_v62 = vmul.f32 %v4937_v8, %v4977_v27 }
  0xc2   : > { %v575_v33 = vadd.f32 %v543_v18, %v434_v24  ;;  %v2713_v34 = vadd.f32 %v2681_v19, %v2636_v25  ;;  %v2714_v35 = vadd.f32 %v2682_v20, %v2637_v26  ;;  %v574_v41 = vadd.f32 %v542_v28, %v433_v23 }
  0xc3   : > { %v350_v39 = vpop.permute.xlu0 %349 }
  0xc4   : > { %v435_v42 = vmul.f32 %v4937_v8, %v350_v39  ;;  %v436_v43 = vmul.f32 %v4940_v9, %v350_v39  ;;  %v5000_v47 = vadd.f32 %v2758_v30, %v2713_v34  ;;  %v5002_v48 = vadd.f32 %v2759_v31, %v2714_v35  ;;  %v4381_v35 = vld [vmem:[#allocation2 + $0x104] ss:$8 sps:$4 sm:$0xff]  }
  0xc5   : > { %v4998_v46 = vpop.permute.xlu1 %476  ;;  %v716_v52 = vadd.f32 %v684_v32, %v575_v33  ;;  %v715_v63 = vadd.f32 %v683_v29, %v574_v41  ;;  %v2638_v7 = vmul.f32 %v4943_v10, %v350_v39  ;;  %v5040_v31 = vmul.f32 %v4958_v15, %v4916_v1  ;;  %1410 = vmatprep.subr.bf16.mxu1 %v4381_v35  ;;  %v4389_v35 = vld [vmem:[#allocation2 + $0x120] ss:$8 sps:$4 sm:$0xff]  }
  0xc6   : > { %v546_v50 = vmul.f32 %v4949_v12, %v4998_v46  ;;  %v547_v51 = vmul.f32 %v4919_v2, %v4998_v46  ;;  %v576_v55 = vadd.f32 %v544_v36, %v435_v42  ;;  %v577_v60 = vadd.f32 %v545_v0, %v436_v43  ;;  %v4383_v36 = vld [vmem:[#allocation2 + $0x100] ss:$8 sps:$4 sm:$0xff]   ;;  %v4384_v0 = vld [vmem:[#allocation2 + $0x114] ss:$8 sps:$4 sm:$0xff]  }
  0xc7   : > { %v5015_v59 = vpop.permute.xlu0 %359  ;;  %v760_v25 = vadd.f32 %v4970_v22, %v716_v52  ;;  %v5044_v32 = vmul.f32 %v4961_v16, %v4916_v1  ;;  %v2760_v33 = vmul.f32 %v4958_v15, %v4930_v6  ;;  %v759_v34 = vadd.f32 %v4964_v17, %v715_v63  ;;  %1411 = vmatpush1.bf16.msra.mxu1 %v4383_v36 }
  0xc8   : > { %v579_v18 = vadd.f32 %v547_v51, %v438_v54  ;;  %v718_v20 = vadd.f32 %v686_v53, %v577_v60  ;;  %v578_v21 = vadd.f32 %v546_v50, %v437_v62  ;;  %v439_v23 = vmul.f32 %v4937_v8, %v5015_v59  ;;  %1412 = vmatprep.subr.bf16.mxu1 %v4384_v0 }
  0xc9   : > { %v481_v19 = vpop.permute.xlu1 %480  ;;  %v440_v24 = vmul.f32 %v4940_v9, %v5015_v59  ;;  %v717_v30 = vadd.f32 %v685_v5, %v576_v55  ;;  %v2639_v41 = vmul.f32 %v4946_v11, %v350_v39  ;;  %v2685_v51 = vmul.f32 %v4922_v3, %v4998_v46  ;;  %v4386_v39 = vld [vmem:[#allocation2 + $0x110] ss:$8 sps:$4 sm:$0xff]  }
  0xca   : > { %v548_v26 = vmul.f32 %v4949_v12, %v481_v19  ;;  %v549_v28 = vmul.f32 %v4919_v2, %v481_v19  ;;  %v762_v29 = vadd.f32 %v4970_v22, %v718_v20  ;;  %v720_v50 = vadd.f32 %v688_v44, %v579_v18 }
  0xcb   : > { %v761_v43 = vadd.f32 %v4964_v17, %v717_v30  ;;  %v792_v1 = vmax.f32 %v760_v25, 0.0  ;;  %v719_v53 = vadd.f32 %v687_v40, %v578_v21  ;;  %v2715_v54 = vadd.f32 %v2683_v37, %v2638_v7  ;;  %1413 = vmatpush1.bf16.msra.mxu1 %v4386_v39 }
  0xcc   : > { %v794_v42 = vmax.f32 %v762_v29, 0.0  ;;  %v580_v55 = vadd.f32 %v548_v26, %v439_v23  ;;  %v581_v60 = vadd.f32 %v549_v28, %v440_v24  ;;  %v2761_v5 = vmul.f32 %v4961_v16, %v4930_v6  ;;  %v5057_v29 = vpop.permute.xlu0 %369  ;;  %v4387_v23 = vld [vmem:[#allocation2 + $0x124] ss:$8 sps:$4 sm:$0xff]  }
  0xcd   : > { %v791_v18 = vmax.f32 %v759_v34, 0.0  ;;  %v793_v20 = vmax.f32 %v761_v43, 0.0  ;;  %v2640_v37 = vmul.f32 %v4943_v10, %v4977_v27  ;;  %v764_v21 = vadd.f32 %v4970_v22, %v720_v50  ;;  %v4390_v50 = vld [vmem:[#allocation2 + $0x134] ss:$8 sps:$4 sm:$0xff]   ;;  %1414 = vmatprep.subr.bf16.mxu1 %v4387_v23 }
  0xce   : > { %v622_v52 = vpop.permute.xlu1 %621  ;;  %v824_v44 = vpack.c.bf16 %v794_v42, %v792_v1  ;;  %v2686_v24 = vmul.f32 %v4925_v4, %v4998_v46  ;;  %v763_v6 = vadd.f32 %v4964_v17, %v719_v53  ;;  %v5065_v26 = vadd.f32 %v2760_v33, %v2715_v54 }
  0xcf   : > { %v689_v62 = vmul.f32 %v4952_v13, %v622_v52  ;;  %v690_v63 = vmul.f32 %v4955_v14, %v622_v52  ;;  %v823_v25 = vpack.c.bf16 %v793_v20, %v791_v18  ;;  %v2716_v36 = vadd.f32 %v4989_v38, %v2639_v41  ;;  %1415 = vmatpush1.bf16.msra.mxu1 %v4389_v35  ;;  %v4395_v35 = vld [vmem:[#allocation2 + $0x140] ss:$8 sps:$4 sm:$0xff]  }
  0xd0   : > { %1075 = vmatprep.mubr.bf16.mxu0 %v824_v44  ;;  %v2717_v0 = vadd.f32 %v2685_v51, %v2640_v37  ;;  %v2641_v42 = vmul.f32 %v4946_v11, %v4977_v27  ;;  %v2642_v46 = vmul.f32 %v4943_v10, %v5015_v59  ;;  %v2643_v33 = vmul.f32 %v4946_v11, %v5015_v59  ;;  %v5080_v41 = vpop.permute.xlu0 %379 }
  0xd1   : > { %v721_v40 = vadd.f32 %v689_v62, %v580_v55  ;;  %v722_v7 = vadd.f32 %v690_v63, %v581_v60  ;;  %v2687_v43 = vmul.f32 %v4922_v3, %v481_v19  ;;  %1076 = vmatmul.mubr.bf16.vlgmr.msra.gmra.mrb[0].mxu0 %v823_v25  ;;  %v2688_v1 = vmul.f32 %v4925_v4, %v481_v19  ;;  %v4392_v63 = vld [vmem:[#allocation2 + $0x130] ss:$8 sps:$4 sm:$0xff]  }
  0xd2   : > { %v796_v53 = vmax.f32 %v764_v21, 0.0  ;;  %v795_v38 = vmax.f32 %v763_v6, 0.0  ;;  %v443_v27 = vmul.f32 %v4937_v8, %v5057_v29  ;;  %v5082_v51 = vadd.f32 %v2761_v5, %v2716_v36  ;;  %1416 = vmatprep.subr.bf16.mxu1 %v4390_v50 }
  0xd3   : > { %v365_v28 = vpop.permute.xlu1 %364  ;;  %v766_v30 = vadd.f32 %v4970_v22, %v722_v7  ;;  %v765_v34 = vadd.f32 %v4964_v17, %v721_v40  ;;  %v5085_v59 = vadd.f32 %v4996_v45, %v2717_v0  ;;  %v2764_v60 = vmul.f32 %v4958_v15, %v622_v52  ;;  %v4393_v40 = vld [vmem:[#allocation2 + $0x144] ss:$8 sps:$4 sm:$0xff]   ;;  %1417 = vmatpush1.bf16.msra.mxu1 %v4392_v63 }
  0xd4   : > { %v2765_v62 = vmul.f32 %v4961_v16, %v622_v52  ;;  %v2718_v39 = vadd.f32 %v2686_v24, %v2641_v42  ;;  %v442_v44 = vmul.f32 %v4940_v9, %v365_v28  ;;  %v2644_v18 = vmul.f32 %v4943_v10, %v365_v28  ;;  %1418 = vmatprep.subr.bf16.mxu1 %v4393_v40  ;;  %v4399_v63 = vld [vmem:[#allocation2 + $0x164] ss:$8 sps:$4 sm:$0xff]  }
  0xd5   : > { %v798_v54 = vmax.f32 %v766_v30, 0.0  ;;  %v797_v55 = vmax.f32 %v765_v34, 0.0  ;;  %v2645_v20 = vmul.f32 %v4946_v11, %v365_v28  ;;  %v441_v23 = vmul.f32 %v4937_v8, %v365_v28  ;;  %v4396_v28 = vld [vmem:[#allocation2 + $0x154] ss:$8 sps:$4 sm:$0xff]  }
  0xd6   : > { %v5098_v24 = vadd.f32 %v5005_v49, %v2718_v39  ;;  %v2719_v25 = vadd.f32 %v2687_v43, %v2642_v46  ;;  %v2720_v6 = vadd.f32 %v2688_v1, %v2643_v33  ;;  %v2646_v34 = vmul.f32 %v4943_v10, %v5057_v29 }
  0xd7   : > { %v826_v19 = vpack.c.bf16 %v798_v54, %v796_v53  ;;  %v825_v5 = vpack.c.bf16 %v797_v55, %v795_v38  ;;  %v5102_v53 = vpop.permute.xlu0 %389  ;;  %v444_v46 = vmul.f32 %v4940_v9, %v5057_v29  ;;  %v2647_v55 = vmul.f32 %v4946_v11, %v5057_v29  ;;  %1419 = vmatpush1.bf16.msra.mxu1 %v4395_v35 }
  0xd8   : > { %v485_v37 = vpop.permute.xlu1 %484  ;;  %v5104_v54 = vadd.f32 %v2764_v60, %v2719_v25  ;;  %v5106_v49 = vadd.f32 %v2765_v62, %v2720_v6  ;;  %v4398_v60 = vld [vmem:[#allocation2 + $0x150] ss:$8 sps:$4 sm:$0xff]   ;;  %1420 = vmatprep.subr.bf16.mxu1 %v4396_v28 }
  0xd9   : > { %v550_v45 = vmul.f32 %v4949_v12, %v485_v37  ;;  %v551_v7 = vmul.f32 %v4919_v2, %v485_v37  ;;  %v2689_v52 = vmul.f32 %v4922_v3, %v485_v37  ;;  %v2690_v21 = vmul.f32 %v4925_v4, %v485_v37  ;;  %1085 = vmatprep.mubr.bf16.mxu0 %v826_v19 }
  0xda   : > { %1086 = vmatmul.mubr.bf16.gmra.mrb[4].mxu0 %v825_v5 }
  0xdb   : > { %v583_v30 = vadd.f32 %v551_v7, %v442_v44  ;;  %v2721_v36 = vadd.f32 %v2689_v52, %v2644_v18  ;;  %v2722_v0 = vadd.f32 %v2690_v21, %v2645_v20  ;;  %v582_v42 = vadd.f32 %v550_v45, %v441_v23  ;;  %v5128_v45 = vpop.permute.xlu0 %399  ;;  %1421 = vmatpush1.bf16.msra.mxu1 %v4398_v60  ;;  %v4401_v7 = vld [vmem:[#allocation2 + $0x160] ss:$8 sps:$4 sm:$0xff]   ;;  %v4402_v23 = vld [vmem:[#allocation2 + $0x174] ss:$8 sps:$4 sm:$0xff]  }
  0xdc   : > { %v489_v50 = vpop.permute.xlu1 %488  ;;  %1422 = vmatprep.subr.bf16.mxu1 %v4399_v63 }
  0xdd   : > { %v552_v33 = vmul.f32 %v4949_v12, %v489_v50  ;;  %v553_v43 = vmul.f32 %v4919_v2, %v489_v50  ;;  %v2691_v1 = vmul.f32 %v4922_v3, %v489_v50  ;;  %v2692_v38 = vmul.f32 %v4925_v4, %v489_v50 }
  0xde   : > { %v724_v19 = vadd.f32 %v5023_v61, %v583_v30  ;;  %v723_v62 = vadd.f32 %v5019_v56, %v582_v42  ;;  %v5119_v39 = vadd.f32 %v5040_v31, %v2721_v36  ;;  %v5122_v44 = vadd.f32 %v5044_v32, %v2722_v0  ;;  %v4404_v36 = vld [vmem:[#allocation2 + $0x170] ss:$8 sps:$4 sm:$0xff]  }
  0xdf   : > { %v2723_v18 = vadd.f32 %v2691_v1, %v2646_v34  ;;  %v584_v20 = vadd.f32 %v552_v33, %v443_v27  ;;  %v585_v37 = vadd.f32 %v553_v43, %v444_v46  ;;  %v2724_v32 = vadd.f32 %v2692_v38, %v2647_v55  ;;  %1423 = vmatpush1.bf16.msra.mxu1 %v4401_v7  ;;  %v634_v50 = vpop.permute.xlu0 %633  ;;  %v4405_v33 = vld [vmem:[#allocation2 + $0x184] ss:$8 sps:$4 sm:$0xff]  }
  0xe0   : > { %v768_v31 = vadd.f32 %v4970_v22, %v724_v19  ;;  %v767_v27 = vadd.f32 %v4964_v17, %v723_v62  ;;  %1424 = vmatprep.subr.bf16.mxu1 %v4402_v23  ;;  %v2770_v19 = vmul.f32 %v4958_v15, %v634_v50  ;;  %v2771_v60 = vmul.f32 %v4961_v16, %v634_v50  ;;  %v4407_v62 = vld [vmem:[#allocation2 + $0x180] ss:$8 sps:$4 sm:$0xff]   ;;  %v4410_v23 = vld [vmem:[#allocation2 + $0x190] ss:$8 sps:$4 sm:$0xff]  }
  0xe1   : > { %v630_v29 = vpop.permute.xlu1 %629  ;;  %v695_v7 = vmul.f32 %v4952_v13, %v634_v50 }
  0xe2   : > { %v693_v5 = vmul.f32 %v4952_v13, %v630_v29  ;;  %v694_v61 = vmul.f32 %v4955_v14, %v630_v29  ;;  %v2768_v40 = vmul.f32 %v4958_v15, %v630_v29  ;;  %v2769_v56 = vmul.f32 %v4961_v16, %v630_v29  ;;  %v4408_v29 = vld [vmem:[#allocation2 + $0x194] ss:$8 sps:$4 sm:$0xff]  }
  0xe3   : > { %v800_v0 = vmax.f32 %v768_v31, 0.0  ;;  %v799_v28 = vmax.f32 %v767_v27, 0.0  ;;  %1425 = vmatpush1.bf16.msra.mxu1 %v4404_v36  ;;  %v448_v31 = vmul.f32 %v4940_v9, %v5080_v41  ;;  %v2651_v36 = vmul.f32 %v4946_v11, %v5080_v41 }
  0xe4   : > { %v725_v52 = vadd.f32 %v693_v5, %v584_v20  ;;  %v726_v21 = vadd.f32 %v694_v61, %v585_v37  ;;  %v5132_v25 = vadd.f32 %v2768_v40, %v2723_v18  ;;  %v5136_v35 = vadd.f32 %v2769_v56, %v2724_v32  ;;  %1426 = vmatprep.subr.bf16.mxu1 %v4405_v33 }
  0xe5   : > { %v447_v56 = vmul.f32 %v4937_v8, %v5080_v41  ;;  %v696_v32 = vmul.f32 %v4955_v14, %v634_v50 }
  0xe6   : > { %v375_v6 = vpop.permute.xlu1 %374  ;;  %v770_v30 = vadd.f32 %v4970_v22, %v726_v21  ;;  %v769_v34 = vadd.f32 %v4964_v17, %v725_v52 }
  0xe7   : > { %v445_v55 = vmul.f32 %v4937_v8, %v375_v6  ;;  %v446_v5 = vmul.f32 %v4940_v9, %v375_v6  ;;  %v2648_v61 = vmul.f32 %v4943_v10, %v375_v6  ;;  %v2649_v40 = vmul.f32 %v4946_v11, %v375_v6  ;;  %1427 = vmatpush1.bf16.msra.mxu1 %v4407_v62 }
  0xe8   : > { %v802_v42 = vmax.f32 %v770_v30, 0.0  ;;  %v801_v46 = vmax.f32 %v769_v34, 0.0  ;;  %v2650_v6 = vmul.f32 %v4943_v10, %v5080_v41  ;;  %1428 = vmatprep.subr.bf16.mxu1 %v4408_v29 }
  0xea   : > { %v828_v43 = vpack.c.bf16 %v802_v42, %v800_v0  ;;  %v827_v1 = vpack.c.bf16 %v801_v46, %v799_v28  ;;  %v4411_v28 = vld [vmem:[#allocation2 + $0x1a4] ss:$8 sps:$4 sm:$0xff]  }
  0xeb   : > { %v493_v38 = vpop.permute.xlu1 %492  ;;  %1429 = vmatpush1.bf16.msra.mxu1 %v4410_v23 }
  0xec   : > { %v554_v63 = vmul.f32 %v4949_v12, %v493_v38  ;;  %v555_v18 = vmul.f32 %v4919_v2, %v493_v38  ;;  %v2693_v20 = vmul.f32 %v4922_v3, %v493_v38  ;;  %v2694_v37 = vmul.f32 %v4925_v4, %v493_v38  ;;  %1095 = vmatprep.mubr.bf16.mxu0 %v828_v43  ;;  %v4413_v38 = vld [vmem:[#allocation2 + $0x1a0] ss:$8 sps:$4 sm:$0xff]  }
  0xed   : > { %1096 = vmatmul.mubr.bf16.gmra.mrb[8].mxu0 %v827_v1  ;;  %1430 = vmatprep.subr.bf16.mxu1 %v4411_v28  ;;  %v4419_v28 = vld [vmem:[#allocation2 + $0x1c0] ss:$8 sps:$4 sm:$0xff]  }
  0xee   : > { %v586_v52 = vadd.f32 %v554_v63, %v445_v55  ;;  %v587_v21 = vadd.f32 %v555_v18, %v446_v5  ;;  %v2725_v30 = vadd.f32 %v2693_v20, %v2648_v61  ;;  %v2726_v34 = vadd.f32 %v2694_v37, %v2649_v40  ;;  %v4414_v18 = vld [vmem:[#allocation2 + $0x1b4] ss:$8 sps:$4 sm:$0xff]  }
  0xef   : > { %v497_v27 = vpop.permute.xlu1 %496  ;;  %1431 = vmatpush1.bf16.msra.mxu1 %v4413_v38 }
  0xf0   : > { %v556_v0 = vmul.f32 %v4949_v12, %v497_v27  ;;  %v557_v42 = vmul.f32 %v4919_v2, %v497_v27  ;;  %v2695_v50 = vmul.f32 %v4922_v3, %v497_v27  ;;  %v2696_v46 = vmul.f32 %v4925_v4, %v497_v27  ;;  %1432 = vmatprep.subr.bf16.mxu1 %v4414_v18 }
  0xf1   : > { %v5162_v33 = vadd.f32 %v2770_v19, %v2725_v30  ;;  %v5164_v43 = vadd.f32 %v2771_v60, %v2726_v34  ;;  %v727_v1 = vadd.f32 %v695_v7, %v586_v52  ;;  %v728_v55 = vadd.f32 %v696_v32, %v587_v21  ;;  %v4417_v32 = vld [vmem:[#allocation2 + $0x1c4] ss:$8 sps:$4 sm:$0xff]   ;;  %v642_v34 = vpop.permute.xlu0 %641 }
  0xf2   : > { %v588_v62 = vadd.f32 %v556_v0, %v447_v56  ;;  %v589_v41 = vadd.f32 %v557_v42, %v448_v31  ;;  %v2727_v20 = vadd.f32 %v2695_v50, %v2650_v6  ;;  %v2728_v37 = vadd.f32 %v2696_v46, %v2651_v36  ;;  %v4416_v31 = vld [vmem:[#allocation2 + $0x1b0] ss:$8 sps:$4 sm:$0xff]  }
  0xf3   : > { %v772_v7 = vadd.f32 %v4970_v22, %v728_v55  ;;  %v771_v56 = vadd.f32 %v4964_v17, %v727_v1  ;;  %1433 = vmatpush1.bf16.msra.mxu1 %v4416_v31  ;;  %v699_v46 = vmul.f32 %v4952_v13, %v642_v34  ;;  %v4420_v55 = vld [vmem:[#allocation2 + $0x1d4] ss:$8 sps:$4 sm:$0xff]  }
  0xf4   : > { %v638_v63 = vpop.permute.xlu1 %637  ;;  %1434 = vmatprep.subr.bf16.mxu1 %v4417_v32  ;;  %v2654_v32 = vmul.f32 %v4943_v10, %v5102_v53 }
  0xf5   : > { %v697_v29 = vmul.f32 %v4952_v13, %v638_v63  ;;  %v698_v5 = vmul.f32 %v4955_v14, %v638_v63  ;;  %v2772_v19 = vmul.f32 %v4958_v15, %v638_v63  ;;  %v2773_v60 = vmul.f32 %v4961_v16, %v638_v63 }
  0xf6   : > { %v804_v6 = vmax.f32 %v772_v7, 0.0  ;;  %v803_v0 = vmax.f32 %v771_v56, 0.0 }
  0xf7   : > { %v729_v61 = vadd.f32 %v697_v29, %v588_v62  ;;  %v730_v40 = vadd.f32 %v698_v5, %v589_v41  ;;  %v5172_v52 = vadd.f32 %v2772_v19, %v2727_v20  ;;  %v5174_v21 = vadd.f32 %v2773_v60, %v2728_v37  ;;  %1435 = vmatpush1.bf16.msra.mxu1 %v4419_v28 }
  0xf8   : > { %v700_v19 = vmul.f32 %v4955_v14, %v642_v34  ;;  %v2774_v60 = vmul.f32 %v4958_v15, %v642_v34  ;;  %1436 = vmatprep.subr.bf16.mxu1 %v4420_v55 }
  0xf9   : > { %v385_v27 = vpop.permute.xlu1 %384  ;;  %v774_v23 = vadd.f32 %v4970_v22, %v730_v40  ;;  %v773_v30 = vadd.f32 %v4964_v17, %v729_v61  ;;  %v2775_v61 = vmul.f32 %v4961_v16, %v642_v34  ;;  %v452_v34 = vmul.f32 %v4940_v9, %v5102_v53 }
  0xfa   : > { %v449_v38 = vmul.f32 %v4937_v8, %v385_v27  ;;  %v450_v62 = vmul.f32 %v4940_v9, %v385_v27  ;;  %v2652_v41 = vmul.f32 %v4943_v10, %v385_v27  ;;  %v2653_v63 = vmul.f32 %v4946_v11, %v385_v27 }
  0xfb   : > { %v806_v36 = vmax.f32 %v774_v23, 0.0  ;;  %v805_v42 = vmax.f32 %v773_v30, 0.0  ;;  %v2655_v27 = vmul.f32 %v4946_v11, %v5102_v53  ;;  %v451_v30 = vmul.f32 %v4937_v8, %v5102_v53 }
  0xfd   : > { %v830_v50 = vpack.c.bf16 %v806_v36, %v804_v6  ;;  %v829_v1 = vpack.c.bf16 %v805_v42, %v803_v0 }
  0xfe   : > { %v501_v18 = vpop.permute.xlu1 %500 }
  0xff   : > { %v558_v20 = vmul.f32 %v4949_v12, %v501_v18  ;;  %v559_v37 = vmul.f32 %v4919_v2, %v501_v18  ;;  %v2697_v29 = vmul.f32 %v4922_v3, %v501_v18  ;;  %v2698_v5 = vmul.f32 %v4925_v4, %v501_v18  ;;  %1105 = vmatprep.mubr.bf16.mxu0 %v830_v50 }
 0x100   : > { %1106 = vmatmul.mubr.bf16.gmra.mrb[12].mxu0 %v829_v1 }
 0x101   : > { %v590_v40 = vadd.f32 %v558_v20, %v449_v38  ;;  %v591_v7 = vadd.f32 %v559_v37, %v450_v62  ;;  %v2729_v56 = vadd.f32 %v2697_v29, %v2652_v41  ;;  %v2730_v31 = vadd.f32 %v2698_v5, %v2653_v63 }
 0x102   : > { %v505_v23 = vpop.permute.xlu1 %504 }
 0x103   : > { %v560_v6 = vmul.f32 %v4949_v12, %v505_v23  ;;  %v561_v36 = vmul.f32 %v4919_v2, %v505_v23  ;;  %v2699_v0 = vmul.f32 %v4922_v3, %v505_v23  ;;  %v2700_v42 = vmul.f32 %v4925_v4, %v505_v23 }
 0x104   : > { %v5202_v28 = vadd.f32 %v2774_v60, %v2729_v56  ;;  %v5204_v50 = vadd.f32 %v2775_v61, %v2730_v31  ;;  %v731_v1 = vadd.f32 %v699_v46, %v590_v40  ;;  %v732_v55 = vadd.f32 %v700_v19, %v591_v7 }
 0x105   : > { %v2731_v38 = vadd.f32 %v2699_v0, %v2654_v32  ;;  %v2732_v62 = vadd.f32 %v2700_v42, %v2655_v27  ;;  %v592_v41 = vadd.f32 %v560_v6, %v451_v30  ;;  %v593_v63 = vadd.f32 %v561_v36, %v452_v34  ;;  %v650_v6 = vpop.permute.xlu0 %649 }
 0x106   : > { %5777 = vst [vmem:[#allocation5_spill] sm:$0xff] %v5204_v50  ;;  %v776_v5 = vadd.f32 %v4970_v22, %v732_v55  ;;  %v775_v60 = vadd.f32 %v4964_v17, %v731_v1 }
 0x107   : > { %v646_v18 = vpop.permute.xlu1 %645 }
 0x108   : > { %v701_v53 = vmul.f32 %v4952_v13, %v646_v18  ;;  %v702_v20 = vmul.f32 %v4955_v14, %v646_v18  ;;  %v2776_v37 = vmul.f32 %v4958_v15, %v646_v18  ;;  %v2777_v29 = vmul.f32 %v4961_v16, %v646_v18 }
 0x109   : > { %v808_v32 = vmax.f32 %v776_v5, 0.0  ;;  %v807_v23 = vmax.f32 %v775_v60, 0.0 }
 0x10a   : > { %v733_v61 = vadd.f32 %v701_v53, %v592_v41  ;;  %v734_v46 = vadd.f32 %v702_v20, %v593_v63  ;;  %v5212_v19 = vadd.f32 %v2776_v37, %v2731_v38  ;;  %v5214_v40 = vadd.f32 %v2777_v29, %v2732_v62 }
 0x10b   : > { %v703_v53 = vmul.f32 %v4952_v13, %v650_v6  ;;  %v704_v20 = vmul.f32 %v4955_v14, %v650_v6  ;;  %v2778_v37 = vmul.f32 %v4958_v15, %v650_v6  ;;  %v2779_v29 = vmul.f32 %v4961_v16, %v650_v6 }
 0x10c   : > { %5778 = vst [vmem:[#allocation6_spill] sm:$0xff] %v5212_v19  ;;  %5779 = vst [vmem:[#allocation7_spill] sm:$0xff] %v5214_v40  ;;  %v395_v7 = vpop.permute.xlu1 %394  ;;  %v778_v56 = vadd.f32 %v4970_v22, %v734_v46  ;;  %v777_v31 = vadd.f32 %v4964_v17, %v733_v61  ;;  %v4426_v40 = vld [vmem:[#allocation2 + $0x1f4] ss:$8 sps:$4 sm:$0xff]  }
 0x10d   : > { %v453_v0 = vmul.f32 %v4937_v8, %v395_v7  ;;  %v454_v42 = vmul.f32 %v4940_v9, %v395_v7  ;;  %v2656_v1 = vmul.f32 %v4943_v10, %v395_v7  ;;  %v2657_v55 = vmul.f32 %v4946_v11, %v395_v7 }
 0x10e   : > { %v810_v27 = vmax.f32 %v778_v56, 0.0  ;;  %v809_v30 = vmax.f32 %v777_v31, 0.0  ;;  %v2658_v56 = vmul.f32 %v4943_v10, %v5128_v45  ;;  %v2659_v31 = vmul.f32 %v4946_v11, %v5128_v45 }
 0x110   : > { %v832_v34 = vpack.c.bf16 %v810_v27, %v808_v32  ;;  %v831_v36 = vpack.c.bf16 %v809_v30, %v807_v23 }
 0x111   : > { %v509_v38 = vpop.permute.xlu1 %508 }
 0x112   : > { %v562_v62 = vmul.f32 %v4949_v12, %v509_v38  ;;  %v563_v41 = vmul.f32 %v4919_v2, %v509_v38  ;;  %v2701_v63 = vmul.f32 %v4922_v3, %v509_v38  ;;  %v2702_v18 = vmul.f32 %v4925_v4, %v509_v38  ;;  %1115 = vmatprep.mubr.bf16.mxu0 %v832_v34 }
 0x113   : > { %1116 = vmatmul.mubr.bf16.gmra.mrb[16].mxu0 %v831_v36  ;;  %v455_v36 = vmul.f32 %v4937_v8, %v5128_v45 }
 0x114   : > { %v594_v5 = vadd.f32 %v562_v62, %v453_v0  ;;  %v595_v60 = vadd.f32 %v563_v41, %v454_v42  ;;  %v2733_v61 = vadd.f32 %v2701_v63, %v2656_v1  ;;  %v2734_v46 = vadd.f32 %v2702_v18, %v2657_v55 }
 0x115   : > { %v513_v7 = vpop.permute.xlu1 %512  ;;  %v456_v0 = vmul.f32 %v4940_v9, %v5128_v45 }
 0x116   : > { %v564_v32 = vmul.f32 %v4949_v12, %v513_v7  ;;  %v565_v27 = vmul.f32 %v4919_v2, %v513_v7  ;;  %v2703_v23 = vmul.f32 %v4922_v3, %v513_v7  ;;  %v2704_v30 = vmul.f32 %v4925_v4, %v513_v7 }
 0x117   : > { %v5238_v34 = vadd.f32 %v2778_v37, %v2733_v61  ;;  %v5240_v6 = vadd.f32 %v2779_v29, %v2734_v46  ;;  %v735_v42 = vadd.f32 %v703_v53, %v594_v5  ;;  %v736_v1 = vadd.f32 %v704_v20, %v595_v60 }
 0x118   : > { %v2735_v55 = vadd.f32 %v2703_v23, %v2658_v56  ;;  %v2736_v38 = vadd.f32 %v2704_v30, %v2659_v31  ;;  %v596_v62 = vadd.f32 %v564_v32, %v455_v36  ;;  %v597_v41 = vadd.f32 %v565_v27, %v456_v0  ;;  %v658_v56 = vpop.permute.xlu0 %657 }
 0x119   : > { %5780 = vst [vmem:[#allocation8_spill] sm:$0xff] %v5238_v34  ;;  %5781 = vst [vmem:[#allocation9_spill] sm:$0xff] %v5240_v6  ;;  %v780_v46 = vadd.f32 %v4970_v22, %v736_v1  ;;  %v779_v7 = vadd.f32 %v4964_v17, %v735_v42 }
 0x11a   : > { %v654_v63 = vpop.permute.xlu1 %653 }
 0x11b   : > { %v705_v18 = vmul.f32 %v4952_v13, %v654_v63  ;;  %v706_v37 = vmul.f32 %v4955_v14, %v654_v63  ;;  %v2780_v29 = vmul.f32 %v4958_v15, %v654_v63  ;;  %v2781_v61 = vmul.f32 %v4961_v16, %v654_v63 }
 0x11c   : > { %v812_v27 = vmax.f32 %v780_v46, 0.0  ;;  %v811_v30 = vmax.f32 %v779_v7, 0.0  ;;  %v410_v63 = vpop.permute.xlu0 %409  ;;  %v707_v46 = vmul.f32 %v4952_v13, %v658_v56  ;;  %v708_v7 = vmul.f32 %v4955_v14, %v658_v56 }
 0x11d   : > { %v737_v45 = vadd.f32 %v705_v18, %v596_v62  ;;  %v738_v53 = vadd.f32 %v706_v37, %v597_v41  ;;  %v5252_v20 = vadd.f32 %v2780_v29, %v2735_v55  ;;  %v5254_v5 = vadd.f32 %v2781_v61, %v2736_v38 }
 0x11f   : > { %5782 = vst [vmem:[#allocation10_spill] sm:$0xff] %v5252_v20  ;;  %5783 = vst [vmem:[#allocation11_spill] sm:$0xff] %v5254_v5  ;;  %v405_v60 = vpop.permute.xlu1 %404  ;;  %v782_v31 = vadd.f32 %v4970_v22, %v738_v53  ;;  %v781_v32 = vadd.f32 %v4964_v17, %v737_v45  ;;  %v2662_v45 = vmul.f32 %v4943_v10, %v410_v63 }
 0x120   : > { %v457_v42 = vmul.f32 %v4937_v8, %v405_v60  ;;  %v458_v55 = vmul.f32 %v4940_v9, %v405_v60  ;;  %v2660_v38 = vmul.f32 %v4943_v10, %v405_v60  ;;  %v2661_v62 = vmul.f32 %v4946_v11, %v405_v60  ;;  %v4422_v60 = vld [vmem:[#allocation2 + $0x1d0] ss:$8 sps:$4 sm:$0xff]  }
 0x121   : > { %v814_v23 = vmax.f32 %v782_v31, 0.0  ;;  %v813_v36 = vmax.f32 %v781_v32, 0.0  ;;  %v2663_v53 = vmul.f32 %v4946_v11, %v410_v63  ;;  %1437 = vmatpush1.bf16.msra.mxu1 %v4422_v60 }
 0x123   : > { %v834_v0 = vpack.c.bf16 %v814_v23, %v812_v27  ;;  %v833_v1 = vpack.c.bf16 %v813_v36, %v811_v30  ;;  %v2782_v30 = vmul.f32 %v4958_v15, %v658_v56  ;;  %v2783_v36 = vmul.f32 %v4961_v16, %v658_v56 }
 0x124   : > { %v517_v41 = vpop.permute.xlu1 %516 }
 0x125   : > { %v566_v18 = vmul.f32 %v4949_v12, %v517_v41  ;;  %v567_v37 = vmul.f32 %v4919_v2, %v517_v41  ;;  %v2705_v29 = vmul.f32 %v4922_v3, %v517_v41  ;;  %v2706_v61 = vmul.f32 %v4925_v4, %v517_v41  ;;  %1125 = vmatprep.mubr.bf16.mxu0 %v834_v0 }
 0x126   : > { %1126 = vmatmul.mubr.bf16.gmra.mrb[20].mxu0 %v833_v1  ;;  %v459_v0 = vmul.f32 %v4937_v8, %v410_v63  ;;  %v460_v41 = vmul.f32 %v4940_v9, %v410_v63 }
 0x127   : > { %v598_v31 = vadd.f32 %v566_v18, %v457_v42  ;;  %v599_v32 = vadd.f32 %v567_v37, %v458_v55  ;;  %v2737_v27 = vadd.f32 %v2705_v29, %v2660_v38  ;;  %v2738_v23 = vadd.f32 %v2706_v61, %v2661_v62  ;;  %v4423_v55 = vld [vmem:[#allocation2 + $0x1e4] ss:$8 sps:$4 sm:$0xff]   ;;  %v4425_v38 = vld [vmem:[#allocation2 + $0x1e0] ss:$8 sps:$4 sm:$0xff]  }
 0x128   : > { %v521_v5 = vpop.permute.xlu1 %520  ;;  %1438 = vmatprep.subr.bf16.mxu1 %v4423_v55 }
 0x129   : > { %v568_v1 = vmul.f32 %v4949_v12, %v521_v5  ;;  %v569_v20 = vmul.f32 %v4919_v2, %v521_v5  ;;  %v2707_v6 = vmul.f32 %v4922_v3, %v521_v5  ;;  %v2708_v42 = vmul.f32 %v4925_v4, %v521_v5  ;;  %1439 = vmatpush1.bf16.msra.mxu1 %v4425_v38 }
 0x12a   : > { %v5278_v62 = vadd.f32 %v2782_v30, %v2737_v27  ;;  %v5280_v18 = vadd.f32 %v2783_v36, %v2738_v23  ;;  %v740_v56 = vadd.f32 %v708_v7, %v599_v32  ;;  %v739_v37 = vadd.f32 %v707_v46, %v598_v31  ;;  %v4428_v23 = vld [vmem:[#allocation2 + $0x1f0] ss:$8 sps:$4 sm:$0xff]   ;;  %1440 = vmatprep.subr.bf16.mxu1 %v4426_v40 }
 0x12b   : > { %v2739_v63 = vadd.f32 %v2707_v6, %v2662_v45  ;;  %v2740_v29 = vadd.f32 %v2708_v42, %v2663_v53  ;;  %v600_v61 = vadd.f32 %v568_v1, %v459_v0  ;;  %v601_v60 = vadd.f32 %v569_v20, %v460_v41  ;;  %v420_v53 = vpop.permute.xlu0 %419 }
 0x12c   : > { %v784_v7 = vadd.f32 %v4970_v22, %v740_v56  ;;  %v783_v46 = vadd.f32 %v4964_v17, %v739_v37 }
 0x12d   : > { %v662_v34 = vpop.permute.xlu1 %661  ;;  %1441 = vmatpush1.bf16.msra.mxu1 %v4428_v23 }
 0x12e   : > { %v709_v19 = vmul.f32 %v4952_v13, %v662_v34  ;;  %v710_v5 = vmul.f32 %v4955_v14, %v662_v34  ;;  %v2784_v50 = vmul.f32 %v4958_v15, %v662_v34  ;;  %v2785_v27 = vmul.f32 %v4961_v16, %v662_v34 }
 0x12f   : > { %v816_v34 = vmax.f32 %v784_v7, 0.0  ;;  %v815_v41 = vmax.f32 %v783_v46, 0.0  ;;  %v666_v55 = vpop.permute.xlu0 %665 }
 0x130   : > { %v741_v6 = vadd.f32 %v709_v19, %v600_v61  ;;  %v742_v45 = vadd.f32 %v710_v5, %v601_v60  ;;  %v5288_v20 = vadd.f32 %v2784_v50, %v2739_v63  ;;  %v5290_v31 = vadd.f32 %v2785_v27, %v2740_v29 }
 0x131   : > { %v711_v5 = vmul.f32 %v4952_v13, %v666_v55  ;;  %v712_v27 = vmul.f32 %v4955_v14, %v666_v55  ;;  %v2786_v23 = vmul.f32 %v4958_v15, %v666_v55  ;;  %v2787_v7 = vmul.f32 %v4961_v16, %v666_v55 }
 0x132   : > { %v415_v32 = vpop.permute.xlu1 %414  ;;  %v786_v30 = vadd.f32 %v4970_v22, %v742_v45  ;;  %v785_v36 = vadd.f32 %v4964_v17, %v741_v6 }
 0x133   : > { %v461_v19 = vmul.f32 %v4937_v8, %v415_v32  ;;  %v462_v38 = vmul.f32 %v4940_v9, %v415_v32  ;;  %v2664_v50 = vmul.f32 %v4943_v10, %v415_v32  ;;  %v2665_v56 = vmul.f32 %v4946_v11, %v415_v32 }
 0x134   : > { %v818_v0 = vmax.f32 %v786_v30, 0.0  ;;  %v817_v1 = vmax.f32 %v785_v36, 0.0  ;;  %v2666_v36 = vmul.f32 %v4943_v10, %v420_v53 }
 0x136   : > { %v836_v42 = vpack.c.bf16 %v818_v0, %v816_v34  ;;  %v835_v40 = vpack.c.bf16 %v817_v1, %v815_v41  ;;  %v2667_v34 = vmul.f32 %v4946_v11, %v420_v53 }
 0x137   : > { %v525_v37 = vpop.permute.xlu1 %524 }
 0x138   : > { %v570_v63 = vmul.f32 %v4949_v12, %v525_v37  ;;  %v571_v29 = vmul.f32 %v4919_v2, %v525_v37  ;;  %v2709_v61 = vmul.f32 %v4922_v3, %v525_v37  ;;  %v2710_v60 = vmul.f32 %v4925_v4, %v525_v37  ;;  %1135 = vmatprep.mubr.bf16.mxu0 %v836_v42 }
 0x139   : > { %1136 = vmatmul.mubr.bf16.gmra.mrb[24].mxu0 %v835_v40  ;;  %v463_v40 = vmul.f32 %v4937_v8, %v420_v53 }
 0x13a   : > { %v602_v46 = vadd.f32 %v570_v63, %v461_v19  ;;  %v603_v6 = vadd.f32 %v571_v29, %v462_v38  ;;  %v2741_v45 = vadd.f32 %v2709_v61, %v2664_v50  ;;  %v2742_v32 = vadd.f32 %v2710_v60, %v2665_v56 }
 0x13b   : > { %v529_v30 = vpop.permute.xlu1 %528  ;;  %v464_v19 = vmul.f32 %v4940_v9, %v420_v53 }
 0x13c   : > { %v572_v0 = vmul.f32 %v4949_v12, %v529_v30  ;;  %v573_v41 = vmul.f32 %v4919_v2, %v529_v30  ;;  %v2711_v1 = vmul.f32 %v4922_v3, %v529_v30  ;;  %v2712_v42 = vmul.f32 %v4925_v4, %v529_v30 }
 0x13d   : > { %v5312_v37 = vadd.f32 %v2786_v23, %v2741_v45  ;;  %v5314_v55 = vadd.f32 %v2787_v7, %v2742_v32  ;;  %v743_v38 = vadd.f32 %v711_v5, %v602_v46  ;;  %v744_v10 = vadd.f32 %v712_v27, %v603_v6  ;;  %v871_v6 = vld [vmem:[%s5765_s5] ss:$8 sm:$0x3] }
 0x13e   : > { %v2743_v50 = vadd.f32 %v2711_v1, %v2666_v36  ;;  %v2744_v11 = vadd.f32 %v2712_v42, %v2667_v34  ;;  %v604_v56 = vadd.f32 %v572_v0, %v463_v40  ;;  %v605_v12 = vadd.f32 %v573_v41, %v464_v19  ;;  %v4429_v1 = vld [vmem:[#allocation2 + $0x200] ss:$8 sps:$4 sm:$0xff]   ;;  %v4431_v42 = vld [vmem:[#allocation2 + $0x204] ss:$8 sps:$4 sm:$0xff]   ;;  %v4434_v19 = vld [vmem:[#allocation2 + $0x214] ss:$8 sps:$4 sm:$0xff]  }
 0x13f   : > { %v788_v61 = vadd.f32 %v4970_v22, %v744_v10  ;;  %v787_v8 = vadd.f32 %v4964_v17, %v743_v38  ;;  %v5334_v45 = vrot.slane %v871_v6, %v4896_v57  ;;  %v5337_v32 = vrot.slane %v871_v6, %v4898_v58  ;;  %1777 = vmatprep.subr.bf16.mxu0 %v4431_v42 }
 0x140   : > { %v670_v63 = vpop.permute.xlu1 %669  ;;  %1778 = vmatpush1.bf16.msra.mxu0 %v4429_v1 }
 0x141   : > { %v713_v2 = vmul.f32 %v4952_v13, %v670_v63  ;;  %v714_v3 = vmul.f32 %v4955_v14, %v670_v63  ;;  %v2788_v4 = vmul.f32 %v4958_v15, %v670_v63  ;;  %v2789_v29 = vmul.f32 %v4961_v16, %v670_v63  ;;  %1779 = vmatprep.subr.bf16.mxu0 %v4434_v19  ;;  %v4437_v63 = vld [vmem:[#allocation2 + $0x224] ss:$8 sps:$4 sm:$0xff]  }
 0x142   : > { %v820_v23 = vmax.f32 %v788_v61, 0.0  ;;  %v819_v7 = vmax.f32 %v787_v8, 0.0 }
 0x143   : > { %v745_v9 = vadd.f32 %v713_v2, %v604_v56  ;;  %v746_v53 = vadd.f32 %v714_v3, %v605_v12  ;;  %v5324_v60 = vadd.f32 %v2788_v4, %v2743_v50  ;;  %v5326_v5 = vadd.f32 %v2789_v29, %v2744_v11  ;;  %v4432_v56 = vld [vmem:[#allocation2 + $0x210] ss:$8 sps:$4 sm:$0xff]  }
 0x144   : > { %1780 = vmatpush1.bf16.msra.mxu0 %v4432_v56 }
 0x145   : > { %v790_v27 = vadd.f32 %v4970_v22, %v746_v53  ;;  %v789_v13 = vadd.f32 %v4964_v17, %v745_v9  ;;  %v4435_v9 = vld [vmem:[#allocation2 + $0x220] ss:$8 sps:$4 sm:$0xff]   ;;  %1781 = vmatprep.subr.bf16.mxu0 %v4437_v63 }
 0x147   : > { %v822_v14 = vmax.f32 %v790_v27, 0.0  ;;  %v821_v15 = vmax.f32 %v789_v13, 0.0  ;;  %v4440_v13 = vld [vmem:[#allocation2 + $0x234] ss:$8 sps:$4 sm:$0xff]  }
 0x148   : > { %1782 = vmatpush1.bf16.msra.mxu0 %v4435_v9  ;;  %v4453_v9 = vld [vmem:[#allocation2 + $0x280] ss:$8 sps:$4 sm:$0xff]  }
 0x149   : > { %v838_v46 = vpack.c.bf16 %v822_v14, %v820_v23  ;;  %v837_v16 = vpack.c.bf16 %v821_v15, %v819_v7  ;;  %1783 = vmatprep.subr.bf16.mxu0 %v4440_v13  ;;  %v4461_v13 = vld [vmem:[#allocation2 + $0x2a4] ss:$8 sps:$4 sm:$0xff]  }
 0x14b   : > { %1145 = vmatprep.mubr.bf16.mxu0 %v838_v46 }
 0x14c   : > { %1146 = vmatmul.mubr.bf16.gmra.mrb[28].mxu0 %v837_v16  ;;  %v4438_v16 = vld [vmem:[#allocation2 + $0x230] ss:$8 sps:$4 sm:$0xff]  }
 0x14d   : > { %1784 = vmatpush1.bf16.msra.mxu0 %v4438_v16 }
 0x1a4   : > { %v1077_v22 = vpop.f32.mrb[0].mxu0 }
 0x1a5   : > { %v1078_v17 = vadd.f32 %v1077_v22, %v5334_v45  ;;  %v1079_v30 = vpop.f32.mrb[1].mxu0  ;;  %v4443_v22 = vld [vmem:[#allocation2 + $0x244] ss:$8 sps:$4 sm:$0xff]  }
 0x1a6   : > { %v1080_v36 = vadd.f32 %v1079_v30, %v5337_v32  ;;  %v1081_v34 = vpop.f32.mrb[2].mxu0  ;;  %v4441_v30 = vld [vmem:[#allocation2 + $0x240] ss:$8 sps:$4 sm:$0xff]   ;;  %1785 = vmatprep.subr.bf16.mxu0 %v4443_v22  ;;  %v4462_v22 = vld [vmem:[#allocation2 + $0x2b0] ss:$8 sps:$4 sm:$0xff]  }
 0x1a7   : > { %v1082_v0 = vadd.f32 %v1081_v34, %v5334_v45  ;;  %v1083_v41 = vpop.f32.mrb[3].mxu0  ;;  %v1156_v38 = vmax.f32 %v1078_v17, 0.0  ;;  %1786 = vmatpush1.bf16.msra.mxu0 %v4441_v30  ;;  %v4444_v34 = vld [vmem:[#allocation2 + $0x250] ss:$8 sps:$4 sm:$0xff]  }
 0x1a8   : > { %v1084_v40 = vadd.f32 %v1083_v41, %v5337_v32  ;;  %v1157_v50 = vmax.f32 %v1080_v36, 0.0  ;;  %v4446_v36 = vld [vmem:[#allocation2 + $0x254] ss:$8 sps:$4 sm:$0xff]  }
 0x1a9   : > { %v1158_v10 = vmax.f32 %v1082_v0, 0.0  ;;  %1787 = vmatprep.subr.bf16.mxu0 %v4446_v36  ;;  %v4449_v0 = vld [vmem:[#allocation2 + $0x264] ss:$8 sps:$4 sm:$0xff]  }
 0x1aa   : > { %v1159_v11 = vmax.f32 %v1084_v40, 0.0  ;;  %v4447_v40 = vld [vmem:[#allocation2 + $0x260] ss:$8 sps:$4 sm:$0xff]   ;;  %v4467_v36 = vld [vmem:[#allocation2 + $0x2c4] ss:$8 sps:$4 sm:$0xff]  }
 0x1ab   : > { %v1188_v12 = vpack.c.bf16 %v1158_v10, %v1156_v38  ;;  %1788 = vmatpush1.bf16.msra.mxu0 %v4444_v34  ;;  %v4452_v10 = vld [vmem:[#allocation2 + $0x274] ss:$8 sps:$4 sm:$0xff]  }
 0x1ac   : > { %v1189_v3 = vpack.c.bf16 %v1159_v11, %v1157_v50  ;;  %1789 = vmatprep.subr.bf16.mxu0 %v4449_v0 }
 0x1ad   : > { %v1087_v2 = vpop.f32.mrb[4].mxu0 }
 0x1ae   : > { %v1088_v4 = vadd.f32 %v1087_v2, %v5334_v45  ;;  %v1089_v29 = vpop.f32.mrb[5].mxu0  ;;  %1442 = vmatprep.mubr.bf16.mxu1 %v1189_v3  ;;  %v4450_v2 = vld [vmem:[#allocation2 + $0x270] ss:$8 sps:$4 sm:$0xff]  }
 0x1af   : > { %v1090_v61 = vadd.f32 %v1089_v29, %v5337_v32  ;;  %v1091_v8 = vpop.f32.mrb[6].mxu0  ;;  %1443 = vmatmul.mubr.bf16.vlgmr.msra.gmra.mrb[0].mxu1 %v1188_v12  ;;  %1790 = vmatpush1.bf16.msra.mxu0 %v4447_v40  ;;  %v4455_v29 = vld [vmem:[#allocation2 + $0x284] ss:$8 sps:$4 sm:$0xff]   ;;  %v4465_v40 = vld [vmem:[#allocation2 + $0x2c0] ss:$8 sps:$4 sm:$0xff]  }
 0x1b0   : > { %v1092_v53 = vadd.f32 %v1091_v8, %v5334_v45  ;;  %v1093_v27 = vpop.f32.mrb[7].mxu0  ;;  %v1160_v14 = vmax.f32 %v1088_v4, 0.0  ;;  %1791 = vmatprep.subr.bf16.mxu0 %v4452_v10 }
 0x1b1   : > { %v1094_v23 = vadd.f32 %v1093_v27, %v5337_v32  ;;  %v1161_v15 = vmax.f32 %v1090_v61, 0.0  ;;  %v4456_v27 = vld [vmem:[#allocation2 + $0x290] ss:$8 sps:$4 sm:$0xff]  }
 0x1b2   : > { %v1162_v7 = vmax.f32 %v1092_v53, 0.0  ;;  %v4458_v53 = vld [vmem:[#allocation2 + $0x294] ss:$8 sps:$4 sm:$0xff]  }
 0x1b3   : > { %v1163_v46 = vmax.f32 %v1094_v23, 0.0  ;;  %1792 = vmatpush1.bf16.msra.mxu0 %v4450_v2  ;;  %v4459_v23 = vld [vmem:[#allocation2 + $0x2a0] ss:$8 sps:$4 sm:$0xff]  }
 0x1b4   : > { %v1190_v6 = vpack.c.bf16 %v1162_v7, %v1160_v14  ;;  %1793 = vmatprep.subr.bf16.mxu0 %v4455_v29  ;;  %v4464_v14 = vld [vmem:[#allocation2 + $0x2b4] ss:$8 sps:$4 sm:$0xff]  }
 0x1b5   : > { %v1191_v17 = vpack.c.bf16 %v1163_v46, %v1161_v15 }
 0x1b7   : > { %1452 = vmatprep.mubr.bf16.mxu1 %v1191_v17  ;;  %1794 = vmatpush1.bf16.msra.mxu0 %v4453_v9 }
 0x1b8   : > { %1453 = vmatmul.mubr.bf16.gmra.mrb[4].mxu1 %v1190_v6  ;;  %1795 = vmatprep.subr.bf16.mxu0 %v4458_v53 }
 0x1bb   : > { %1796 = vmatpush1.bf16.msra.mxu0 %v4456_v27 }
 0x1bc   : > { %1797 = vmatprep.subr.bf16.mxu0 %v4461_v13 }
 0x1bf   : > { %1798 = vmatpush1.bf16.msra.mxu0 %v4459_v23 }
 0x1c0   : > { %v1097_v41 = vpop.f32.mrb[8].mxu0  ;;  %1799 = vmatprep.subr.bf16.mxu0 %v4464_v14 }
 0x1c1   : > { %v1098_v1 = vadd.f32 %v1097_v41, %v5334_v45  ;;  %v1099_v42 = vpop.f32.mrb[9].mxu0 }
 0x1c2   : > { %v1100_v19 = vadd.f32 %v1099_v42, %v5337_v32  ;;  %v1101_v38 = vpop.f32.mrb[10].mxu0 }
 0x1c3   : > { %v1102_v50 = vadd.f32 %v1101_v38, %v5334_v45  ;;  %v1103_v11 = vpop.f32.mrb[11].mxu0  ;;  %v1164_v12 = vmax.f32 %v1098_v1, 0.0  ;;  %1800 = vmatpush1.bf16.msra.mxu0 %v4462_v22  ;;  %v4470_v38 = vld [vmem:[#allocation2 + $0x2d4] ss:$8 sps:$4 sm:$0xff]  }
 0x1c4   : > { %v1104_v56 = vadd.f32 %v1103_v11, %v5337_v32  ;;  %v1165_v3 = vmax.f32 %v1100_v19, 0.0  ;;  %1801 = vmatprep.subr.bf16.mxu0 %v4467_v36 }
 0x1c5   : > { %v1166_v63 = vmax.f32 %v1102_v50, 0.0  ;;  %v4468_v50 = vld [vmem:[#allocation2 + $0x2d0] ss:$8 sps:$4 sm:$0xff]  }
 0x1c6   : > { %v1167_v4 = vmax.f32 %v1104_v56, 0.0 }
 0x1c7   : > { %v1192_v61 = vpack.c.bf16 %v1166_v63, %v1164_v12  ;;  %1802 = vmatpush1.bf16.msra.mxu0 %v4465_v40  ;;  %v4476_v40 = vld [vmem:[#allocation2 + $0x2f4] ss:$8 sps:$4 sm:$0xff]  }
 0x1c8   : > { %v1193_v8 = vpack.c.bf16 %v1167_v4, %v1165_v3  ;;  %1803 = vmatprep.subr.bf16.mxu0 %v4470_v38  ;;  %v4474_v38 = vld [vmem:[#allocation2 + $0x2f0] ss:$8 sps:$4 sm:$0xff]  }
 0x1ca   : > { %1462 = vmatprep.mubr.bf16.mxu1 %v1193_v8 }
 0x1cb   : > { %1463 = vmatmul.mubr.bf16.gmra.mrb[8].mxu1 %v1192_v61  ;;  %1804 = vmatpush1.bf16.msra.mxu0 %v4468_v50 }
 0x1d3   : > { %v1107_v7 = vpop.f32.mrb[12].mxu0 }
 0x1d4   : > { %v1108_v15 = vadd.f32 %v1107_v7, %v5334_v45  ;;  %v1109_v46 = vpop.f32.mrb[13].mxu0 }
 0x1d5   : > { %v1110_v16 = vadd.f32 %v1109_v46, %v5337_v32  ;;  %v1111_v6 = vpop.f32.mrb[14].mxu0 }
 0x1d6   : > { %v1112_v17 = vadd.f32 %v1111_v6, %v5334_v45  ;;  %v1113_v30 = vpop.f32.mrb[15].mxu0  ;;  %v1168_v0 = vmax.f32 %v1108_v15, 0.0 }
 0x1d7   : > { %v1114_v34 = vadd.f32 %v1113_v30, %v5337_v32  ;;  %v1169_v1 = vmax.f32 %v1110_v16, 0.0 }
 0x1d8   : > { %v1170_v41 = vmax.f32 %v1112_v17, 0.0 }
 0x1d9   : > { %v1171_v42 = vmax.f32 %v1114_v34, 0.0 }
 0x1da   : > { %v1194_v19 = vpack.c.bf16 %v1170_v41, %v1168_v0 }
 0x1db   : > { %v1195_v10 = vpack.c.bf16 %v1171_v42, %v1169_v1  ;;  %v4473_v1 = vld [vmem:[#allocation2 + $0x2e4] ss:$8 sps:$4 sm:$0xff]   ;;  %v4471_v42 = vld [vmem:[#allocation2 + $0x2e0] ss:$8 sps:$4 sm:$0xff]  }
 0x1dc   : > { %1805 = vmatprep.subr.bf16.mxu0 %v4473_v1 }
 0x1dd   : > { %1472 = vmatprep.mubr.bf16.mxu1 %v1195_v10  ;;  %1806 = vmatpush1.bf16.msra.mxu0 %v4471_v42 }
 0x1de   : > { %1473 = vmatmul.mubr.bf16.gmra.mrb[12].mxu1 %v1194_v19  ;;  %1807 = vmatprep.subr.bf16.mxu0 %v4476_v40 }
 0x1e1   : > { %1808 = vmatpush1.bf16.msra.mxu0 %v4474_v38 }
 0x1e6   : > { %v1117_v11 = vpop.f32.mrb[16].mxu0 }
 0x1e7   : > { %v1118_v56 = vadd.f32 %v1117_v11, %v5334_v45  ;;  %v1119_v12 = vpop.f32.mrb[17].mxu0 }
 0x1e8   : > { %v1120_v63 = vadd.f32 %v1119_v12, %v5337_v32  ;;  %v1121_v2 = vpop.f32.mrb[18].mxu0 }
 0x1e9   : > { %v1122_v3 = vadd.f32 %v1121_v2, %v5334_v45  ;;  %v1123_v4 = vpop.f32.mrb[19].mxu0  ;;  %v1172_v61 = vmax.f32 %v1118_v56, 0.0 }
 0x1ea   : > { %v1124_v29 = vadd.f32 %v1123_v4, %v5337_v32  ;;  %v1173_v9 = vmax.f32 %v1120_v63, 0.0 }
 0x1eb   : > { %v1174_v8 = vmax.f32 %v1122_v3, 0.0 }
 0x1ec   : > { %v1175_v53 = vmax.f32 %v1124_v29, 0.0 }
 0x1ed   : > { %v1196_v27 = vpack.c.bf16 %v1174_v8, %v1172_v61 }
 0x1ee   : > { %v1197_v13 = vpack.c.bf16 %v1175_v53, %v1173_v9 }
 0x1f0   : > { %1482 = vmatprep.mubr.bf16.mxu1 %v1197_v13 }
 0x1f1   : > { %1483 = vmatmul.mubr.bf16.gmra.mrb[16].mxu1 %v1196_v27 }
 0x1f9   : > { %v1127_v23 = vpop.f32.mrb[20].mxu0 }
 0x1fa   : > { %v1128_v14 = vadd.f32 %v1127_v23, %v5334_v45  ;;  %v1129_v7 = vpop.f32.mrb[21].mxu0 }
 0x1fb   : > { %v1130_v15 = vadd.f32 %v1129_v7, %v5337_v32  ;;  %v1131_v46 = vpop.f32.mrb[22].mxu0 }
 0x1fc   : > { %v1132_v16 = vadd.f32 %v1131_v46, %v5334_v45  ;;  %v1133_v6 = vpop.f32.mrb[23].mxu0  ;;  %v1176_v17 = vmax.f32 %v1128_v14, 0.0 }
 0x1fd   : > { %v1134_v22 = vadd.f32 %v1133_v6, %v5337_v32  ;;  %v1177_v36 = vmax.f32 %v1130_v15, 0.0 }
 0x1fe   : > { %v1178_v30 = vmax.f32 %v1132_v16, 0.0 }
 0x1ff   : > { %v1179_v34 = vmax.f32 %v1134_v22, 0.0 }
 0x200   : > { %v1198_v0 = vpack.c.bf16 %v1178_v30, %v1176_v17 }
 0x201   : > { %v1199_v41 = vpack.c.bf16 %v1179_v34, %v1177_v36  ;;  %v3998_v34 = vld [vmem:[%s5765_s5 + $0x1] ss:$8 sm:$0x3] }
 0x203   : > { %1492 = vmatprep.mubr.bf16.mxu1 %v1199_v41 }
 0x204   : > { %1493 = vmatmul.mubr.bf16.gmra.mrb[20].mxu1 %v1198_v0  ;;  %v5375_v0 = vrot.slane %v3998_v34, %v4896_v57 }
 0x20c   : > { %v1137_v19 = vpop.f32.mrb[24].mxu0 }
 0x20d   : > { %v1138_v10 = vadd.f32 %v1137_v19, %v5334_v45  ;;  %v1139_v50 = vpop.f32.mrb[25].mxu0 }
 0x20e   : > { %v1140_v11 = vadd.f32 %v1139_v50, %v5337_v32  ;;  %v1141_v56 = vpop.f32.mrb[26].mxu0  ;;  %v4479_v50 = vld [vmem:[#allocation2 + $0x304] ss:$8 sps:$4 sm:$0xff]  }
 0x20f   : > { %v1142_v12 = vadd.f32 %v1141_v56, %v5334_v45  ;;  %v1143_v63 = vpop.f32.mrb[27].mxu0  ;;  %v1180_v3 = vmax.f32 %v1138_v10, 0.0  ;;  %v4477_v10 = vld [vmem:[#allocation2 + $0x300] ss:$8 sps:$4 sm:$0xff]   ;;  %v4482_v56 = vld [vmem:[#allocation2 + $0x314] ss:$8 sps:$4 sm:$0xff]   ;;  %2144 = vmatprep.subr.bf16.mxu1 %v4479_v50 }
 0x210   : > { %v1144_v2 = vadd.f32 %v1143_v63, %v5337_v32  ;;  %v1181_v29 = vmax.f32 %v1140_v11, 0.0  ;;  %2145 = vmatpush1.bf16.msra.mxu1 %v4477_v10 }
 0x211   : > { %v1182_v4 = vmax.f32 %v1142_v12, 0.0  ;;  %2146 = vmatprep.subr.bf16.mxu1 %v4482_v56 }
 0x212   : > { %v1183_v61 = vmax.f32 %v1144_v2, 0.0 }
 0x213   : > { %v1200_v8 = vpack.c.bf16 %v1182_v4, %v1180_v3  ;;  %v4480_v4 = vld [vmem:[#allocation2 + $0x310] ss:$8 sps:$4 sm:$0xff]  }
 0x214   : > { %v1201_v9 = vpack.c.bf16 %v1183_v61, %v1181_v29  ;;  %v4485_v61 = vld [vmem:[#allocation2 + $0x324] ss:$8 sps:$4 sm:$0xff]   ;;  %2147 = vmatpush1.bf16.msra.mxu1 %v4480_v4 }
 0x215   : > { %2148 = vmatprep.subr.bf16.mxu1 %v4485_v61 }
 0x216   : > { %1502 = vmatprep.mubr.bf16.mxu1 %v1201_v9 }
 0x217   : > { %1503 = vmatmul.mubr.bf16.gmra.mrb[24].mxu1 %v1200_v8 }
 0x21f   : > { %v1147_v53 = vpop.f32.mrb[28].mxu0 }
 0x220   : > { %v1148_v27 = vadd.f32 %v1147_v53, %v5334_v45  ;;  %v1149_v13 = vpop.f32.mrb[29].mxu0 }
 0x221   : > { %v1150_v23 = vadd.f32 %v1149_v13, %v5337_v32  ;;  %v1151_v14 = vpop.f32.mrb[30].mxu0 }
 0x222   : > { %v1152_v7 = vadd.f32 %v1151_v14, %v5334_v45  ;;  %v1153_v15 = vpop.f32.mrb[31].mxu0  ;;  %v1184_v16 = vmax.f32 %v1148_v27, 0.0  ;;  %v5378_v45 = vrot.slane %v3998_v34, %v4898_v58  ;;  %v4483_v14 = vld [vmem:[#allocation2 + $0x320] ss:$8 sps:$4 sm:$0xff]  }
 0x223   : > { %v1154_v46 = vadd.f32 %v1153_v15, %v5337_v32  ;;  %v1185_v22 = vmax.f32 %v1150_v23, 0.0  ;;  %2149 = vmatpush1.bf16.msra.mxu1 %v4483_v14  ;;  %v4501_v14 = vld [vmem:[#allocation2 + $0x380] ss:$8 sps:$4 sm:$0xff]  }
 0x224   : > { %v1186_v6 = vmax.f32 %v1152_v7, 0.0 }
 0x225   : > { %v1187_v17 = vmax.f32 %v1154_v46, 0.0  ;;  %v4488_v46 = vld [vmem:[#allocation2 + $0x334] ss:$8 sps:$4 sm:$0xff]  }
 0x226   : > { %v1202_v30 = vpack.c.bf16 %v1186_v6, %v1184_v16  ;;  %2150 = vmatprep.subr.bf16.mxu1 %v4488_v46  ;;  %v4509_v46 = vld [vmem:[#allocation2 + $0x3a4] ss:$8 sps:$4 sm:$0xff]  }
 0x227   : > { %v1203_v36 = vpack.c.bf16 %v1187_v17, %v1185_v22 }
 0x229   : > { %1512 = vmatprep.mubr.bf16.mxu1 %v1203_v36  ;;  %v4486_v36 = vld [vmem:[#allocation2 + $0x330] ss:$8 sps:$4 sm:$0xff]  }
 0x22a   : > { %1513 = vmatmul.mubr.bf16.gmra.mrb[28].mxu1 %v1202_v30 }
 0x22b   : > { %2151 = vmatpush1.bf16.msra.mxu1 %v4486_v36 }
 0x282   : > { %v1444_v41 = vpop.f32.mrb[0].mxu1 }
 0x283   : > { %v1445_v32 = vadd.f32 %v1444_v41, %v5375_v0  ;;  %v1446_v1 = vpop.f32.mrb[1].mxu1  ;;  %v4491_v41 = vld [vmem:[#allocation2 + $0x344] ss:$8 sps:$4 sm:$0xff]  }
 0x284   : > { %v1447_v42 = vadd.f32 %v1446_v1, %v5378_v45  ;;  %v1448_v40 = vpop.f32.mrb[2].mxu1  ;;  %v4489_v1 = vld [vmem:[#allocation2 + $0x340] ss:$8 sps:$4 sm:$0xff]   ;;  %2152 = vmatprep.subr.bf16.mxu1 %v4491_v41  ;;  %v4510_v41 = vld [vmem:[#allocation2 + $0x3b0] ss:$8 sps:$4 sm:$0xff]  }
 0x285   : > { %v1449_v19 = vadd.f32 %v1448_v40, %v5375_v0  ;;  %v1450_v38 = vpop.f32.mrb[3].mxu1  ;;  %v1523_v12 = vmax.f32 %v1445_v32, 0.0  ;;  %2153 = vmatpush1.bf16.msra.mxu1 %v4489_v1  ;;  %v4492_v40 = vld [vmem:[#allocation2 + $0x350] ss:$8 sps:$4 sm:$0xff]  }
 0x286   : > { %v1451_v11 = vadd.f32 %v1450_v38, %v5378_v45  ;;  %v1524_v2 = vmax.f32 %v1447_v42, 0.0  ;;  %v4494_v42 = vld [vmem:[#allocation2 + $0x354] ss:$8 sps:$4 sm:$0xff]  }
 0x287   : > { %v1525_v63 = vmax.f32 %v1449_v19, 0.0  ;;  %2154 = vmatprep.subr.bf16.mxu1 %v4494_v42  ;;  %v4497_v19 = vld [vmem:[#allocation2 + $0x364] ss:$8 sps:$4 sm:$0xff]  }
 0x288   : > { %v1526_v3 = vmax.f32 %v1451_v11, 0.0  ;;  %v4495_v11 = vld [vmem:[#allocation2 + $0x360] ss:$8 sps:$4 sm:$0xff]   ;;  %v4515_v42 = vld [vmem:[#allocation2 + $0x3c4] ss:$8 sps:$4 sm:$0xff]  }
 0x289   : > { %v1555_v29 = vpack.c.bf16 %v1525_v63, %v1523_v12  ;;  %2155 = vmatpush1.bf16.msra.mxu1 %v4492_v40  ;;  %v4500_v63 = vld [vmem:[#allocation2 + $0x374] ss:$8 sps:$4 sm:$0xff]  }
 0x28a   : > { %v1556_v8 = vpack.c.bf16 %v1526_v3, %v1524_v2  ;;  %2156 = vmatprep.subr.bf16.mxu1 %v4497_v19 }
 0x28b   : > { %v1454_v9 = vpop.f32.mrb[4].mxu1 }
 0x28c   : > { %v1455_v53 = vadd.f32 %v1454_v9, %v5375_v0  ;;  %v1456_v27 = vpop.f32.mrb[5].mxu1  ;;  %1809 = vmatprep.mubr.bf16.mxu0 %v1556_v8  ;;  %v4498_v8 = vld [vmem:[#allocation2 + $0x370] ss:$8 sps:$4 sm:$0xff]  }
 0x28d   : > { %v1457_v13 = vadd.f32 %v1456_v27, %v5378_v45  ;;  %v1458_v23 = vpop.f32.mrb[6].mxu1  ;;  %1810 = vmatmul.mubr.bf16.vlgmr.msra.gmra.mrb[32].mxu0 %v1555_v29  ;;  %2157 = vmatpush1.bf16.msra.mxu1 %v4495_v11  ;;  %v4503_v27 = vld [vmem:[#allocation2 + $0x384] ss:$8 sps:$4 sm:$0xff]   ;;  %v4513_v11 = vld [vmem:[#allocation2 + $0x3c0] ss:$8 sps:$4 sm:$0xff]  }
 0x28e   : > { %v1459_v7 = vadd.f32 %v1458_v23, %v5375_v0  ;;  %v1460_v15 = vpop.f32.mrb[7].mxu1  ;;  %v1527_v6 = vmax.f32 %v1455_v53, 0.0  ;;  %2158 = vmatprep.subr.bf16.mxu1 %v4500_v63 }
 0x28f   : > { %v1461_v16 = vadd.f32 %v1460_v15, %v5378_v45  ;;  %v1528_v17 = vmax.f32 %v1457_v13, 0.0  ;;  %v4504_v15 = vld [vmem:[#allocation2 + $0x390] ss:$8 sps:$4 sm:$0xff]  }
 0x290   : > { %v1529_v22 = vmax.f32 %v1459_v7, 0.0  ;;  %v4506_v7 = vld [vmem:[#allocation2 + $0x394] ss:$8 sps:$4 sm:$0xff]  }
 0x291   : > { %v1530_v30 = vmax.f32 %v1461_v16, 0.0  ;;  %2159 = vmatpush1.bf16.msra.mxu1 %v4498_v8  ;;  %v4507_v16 = vld [vmem:[#allocation2 + $0x3a0] ss:$8 sps:$4 sm:$0xff]  }
 0x292   : > { %v1557_v34 = vpack.c.bf16 %v1529_v22, %v1527_v6  ;;  %2160 = vmatprep.subr.bf16.mxu1 %v4503_v27  ;;  %v4512_v6 = vld [vmem:[#allocation2 + $0x3b4] ss:$8 sps:$4 sm:$0xff]  }
 0x293   : > { %v1558_v32 = vpack.c.bf16 %v1530_v30, %v1528_v17 }
 0x295   : > { %1819 = vmatprep.mubr.bf16.mxu0 %v1558_v32  ;;  %2161 = vmatpush1.bf16.msra.mxu1 %v4501_v14 }
 0x296   : > { %1820 = vmatmul.mubr.bf16.gmra.mrb[36].mxu0 %v1557_v34  ;;  %2162 = vmatprep.subr.bf16.mxu1 %v4506_v7 }
 0x299   : > { %2163 = vmatpush1.bf16.msra.mxu1 %v4504_v15 }
 0x29a   : > { %2164 = vmatprep.subr.bf16.mxu1 %v4509_v46 }
 0x29d   : > { %2165 = vmatpush1.bf16.msra.mxu1 %v4507_v16 }
 0x29e   : > { %v1464_v38 = vpop.f32.mrb[8].mxu1  ;;  %2166 = vmatprep.subr.bf16.mxu1 %v4512_v6 }
 0x29f   : > { %v1465_v10 = vadd.f32 %v1464_v38, %v5375_v0  ;;  %v1466_v50 = vpop.f32.mrb[9].mxu1 }
 0x2a0   : > { %v1467_v56 = vadd.f32 %v1466_v50, %v5378_v45  ;;  %v1468_v12 = vpop.f32.mrb[10].mxu1 }
 0x2a1   : > { %v1469_v2 = vadd.f32 %v1468_v12, %v5375_v0  ;;  %v1470_v3 = vpop.f32.mrb[11].mxu1  ;;  %v1531_v29 = vmax.f32 %v1465_v10, 0.0  ;;  %2167 = vmatpush1.bf16.msra.mxu1 %v4510_v41  ;;  %v4518_v12 = vld [vmem:[#allocation2 + $0x3d4] ss:$8 sps:$4 sm:$0xff]  }
 0x2a2   : > { %v1471_v4 = vadd.f32 %v1470_v3, %v5378_v45  ;;  %v1532_v9 = vmax.f32 %v1467_v56, 0.0  ;;  %2168 = vmatprep.subr.bf16.mxu1 %v4515_v42 }
 0x2a3   : > { %v1533_v61 = vmax.f32 %v1469_v2, 0.0  ;;  %v4516_v2 = vld [vmem:[#allocation2 + $0x3d0] ss:$8 sps:$4 sm:$0xff]  }
 0x2a4   : > { %v1534_v53 = vmax.f32 %v1471_v4, 0.0 }
 0x2a5   : > { %v1559_v13 = vpack.c.bf16 %v1533_v61, %v1531_v29  ;;  %2169 = vmatpush1.bf16.msra.mxu1 %v4513_v11  ;;  %v4524_v11 = vld [vmem:[#allocation2 + $0x3f4] ss:$8 sps:$4 sm:$0xff]  }
 0x2a6   : > { %v1560_v23 = vpack.c.bf16 %v1534_v53, %v1532_v9  ;;  %2170 = vmatprep.subr.bf16.mxu1 %v4518_v12  ;;  %v4522_v12 = vld [vmem:[#allocation2 + $0x3f0] ss:$8 sps:$4 sm:$0xff]  }
 0x2a8   : > { %1829 = vmatprep.mubr.bf16.mxu0 %v1560_v23 }
 0x2a9   : > { %1830 = vmatmul.mubr.bf16.gmra.mrb[40].mxu0 %v1559_v13  ;;  %2171 = vmatpush1.bf16.msra.mxu1 %v4516_v2 }
 0x2b1   : > { %v1474_v22 = vpop.f32.mrb[12].mxu1 }
 0x2b2   : > { %v1475_v17 = vadd.f32 %v1474_v22, %v5375_v0  ;;  %v1476_v30 = vpop.f32.mrb[13].mxu1 }
 0x2b3   : > { %v1477_v36 = vadd.f32 %v1476_v30, %v5378_v45  ;;  %v1478_v34 = vpop.f32.mrb[14].mxu1 }
 0x2b4   : > { %v1479_v32 = vadd.f32 %v1478_v34, %v5375_v0  ;;  %v1480_v1 = vpop.f32.mrb[15].mxu1  ;;  %v1535_v19 = vmax.f32 %v1475_v17, 0.0 }
 0x2b5   : > { %v1481_v40 = vadd.f32 %v1480_v1, %v5378_v45  ;;  %v1536_v10 = vmax.f32 %v1477_v36, 0.0 }
 0x2b6   : > { %v1537_v38 = vmax.f32 %v1479_v32, 0.0 }
 0x2b7   : > { %v1538_v50 = vmax.f32 %v1481_v40, 0.0 }
 0x2b8   : > { %v1561_v56 = vpack.c.bf16 %v1537_v38, %v1535_v19 }
 0x2b9   : > { %v1562_v63 = vpack.c.bf16 %v1538_v50, %v1536_v10  ;;  %v4521_v10 = vld [vmem:[#allocation2 + $0x3e4] ss:$8 sps:$4 sm:$0xff]   ;;  %v4519_v50 = vld [vmem:[#allocation2 + $0x3e0] ss:$8 sps:$4 sm:$0xff]  }
 0x2ba   : > { %2172 = vmatprep.subr.bf16.mxu1 %v4521_v10 }
 0x2bb   : > { %1839 = vmatprep.mubr.bf16.mxu0 %v1562_v63  ;;  %2173 = vmatpush1.bf16.msra.mxu1 %v4519_v50 }
 0x2bc   : > { %1840 = vmatmul.mubr.bf16.gmra.mrb[44].mxu0 %v1561_v56  ;;  %2174 = vmatprep.subr.bf16.mxu1 %v4524_v11 }
 0x2bf   : > { %2175 = vmatpush1.bf16.msra.mxu1 %v4522_v12 }
 0x2c4   : > { %v1484_v3 = vpop.f32.mrb[16].mxu1 }
 0x2c5   : > { %v1485_v4 = vadd.f32 %v1484_v3, %v5375_v0  ;;  %v1486_v29 = vpop.f32.mrb[17].mxu1 }
 0x2c6   : > { %v1487_v61 = vadd.f32 %v1486_v29, %v5378_v45  ;;  %v1488_v8 = vpop.f32.mrb[18].mxu1 }
 0x2c7   : > { %v1489_v9 = vadd.f32 %v1488_v8, %v5375_v0  ;;  %v1490_v53 = vpop.f32.mrb[19].mxu1  ;;  %v1539_v13 = vmax.f32 %v1485_v4, 0.0 }
 0x2c8   : > { %v1491_v27 = vadd.f32 %v1490_v53, %v5378_v45  ;;  %v1540_v14 = vmax.f32 %v1487_v61, 0.0 }
 0x2c9   : > { %v1541_v23 = vmax.f32 %v1489_v9, 0.0 }
 0x2ca   : > { %v1542_v7 = vmax.f32 %v1491_v27, 0.0 }
 0x2cb   : > { %v1563_v15 = vpack.c.bf16 %v1541_v23, %v1539_v13 }
 0x2cc   : > { %v1564_v46 = vpack.c.bf16 %v1542_v7, %v1540_v14 }
 0x2ce   : > { %1849 = vmatprep.mubr.bf16.mxu0 %v1564_v46 }
 0x2cf   : > { %1850 = vmatmul.mubr.bf16.gmra.mrb[48].mxu0 %v1563_v15 }
 0x2d7   : > { %v1494_v16 = vpop.f32.mrb[20].mxu1 }
 0x2d8   : > { %v1495_v6 = vadd.f32 %v1494_v16, %v5375_v0  ;;  %v1496_v22 = vpop.f32.mrb[21].mxu1 }
 0x2d9   : > { %v1497_v17 = vadd.f32 %v1496_v22, %v5378_v45  ;;  %v1498_v30 = vpop.f32.mrb[22].mxu1 }
 0x2da   : > { %v1499_v36 = vadd.f32 %v1498_v30, %v5375_v0  ;;  %v1500_v34 = vpop.f32.mrb[23].mxu1  ;;  %v1543_v32 = vmax.f32 %v1495_v6, 0.0 }
 0x2db   : > { %v1501_v41 = vadd.f32 %v1500_v34, %v5378_v45  ;;  %v1544_v42 = vmax.f32 %v1497_v17, 0.0 }
 0x2dc   : > { %v1545_v1 = vmax.f32 %v1499_v36, 0.0 }
 0x2dd   : > { %v1546_v40 = vmax.f32 %v1501_v41, 0.0 }
 0x2de   : > { %v1565_v19 = vpack.c.bf16 %v1545_v1, %v1543_v32 }
 0x2df   : > { %v1566_v38 = vpack.c.bf16 %v1546_v40, %v1544_v42  ;;  %v4031_v40 = vld [vmem:[%s5765_s5 + $0x2] ss:$8 sm:$0x3] }
 0x2e1   : > { %1859 = vmatprep.mubr.bf16.mxu0 %v1566_v38 }
 0x2e2   : > { %1860 = vmatmul.mubr.bf16.gmra.mrb[52].mxu0 %v1565_v19  ;;  %v5416_v19 = vrot.slane %v4031_v40, %v4896_v57 }
 0x2ea   : > { %v1504_v56 = vpop.f32.mrb[24].mxu1 }
 0x2eb   : > { %v1505_v63 = vadd.f32 %v1504_v56, %v5375_v0  ;;  %v1506_v2 = vpop.f32.mrb[25].mxu1 }
 0x2ec   : > { %v1507_v3 = vadd.f32 %v1506_v2, %v5378_v45  ;;  %v1508_v4 = vpop.f32.mrb[26].mxu1  ;;  %v4527_v2 = vld [vmem:[#allocation2 + $0x404] ss:$8 sps:$4 sm:$0xff]  }
 0x2ed   : > { %v1509_v29 = vadd.f32 %v1508_v4, %v5375_v0  ;;  %v1510_v61 = vpop.f32.mrb[27].mxu1  ;;  %v1547_v9 = vmax.f32 %v1505_v63, 0.0  ;;  %v4525_v63 = vld [vmem:[#allocation2 + $0x400] ss:$8 sps:$4 sm:$0xff]   ;;  %v4530_v4 = vld [vmem:[#allocation2 + $0x414] ss:$8 sps:$4 sm:$0xff]   ;;  %2511 = vmatprep.subr.bf16.mxu0 %v4527_v2 }
 0x2ee   : > { %v1511_v8 = vadd.f32 %v1510_v61, %v5378_v45  ;;  %v1548_v27 = vmax.f32 %v1507_v3, 0.0  ;;  %2512 = vmatpush1.bf16.msra.mxu0 %v4525_v63 }
 0x2ef   : > { %v1549_v53 = vmax.f32 %v1509_v29, 0.0  ;;  %2513 = vmatprep.subr.bf16.mxu0 %v4530_v4 }
 0x2f0   : > { %v1550_v13 = vmax.f32 %v1511_v8, 0.0 }
 0x2f1   : > { %v1567_v23 = vpack.c.bf16 %v1549_v53, %v1547_v9  ;;  %v4528_v53 = vld [vmem:[#allocation2 + $0x410] ss:$8 sps:$4 sm:$0xff]  }
 0x2f2   : > { %v1568_v14 = vpack.c.bf16 %v1550_v13, %v1548_v27  ;;  %v4533_v13 = vld [vmem:[#allocation2 + $0x424] ss:$8 sps:$4 sm:$0xff]   ;;  %2514 = vmatpush1.bf16.msra.mxu0 %v4528_v53 }
 0x2f3   : > { %2515 = vmatprep.subr.bf16.mxu0 %v4533_v13 }
 0x2f4   : > { %1869 = vmatprep.mubr.bf16.mxu0 %v1568_v14 }
 0x2f5   : > { %1870 = vmatmul.mubr.bf16.gmra.mrb[56].mxu0 %v1567_v23 }
 0x2fd   : > { %v1514_v7 = vpop.f32.mrb[28].mxu1 }
 0x2fe   : > { %v1515_v15 = vadd.f32 %v1514_v7, %v5375_v0  ;;  %v1516_v46 = vpop.f32.mrb[29].mxu1 }
 0x2ff   : > { %v1517_v16 = vadd.f32 %v1516_v46, %v5378_v45  ;;  %v1518_v6 = vpop.f32.mrb[30].mxu1 }
 0x300   : > { %v1519_v22 = vadd.f32 %v1518_v6, %v5375_v0  ;;  %v1520_v17 = vpop.f32.mrb[31].mxu1  ;;  %v1551_v36 = vmax.f32 %v1515_v15, 0.0  ;;  %v5419_v0 = vrot.slane %v4031_v40, %v4898_v58  ;;  %v4531_v6 = vld [vmem:[#allocation2 + $0x420] ss:$8 sps:$4 sm:$0xff]  }
 0x301   : > { %v1521_v30 = vadd.f32 %v1520_v17, %v5378_v45  ;;  %v1552_v41 = vmax.f32 %v1517_v16, 0.0  ;;  %2516 = vmatpush1.bf16.msra.mxu0 %v4531_v6  ;;  %v4549_v6 = vld [vmem:[#allocation2 + $0x480] ss:$8 sps:$4 sm:$0xff]  }
 0x302   : > { %v1553_v34 = vmax.f32 %v1519_v22, 0.0 }
 0x303   : > { %v1554_v32 = vmax.f32 %v1521_v30, 0.0  ;;  %v4536_v30 = vld [vmem:[#allocation2 + $0x434] ss:$8 sps:$4 sm:$0xff]  }
 0x304   : > { %v1569_v1 = vpack.c.bf16 %v1553_v34, %v1551_v36  ;;  %2517 = vmatprep.subr.bf16.mxu0 %v4536_v30  ;;  %v4557_v30 = vld [vmem:[#allocation2 + $0x4a4] ss:$8 sps:$4 sm:$0xff]  }
 0x305   : > { %v1570_v42 = vpack.c.bf16 %v1554_v32, %v1552_v41 }
 0x307   : > { %1879 = vmatprep.mubr.bf16.mxu0 %v1570_v42  ;;  %v4534_v42 = vld [vmem:[#allocation2 + $0x430] ss:$8 sps:$4 sm:$0xff]  }
 0x308   : > { %1880 = vmatmul.mubr.bf16.gmra.mrb[60].mxu0 %v1569_v1 }
 0x309   : > { %2518 = vmatpush1.bf16.msra.mxu0 %v4534_v42 }
 0x360   : > { %v1811_v38 = vpop.f32.mrb[32].mxu0 }
 0x361   : > { %v1812_v45 = vadd.f32 %v1811_v38, %v5416_v19  ;;  %v1813_v10 = vpop.f32.mrb[33].mxu0  ;;  %v4539_v38 = vld [vmem:[#allocation2 + $0x444] ss:$8 sps:$4 sm:$0xff]  }
 0x362   : > { %v1814_v50 = vadd.f32 %v1813_v10, %v5419_v0  ;;  %v1815_v11 = vpop.f32.mrb[34].mxu0  ;;  %v4537_v10 = vld [vmem:[#allocation2 + $0x440] ss:$8 sps:$4 sm:$0xff]   ;;  %2519 = vmatprep.subr.bf16.mxu0 %v4539_v38  ;;  %v4558_v38 = vld [vmem:[#allocation2 + $0x4b0] ss:$8 sps:$4 sm:$0xff]  }
 0x363   : > { %v1816_v56 = vadd.f32 %v1815_v11, %v5416_v19  ;;  %v1817_v12 = vpop.f32.mrb[35].mxu0  ;;  %v1890_v29 = vmax.f32 %v1812_v45, 0.0  ;;  %2520 = vmatpush1.bf16.msra.mxu0 %v4537_v10  ;;  %v4540_v11 = vld [vmem:[#allocation2 + $0x450] ss:$8 sps:$4 sm:$0xff]  }
 0x364   : > { %v1818_v3 = vadd.f32 %v1817_v12, %v5419_v0  ;;  %v1891_v8 = vmax.f32 %v1814_v50, 0.0  ;;  %v4542_v50 = vld [vmem:[#allocation2 + $0x454] ss:$8 sps:$4 sm:$0xff]  }
 0x365   : > { %v1892_v61 = vmax.f32 %v1816_v56, 0.0  ;;  %2521 = vmatprep.subr.bf16.mxu0 %v4542_v50  ;;  %v4545_v56 = vld [vmem:[#allocation2 + $0x464] ss:$8 sps:$4 sm:$0xff]  }
 0x366   : > { %v1893_v9 = vmax.f32 %v1818_v3, 0.0  ;;  %v4543_v3 = vld [vmem:[#allocation2 + $0x460] ss:$8 sps:$4 sm:$0xff]   ;;  %v4563_v50 = vld [vmem:[#allocation2 + $0x4c4] ss:$8 sps:$4 sm:$0xff]  }
 0x367   : > { %v1922_v27 = vpack.c.bf16 %v1892_v61, %v1890_v29  ;;  %2522 = vmatpush1.bf16.msra.mxu0 %v4540_v11  ;;  %v4548_v61 = vld [vmem:[#allocation2 + $0x474] ss:$8 sps:$4 sm:$0xff]  }
 0x368   : > { %v1923_v23 = vpack.c.bf16 %v1893_v9, %v1891_v8  ;;  %2523 = vmatprep.subr.bf16.mxu0 %v4545_v56 }
 0x369   : > { %v1821_v14 = vpop.f32.mrb[36].mxu0 }
 0x36a   : > { %v1822_v7 = vadd.f32 %v1821_v14, %v5416_v19  ;;  %v1823_v15 = vpop.f32.mrb[37].mxu0  ;;  %2176 = vmatprep.mubr.bf16.mxu1 %v1923_v23  ;;  %v4546_v23 = vld [vmem:[#allocation2 + $0x470] ss:$8 sps:$4 sm:$0xff]  }
 0x36b   : > { %v1824_v46 = vadd.f32 %v1823_v15, %v5419_v0  ;;  %v1825_v16 = vpop.f32.mrb[38].mxu0  ;;  %2177 = vmatmul.mubr.bf16.vlgmr.msra.gmra.mrb[32].mxu1 %v1922_v27  ;;  %2524 = vmatpush1.bf16.msra.mxu0 %v4543_v3  ;;  %v4551_v15 = vld [vmem:[#allocation2 + $0x484] ss:$8 sps:$4 sm:$0xff]   ;;  %v4561_v3 = vld [vmem:[#allocation2 + $0x4c0] ss:$8 sps:$4 sm:$0xff]  }
 0x36c   : > { %v1826_v22 = vadd.f32 %v1825_v16, %v5416_v19  ;;  %v1827_v17 = vpop.f32.mrb[39].mxu0  ;;  %v1894_v34 = vmax.f32 %v1822_v7, 0.0  ;;  %2525 = vmatprep.subr.bf16.mxu0 %v4548_v61 }
 0x36d   : > { %v1828_v36 = vadd.f32 %v1827_v17, %v5419_v0  ;;  %v1895_v32 = vmax.f32 %v1824_v46, 0.0  ;;  %v4552_v17 = vld [vmem:[#allocation2 + $0x490] ss:$8 sps:$4 sm:$0xff]  }
 0x36e   : > { %v1896_v41 = vmax.f32 %v1826_v22, 0.0  ;;  %v4554_v22 = vld [vmem:[#allocation2 + $0x494] ss:$8 sps:$4 sm:$0xff]  }
 0x36f   : > { %v1897_v1 = vmax.f32 %v1828_v36, 0.0  ;;  %2526 = vmatpush1.bf16.msra.mxu0 %v4546_v23  ;;  %v4555_v36 = vld [vmem:[#allocation2 + $0x4a0] ss:$8 sps:$4 sm:$0xff]  }
 0x370   : > { %v1924_v40 = vpack.c.bf16 %v1896_v41, %v1894_v34  ;;  %2527 = vmatprep.subr.bf16.mxu0 %v4551_v15  ;;  %v4560_v34 = vld [vmem:[#allocation2 + $0x4b4] ss:$8 sps:$4 sm:$0xff]  }
 0x371   : > { %v1925_v45 = vpack.c.bf16 %v1897_v1, %v1895_v32 }
 0x373   : > { %2186 = vmatprep.mubr.bf16.mxu1 %v1925_v45  ;;  %2528 = vmatpush1.bf16.msra.mxu0 %v4549_v6 }
 0x374   : > { %2187 = vmatmul.mubr.bf16.gmra.mrb[36].mxu1 %v1924_v40  ;;  %2529 = vmatprep.subr.bf16.mxu0 %v4554_v22 }
 0x377   : > { %2530 = vmatpush1.bf16.msra.mxu0 %v4552_v17 }
 0x378   : > { %2531 = vmatprep.subr.bf16.mxu0 %v4557_v30 }
 0x37b   : > { %2532 = vmatpush1.bf16.msra.mxu0 %v4555_v36 }
 0x37c   : > { %v1831_v12 = vpop.f32.mrb[40].mxu0  ;;  %2533 = vmatprep.subr.bf16.mxu0 %v4560_v34 }
 0x37d   : > { %v1832_v63 = vadd.f32 %v1831_v12, %v5416_v19  ;;  %v1833_v2 = vpop.f32.mrb[41].mxu0 }
 0x37e   : > { %v1834_v4 = vadd.f32 %v1833_v2, %v5419_v0  ;;  %v1835_v29 = vpop.f32.mrb[42].mxu0 }
 0x37f   : > { %v1836_v8 = vadd.f32 %v1835_v29, %v5416_v19  ;;  %v1837_v9 = vpop.f32.mrb[43].mxu0  ;;  %v1898_v27 = vmax.f32 %v1832_v63, 0.0  ;;  %2534 = vmatpush1.bf16.msra.mxu0 %v4558_v38  ;;  %v4566_v29 = vld [vmem:[#allocation2 + $0x4d4] ss:$8 sps:$4 sm:$0xff]  }
 0x380   : > { %v1838_v53 = vadd.f32 %v1837_v9, %v5419_v0  ;;  %v1899_v14 = vmax.f32 %v1834_v4, 0.0  ;;  %2535 = vmatprep.subr.bf16.mxu0 %v4563_v50 }
 0x381   : > { %v1900_v13 = vmax.f32 %v1836_v8, 0.0  ;;  %v4564_v8 = vld [vmem:[#allocation2 + $0x4d0] ss:$8 sps:$4 sm:$0xff]  }
 0x382   : > { %v1901_v7 = vmax.f32 %v1838_v53, 0.0 }
 0x383   : > { %v1926_v46 = vpack.c.bf16 %v1900_v13, %v1898_v27  ;;  %2536 = vmatpush1.bf16.msra.mxu0 %v4561_v3  ;;  %v4572_v3 = vld [vmem:[#allocation2 + $0x4f4] ss:$8 sps:$4 sm:$0xff]  }
 0x384   : > { %v1927_v16 = vpack.c.bf16 %v1901_v7, %v1899_v14  ;;  %2537 = vmatprep.subr.bf16.mxu0 %v4566_v29  ;;  %v4570_v29 = vld [vmem:[#allocation2 + $0x4f0] ss:$8 sps:$4 sm:$0xff]  }
 0x386   : > { %2196 = vmatprep.mubr.bf16.mxu1 %v1927_v16 }
 0x387   : > { %2197 = vmatmul.mubr.bf16.gmra.mrb[40].mxu1 %v1926_v46  ;;  %2538 = vmatpush1.bf16.msra.mxu0 %v4564_v8 }
 0x38f   : > { %v1841_v41 = vpop.f32.mrb[44].mxu0 }
 0x390   : > { %v1842_v32 = vadd.f32 %v1841_v41, %v5416_v19  ;;  %v1843_v1 = vpop.f32.mrb[45].mxu0 }
 0x391   : > { %v1844_v42 = vadd.f32 %v1843_v1, %v5419_v0  ;;  %v1845_v40 = vpop.f32.mrb[46].mxu0 }
 0x392   : > { %v1846_v45 = vadd.f32 %v1845_v40, %v5416_v19  ;;  %v1847_v10 = vpop.f32.mrb[47].mxu0  ;;  %v1902_v56 = vmax.f32 %v1842_v32, 0.0 }
 0x393   : > { %v1848_v11 = vadd.f32 %v1847_v10, %v5419_v0  ;;  %v1903_v63 = vmax.f32 %v1844_v42, 0.0 }
 0x394   : > { %v1904_v12 = vmax.f32 %v1846_v45, 0.0 }
 0x395   : > { %v1905_v2 = vmax.f32 %v1848_v11, 0.0 }
 0x396   : > { %v1928_v4 = vpack.c.bf16 %v1904_v12, %v1902_v56 }
 0x397   : > { %v1929_v61 = vpack.c.bf16 %v1905_v2, %v1903_v63  ;;  %v4569_v63 = vld [vmem:[#allocation2 + $0x4e4] ss:$8 sps:$4 sm:$0xff]   ;;  %v4567_v2 = vld [vmem:[#allocation2 + $0x4e0] ss:$8 sps:$4 sm:$0xff]  }
 0x398   : > { %2539 = vmatprep.subr.bf16.mxu0 %v4569_v63 }
 0x399   : > { %2206 = vmatprep.mubr.bf16.mxu1 %v1929_v61  ;;  %2540 = vmatpush1.bf16.msra.mxu0 %v4567_v2 }
 0x39a   : > { %2207 = vmatmul.mubr.bf16.gmra.mrb[44].mxu1 %v1928_v4  ;;  %2541 = vmatprep.subr.bf16.mxu0 %v4572_v3 }
 0x39d   : > { %2542 = vmatpush1.bf16.msra.mxu0 %v4570_v29 }
 0x3a2   : > { %v1851_v9 = vpop.f32.mrb[48].mxu0 }
 0x3a3   : > { %v1852_v53 = vadd.f32 %v1851_v9, %v5416_v19  ;;  %v1853_v27 = vpop.f32.mrb[49].mxu0 }
 0x3a4   : > { %v1854_v13 = vadd.f32 %v1853_v27, %v5419_v0  ;;  %v1855_v23 = vpop.f32.mrb[50].mxu0 }
 0x3a5   : > { %v1856_v14 = vadd.f32 %v1855_v23, %v5416_v19  ;;  %v1857_v7 = vpop.f32.mrb[51].mxu0  ;;  %v1906_v46 = vmax.f32 %v1852_v53, 0.0 }
 0x3a6   : > { %v1858_v15 = vadd.f32 %v1857_v7, %v5419_v0  ;;  %v1907_v6 = vmax.f32 %v1854_v13, 0.0 }
 0x3a7   : > { %v1908_v16 = vmax.f32 %v1856_v14, 0.0 }
 0x3a8   : > { %v1909_v22 = vmax.f32 %v1858_v15, 0.0 }
 0x3a9   : > { %v1930_v17 = vpack.c.bf16 %v1908_v16, %v1906_v46 }
 0x3aa   : > { %v1931_v30 = vpack.c.bf16 %v1909_v22, %v1907_v6 }
 0x3ac   : > { %2216 = vmatprep.mubr.bf16.mxu1 %v1931_v30 }
 0x3ad   : > { %2217 = vmatmul.mubr.bf16.gmra.mrb[48].mxu1 %v1930_v17 }
 0x3b5   : > { %v1861_v36 = vpop.f32.mrb[52].mxu0 }
 0x3b6   : > { %v1862_v34 = vadd.f32 %v1861_v36, %v5416_v19  ;;  %v1863_v41 = vpop.f32.mrb[53].mxu0 }
 0x3b7   : > { %v1864_v32 = vadd.f32 %v1863_v41, %v5419_v0  ;;  %v1865_v1 = vpop.f32.mrb[54].mxu0 }
 0x3b8   : > { %v1866_v42 = vadd.f32 %v1865_v1, %v5416_v19  ;;  %v1867_v40 = vpop.f32.mrb[55].mxu0  ;;  %v1910_v45 = vmax.f32 %v1862_v34, 0.0 }
 0x3b9   : > { %v1868_v38 = vadd.f32 %v1867_v40, %v5419_v0  ;;  %v1911_v50 = vmax.f32 %v1864_v32, 0.0 }
 0x3ba   : > { %v1912_v10 = vmax.f32 %v1866_v42, 0.0 }
 0x3bb   : > { %v1913_v11 = vmax.f32 %v1868_v38, 0.0 }
 0x3bc   : > { %v1932_v56 = vpack.c.bf16 %v1912_v10, %v1910_v45 }
 0x3bd   : > { %v1933_v12 = vpack.c.bf16 %v1913_v11, %v1911_v50  ;;  %v4064_v11 = vld [vmem:[%s5765_s5 + $0x3] ss:$8 sm:$0x3] }
 0x3bf   : > { %2226 = vmatprep.mubr.bf16.mxu1 %v1933_v12 }
 0x3c0   : > { %2227 = vmatmul.mubr.bf16.gmra.mrb[52].mxu1 %v1932_v56  ;;  %v5457_v56 = vrot.slane %v4064_v11, %v4896_v57 }
 0x3c8   : > { %v1871_v4 = vpop.f32.mrb[56].mxu0 }
 0x3c9   : > { %v1872_v61 = vadd.f32 %v1871_v4, %v5416_v19  ;;  %v1873_v8 = vpop.f32.mrb[57].mxu0 }
 0x3ca   : > { %v1874_v9 = vadd.f32 %v1873_v8, %v5419_v0  ;;  %v1875_v53 = vpop.f32.mrb[58].mxu0  ;;  %v4575_v8 = vld [vmem:[#allocation2 + $0x504] ss:$8 sps:$4 sm:$0xff]  }
 0x3cb   : > { %v1876_v27 = vadd.f32 %v1875_v53, %v5416_v19  ;;  %v1877_v13 = vpop.f32.mrb[59].mxu0  ;;  %v1914_v14 = vmax.f32 %v1872_v61, 0.0  ;;  %v4573_v61 = vld [vmem:[#allocation2 + $0x500] ss:$8 sps:$4 sm:$0xff]   ;;  %v4578_v53 = vld [vmem:[#allocation2 + $0x514] ss:$8 sps:$4 sm:$0xff]   ;;  %3108 = vmatprep.subr.bf16.mxu1 %v4575_v8 }
 0x3cc   : > { %v1878_v23 = vadd.f32 %v1877_v13, %v5419_v0  ;;  %v1915_v15 = vmax.f32 %v1874_v9, 0.0  ;;  %3109 = vmatpush1.bf16.msra.mxu1 %v4573_v61 }
 0x3cd   : > { %v1916_v7 = vmax.f32 %v1876_v27, 0.0  ;;  %3110 = vmatprep.subr.bf16.mxu1 %v4578_v53 }
 0x3ce   : > { %v1917_v46 = vmax.f32 %v1878_v23, 0.0 }
 0x3cf   : > { %v1934_v16 = vpack.c.bf16 %v1916_v7, %v1914_v14  ;;  %v4576_v7 = vld [vmem:[#allocation2 + $0x510] ss:$8 sps:$4 sm:$0xff]  }
 0x3d0   : > { %v1935_v6 = vpack.c.bf16 %v1917_v46, %v1915_v15  ;;  %v4581_v46 = vld [vmem:[#allocation2 + $0x524] ss:$8 sps:$4 sm:$0xff]   ;;  %3111 = vmatpush1.bf16.msra.mxu1 %v4576_v7 }
 0x3d1   : > { %3112 = vmatprep.subr.bf16.mxu1 %v4581_v46 }
 0x3d2   : > { %2236 = vmatprep.mubr.bf16.mxu1 %v1935_v6 }
 0x3d3   : > { %2237 = vmatmul.mubr.bf16.gmra.mrb[56].mxu1 %v1934_v16 }
 0x3db   : > { %v1881_v22 = vpop.f32.mrb[60].mxu0 }
 0x3dc   : > { %v1882_v17 = vadd.f32 %v1881_v22, %v5416_v19  ;;  %v1883_v30 = vpop.f32.mrb[61].mxu0 }
 0x3dd   : > { %v1884_v36 = vadd.f32 %v1883_v30, %v5419_v0  ;;  %v1885_v34 = vpop.f32.mrb[62].mxu0 }
 0x3de   : > { %v1886_v41 = vadd.f32 %v1885_v34, %v5416_v19  ;;  %v1887_v32 = vpop.f32.mrb[63].mxu0  ;;  %v1918_v42 = vmax.f32 %v1882_v17, 0.0  ;;  %v5460_v19 = vrot.slane %v4064_v11, %v4898_v58  ;;  %v4579_v34 = vld [vmem:[#allocation2 + $0x520] ss:$8 sps:$4 sm:$0xff]  }
 0x3df   : > { %v1888_v1 = vadd.f32 %v1887_v32, %v5419_v0  ;;  %v1919_v38 = vmax.f32 %v1884_v36, 0.0  ;;  %3113 = vmatpush1.bf16.msra.mxu1 %v4579_v34  ;;  %v4597_v34 = vld [vmem:[#allocation2 + $0x580] ss:$8 sps:$4 sm:$0xff]  }
 0x3e0   : > { %v1920_v40 = vmax.f32 %v1886_v41, 0.0 }
 0x3e1   : > { %v1921_v45 = vmax.f32 %v1888_v1, 0.0  ;;  %v4584_v1 = vld [vmem:[#allocation2 + $0x534] ss:$8 sps:$4 sm:$0xff]  }
 0x3e2   : > { %v1936_v10 = vpack.c.bf16 %v1920_v40, %v1918_v42  ;;  %3114 = vmatprep.subr.bf16.mxu1 %v4584_v1  ;;  %v4605_v1 = vld [vmem:[#allocation2 + $0x5a4] ss:$8 sps:$4 sm:$0xff]  }
 0x3e3   : > { %v1937_v50 = vpack.c.bf16 %v1921_v45, %v1919_v38 }
 0x3e5   : > { %2246 = vmatprep.mubr.bf16.mxu1 %v1937_v50  ;;  %v4582_v50 = vld [vmem:[#allocation2 + $0x530] ss:$8 sps:$4 sm:$0xff]  }
 0x3e6   : > { %2247 = vmatmul.mubr.bf16.gmra.mrb[60].mxu1 %v1936_v10 }
 0x3e7   : > { %3115 = vmatpush1.bf16.msra.mxu1 %v4582_v50 }
 0x43e   : > { %v2178_v12 = vpop.f32.mrb[32].mxu1 }
 0x43f   : > { %v2179_v0 = vadd.f32 %v2178_v12, %v5457_v56  ;;  %v2180_v63 = vpop.f32.mrb[33].mxu1  ;;  %v4587_v12 = vld [vmem:[#allocation2 + $0x544] ss:$8 sps:$4 sm:$0xff]  }
 0x440   : > { %v2181_v2 = vadd.f32 %v2180_v63, %v5460_v19  ;;  %v2182_v3 = vpop.f32.mrb[34].mxu1  ;;  %v4585_v63 = vld [vmem:[#allocation2 + $0x540] ss:$8 sps:$4 sm:$0xff]   ;;  %3116 = vmatprep.subr.bf16.mxu1 %v4587_v12  ;;  %v4606_v12 = vld [vmem:[#allocation2 + $0x5b0] ss:$8 sps:$4 sm:$0xff]  }
 0x441   : > { %v2183_v4 = vadd.f32 %v2182_v3, %v5457_v56  ;;  %v2184_v29 = vpop.f32.mrb[35].mxu1  ;;  %v2257_v27 = vmax.f32 %v2179_v0, 0.0  ;;  %3117 = vmatpush1.bf16.msra.mxu1 %v4585_v63  ;;  %v4588_v3 = vld [vmem:[#allocation2 + $0x550] ss:$8 sps:$4 sm:$0xff]  }
 0x442   : > { %v2185_v9 = vadd.f32 %v2184_v29, %v5460_v19  ;;  %v2258_v23 = vmax.f32 %v2181_v2, 0.0  ;;  %v4590_v2 = vld [vmem:[#allocation2 + $0x554] ss:$8 sps:$4 sm:$0xff]  }
 0x443   : > { %v2259_v13 = vmax.f32 %v2183_v4, 0.0  ;;  %3118 = vmatprep.subr.bf16.mxu1 %v4590_v2  ;;  %v4593_v4 = vld [vmem:[#allocation2 + $0x564] ss:$8 sps:$4 sm:$0xff]  }
 0x444   : > { %v2260_v14 = vmax.f32 %v2185_v9, 0.0  ;;  %v4591_v9 = vld [vmem:[#allocation2 + $0x560] ss:$8 sps:$4 sm:$0xff]   ;;  %v4611_v2 = vld [vmem:[#allocation2 + $0x5c4] ss:$8 sps:$4 sm:$0xff]  }
 0x445   : > { %v2289_v15 = vpack.c.bf16 %v2259_v13, %v2257_v27  ;;  %3119 = vmatpush1.bf16.msra.mxu1 %v4588_v3  ;;  %v4596_v13 = vld [vmem:[#allocation2 + $0x574] ss:$8 sps:$4 sm:$0xff]  }
 0x446   : > { %v2290_v16 = vpack.c.bf16 %v2260_v14, %v2258_v23  ;;  %3120 = vmatprep.subr.bf16.mxu1 %v4593_v4 }
 0x447   : > { %v2188_v6 = vpop.f32.mrb[36].mxu1 }
 0x448   : > { %v2189_v22 = vadd.f32 %v2188_v6, %v5457_v56  ;;  %v2190_v17 = vpop.f32.mrb[37].mxu1  ;;  %2543 = vmatprep.mubr.bf16.mxu0 %v2290_v16  ;;  %v4594_v16 = vld [vmem:[#allocation2 + $0x570] ss:$8 sps:$4 sm:$0xff]  }
 0x449   : > { %v2191_v30 = vadd.f32 %v2190_v17, %v5460_v19  ;;  %v2192_v36 = vpop.f32.mrb[38].mxu1  ;;  %2544 = vmatmul.mubr.bf16.vlgmr.msra.gmra.mrb[64].mxu0 %v2289_v15  ;;  %3121 = vmatpush1.bf16.msra.mxu1 %v4591_v9  ;;  %v4599_v17 = vld [vmem:[#allocation2 + $0x584] ss:$8 sps:$4 sm:$0xff]   ;;  %v4609_v9 = vld [vmem:[#allocation2 + $0x5c0] ss:$8 sps:$4 sm:$0xff]  }
 0x44a   : > { %v2193_v41 = vadd.f32 %v2192_v36, %v5457_v56  ;;  %v2194_v32 = vpop.f32.mrb[39].mxu1  ;;  %v2261_v40 = vmax.f32 %v2189_v22, 0.0  ;;  %3122 = vmatprep.subr.bf16.mxu1 %v4596_v13 }
 0x44b   : > { %v2195_v42 = vadd.f32 %v2194_v32, %v5460_v19  ;;  %v2262_v45 = vmax.f32 %v2191_v30, 0.0  ;;  %v4600_v32 = vld [vmem:[#allocation2 + $0x590] ss:$8 sps:$4 sm:$0xff]  }
 0x44c   : > { %v2263_v38 = vmax.f32 %v2193_v41, 0.0  ;;  %v4602_v41 = vld [vmem:[#allocation2 + $0x594] ss:$8 sps:$4 sm:$0xff]  }
 0x44d   : > { %v2264_v10 = vmax.f32 %v2195_v42, 0.0  ;;  %3123 = vmatpush1.bf16.msra.mxu1 %v4594_v16  ;;  %v4603_v42 = vld [vmem:[#allocation2 + $0x5a0] ss:$8 sps:$4 sm:$0xff]  }
 0x44e   : > { %v2291_v11 = vpack.c.bf16 %v2263_v38, %v2261_v40  ;;  %3124 = vmatprep.subr.bf16.mxu1 %v4599_v17  ;;  %v4608_v40 = vld [vmem:[#allocation2 + $0x5b4] ss:$8 sps:$4 sm:$0xff]  }
 0x44f   : > { %v2292_v0 = vpack.c.bf16 %v2264_v10, %v2262_v45 }
 0x451   : > { %2553 = vmatprep.mubr.bf16.mxu0 %v2292_v0  ;;  %3125 = vmatpush1.bf16.msra.mxu1 %v4597_v34 }
 0x452   : > { %2554 = vmatmul.mubr.bf16.gmra.mrb[68].mxu0 %v2291_v11  ;;  %3126 = vmatprep.subr.bf16.mxu1 %v4602_v41 }
 0x455   : > { %3127 = vmatpush1.bf16.msra.mxu1 %v4600_v32 }
 0x456   : > { %3128 = vmatprep.subr.bf16.mxu1 %v4605_v1 }
 0x459   : > { %3129 = vmatpush1.bf16.msra.mxu1 %v4603_v42 }
 0x45a   : > { %v2198_v29 = vpop.f32.mrb[40].mxu1  ;;  %3130 = vmatprep.subr.bf16.mxu1 %v4608_v40 }
 0x45b   : > { %v2199_v61 = vadd.f32 %v2198_v29, %v5457_v56  ;;  %v2200_v8 = vpop.f32.mrb[41].mxu1 }
 0x45c   : > { %v2201_v53 = vadd.f32 %v2200_v8, %v5460_v19  ;;  %v2202_v27 = vpop.f32.mrb[42].mxu1 }
 0x45d   : > { %v2203_v23 = vadd.f32 %v2202_v27, %v5457_v56  ;;  %v2204_v14 = vpop.f32.mrb[43].mxu1  ;;  %v2265_v15 = vmax.f32 %v2199_v61, 0.0  ;;  %3131 = vmatpush1.bf16.msra.mxu1 %v4606_v12 }
 0x45e   : > { %v2205_v7 = vadd.f32 %v2204_v14, %v5460_v19  ;;  %v2266_v6 = vmax.f32 %v2201_v53, 0.0  ;;  %3132 = vmatprep.subr.bf16.mxu1 %v4611_v2 }
 0x45f   : > { %v2267_v46 = vmax.f32 %v2203_v23, 0.0 }
 0x460   : > { %v2268_v22 = vmax.f32 %v2205_v7, 0.0 }
 0x461   : > { %v2293_v30 = vpack.c.bf16 %v2267_v46, %v2265_v15  ;;  %3133 = vmatpush1.bf16.msra.mxu1 %v4609_v9 }
 0x462   : > { %v2294_v36 = vpack.c.bf16 %v2268_v22, %v2266_v6 }
 0x464   : > { %2563 = vmatprep.mubr.bf16.mxu0 %v2294_v36 }
 0x465   : > { %2564 = vmatmul.mubr.bf16.gmra.mrb[72].mxu0 %v2293_v30 }
 0x46d   : > { %v2208_v38 = vpop.f32.mrb[44].mxu1 }
 0x46e   : > { %v2209_v45 = vadd.f32 %v2208_v38, %v5457_v56  ;;  %v2210_v10 = vpop.f32.mrb[45].mxu1 }
 0x46f   : > { %v2211_v50 = vadd.f32 %v2210_v10, %v5460_v19  ;;  %v2212_v11 = vpop.f32.mrb[46].mxu1 }
 0x470   : > { %v2213_v0 = vadd.f32 %v2212_v11, %v5457_v56  ;;  %v2214_v63 = vpop.f32.mrb[47].mxu1  ;;  %v2269_v4 = vmax.f32 %v2209_v45, 0.0 }
 0x471   : > { %v2215_v3 = vadd.f32 %v2214_v63, %v5460_v19  ;;  %v2270_v61 = vmax.f32 %v2211_v50, 0.0 }
 0x472   : > { %v2271_v29 = vmax.f32 %v2213_v0, 0.0 }
 0x473   : > { %v2272_v8 = vmax.f32 %v2215_v3, 0.0 }
 0x474   : > { %v2295_v53 = vpack.c.bf16 %v2271_v29, %v2269_v4  ;;  %v4614_v4 = vld [vmem:[#allocation2 + $0x5d4] ss:$8 sps:$4 sm:$0xff]   ;;  %v4612_v29 = vld [vmem:[#allocation2 + $0x5d0] ss:$8 sps:$4 sm:$0xff]  }
 0x475   : > { %v2296_v27 = vpack.c.bf16 %v2272_v8, %v2270_v61  ;;  %3134 = vmatprep.subr.bf16.mxu1 %v4614_v4 }
 0x476   : > { %3135 = vmatpush1.bf16.msra.mxu1 %v4612_v29 }
 0x477   : > { %2573 = vmatprep.mubr.bf16.mxu0 %v2296_v27 }
 0x478   : > { %2574 = vmatmul.mubr.bf16.gmra.mrb[76].mxu0 %v2295_v53 }
 0x480   : > { %v2218_v13 = vpop.f32.mrb[48].mxu1 }
 0x481   : > { %v2219_v23 = vadd.f32 %v2218_v13, %v5457_v56  ;;  %v2220_v14 = vpop.f32.mrb[49].mxu1  ;;  %v4615_v13 = vld [vmem:[#allocation2 + $0x5e0] ss:$8 sps:$4 sm:$0xff]  }
 0x482   : > { %v2221_v7 = vadd.f32 %v2220_v14, %v5460_v19  ;;  %v2222_v15 = vpop.f32.mrb[50].mxu1 }
 0x483   : > { %v2223_v46 = vadd.f32 %v2222_v15, %v5457_v56  ;;  %v2224_v16 = vpop.f32.mrb[51].mxu1  ;;  %v2273_v22 = vmax.f32 %v2219_v23, 0.0  ;;  %v4617_v23 = vld [vmem:[#allocation2 + $0x5e4] ss:$8 sps:$4 sm:$0xff]  }
 0x484   : > { %v2225_v6 = vadd.f32 %v2224_v16, %v5460_v19  ;;  %v2274_v30 = vmax.f32 %v2221_v7, 0.0  ;;  %3136 = vmatprep.subr.bf16.mxu1 %v4617_v23 }
 0x485   : > { %v2275_v17 = vmax.f32 %v2223_v46, 0.0  ;;  %3137 = vmatpush1.bf16.msra.mxu1 %v4615_v13 }
 0x486   : > { %v2276_v36 = vmax.f32 %v2225_v6, 0.0 }
 0x487   : > { %v2297_v34 = vpack.c.bf16 %v2275_v17, %v2273_v22  ;;  %v4618_v17 = vld [vmem:[#allocation2 + $0x5f0] ss:$8 sps:$4 sm:$0xff]  }
 0x488   : > { %v2298_v41 = vpack.c.bf16 %v2276_v36, %v2274_v30  ;;  %v4620_v30 = vld [vmem:[#allocation2 + $0x5f4] ss:$8 sps:$4 sm:$0xff]  }
 0x489   : > { %3138 = vmatprep.subr.bf16.mxu1 %v4620_v30 }
 0x48a   : > { %2583 = vmatprep.mubr.bf16.mxu0 %v2298_v41  ;;  %3139 = vmatpush1.bf16.msra.mxu1 %v4618_v17 }
 0x48b   : > { %2584 = vmatmul.mubr.bf16.gmra.mrb[80].mxu0 %v2297_v34 }
 0x493   : > { %v2228_v32 = vpop.f32.mrb[52].mxu1 }
 0x494   : > { %v2229_v1 = vadd.f32 %v2228_v32, %v5457_v56  ;;  %v2230_v42 = vpop.f32.mrb[53].mxu1 }
 0x495   : > { %v2231_v40 = vadd.f32 %v2230_v42, %v5460_v19  ;;  %v2232_v38 = vpop.f32.mrb[54].mxu1 }
 0x496   : > { %v2233_v45 = vadd.f32 %v2232_v38, %v5457_v56  ;;  %v2234_v10 = vpop.f32.mrb[55].mxu1  ;;  %v2277_v11 = vmax.f32 %v2229_v1, 0.0 }
 0x497   : > { %v2235_v50 = vadd.f32 %v2234_v10, %v5460_v19  ;;  %v2278_v0 = vmax.f32 %v2231_v40, 0.0 }
 0x498   : > { %v2279_v12 = vmax.f32 %v2233_v45, 0.0 }
 0x499   : > { %v2280_v63 = vmax.f32 %v2235_v50, 0.0 }
 0x49a   : > { %v2299_v2 = vpack.c.bf16 %v2279_v12, %v2277_v11 }
 0x49b   : > { %v2300_v3 = vpack.c.bf16 %v2280_v63, %v2278_v0 }
 0x49d   : > { %2593 = vmatprep.mubr.bf16.mxu0 %v2300_v3  ;;  %v4097_v3 = vld [vmem:[%s5765_s5 + $0x4] ss:$8 sm:$0x3] }
 0x49e   : > { %2594 = vmatmul.mubr.bf16.gmra.mrb[84].mxu0 %v2299_v2  ;;  %v5498_v4 = vrot.slane %v4097_v3, %v4896_v57 }
 0x4a6   : > { %v2238_v61 = vpop.f32.mrb[56].mxu1 }
 0x4a7   : > { %v2239_v8 = vadd.f32 %v2238_v61, %v5457_v56  ;;  %v2240_v9 = vpop.f32.mrb[57].mxu1 }
 0x4a8   : > { %v2241_v53 = vadd.f32 %v2240_v9, %v5460_v19  ;;  %v2242_v27 = vpop.f32.mrb[58].mxu1 }
 0x4a9   : > { %v2243_v14 = vadd.f32 %v2242_v27, %v5457_v56  ;;  %v2244_v7 = vpop.f32.mrb[59].mxu1  ;;  %v2281_v46 = vmax.f32 %v2239_v8, 0.0 }
 0x4aa   : > { %v2245_v15 = vadd.f32 %v2244_v7, %v5460_v19  ;;  %v2282_v6 = vmax.f32 %v2241_v53, 0.0 }
 0x4ab   : > { %v2283_v16 = vmax.f32 %v2243_v14, 0.0 }
 0x4ac   : > { %v2284_v22 = vmax.f32 %v2245_v15, 0.0  ;;  %v4621_v15 = vld [vmem:[#allocation2 + $0x600] ss:$8 sps:$4 sm:$0xff]  }
 0x4ad   : > { %v2301_v36 = vpack.c.bf16 %v2283_v16, %v2281_v46  ;;  %v4623_v46 = vld [vmem:[#allocation2 + $0x604] ss:$8 sps:$4 sm:$0xff]  }
 0x4ae   : > { %v2302_v34 = vpack.c.bf16 %v2284_v22, %v2282_v6  ;;  %v4626_v6 = vld [vmem:[#allocation2 + $0x614] ss:$8 sps:$4 sm:$0xff]   ;;  %3475 = vmatprep.subr.bf16.mxu0 %v4623_v46 }
 0x4af   : > { %3476 = vmatpush1.bf16.msra.mxu0 %v4621_v15 }
 0x4b0   : > { %2603 = vmatprep.mubr.bf16.mxu0 %v2302_v34  ;;  %v4624_v34 = vld [vmem:[#allocation2 + $0x610] ss:$8 sps:$4 sm:$0xff]   ;;  %3477 = vmatprep.subr.bf16.mxu0 %v4626_v6  ;;  %v4639_v6 = vld [vmem:[#allocation2 + $0x660] ss:$8 sps:$4 sm:$0xff]  }
 0x4b1   : > { %2604 = vmatmul.mubr.bf16.gmra.mrb[88].mxu0 %v2301_v36 }
 0x4b3   : > { %3478 = vmatpush1.bf16.msra.mxu0 %v4624_v34 }
 0x4b9   : > { %v2248_v41 = vpop.f32.mrb[60].mxu1 }
 0x4ba   : > { %v2249_v32 = vadd.f32 %v2248_v41, %v5457_v56  ;;  %v2250_v1 = vpop.f32.mrb[61].mxu1 }
 0x4bb   : > { %v2251_v42 = vadd.f32 %v2250_v1, %v5460_v19  ;;  %v2252_v40 = vpop.f32.mrb[62].mxu1  ;;  %v4629_v1 = vld [vmem:[#allocation2 + $0x624] ss:$8 sps:$4 sm:$0xff]  }
 0x4bc   : > { %v2253_v38 = vadd.f32 %v2252_v40, %v5457_v56  ;;  %v2254_v45 = vpop.f32.mrb[63].mxu1  ;;  %v2285_v50 = vmax.f32 %v2249_v32, 0.0  ;;  %v5501_v56 = vrot.slane %v4097_v3, %v4898_v58  ;;  %3479 = vmatprep.subr.bf16.mxu0 %v4629_v1  ;;  %v4647_v1 = vld [vmem:[#allocation2 + $0x684] ss:$8 sps:$4 sm:$0xff]  }
 0x4bd   : > { %v2255_v10 = vadd.f32 %v2254_v45, %v5460_v19  ;;  %v2286_v12 = vmax.f32 %v2251_v42, 0.0 }
 0x4be   : > { %v2287_v11 = vmax.f32 %v2253_v38, 0.0 }
 0x4bf   : > { %v2288_v0 = vmax.f32 %v2255_v10, 0.0 }
 0x4c0   : > { %v2303_v63 = vpack.c.bf16 %v2287_v11, %v2285_v50  ;;  %v4627_v11 = vld [vmem:[#allocation2 + $0x620] ss:$8 sps:$4 sm:$0xff]  }
 0x4c1   : > { %v2304_v2 = vpack.c.bf16 %v2288_v0, %v2286_v12  ;;  %v4632_v0 = vld [vmem:[#allocation2 + $0x634] ss:$8 sps:$4 sm:$0xff]   ;;  %3480 = vmatpush1.bf16.msra.mxu0 %v4627_v11 }
 0x4c2   : > { %3481 = vmatprep.subr.bf16.mxu0 %v4632_v0 }
 0x4c3   : > { %2613 = vmatprep.mubr.bf16.mxu0 %v2304_v2 }
 0x4c4   : > { %2614 = vmatmul.mubr.bf16.gmra.mrb[92].mxu0 %v2303_v63 }
 0x51c   : > { %v2545_v29 = vpop.f32.mrb[64].mxu0 }
 0x51d   : > { %v2546_v19 = vadd.f32 %v2545_v29, %v5498_v4  ;;  %v2547_v61 = vpop.f32.mrb[65].mxu0 }
 0x51e   : > { %v2548_v8 = vadd.f32 %v2547_v61, %v5501_v56  ;;  %v2549_v9 = vpop.f32.mrb[66].mxu0 }
 0x51f   : > { %v2822_v53 = vadd.f32 %v5000_v47, %v2546_v19  ;;  %v2550_v27 = vadd.f32 %v2549_v9, %v5498_v4  ;;  %v2551_v13 = vpop.f32.mrb[67].mxu0  ;;  %v4630_v19 = vld [vmem:[#allocation2 + $0x630] ss:$8 sps:$4 sm:$0xff]   ;;  %v4633_v9 = vld [vmem:[#allocation2 + $0x640] ss:$8 sps:$4 sm:$0xff]  }
 0x520   : > { %v2823_v23 = vadd.f32 %v5002_v48, %v2548_v8  ;;  %v2552_v14 = vadd.f32 %v2551_v13, %v5501_v56  ;;  %3482 = vmatpush1.bf16.msra.mxu0 %v4630_v19 }
 0x521   : > { %v2824_v7 = vadd.f32 %v5065_v26, %v2550_v27  ;;  %v2854_v22 = vmax.f32 %v2822_v53, 0.0  ;;  %v4636_v53 = vld [vmem:[#allocation2 + $0x650] ss:$8 sps:$4 sm:$0xff]  }
 0x522   : > { %v2825_v16 = vadd.f32 %v5082_v51, %v2552_v14  ;;  %v2855_v30 = vmax.f32 %v2823_v23, 0.0 }
 0x523   : > { %v2856_v17 = vmax.f32 %v2824_v7, 0.0 }
 0x524   : > { %v2857_v36 = vmax.f32 %v2825_v16, 0.0 }
 0x525   : > { %v2555_v47 = vpop.f32.mrb[68].mxu0  ;;  %v2886_v41 = vpack.c.bf16 %v2856_v17, %v2854_v22 }
 0x526   : > { %v2556_v48 = vadd.f32 %v2555_v47, %v5498_v4  ;;  %v2557_v32 = vpop.f32.mrb[69].mxu0  ;;  %v2887_v40 = vpack.c.bf16 %v2857_v36, %v2855_v30  ;;  %v4644_v30 = vld [vmem:[#allocation2 + $0x674] ss:$8 sps:$4 sm:$0xff]  }
 0x527   : > { %v2558_v26 = vadd.f32 %v2557_v32, %v5501_v56  ;;  %v2559_v42 = vpop.f32.mrb[70].mxu0 }
 0x528   : > { %v2826_v51 = vadd.f32 %v5085_v59, %v2556_v48  ;;  %v2560_v38 = vadd.f32 %v2559_v42, %v5498_v4  ;;  %v2561_v45 = vpop.f32.mrb[71].mxu0  ;;  %3140 = vmatprep.mubr.bf16.mxu1 %v2887_v40  ;;  %v4642_v48 = vld [vmem:[#allocation2 + $0x670] ss:$8 sps:$4 sm:$0xff]   ;;  %v4650_v40 = vld [vmem:[#allocation2 + $0x694] ss:$8 sps:$4 sm:$0xff]  }
 0x529   : > { %v2827_v10 = vadd.f32 %v5098_v24, %v2558_v26  ;;  %v2562_v50 = vadd.f32 %v2561_v45, %v5501_v56  ;;  %3141 = vmatmul.mubr.bf16.vlgmr.msra.gmra.mrb[64].mxu1 %v2886_v41  ;;  %v4635_v24 = vld [vmem:[#allocation2 + $0x644] ss:$8 sps:$4 sm:$0xff]  }
 0x52a   : > { %v2828_v12 = vadd.f32 %v5104_v54, %v2560_v38  ;;  %v2858_v2 = vmax.f32 %v2826_v51, 0.0  ;;  %3483 = vmatprep.subr.bf16.mxu0 %v4635_v24  ;;  %v4638_v54 = vld [vmem:[#allocation2 + $0x654] ss:$8 sps:$4 sm:$0xff]   ;;  %v4651_v38 = vld [vmem:[#allocation2 + $0x6a0] ss:$8 sps:$4 sm:$0xff]  }
 0x52b   : > { %v2829_v63 = vadd.f32 %v5106_v49, %v2562_v50  ;;  %v2859_v59 = vmax.f32 %v2827_v10, 0.0  ;;  %3484 = vmatpush1.bf16.msra.mxu0 %v4633_v9  ;;  %v4641_v49 = vld [vmem:[#allocation2 + $0x664] ss:$8 sps:$4 sm:$0xff]   ;;  %v4656_v50 = vld [vmem:[#allocation2 + $0x6b4] ss:$8 sps:$4 sm:$0xff]  }
 0x52c   : > { %v2860_v3 = vmax.f32 %v2828_v12, 0.0  ;;  %3485 = vmatprep.subr.bf16.mxu0 %v4638_v54 }
 0x52d   : > { %v2861_v29 = vmax.f32 %v2829_v63, 0.0 }
 0x52e   : > { %v2888_v61 = vpack.c.bf16 %v2860_v3, %v2858_v2 }
 0x52f   : > { %v2889_v8 = vpack.c.bf16 %v2861_v29, %v2859_v59  ;;  %3486 = vmatpush1.bf16.msra.mxu0 %v4636_v53  ;;  %v4654_v29 = vld [vmem:[#allocation2 + $0x6b0] ss:$8 sps:$4 sm:$0xff]  }
 0x530   : > { %3487 = vmatprep.subr.bf16.mxu0 %v4641_v49  ;;  %v4662_v49 = vld [vmem:[#allocation2 + $0x6d4] ss:$8 sps:$4 sm:$0xff]  }
 0x531   : > { %3150 = vmatprep.mubr.bf16.mxu1 %v2889_v8 }
 0x532   : > { %3151 = vmatmul.mubr.bf16.gmra.mrb[68].mxu1 %v2888_v61  ;;  %v4659_v61 = vld [vmem:[#allocation2 + $0x6c4] ss:$8 sps:$4 sm:$0xff]  }
 0x533   : > { %3488 = vmatpush1.bf16.msra.mxu0 %v4639_v6  ;;  %v5784_v6 = vld [vmem:[#allocation5_spill] sm:$0xff] }
 0x534   : > { %3489 = vmatprep.subr.bf16.mxu0 %v4644_v30  ;;  %v5785_v30 = vld [vmem:[#allocation6_spill] sm:$0xff] }
 0x537   : > { %3490 = vmatpush1.bf16.msra.mxu0 %v4642_v48 }
 0x538   : > { %v2565_v27 = vpop.f32.mrb[72].mxu0  ;;  %3491 = vmatprep.subr.bf16.mxu0 %v4647_v1 }
 0x539   : > { %v2566_v13 = vadd.f32 %v2565_v27, %v5498_v4  ;;  %v2567_v23 = vpop.f32.mrb[73].mxu0 }
 0x53a   : > { %v2568_v14 = vadd.f32 %v2567_v23, %v5501_v56  ;;  %v2569_v7 = vpop.f32.mrb[74].mxu0 }
 0x53b   : > { %v2830_v15 = vadd.f32 %v5119_v39, %v2566_v13  ;;  %v2570_v46 = vadd.f32 %v2569_v7, %v5498_v4  ;;  %v2571_v16 = vpop.f32.mrb[75].mxu0  ;;  %v4660_v13 = vld [vmem:[#allocation2 + $0x6d0] ss:$8 sps:$4 sm:$0xff]  }
 0x53c   : > { %v2831_v22 = vadd.f32 %v5122_v44, %v2568_v14  ;;  %v2572_v17 = vadd.f32 %v2571_v16, %v5501_v56  ;;  %v4645_v44 = vld [vmem:[#allocation2 + $0x680] ss:$8 sps:$4 sm:$0xff]  }
 0x53d   : > { %v2832_v36 = vadd.f32 %v5132_v25, %v2570_v46  ;;  %v2862_v34 = vmax.f32 %v2830_v15, 0.0  ;;  %3492 = vmatpush1.bf16.msra.mxu0 %v4645_v44  ;;  %v4648_v25 = vld [vmem:[#allocation2 + $0x690] ss:$8 sps:$4 sm:$0xff]  }
 0x53e   : > { %v2833_v47 = vadd.f32 %v5136_v35, %v2572_v17  ;;  %v2863_v39 = vmax.f32 %v2831_v22, 0.0  ;;  %3493 = vmatprep.subr.bf16.mxu0 %v4650_v40  ;;  %v4653_v35 = vld [vmem:[#allocation2 + $0x6a4] ss:$8 sps:$4 sm:$0xff]  }
 0x53f   : > { %v2864_v41 = vmax.f32 %v2832_v36, 0.0 }
 0x540   : > { %v2865_v32 = vmax.f32 %v2833_v47, 0.0  ;;  %v5786_v47 = vld [vmem:[#allocation7_spill] sm:$0xff] }
 0x541   : > { %v2890_v26 = vpack.c.bf16 %v2864_v41, %v2862_v34  ;;  %3494 = vmatpush1.bf16.msra.mxu0 %v4648_v25 }
 0x542   : > { %v2891_v42 = vpack.c.bf16 %v2865_v32, %v2863_v39  ;;  %3495 = vmatprep.subr.bf16.mxu0 %v4653_v35  ;;  %v5787_v35 = vld [vmem:[#allocation8_spill] sm:$0xff] }
 0x544   : > { %3160 = vmatprep.mubr.bf16.mxu1 %v2891_v42 }
 0x545   : > { %3161 = vmatmul.mubr.bf16.gmra.mrb[72].mxu1 %v2890_v26  ;;  %3496 = vmatpush1.bf16.msra.mxu0 %v4651_v38 }
 0x546   : > { %3497 = vmatprep.subr.bf16.mxu0 %v4656_v50 }
 0x549   : > { %3498 = vmatpush1.bf16.msra.mxu0 %v4654_v29 }
 0x54a   : > { %3499 = vmatprep.subr.bf16.mxu0 %v4659_v61 }
 0x54b   : > { %v2575_v51 = vpop.f32.mrb[76].mxu0 }
 0x54c   : > { %v2576_v45 = vadd.f32 %v2575_v51, %v5498_v4  ;;  %v2577_v10 = vpop.f32.mrb[77].mxu0 }
 0x54d   : > { %v2578_v11 = vadd.f32 %v2577_v10, %v5501_v56  ;;  %v2579_v12 = vpop.f32.mrb[78].mxu0  ;;  %v5788_v10 = vld [vmem:[#allocation9_spill] sm:$0xff] }
 0x54e   : > { %v2834_v0 = vadd.f32 %v5162_v33, %v2576_v45  ;;  %v2580_v63 = vadd.f32 %v2579_v12, %v5498_v4  ;;  %v2581_v2 = vpop.f32.mrb[79].mxu0  ;;  %v4657_v33 = vld [vmem:[#allocation2 + $0x6c0] ss:$8 sps:$4 sm:$0xff]  }
 0x54f   : > { %v2835_v3 = vadd.f32 %v5164_v43, %v2578_v11  ;;  %v2582_v59 = vadd.f32 %v2581_v2, %v5501_v56  ;;  %3500 = vmatpush1.bf16.msra.mxu0 %v4657_v33  ;;  %v5789_v12 = vld [vmem:[#allocation10_spill] sm:$0xff] }
 0x550   : > { %v2836_v19 = vadd.f32 %v5172_v52, %v2580_v63  ;;  %v2866_v8 = vmax.f32 %v2834_v0, 0.0  ;;  %3501 = vmatprep.subr.bf16.mxu0 %v4662_v49  ;;  %v5790_v63 = vld [vmem:[#allocation11_spill] sm:$0xff] }
 0x551   : > { %v2837_v24 = vadd.f32 %v5174_v21, %v2582_v59  ;;  %v2867_v54 = vmax.f32 %v2835_v3, 0.0 }
 0x552   : > { %v2868_v9 = vmax.f32 %v2836_v19, 0.0 }
 0x553   : > { %v2869_v53 = vmax.f32 %v2837_v24, 0.0  ;;  %3502 = vmatpush1.bf16.msra.mxu0 %v4660_v13  ;;  %v4663_v13 = vld [vmem:[#allocation2 + $0x6e0] ss:$8 sps:$4 sm:$0xff]  }
 0x554   : > { %v2892_v27 = vpack.c.bf16 %v2868_v9, %v2866_v8 }
 0x555   : > { %v2893_v43 = vpack.c.bf16 %v2869_v53, %v2867_v54 }
 0x557   : > { %3170 = vmatprep.mubr.bf16.mxu1 %v2893_v43 }
 0x558   : > { %3171 = vmatmul.mubr.bf16.gmra.mrb[76].mxu1 %v2892_v27 }
 0x55e   : > { %v2585_v52 = vpop.f32.mrb[80].mxu0 }
 0x55f   : > { %v2586_v23 = vadd.f32 %v2585_v52, %v5498_v4  ;;  %v2587_v21 = vpop.f32.mrb[81].mxu0  ;;  %v4665_v52 = vld [vmem:[#allocation2 + $0x6e4] ss:$8 sps:$4 sm:$0xff]  }
 0x560   : > { %v2588_v14 = vadd.f32 %v2587_v21, %v5501_v56  ;;  %v2589_v7 = vpop.f32.mrb[82].mxu0  ;;  %3503 = vmatprep.subr.bf16.mxu0 %v4665_v52 }
 0x561   : > { %v2838_v15 = vadd.f32 %v5202_v28, %v2586_v23  ;;  %v2590_v46 = vadd.f32 %v2589_v7, %v5498_v4  ;;  %v2591_v16 = vpop.f32.mrb[83].mxu0  ;;  %3504 = vmatpush1.bf16.msra.mxu0 %v4663_v13  ;;  %v4675_v13 = vld [vmem:[%s5766_s6 + $0x58] sm:$0xff]  }
 0x562   : > { %v2839_v22 = vadd.f32 %v5784_v6, %v2588_v14  ;;  %v2592_v17 = vadd.f32 %v2591_v16, %v5501_v56  ;;  %v4668_v14 = vld [vmem:[#allocation2 + $0x6f4] ss:$8 sps:$4 sm:$0xff]  }
 0x563   : > { %v2840_v36 = vadd.f32 %v5785_v30, %v2590_v46  ;;  %v2870_v41 = vmax.f32 %v2838_v15, 0.0  ;;  %v4666_v46 = vld [vmem:[#allocation2 + $0x6f0] ss:$8 sps:$4 sm:$0xff]   ;;  %3505 = vmatprep.subr.bf16.mxu0 %v4668_v14 }
 0x564   : > { %v2841_v34 = vadd.f32 %v5786_v47, %v2592_v17  ;;  %v2871_v39 = vmax.f32 %v2839_v22, 0.0 }
 0x565   : > { %v2872_v48 = vmax.f32 %v2840_v36, 0.0  ;;  %3506 = vmatpush1.bf16.msra.mxu0 %v4666_v46 }
 0x566   : > { %v2873_v32 = vmax.f32 %v2841_v34, 0.0 }
 0x567   : > { %v2894_v1 = vpack.c.bf16 %v2872_v48, %v2870_v41 }
 0x568   : > { %v2895_v26 = vpack.c.bf16 %v2873_v32, %v2871_v39 }
 0x56a   : > { %3180 = vmatprep.mubr.bf16.mxu1 %v2895_v26 }
 0x56b   : > { %3181 = vmatmul.mubr.bf16.gmra.mrb[80].mxu1 %v2894_v1 }
 0x571   : > { %v2595_v28 = vpop.f32.mrb[84].mxu0 }
 0x572   : > { %v2596_v42 = vadd.f32 %v2595_v28, %v5498_v4  ;;  %v2597_v44 = vpop.f32.mrb[85].mxu0 }
 0x573   : > { %v2598_v40 = vadd.f32 %v2597_v44, %v5501_v56  ;;  %v2599_v25 = vpop.f32.mrb[86].mxu0 }
 0x574   : > { %v2842_v51 = vadd.f32 %v5787_v35, %v2596_v42  ;;  %v2600_v38 = vadd.f32 %v2599_v25, %v5498_v4  ;;  %v2601_v45 = vpop.f32.mrb[87].mxu0 }
 0x575   : > { %v2843_v50 = vadd.f32 %v5788_v10, %v2598_v40  ;;  %v2602_v11 = vadd.f32 %v2601_v45, %v5501_v56 }
 0x576   : > { %v2844_v0 = vadd.f32 %v5789_v12, %v2600_v38  ;;  %v2874_v3 = vmax.f32 %v2842_v51, 0.0  ;;  %v4671_v12 = vld [vmem:[%s5766_s6 + $0x48] sm:$0xff]  }
 0x577   : > { %v2845_v2 = vadd.f32 %v5790_v63, %v2602_v11  ;;  %v2875_v29 = vmax.f32 %v2843_v50, 0.0  ;;  %v4669_v50 = vld [vmem:[%s5766_s6 + $0x40] sm:$0xff]  }
 0x578   : > { %v2876_v59 = vmax.f32 %v2844_v0, 0.0  ;;  %v4670_v11 = vld [vmem:[%s5766_s6] sm:$0xff]   ;;  %4217 = vmatprep.subr.bf16.mxu1 %v4669_v50 }
 0x579   : > { %v2877_v19 = vmax.f32 %v2845_v2, 0.0  ;;  %4218 = vmatpush3.bf16.msra.mxu1 %v4670_v11 }
 0x57a   : > { %v2896_v61 = vpack.c.bf16 %v2876_v59, %v2874_v3  ;;  %4219 = vmatprep.subr.bf16.mxu1 %v4671_v12 }
 0x57b   : > { %v2897_v24 = vpack.c.bf16 %v2877_v19, %v2875_v29  ;;  %v4672_v29 = vld [vmem:[%s5766_s6 + $0x8] sm:$0xff]  }
 0x57d   : > { %3190 = vmatprep.mubr.bf16.mxu1 %v2897_v24  ;;  %4220 = vmatpush3.bf16.msra.mxu1 %v4672_v29 }
 0x57e   : > { %3191 = vmatmul.mubr.bf16.gmra.mrb[84].mxu1 %v2896_v61  ;;  %v4673_v61 = vld [vmem:[%s5766_s6 + $0x50] sm:$0xff]  }
 0x57f   : > { %4221 = vmatprep.subr.bf16.mxu1 %v4673_v61 }
 0x584   : > { %v2605_v8 = vpop.f32.mrb[88].mxu0 }
 0x585   : > { %v2606_v9 = vadd.f32 %v2605_v8, %v5498_v4  ;;  %v2607_v54 = vpop.f32.mrb[89].mxu0 }
 0x586   : > { %v2608_v53 = vadd.f32 %v2607_v54, %v5501_v56  ;;  %v2609_v33 = vpop.f32.mrb[90].mxu0 }
 0x587   : > { %v2846_v27 = vadd.f32 %v5278_v62, %v2606_v9  ;;  %v2610_v49 = vadd.f32 %v2609_v33, %v5498_v4  ;;  %v2611_v43 = vpop.f32.mrb[91].mxu0 }
 0x588   : > { %v2847_v23 = vadd.f32 %v5280_v18, %v2608_v53  ;;  %v2612_v21 = vadd.f32 %v2611_v43, %v5501_v56 }
 0x589   : > { %v2848_v7 = vadd.f32 %v5288_v20, %v2610_v49  ;;  %v2878_v16 = vmax.f32 %v2846_v27, 0.0  ;;  %v4674_v27 = vld [vmem:[%s5766_s6 + $0x10] sm:$0xff]  }
 0x58a   : > { %v2849_v15 = vadd.f32 %v5290_v31, %v2612_v21  ;;  %v2879_v62 = vmax.f32 %v2847_v23, 0.0  ;;  %4222 = vmatpush3.bf16.msra.mxu1 %v4674_v27 }
 0x58b   : > { %v2880_v6 = vmax.f32 %v2848_v7, 0.0  ;;  %4223 = vmatprep.subr.bf16.mxu1 %v4675_v13 }
 0x58c   : > { %v2881_v22 = vmax.f32 %v2849_v15, 0.0  ;;  %v4676_v15 = vld [vmem:[%s5766_s6 + $0x18] sm:$0xff]  }
 0x58d   : > { %v2898_v17 = vpack.c.bf16 %v2880_v6, %v2878_v16  ;;  %v4677_v16 = vld [vmem:[%s5766_s6 + $0x60] sm:$0xff]  }
 0x58e   : > { %v2899_v30 = vpack.c.bf16 %v2881_v22, %v2879_v62  ;;  %4224 = vmatpush3.bf16.msra.mxu1 %v4676_v15  ;;  %v4678_v62 = vld [vmem:[%s5766_s6 + $0x20] sm:$0xff]   ;;  %v4679_v22 = vld [vmem:[%s5766_s6 + $0x68] sm:$0xff]  }
 0x58f   : > { %4225 = vmatprep.subr.bf16.mxu1 %v4677_v16  ;;  %v4680_v16 = vld [vmem:[%s5766_s6 + $0x28] sm:$0xff]  }
 0x590   : > { %3200 = vmatprep.mubr.bf16.mxu1 %v2899_v30 }
 0x591   : > { %3201 = vmatmul.mubr.bf16.gmra.mrb[88].mxu1 %v2898_v17 }
 0x592   : > { %4226 = vmatpush3.bf16.msra.mxu1 %v4678_v62 }
 0x593   : > { %4227 = vmatprep.subr.bf16.mxu1 %v4679_v22 }
 0x596   : > { %4228 = vmatpush3.bf16.msra.mxu1 %v4680_v16 }
 0x597   : > { %v2615_v18 = vpop.f32.mrb[92].mxu0 }
 0x598   : > { %v2616_v36 = vadd.f32 %v2615_v18, %v5498_v4  ;;  %v2617_v47 = vpop.f32.mrb[93].mxu0 }
 0x599   : > { %v2618_v20 = vadd.f32 %v2617_v47, %v5501_v56  ;;  %v2619_v34 = vpop.f32.mrb[94].mxu0 }
 0x59a   : > { %v2850_v31 = vadd.f32 %v5312_v37, %v2616_v36  ;;  %v2620_v41 = vadd.f32 %v2619_v34, %v5498_v4  ;;  %v2621_v48 = vpop.f32.mrb[95].mxu0  ;;  %v4132_v37 = vld [vmem:[%s5765_s5 + $0x5] ss:$8 sm:$0x3] }
 0x59b   : > { %v2851_v39 = vadd.f32 %v5314_v55, %v2618_v20  ;;  %v2622_v32 = vadd.f32 %v2621_v48, %v5501_v56  ;;  %v5571_v55 = vrot.slane %v4132_v37, %v4896_v57  ;;  %v5574_v4 = vrot.slane %v4132_v37, %v4898_v58 }
 0x59c   : > { %v2852_v1 = vadd.f32 %v5324_v60, %v2620_v41  ;;  %v2882_v28 = vmax.f32 %v2850_v31, 0.0 }
 0x59d   : > { %v2853_v26 = vadd.f32 %v5326_v5, %v2622_v32  ;;  %v2883_v44 = vmax.f32 %v2851_v39, 0.0 }
 0x59e   : > { %v2884_v42 = vmax.f32 %v2852_v1, 0.0 }
 0x59f   : > { %v2885_v40 = vmax.f32 %v2853_v26, 0.0 }
 0x5a0   : > { %v2900_v25 = vpack.c.bf16 %v2884_v42, %v2882_v28 }
 0x5a1   : > { %v2901_v35 = vpack.c.bf16 %v2885_v40, %v2883_v44 }
 0x5a3   : > { %3210 = vmatprep.mubr.bf16.mxu1 %v2901_v35 }
 0x5a4   : > { %3211 = vmatmul.mubr.bf16.gmra.mrb[92].mxu1 %v2900_v25 }
 0x5fc   : > { %v3142_v60 = vpop.f32.mrb[64].mxu1 }
 0x5fd   : > { %v3143_v5 = vadd.f32 %v3142_v60, %v5571_v55  ;;  %v3144_v56 = vpop.f32.mrb[65].mxu1 }
 0x5fe   : > { %v3145_v51 = vadd.f32 %v3144_v56, %v5574_v4  ;;  %v3146_v38 = vpop.f32.mrb[66].mxu1 }
 0x5ff   : > { %v3147_v45 = vadd.f32 %v3146_v38, %v5571_v55  ;;  %v3148_v10 = vpop.f32.mrb[67].mxu1  ;;  %v3221_v63 = vmax.f32 %v3143_v5, 0.0 }
 0x600   : > { %v3149_v0 = vadd.f32 %v3148_v10, %v5574_v4  ;;  %v3222_v3 = vmax.f32 %v3145_v51, 0.0 }
 0x601   : > { %v3223_v2 = vmax.f32 %v3147_v45, 0.0 }
 0x602   : > { %v3224_v59 = vmax.f32 %v3149_v0, 0.0 }
 0x603   : > { %v3253_v19 = vpack.c.bf16 %v3223_v2, %v3221_v63 }
 0x604   : > { %v3254_v24 = vpack.c.bf16 %v3224_v59, %v3222_v3 }
 0x605   : > { %v3152_v8 = vpop.f32.mrb[68].mxu1 }
 0x606   : > { %v3153_v9 = vadd.f32 %v3152_v8, %v5571_v55  ;;  %v3154_v54 = vpop.f32.mrb[69].mxu1  ;;  %3507 = vmatprep.mubr.bf16.mxu0 %v3254_v24 }
 0x607   : > { %v3155_v53 = vadd.f32 %v3154_v54, %v5574_v4  ;;  %v3156_v33 = vpop.f32.mrb[70].mxu1  ;;  %3508 = vmatmul.mubr.bf16.vlgmr.msra.gmra.mrb[96].mxu0 %v3253_v19 }
 0x608   : > { %v3157_v49 = vadd.f32 %v3156_v33, %v5571_v55  ;;  %v3158_v43 = vpop.f32.mrb[71].mxu1  ;;  %v3225_v23 = vmax.f32 %v3153_v9, 0.0 }
 0x609   : > { %v3159_v52 = vadd.f32 %v3158_v43, %v5574_v4  ;;  %v3226_v14 = vmax.f32 %v3155_v53, 0.0 }
 0x60a   : > { %v3227_v21 = vmax.f32 %v3157_v49, 0.0 }
 0x60b   : > { %v3228_v7 = vmax.f32 %v3159_v52, 0.0 }
 0x60c   : > { %v3255_v46 = vpack.c.bf16 %v3227_v21, %v3225_v23 }
 0x60d   : > { %v3256_v6 = vpack.c.bf16 %v3228_v7, %v3226_v14 }
 0x60f   : > { %3517 = vmatprep.mubr.bf16.mxu0 %v3256_v6 }
 0x610   : > { %3518 = vmatmul.mubr.bf16.gmra.mrb[100].mxu0 %v3255_v46 }
 0x618   : > { %v3162_v17 = vpop.f32.mrb[72].mxu1 }
 0x619   : > { %v3163_v30 = vadd.f32 %v3162_v17, %v5571_v55  ;;  %v3164_v18 = vpop.f32.mrb[73].mxu1  ;;  %v4681_v17 = vld [vmem:[%s5766_s6 + $0x70] sm:$0xff]  }
 0x61a   : > { %v3165_v36 = vadd.f32 %v3164_v18, %v5574_v4  ;;  %v3166_v47 = vpop.f32.mrb[74].mxu1  ;;  %v4683_v18 = vld [vmem:[%s5766_s6 + $0x78] sm:$0xff]   ;;  %4229 = vmatprep.subr.bf16.mxu1 %v4681_v17 }
 0x61b   : > { %v3167_v20 = vadd.f32 %v3166_v47, %v5571_v55  ;;  %v3168_v34 = vpop.f32.mrb[75].mxu1  ;;  %v3229_v41 = vmax.f32 %v3163_v30, 0.0  ;;  %v4682_v30 = vld [vmem:[%s5766_s6 + $0x30] sm:$0xff]  }
 0x61c   : > { %v3169_v31 = vadd.f32 %v3168_v34, %v5574_v4  ;;  %v3230_v39 = vmax.f32 %v3165_v36, 0.0  ;;  %4230 = vmatpush3.bf16.msra.mxu1 %v4682_v30 }
 0x61d   : > { %v3231_v48 = vmax.f32 %v3167_v20, 0.0  ;;  %4231 = vmatprep.subr.bf16.mxu1 %v4683_v18 }
 0x61e   : > { %v3232_v32 = vmax.f32 %v3169_v31, 0.0 }
 0x61f   : > { %v3257_v1 = vpack.c.bf16 %v3231_v48, %v3229_v41  ;;  %v4684_v41 = vld [vmem:[%s5766_s6 + $0x38] sm:$0xff]  }
 0x620   : > { %v3258_v26 = vpack.c.bf16 %v3232_v32, %v3230_v39  ;;  %4232 = vmatpush3.bf16.msra.mxu1 %v4684_v41 }
 0x622   : > { %3527 = vmatprep.mubr.bf16.mxu0 %v3258_v26 }
 0x623   : > { %3528 = vmatmul.mubr.bf16.gmra.mrb[104].mxu0 %v3257_v1 }
 0x62b   : > { %v3172_v28 = vpop.f32.mrb[76].mxu1 }
 0x62c   : > { %v3173_v42 = vadd.f32 %v3172_v28, %v5571_v55  ;;  %v3174_v44 = vpop.f32.mrb[77].mxu1 }
 0x62d   : > { %v3175_v40 = vadd.f32 %v3174_v44, %v5574_v4  ;;  %v3176_v25 = vpop.f32.mrb[78].mxu1 }
 0x62e   : > { %v3177_v35 = vadd.f32 %v3176_v25, %v5571_v55  ;;  %v3178_v37 = vpop.f32.mrb[79].mxu1  ;;  %v3233_v5 = vmax.f32 %v3173_v42, 0.0 }
 0x62f   : > { %v3179_v60 = vadd.f32 %v3178_v37, %v5574_v4  ;;  %v3234_v51 = vmax.f32 %v3175_v40, 0.0 }
 0x630   : > { %v3235_v56 = vmax.f32 %v3177_v35, 0.0 }
 0x631   : > { %v3236_v38 = vmax.f32 %v3179_v60, 0.0 }
 0x632   : > { %v3259_v45 = vpack.c.bf16 %v3235_v56, %v3233_v5 }
 0x633   : > { %v3260_v10 = vpack.c.bf16 %v3236_v38, %v3234_v51 }
 0x635   : > { %3537 = vmatprep.mubr.bf16.mxu0 %v3260_v10 }
 0x636   : > { %3538 = vmatmul.mubr.bf16.gmra.mrb[108].mxu0 %v3259_v45 }
 0x63e   : > { %v3182_v50 = vpop.f32.mrb[80].mxu1 }
 0x63f   : > { %v3183_v11 = vadd.f32 %v3182_v50, %v5571_v55  ;;  %v3184_v12 = vpop.f32.mrb[81].mxu1 }
 0x640   : > { %v3185_v0 = vadd.f32 %v3184_v12, %v5574_v4  ;;  %v3186_v63 = vpop.f32.mrb[82].mxu1 }
 0x641   : > { %v3187_v2 = vadd.f32 %v3186_v63, %v5571_v55  ;;  %v3188_v3 = vpop.f32.mrb[83].mxu1  ;;  %v3237_v29 = vmax.f32 %v3183_v11, 0.0  ;;  %v4165_v11 = vld [vmem:[%s5765_s5 + $0x6] ss:$8 sm:$0x3] }
 0x642   : > { %v3189_v59 = vadd.f32 %v3188_v3, %v5574_v4  ;;  %v3238_v61 = vmax.f32 %v3185_v0, 0.0  ;;  %v5660_v12 = vrot.slane %v4165_v11, %v4896_v57 }
 0x643   : > { %v3239_v19 = vmax.f32 %v3187_v2, 0.0 }
 0x644   : > { %v3240_v24 = vmax.f32 %v3189_v59, 0.0 }
 0x645   : > { %v3261_v8 = vpack.c.bf16 %v3239_v19, %v3237_v29 }
 0x646   : > { %v3262_v9 = vpack.c.bf16 %v3240_v24, %v3238_v61 }
 0x648   : > { %3547 = vmatprep.mubr.bf16.mxu0 %v3262_v9 }
 0x649   : > { %3548 = vmatmul.mubr.bf16.gmra.mrb[112].mxu0 %v3261_v8 }
 0x651   : > { %v3192_v54 = vpop.f32.mrb[84].mxu1 }
 0x652   : > { %v3193_v53 = vadd.f32 %v3192_v54, %v5571_v55  ;;  %v3194_v33 = vpop.f32.mrb[85].mxu1 }
 0x653   : > { %v3195_v27 = vadd.f32 %v3194_v33, %v5574_v4  ;;  %v3196_v49 = vpop.f32.mrb[86].mxu1 }
 0x654   : > { %v3197_v43 = vadd.f32 %v3196_v49, %v5571_v55  ;;  %v3198_v13 = vpop.f32.mrb[87].mxu1  ;;  %v3241_v23 = vmax.f32 %v3193_v53, 0.0 }
 0x655   : > { %v3199_v52 = vadd.f32 %v3198_v13, %v5574_v4  ;;  %v3242_v14 = vmax.f32 %v3195_v27, 0.0 }
 0x656   : > { %v3243_v21 = vmax.f32 %v3197_v43, 0.0 }
 0x657   : > { %v3244_v7 = vmax.f32 %v3199_v52, 0.0 }
 0x658   : > { %v3263_v15 = vpack.c.bf16 %v3243_v21, %v3241_v23 }
 0x659   : > { %v3264_v46 = vpack.c.bf16 %v3244_v7, %v3242_v14 }
 0x65b   : > { %3557 = vmatprep.mubr.bf16.mxu0 %v3264_v46 }
 0x65c   : > { %3558 = vmatmul.mubr.bf16.gmra.mrb[116].mxu0 %v3263_v15 }
 0x664   : > { %v3202_v6 = vpop.f32.mrb[88].mxu1 }
 0x665   : > { %v3203_v62 = vadd.f32 %v3202_v6, %v5571_v55  ;;  %v3204_v22 = vpop.f32.mrb[89].mxu1 }
 0x666   : > { %v3205_v36 = vadd.f32 %v3204_v22, %v5574_v4  ;;  %v3206_v47 = vpop.f32.mrb[90].mxu1 }
 0x667   : > { %v3207_v20 = vadd.f32 %v3206_v47, %v5571_v55  ;;  %v3208_v34 = vpop.f32.mrb[91].mxu1  ;;  %v3245_v48 = vmax.f32 %v3203_v62, 0.0 }
 0x668   : > { %v3209_v31 = vadd.f32 %v3208_v34, %v5574_v4  ;;  %v3246_v32 = vmax.f32 %v3205_v36, 0.0 }
 0x669   : > { %v3247_v39 = vmax.f32 %v3207_v20, 0.0 }
 0x66a   : > { %v3248_v1 = vmax.f32 %v3209_v31, 0.0 }
 0x66b   : > { %v3265_v26 = vpack.c.bf16 %v3247_v39, %v3245_v48 }
 0x66c   : > { %v3266_v28 = vpack.c.bf16 %v3248_v1, %v3246_v32 }
 0x66e   : > { %3567 = vmatprep.mubr.bf16.mxu0 %v3266_v28 }
 0x66f   : > { %3568 = vmatmul.mubr.bf16.gmra.mrb[120].mxu0 %v3265_v26 }
 0x677   : > { %v3212_v42 = vpop.f32.mrb[92].mxu1 }
 0x678   : > { %v3213_v44 = vadd.f32 %v3212_v42, %v5571_v55  ;;  %v3214_v40 = vpop.f32.mrb[93].mxu1 }
 0x679   : > { %v3215_v25 = vadd.f32 %v3214_v40, %v5574_v4  ;;  %v3216_v35 = vpop.f32.mrb[94].mxu1 }
 0x67a   : > { %v3217_v37 = vadd.f32 %v3216_v35, %v5571_v55  ;;  %v3218_v60 = vpop.f32.mrb[95].mxu1  ;;  %v3249_v56 = vmax.f32 %v3213_v44, 0.0  ;;  %v5663_v55 = vrot.slane %v4165_v11, %v4898_v58 }
 0x67b   : > { %v3219_v5 = vadd.f32 %v3218_v60, %v5574_v4  ;;  %v3250_v38 = vmax.f32 %v3215_v25, 0.0 }
 0x67c   : > { %v3251_v51 = vmax.f32 %v3217_v37, 0.0 }
 0x67d   : > { %v3252_v45 = vmax.f32 %v3219_v5, 0.0 }
 0x67e   : > { %v3267_v10 = vpack.c.bf16 %v3251_v51, %v3249_v56 }
 0x67f   : > { %v3268_v50 = vpack.c.bf16 %v3252_v45, %v3250_v38 }
 0x681   : > { %3577 = vmatprep.mubr.bf16.mxu0 %v3268_v50 }
 0x682   : > { %3578 = vmatmul.mubr.bf16.gmra.mrb[124].mxu0 %v3267_v10 }
 0x6da   : > { %v3509_v0 = vpop.f32.mrb[96].mxu0 }
 0x6db   : > { %v3510_v4 = vadd.f32 %v3509_v0, %v5660_v12  ;;  %v3511_v63 = vpop.f32.mrb[97].mxu0 }
 0x6dc   : > { %v3512_v2 = vadd.f32 %v3511_v63, %v5663_v55  ;;  %v3513_v3 = vpop.f32.mrb[98].mxu0 }
 0x6dd   : > { %v3514_v59 = vadd.f32 %v3513_v3, %v5660_v12  ;;  %v3515_v29 = vpop.f32.mrb[99].mxu0  ;;  %v3588_v61 = vmax.f32 %v3510_v4, 0.0 }
 0x6de   : > { %v3516_v19 = vadd.f32 %v3515_v29, %v5663_v55  ;;  %v3589_v8 = vmax.f32 %v3512_v2, 0.0 }
 0x6df   : > { %v3590_v24 = vmax.f32 %v3514_v59, 0.0 }
 0x6e0   : > { %v3591_v57 = vmax.f32 %v3516_v19, 0.0 }
 0x6e1   : > { %v3620_v9 = vpack.c.bf16 %v3590_v24, %v3588_v61 }
 0x6e2   : > { %v3621_v54 = vpack.c.bf16 %v3591_v57, %v3589_v8 }
 0x6e3   : > { %v3519_v58 = vpop.f32.mrb[100].mxu0 }
 0x6e4   : > { %v3520_v53 = vadd.f32 %v3519_v58, %v5660_v12  ;;  %v3521_v33 = vpop.f32.mrb[101].mxu0  ;;  %3803 = vmatprep.mubr.bf16.mxu1 %v3621_v54 }
 0x6e5   : > { %v3522_v27 = vadd.f32 %v3521_v33, %v5663_v55  ;;  %v3523_v49 = vpop.f32.mrb[102].mxu0  ;;  %3804 = vmatmul.mubr.bf16.vlgmr.msra.gmra.mrb[96].mxu1 %v3620_v9 }
 0x6e6   : > { %v3524_v43 = vadd.f32 %v3523_v49, %v5660_v12  ;;  %v3525_v13 = vpop.f32.mrb[103].mxu0  ;;  %v3592_v23 = vmax.f32 %v3520_v53, 0.0 }
 0x6e7   : > { %v3526_v52 = vadd.f32 %v3525_v13, %v5663_v55  ;;  %v3593_v14 = vmax.f32 %v3522_v27, 0.0 }
 0x6e8   : > { %v3594_v21 = vmax.f32 %v3524_v43, 0.0 }
 0x6e9   : > { %v3595_v7 = vmax.f32 %v3526_v52, 0.0 }
 0x6ea   : > { %v3622_v15 = vpack.c.bf16 %v3594_v21, %v3592_v23 }
 0x6eb   : > { %v3623_v46 = vpack.c.bf16 %v3595_v7, %v3593_v14 }
 0x6ed   : > { %3811 = vmatprep.mubr.bf16.mxu1 %v3623_v46 }
 0x6ee   : > { %3812 = vmatmul.mubr.bf16.gmra.mrb[100].mxu1 %v3622_v15 }
 0x6f6   : > { %v3529_v16 = vpop.f32.mrb[104].mxu0 }
 0x6f7   : > { %v3530_v6 = vadd.f32 %v3529_v16, %v5660_v12  ;;  %v3531_v62 = vpop.f32.mrb[105].mxu0 }
 0x6f8   : > { %v3532_v22 = vadd.f32 %v3531_v62, %v5663_v55  ;;  %v3533_v17 = vpop.f32.mrb[106].mxu0 }
 0x6f9   : > { %v3534_v30 = vadd.f32 %v3533_v17, %v5660_v12  ;;  %v3535_v18 = vpop.f32.mrb[107].mxu0  ;;  %v3596_v47 = vmax.f32 %v3530_v6, 0.0 }
 0x6fa   : > { %v3536_v36 = vadd.f32 %v3535_v18, %v5663_v55  ;;  %v3597_v34 = vmax.f32 %v3532_v22, 0.0 }
 0x6fb   : > { %v3598_v20 = vmax.f32 %v3534_v30, 0.0 }
 0x6fc   : > { %v3599_v31 = vmax.f32 %v3536_v36, 0.0 }
 0x6fd   : > { %v3624_v41 = vpack.c.bf16 %v3598_v20, %v3596_v47 }
 0x6fe   : > { %v3625_v48 = vpack.c.bf16 %v3599_v31, %v3597_v34 }
 0x700   : > { %3819 = vmatprep.mubr.bf16.mxu1 %v3625_v48 }
 0x701   : > { %3820 = vmatmul.mubr.bf16.gmra.mrb[104].mxu1 %v3624_v41 }
 0x709   : > { %v3539_v39 = vpop.f32.mrb[108].mxu0 }
 0x70a   : > { %v3540_v32 = vadd.f32 %v3539_v39, %v5660_v12  ;;  %v3541_v1 = vpop.f32.mrb[109].mxu0 }
 0x70b   : > { %v3542_v26 = vadd.f32 %v3541_v1, %v5663_v55  ;;  %v3543_v28 = vpop.f32.mrb[110].mxu0 }
 0x70c   : > { %v3544_v42 = vadd.f32 %v3543_v28, %v5660_v12  ;;  %v3545_v44 = vpop.f32.mrb[111].mxu0  ;;  %v3600_v25 = vmax.f32 %v3540_v32, 0.0 }
 0x70d   : > { %v3546_v40 = vadd.f32 %v3545_v44, %v5663_v55  ;;  %v3601_v37 = vmax.f32 %v3542_v26, 0.0 }
 0x70e   : > { %v3602_v35 = vmax.f32 %v3544_v42, 0.0 }
 0x70f   : > { %v3603_v60 = vmax.f32 %v3546_v40, 0.0 }
 0x710   : > { %v3626_v5 = vpack.c.bf16 %v3602_v35, %v3600_v25  ;;  %v5700_v35 = vld [vmem:[%s5767_s7] ss:$0 sm:$0xff] }
 0x711   : > { %v3627_v56 = vpack.c.bf16 %v3603_v60, %v3601_v37 }
 0x713   : > { %3827 = vmatprep.mubr.bf16.mxu1 %v3627_v56 }
 0x714   : > { %3828 = vmatmul.mubr.bf16.gmra.mrb[108].mxu1 %v3626_v5 }
 0x71c   : > { %v3549_v51 = vpop.f32.mrb[112].mxu0 }
 0x71d   : > { %v3550_v38 = vadd.f32 %v3549_v51, %v5660_v12  ;;  %v3551_v45 = vpop.f32.mrb[113].mxu0 }
 0x71e   : > { %v3552_v10 = vadd.f32 %v3551_v45, %v5663_v55  ;;  %v3553_v50 = vpop.f32.mrb[114].mxu0 }
 0x71f   : > { %v3554_v11 = vadd.f32 %v3553_v50, %v5660_v12  ;;  %v3555_v0 = vpop.f32.mrb[115].mxu0  ;;  %v3604_v63 = vmax.f32 %v3550_v38, 0.0 }
 0x720   : > { %v3556_v4 = vadd.f32 %v3555_v0, %v5663_v55  ;;  %v3605_v3 = vmax.f32 %v3552_v10, 0.0 }
 0x721   : > { %v3606_v2 = vmax.f32 %v3554_v11, 0.0 }
 0x722   : > { %v3607_v59 = vmax.f32 %v3556_v4, 0.0 }
 0x723   : > { %v3628_v29 = vpack.c.bf16 %v3606_v2, %v3604_v63 }
 0x724   : > { %v3629_v19 = vpack.c.bf16 %v3607_v59, %v3605_v3 }
 0x726   : > { %3835 = vmatprep.mubr.bf16.mxu1 %v3629_v19 }
 0x727   : > { %3836 = vmatmul.mubr.bf16.gmra.mrb[112].mxu1 %v3628_v29 }
 0x72f   : > { %v3559_v61 = vpop.f32.mrb[116].mxu0 }
 0x730   : > { %v3560_v24 = vadd.f32 %v3559_v61, %v5660_v12  ;;  %v3561_v8 = vpop.f32.mrb[117].mxu0 }
 0x731   : > { %v3562_v57 = vadd.f32 %v3561_v8, %v5663_v55  ;;  %v3563_v9 = vpop.f32.mrb[118].mxu0 }
 0x732   : > { %v3564_v54 = vadd.f32 %v3563_v9, %v5660_v12  ;;  %v3565_v58 = vpop.f32.mrb[119].mxu0  ;;  %v3608_v33 = vmax.f32 %v3560_v24, 0.0 }
 0x733   : > { %v3566_v53 = vadd.f32 %v3565_v58, %v5663_v55  ;;  %v3609_v49 = vmax.f32 %v3562_v57, 0.0 }
 0x734   : > { %v3610_v27 = vmax.f32 %v3564_v54, 0.0 }
 0x735   : > { %v3611_v43 = vmax.f32 %v3566_v53, 0.0 }
 0x736   : > { %v3630_v13 = vpack.c.bf16 %v3610_v27, %v3608_v33 }
 0x737   : > { %v3631_v52 = vpack.c.bf16 %v3611_v43, %v3609_v49 }
 0x739   : > { %3843 = vmatprep.mubr.bf16.mxu1 %v3631_v52 }
 0x73a   : > { %3844 = vmatmul.mubr.bf16.gmra.mrb[116].mxu1 %v3630_v13 }
 0x742   : > { %v3569_v23 = vpop.f32.mrb[120].mxu0 }
 0x743   : > { %v3570_v21 = vadd.f32 %v3569_v23, %v5660_v12  ;;  %v3571_v14 = vpop.f32.mrb[121].mxu0 }
 0x744   : > { %v3572_v7 = vadd.f32 %v3571_v14, %v5663_v55  ;;  %v3573_v15 = vpop.f32.mrb[122].mxu0 }
 0x745   : > { %v3574_v46 = vadd.f32 %v3573_v15, %v5660_v12  ;;  %v3575_v16 = vpop.f32.mrb[123].mxu0  ;;  %v3612_v62 = vmax.f32 %v3570_v21, 0.0 }
 0x746   : > { %v3576_v6 = vadd.f32 %v3575_v16, %v5663_v55  ;;  %v3613_v17 = vmax.f32 %v3572_v7, 0.0 }
 0x747   : > { %v3614_v22 = vmax.f32 %v3574_v46, 0.0 }
 0x748   : > { %v3615_v30 = vmax.f32 %v3576_v6, 0.0 }
 0x749   : > { %v3632_v18 = vpack.c.bf16 %v3614_v22, %v3612_v62 }
 0x74a   : > { %v3633_v36 = vpack.c.bf16 %v3615_v30, %v3613_v17 }
 0x74c   : > { %3851 = vmatprep.mubr.bf16.mxu1 %v3633_v36 }
 0x74d   : > { %3852 = vmatmul.mubr.bf16.gmra.mrb[120].mxu1 %v3632_v18 }
 0x755   : > { %v3579_v47 = vpop.f32.mrb[124].mxu0 }
 0x756   : > { %v3580_v20 = vadd.f32 %v3579_v47, %v5660_v12  ;;  %v3581_v34 = vpop.f32.mrb[125].mxu0 }
 0x757   : > { %v3582_v31 = vadd.f32 %v3581_v34, %v5663_v55  ;;  %v3583_v41 = vpop.f32.mrb[126].mxu0 }
 0x758   : > { %v3584_v48 = vadd.f32 %v3583_v41, %v5660_v12  ;;  %v3585_v39 = vpop.f32.mrb[127].mxu0  ;;  %v3616_v1 = vmax.f32 %v3580_v20, 0.0 }
 0x759   : > { %v3586_v32 = vadd.f32 %v3585_v39, %v5663_v55  ;;  %v3617_v28 = vmax.f32 %v3582_v31, 0.0 }
 0x75a   : > { %v3618_v26 = vmax.f32 %v3584_v48, 0.0 }
 0x75b   : > { %v3619_v42 = vmax.f32 %v3586_v32, 0.0 }
 0x75c   : > { %v3634_v44 = vpack.c.bf16 %v3618_v26, %v3616_v1 }
 0x75d   : > { %v3635_v40 = vpack.c.bf16 %v3619_v42, %v3617_v28 }
 0x75f   : > { %3859 = vmatprep.mubr.bf16.mxu1 %v3635_v40 }
 0x760   : > { %3860 = vmatmul.mubr.bf16.gmra.mrb[124].mxu1 %v3634_v44 }
 0x7b8   : > { %v4233_v25 = vpop.f32.mrb[96].mxu1 }
 0x7b9   : > { %v4234_v37 = vpop.f32.mrb[97].mxu1 }
 0x7ba   : > { %v4235_v12 = vadd.f32 %v4234_v37, %v4233_v25  ;;  %v4236_v60 = vpop.f32.mrb[98].mxu1 }
 0x7bb   : > { %v4237_v55 = vpop.f32.mrb[99].mxu1 }
 0x7bc   : > { %v3806_v5 = vadd.f32 %v4235_v12, %v5700_v35  ;;  %v4238_v56 = vadd.f32 %v4237_v55, %v4236_v60 }
 0x7be   : > { %3869 = vst.msk [vmem:[%s5707_s15] sm:$0xff] %vm3868_vm0, %v3806_v5  ;;  %v3809_v51 = vadd.f32 %v4238_v56, %v5700_v35 }
 0x7c0   : > { %3870 = vst.msk [vmem:[%s5707_s15 + $0x8] sm:$0xff] %vm3868_vm0, %v3809_v51 }
 0x7c1   : > { %v4239_v38 = vpop.f32.mrb[100].mxu1 }
 0x7c2   : > { %v4240_v45 = vpop.f32.mrb[101].mxu1 }
 0x7c3   : > { %v4241_v10 = vadd.f32 %v4240_v45, %v4239_v38  ;;  %v4242_v50 = vpop.f32.mrb[102].mxu1 }
 0x7c4   : > { %v4243_v11 = vpop.f32.mrb[103].mxu1 }
 0x7c5   : > { %v3814_v0 = vadd.f32 %v4241_v10, %v5700_v35  ;;  %v4244_v4 = vadd.f32 %v4243_v11, %v4242_v50 }
 0x7c7   : > { %3871 = vst.msk [vmem:[%s5707_s15 + $0x10] sm:$0xff] %vm3868_vm0, %v3814_v0  ;;  %v3817_v63 = vadd.f32 %v4244_v4, %v5700_v35 }
 0x7c9   : > { %3872 = vst.msk [vmem:[%s5707_s15 + $0x18] sm:$0xff] %vm3868_vm0, %v3817_v63 }
 0x7d4   : > { %v4245_v2 = vpop.f32.mrb[104].mxu1 }
 0x7d5   : > { %v4246_v3 = vpop.f32.mrb[105].mxu1 }
 0x7d6   : > { %v4247_v59 = vadd.f32 %v4246_v3, %v4245_v2  ;;  %v4248_v29 = vpop.f32.mrb[106].mxu1 }
 0x7d7   : > { %v4249_v19 = vpop.f32.mrb[107].mxu1 }
 0x7d8   : > { %v3822_v61 = vadd.f32 %v4247_v59, %v5700_v35  ;;  %v4250_v24 = vadd.f32 %v4249_v19, %v4248_v29 }
 0x7da   : > { %3873 = vst.msk [vmem:[%s5707_s15 + $0x20] sm:$0xff] %vm3868_vm0, %v3822_v61  ;;  %v3825_v8 = vadd.f32 %v4250_v24, %v5700_v35 }
 0x7dc   : > { %3874 = vst.msk [vmem:[%s5707_s15 + $0x28] sm:$0xff] %vm3868_vm0, %v3825_v8 }
 0x7e7   : > { %v4251_v57 = vpop.f32.mrb[108].mxu1 }
 0x7e8   : > { %v4252_v9 = vpop.f32.mrb[109].mxu1 }
 0x7e9   : > { %v4253_v54 = vadd.f32 %v4252_v9, %v4251_v57  ;;  %v4254_v58 = vpop.f32.mrb[110].mxu1 }
 0x7ea   : > { %v4255_v53 = vpop.f32.mrb[111].mxu1 }
 0x7eb   : > { %v3830_v33 = vadd.f32 %v4253_v54, %v5700_v35  ;;  %v4256_v27 = vadd.f32 %v4255_v53, %v4254_v58 }
 0x7ed   : > { %3875 = vst.msk [vmem:[%s5707_s15 + $0x30] sm:$0xff] %vm3868_vm0, %v3830_v33  ;;  %v3833_v49 = vadd.f32 %v4256_v27, %v5700_v35 }
 0x7ef   : > { %3876 = vst.msk [vmem:[%s5707_s15 + $0x38] sm:$0xff] %vm3868_vm0, %v3833_v49 }
 0x7fa   : > { %v4257_v43 = vpop.f32.mrb[112].mxu1 }
 0x7fb   : > { %v4258_v13 = vpop.f32.mrb[113].mxu1 }
 0x7fc   : > { %v4259_v52 = vadd.f32 %v4258_v13, %v4257_v43  ;;  %v4260_v23 = vpop.f32.mrb[114].mxu1 }
 0x7fd   : > { %v4261_v21 = vpop.f32.mrb[115].mxu1 }
 0x7fe   : > { %v3838_v14 = vadd.f32 %v4259_v52, %v5700_v35  ;;  %v4262_v7 = vadd.f32 %v4261_v21, %v4260_v23 }
 0x800   : > { %3877 = vst.msk [vmem:[%s5707_s15 + $0x40] sm:$0xff] %vm3868_vm0, %v3838_v14  ;;  %v3841_v15 = vadd.f32 %v4262_v7, %v5700_v35 }
 0x802   : > { %3878 = vst.msk [vmem:[%s5707_s15 + $0x48] sm:$0xff] %vm3868_vm0, %v3841_v15 }
 0x80d   : > { %v4263_v46 = vpop.f32.mrb[116].mxu1 }
 0x80e   : > { %v4264_v16 = vpop.f32.mrb[117].mxu1 }
 0x80f   : > { %v4265_v6 = vadd.f32 %v4264_v16, %v4263_v46  ;;  %v4266_v62 = vpop.f32.mrb[118].mxu1 }
 0x810   : > { %v4267_v22 = vpop.f32.mrb[119].mxu1 }
 0x811   : > { %v3846_v17 = vadd.f32 %v4265_v6, %v5700_v35  ;;  %v4268_v30 = vadd.f32 %v4267_v22, %v4266_v62 }
 0x813   : > { %3879 = vst.msk [vmem:[%s5707_s15 + $0x50] sm:$0xff] %vm3868_vm0, %v3846_v17  ;;  %v3849_v18 = vadd.f32 %v4268_v30, %v5700_v35 }
 0x815   : > { %3880 = vst.msk [vmem:[%s5707_s15 + $0x58] sm:$0xff] %vm3868_vm0, %v3849_v18 }
 0x820   : > { %v4269_v36 = vpop.f32.mrb[120].mxu1 }
 0x821   : > { %v4270_v47 = vpop.f32.mrb[121].mxu1 }
 0x822   : > { %v4271_v20 = vadd.f32 %v4270_v47, %v4269_v36  ;;  %v4272_v34 = vpop.f32.mrb[122].mxu1 }
 0x823   : > { %v4273_v31 = vpop.f32.mrb[123].mxu1 }
 0x824   : > { %v3854_v41 = vadd.f32 %v4271_v20, %v5700_v35  ;;  %v4274_v48 = vadd.f32 %v4273_v31, %v4272_v34 }
 0x826   : > { %3881 = vst.msk [vmem:[%s5707_s15 + $0x60] sm:$0xff] %vm3868_vm0, %v3854_v41  ;;  %v3857_v39 = vadd.f32 %v4274_v48, %v5700_v35 }
 0x828   : > { %3882 = vst.msk [vmem:[%s5707_s15 + $0x68] sm:$0xff] %vm3868_vm0, %v3857_v39 }
 0x833   : > { %v4275_v32 = vpop.f32.mrb[124].mxu1 }
 0x834   : > { %v4276_v1 = vpop.f32.mrb[125].mxu1 }
 0x835   : > { %v4277_v26 = vadd.f32 %v4276_v1, %v4275_v32  ;;  %v4278_v28 = vpop.f32.mrb[126].mxu1 }
 0x836   : > { %v4279_v42 = vpop.f32.mrb[127].mxu1 }
 0x837   : > { %v3862_v44 = vadd.f32 %v4277_v26, %v5700_v35  ;;  %v4280_v40 = vadd.f32 %v4279_v42, %v4278_v28 }
 0x839   : > { %3883 = vst.msk [vmem:[%s5707_s15 + $0x70] sm:$0xff] %vm3868_vm0, %v3862_v44  ;;  %v3865_v25 = vadd.f32 %v4280_v40, %v5700_v35 }
 0x83b   : > { %3884 = vst.msk [vmem:[%s5707_s15 + $0x78] sm:$0xff] %vm3868_vm0, %v3865_v25 }
 0x83c PF: > { %s19_s27 = sadd.s32 1, %s4723_s27  }
 0x83d   : > { %p16_p3 = scmp.ge.s32.totalorder %s19_s27, 6  }
 0x83f   :  { %18 = sbr.rel (!%p16_p3) target bundleno = 1 (0x1), region = 103 }
 0x846   :  { %3907 = vsyncpa [#allocation3], 1 }
 0x847   :  { %3909 = vsyncpa [#allocation3 + $0x1], 1 }

// kernel: tpu_custom_call.1
= control target key start
LH: loop header
LB: loop body
LE: loop exit
PB: predicated region body
PF: predicated region fallthrough
CT: control target
= control target key end

     0   :  { %13 = vsyncpa [#allocation3], 0  ;;  %s4776_s27 = smov 0   ;;  %s5760_s0 = inlined_call_operand.vmem [shape: f32[512,8], index: 0, kind: input, shape index: {}]   ;;  %s5761_s1 = inlined_call_operand.vmem [shape: f32[8,256], index: 1, kind: input, shape index: {}]   ;;  %s5762_s2 = inlined_call_operand.vmem [shape: f32[1,256], index: 2, kind: input, shape index: {}]   ;;  %s5763_s3 = inlined_call_operand.vmem [shape: f32[8,256], index: 3, kind: input, shape index: {}]   ;;  %s5764_s4 = inlined_call_operand.hbm [shape: bf16[7,256,256], index: 4, kind: input, shape index: {}]   ;;  %s5765_s5 = inlined_call_operand.vmem [shape: f32[7,256], index: 5, kind: input, shape index: {}]   ;;  %s5766_s6 = inlined_call_operand.vmem [shape: bf16[256,8], index: 6, kind: input, shape index: {}]   ;;  %s5767_s7 = inlined_call_operand.vmem [shape: f32[1,8], index: 7, kind: input, shape index: {}]   ;;  %s5768_s8 = inlined_call_operand.vmem [shape: f32[512,8], index: 8, kind: output, shape index: {}]  }
   0x1 LB: > { %s3953_s28 = sadd.s32 4294967295, %s4723_s27   ;;  %p3955_p0 = scmp.ge.s32.totalorder %s4723_s27, 1  ;;  %s4723_s27 = sphi %s4776_s27, %s19_s27  }
   0x2   : > { %p223_p1 = scmp.lt.s32.totalorder %s4723_s27, 5  ;;  %s4725_s29 = smov [#allocation2]  }
   0x3   : > { %s244_s30 = sshll.u32 %s4725_s29, 4  ;;  %p4790_p3 = scmp.eq.s32.totalorder %s3953_s28, 0  ;;  %s245_s30 = int_to_ptr.vmem [resolvable:$true] %s244_s30 }
   0x4   : > { %p4784_p2 = pnand %p3955_p0, %p223_p1  ;;  %s4685_s14 = scalar_lea.hbm %s5764_s4, 28672 }
   0x5   : > { %s5773_s10 = scalar_select %p4790_p3, 1, 0 }
   0x6   : > { %s5772_s9 = scalar_select %p4784_p2, 1, 0 }
   0x7   : > { %p4285_p4 = pneg %p4784_p2  ;;  %p4686_p6 = scmp.ne.s32.totalorder %s5764_s4, %s4685_s14 }
   0x8   : > { %p4692_p10 = scmp.lt.u32.totalorder %s4685_s14, %s5764_s4 }
   0x9   : > { %p4798_p5 = pnand %p4790_p3, %p4285_p4 }
   0xb   : > { %p4687_p7 = pneg %p4798_p5 }
   0xd   : > { %p4688_p8 = pnand %p4687_p7, %p4686_p6 }
   0xf   : > { %p4689_p9 = pneg %p4688_p8 }
  0x11   : > { %p4694_p11 = pnand %p4692_p10, %p4689_p9 }
  0x13   : > { %4697 = shalt.err (!%p4694_p11)
}
  0x14   : > { %s4698_s19 = scalar_lea.vmem %s245_s30, 28672  ;;  %p4706_p1 = scmp.lt.s32.totalorder %s245_s30, %s245_s30 }
  0x15   : > { %p4699_p12 = scmp.ne.s32.totalorder %s245_s30, %s4698_s19  ;;  %p4707_p4 = scmp.lt.s32.totalorder %s4698_s19, %s4698_s19 }
  0x17   : > { %p4701_p13 = pnand %p4699_p12, %p4687_p7  ;;  %p4708_p3 = por %p4707_p4, %p4706_p1 }
  0x19   : > { %p4702_p0 = pneg %p4701_p13 }
  0x1b   : > { %p4709_p2 = pnand %p4708_p3, %p4702_p0 }
  0x1d   : > { %4712 = shalt.err (!%p4709_p2)
}
  0x1e   : > { %s4726_s20 = smov 128   ;;  %s4727_s21 = smov 8  }
  0x1f   : > { %4288 = dma.hbm_to_vmem [thread:$0]  (!%p4798_p5), %s5764_s4, 28672, %s245_s30, [#allocation3], %s4726_s20, %s4726_s20, %s4727_s21  }
  0x20   : > { %p5775_p6 = scmp.ne.s32.totalorder %s5772_s9, 0 }
  0x22   : > { %278 = sbr.rel (%p5775_p6) target bundleno = 2108 (0x83c), region = 52 }
  0x29   : > { %p5776_p8 = scmp.ne.s32.totalorder %s5773_s10, 0 }
  0x2b   : > { %4718 = dma.done.wait (%p5776_p8), [#allocation3], 28672  }
  0x2c   : > { %4720 = vsyncadd (%p5776_p8), [#allocation3], 4294938624  ;;  %s3960_s24 = sshll.u32 %s3953_s28, 4  ;;  %v4728_v0 = vmov 2   ;;  %v4729_v1 = vmov 1   ;;  %v4730_v13 = vmov 0   ;;  %v423_v51 = vlaneseq }
  0x2d   : > { %4306 = vset.pattern.permute.xlu0 %v4728_v0  ;;  %4305 = vset.pattern.permute.xlu1 %v4729_v1  ;;  %p313_p2 = scmp.lt.s32.totalorder %s3960_s24, 63  ;;  %v4333_v5 = vld [vmem:[#allocation2 + $0x4] ss:$8 sps:$4 sm:$0xff]   ;;  %v4335_v6 = vld [vmem:[#allocation2] ss:$8 sps:$4 sm:$0xff]   ;;  %vm3868_vm0 = vcmask 64512  }
  0x2e   : > { %1043 = vmatprep.subr.bf16.mxu0 %v4333_v5  ;;  %v4336_v8 = vld [vmem:[#allocation2 + $0x14] ss:$8 sps:$4 sm:$0xff]   ;;  %v4338_v9 = vld [vmem:[#allocation2 + $0x10] ss:$8 sps:$4 sm:$0xff]   ;;  %v4339_v10 = vld [vmem:[#allocation2 + $0x24] ss:$8 sps:$4 sm:$0xff]  }
  0x2f   : > { %s5792_s24 = smov (!%p313_p2, %s3960_s24), 63  ;;  %1044 = vmatpush1.bf16.msra.mxu0 %v4335_v6  ;;  %v4341_v11 = vld [vmem:[#allocation2 + $0x20] ss:$8 sps:$4 sm:$0xff]   ;;  %v4342_v12 = vld [vmem:[#allocation2 + $0x34] ss:$8 sps:$4 sm:$0xff]   ;;  %v424_v54 = vshrl.u32 %v423_v51, 7 }
  0x30   : > { %s3961_s25 = sshll.u32 %s5792_s24, 3  ;;  %1045 = vmatprep.subr.bf16.mxu0 %v4336_v8  ;;  %v4344_v14 = vld [vmem:[#allocation2 + $0x30] ss:$8 sps:$4 sm:$0xff]   ;;  %v4345_v15 = vld [vmem:[#allocation2 + $0x44] ss:$8 sps:$4 sm:$0xff]  }
  0x31   : > { %s4836_s30 = scalar_lea.vmem %s5760_s0, %s3961_s25  ;;  %v4347_v17 = vld [vmem:[#allocation2 + $0x40] ss:$8 sps:$4 sm:$0xff]   ;;  %v4348_v18 = vld [vmem:[#allocation2 + $0x54] ss:$8 sps:$4 sm:$0xff]   ;;  %v4350_v20 = vld [vmem:[#allocation2 + $0x50] ss:$8 sps:$4 sm:$0xff]   ;;  %s5707_s15 = scalar_lea.vmem %s5768_s8, %s3961_s25 }
  0x32   : > { %v325_v2 = vld [vmem:[%s4836_s30] sm:$0xff]  ;;  %v327_v3 = vld [vmem:[%s4836_s30 + $0x10] sm:$0xff]  ;;  %v326_v4 = vld [vmem:[%s4836_s30 + $0x8] sm:$0xff]  ;;  %v4896_v57 = vsub.s32 0, %v424_v54  ;;  %v4898_v58 = vsub.s32 1, %v424_v54 }
  0x33   : > { %609 = vperm.xlu0 %4306, %v325_v2   ;;  %468 = vperm.xlu1 %4305, %v325_v2   ;;  %v329_v7 = vld [vmem:[%s4836_s30 + $0x20] sm:$0xff]  ;;  %v328_v16 = vld [vmem:[%s4836_s30 + $0x18] sm:$0xff]  ;;  %v330_v19 = vld [vmem:[%s4836_s30 + $0x28] sm:$0xff] }
  0x34   : > { %1046 = vmatpush1.bf16.msra.mxu0 %v4338_v9  ;;  %v4351_v21 = vld [vmem:[#allocation2 + $0x64] ss:$8 sps:$4 sm:$0xff]   ;;  %v4849_v22 = vld [vmem:[%s4836_s30 + $0x38] sm:$0xff]  ;;  %v4353_v23 = vld [vmem:[#allocation2 + $0x60] ss:$8 sps:$4 sm:$0xff]  }
  0x35   : > { %1047 = vmatprep.subr.bf16.mxu0 %v4339_v10  ;;  %v4354_v24 = vld [vmem:[#allocation2 + $0x74] ss:$8 sps:$4 sm:$0xff]   ;;  %v4853_v25 = vld [vmem:[%s4836_s30 + $0x48] sm:$0xff]  ;;  %v4356_v26 = vld [vmem:[#allocation2 + $0x70] ss:$8 sps:$4 sm:$0xff]  }
  0x36   : > { %v4357_v27 = vld [vmem:[#allocation2 + $0x84] ss:$8 sps:$4 sm:$0xff]   ;;  %v4858_v28 = vld [vmem:[%s4836_s30 + $0x58] sm:$0xff]  ;;  %v4359_v29 = vld [vmem:[#allocation2 + $0x80] ss:$8 sps:$4 sm:$0xff]  }
  0x37   : > { %617 = vperm.xlu0 %4306, %v327_v3   ;;  %472 = vperm.xlu1 %4305, %v326_v4   ;;  %v4360_v30 = vld [vmem:[#allocation2 + $0x94] ss:$8 sps:$4 sm:$0xff]   ;;  %v4362_v31 = vld [vmem:[#allocation2 + $0x90] ss:$8 sps:$4 sm:$0xff]   ;;  %v4363_v32 = vld [vmem:[#allocation2 + $0xa4] ss:$8 sps:$4 sm:$0xff]  }
  0x38   : > { %1048 = vmatpush1.bf16.msra.mxu0 %v4341_v11  ;;  %v331_v33 = vld [vmem:[%s4836_s30 + $0x30] sm:$0xff]  ;;  %v4365_v34 = vld [vmem:[#allocation2 + $0xa0] ss:$8 sps:$4 sm:$0xff]   ;;  %v4369_v38 = vld [vmem:[#allocation2 + $0xc4] ss:$8 sps:$4 sm:$0xff]  }
  0x39   : > { %1049 = vmatprep.subr.bf16.mxu0 %v4342_v12  ;;  %v4366_v35 = vld [vmem:[#allocation2 + $0xb4] ss:$8 sps:$4 sm:$0xff]   ;;  %v333_v36 = vld [vmem:[%s4836_s30 + $0x40] sm:$0xff]  ;;  %v4368_v37 = vld [vmem:[#allocation2 + $0xb0] ss:$8 sps:$4 sm:$0xff]  }
  0x3a   : > { %v335_v39 = vld [vmem:[%s4836_s30 + $0x50] sm:$0xff]  ;;  %v337_v40 = vld [vmem:[%s4836_s30 + $0x60] sm:$0xff]  ;;  %v338_v44 = vld [vmem:[%s4836_s30 + $0x68] sm:$0xff] }
  0x3b   : > { %625 = vperm.xlu0 %4306, %v329_v7   ;;  %4307 = vset.pattern.permute.xlu1 %v4728_v0  ;;  %v4371_v41 = vld [vmem:[#allocation2 + $0xc0] ss:$8 sps:$4 sm:$0xff]   ;;  %v4372_v42 = vld [vmem:[#allocation2 + $0xd4] ss:$8 sps:$4 sm:$0xff]   ;;  %v4374_v43 = vld [vmem:[#allocation2 + $0xd0] ss:$8 sps:$4 sm:$0xff]  }
  0x3c   : > { %613 = vperm.xlu1 %4307, %v326_v4   ;;  %1050 = vmatpush1.bf16.msra.mxu0 %v4344_v14  ;;  %v4375_v45 = vld [vmem:[#allocation2 + $0xe4] ss:$8 sps:$4 sm:$0xff]   ;;  %v4377_v46 = vld [vmem:[#allocation2 + $0xe0] ss:$8 sps:$4 sm:$0xff]   ;;  %v4874_v47 = vld [vmem:[%s4836_s30 + $0x78] sm:$0xff] }
  0x3d   : > { %1051 = vmatprep.subr.bf16.mxu0 %v4345_v15  ;;  %v4378_v48 = vld [vmem:[#allocation2 + $0xf4] ss:$8 sps:$4 sm:$0xff]   ;;  %v4380_v49 = vld [vmem:[#allocation2 + $0xf0] ss:$8 sps:$4 sm:$0xff]  }
  0x3e   : > { %v339_v50 = vld [vmem:[%s4836_s30 + $0x70] sm:$0xff]  ;;  %v3964_v59 = vld [vmem:[%s5761_s1 + $0x1] ss:$8 sm:$0x3] }
  0x3f   : > { %4313 = vset.pattern.permute.xlu0 %v4730_v13  ;;  %v4130_v60 = vld [vmem:[%s5763_s3 + $0x1] ss:$8 sm:$0x3]  ;;  %v341_v61 = vld [vmem:[%s5761_s1] ss:$8 sm:$0x3]  ;;  %v4949_v12 = vrot.slane %v3964_v59, %v4896_v57 }
  0x40   : > { %344 = vperm.xlu0 %4313, %v325_v2   ;;  %4308 = vset.pattern.permute.xlu1 %v4730_v13  ;;  %v2624_v62 = vld [vmem:[%s5763_s3] ss:$8 sm:$0x3]  ;;  %v3965_v63 = vld [vmem:[%s5761_s1 + $0x2] ss:$8 sm:$0x3]  ;;  %v4919_v2 = vrot.slane %v3964_v59, %v4898_v58  ;;  %v4937_v8 = vrot.slane %v341_v61, %v4896_v57  ;;  %v4940_v9 = vrot.slane %v341_v61, %v4898_v58 }
  0x41   : > { %354 = vperm.xlu1 %4308, %v327_v3   ;;  %1052 = vmatpush1.bf16.msra.mxu0 %v4347_v17  ;;  %v4131_v5 = vld [vmem:[%s5763_s3 + $0x2] ss:$8 sm:$0x3]  ;;  %v4943_v10 = vrot.slane %v2624_v62, %v4896_v57  ;;  %v4946_v11 = vrot.slane %v2624_v62, %v4898_v58  ;;  %v4955_v14 = vrot.slane %v3965_v63, %v4898_v58 }
  0x42   : > { %1053 = vmatprep.subr.bf16.mxu0 %v4348_v18  ;;  %v4958_v15 = vrot.slane %v4131_v5, %v4896_v57 }
  0x44   : > { %349 = vperm.xlu0 %4313, %v326_v4   ;;  %v4925_v4 = vrot.slane %v4130_v60, %v4898_v58 }
  0x45   : > { %4309 = vset.pattern.permute.xlu1 %v4729_v1  ;;  %1054 = vmatpush1.bf16.msra.mxu0 %v4350_v20 }
  0x46   : > { %476 = vperm.xlu1 %4309, %v327_v3   ;;  %1055 = vmatprep.subr.bf16.mxu0 %v4351_v21  ;;  %v4922_v3 = vrot.slane %v4130_v60, %v4896_v57 }
  0x48   : > { %359 = vperm.xlu0 %4313, %v328_v16  }
  0x49   : > { %1056 = vmatpush1.bf16.msra.mxu0 %v4353_v23 }
  0x4a   : > { %480 = vperm.xlu1 %4309, %v328_v16   ;;  %1057 = vmatprep.subr.bf16.mxu0 %v4354_v24 }
  0x4c   : > { %369 = vperm.xlu0 %4313, %v330_v19  }
  0x4d   : > { %1058 = vmatpush1.bf16.msra.mxu0 %v4356_v26 }
  0x4e   : > { %4310 = vset.pattern.permute.xlu1 %v4728_v0  ;;  %1059 = vmatprep.subr.bf16.mxu0 %v4357_v27 }
  0x4f   : > { %621 = vperm.xlu1 %4310, %v328_v16   ;;  %v4961_v16 = vrot.slane %v4131_v5, %v4898_v58 }
  0x50   : > { %379 = vperm.xlu0 %4313, %v4849_v22  }
  0x51   : > { %1060 = vmatpush1.bf16.msra.mxu0 %v4359_v29 }
  0x52   : > { %1061 = vmatprep.subr.bf16.mxu0 %v4360_v30 }
  0x53   : > { %4311 = vset.pattern.permute.xlu1 %v4730_v13 }
  0x54   : > { %364 = vperm.xlu1 %4311, %v329_v7   ;;  %389 = vperm.xlu0 %4313, %v4853_v25  }
  0x55   : > { %1062 = vmatpush1.bf16.msra.mxu0 %v4362_v31 }
  0x56   : > { %1063 = vmatprep.subr.bf16.mxu0 %v4363_v32 }
  0x58   : > { %4312 = vset.pattern.permute.xlu1 %v4729_v1  ;;  %399 = vperm.xlu0 %4313, %v4858_v28  }
  0x59   : > { %484 = vperm.xlu1 %4312, %v329_v7   ;;  %1064 = vmatpush1.bf16.msra.mxu0 %v4365_v34  ;;  %v747_v7 = vld [vmem:[%s5762_s2] sm:$0x3] }
  0x5a   : > { %1065 = vmatprep.subr.bf16.mxu0 %v4366_v35  ;;  %v4964_v17 = vrot.slane %v747_v7, %v4896_v57 }
  0x5c   : > { %4322 = vset.pattern.permute.xlu0 %v4728_v0 }
  0x5d   : > { %488 = vperm.xlu1 %4312, %v330_v19   ;;  %633 = vperm.xlu0 %4322, %v331_v33  }
  0x5e   : > { %1066 = vmatpush1.bf16.msra.mxu0 %v4368_v37 }
  0x5f   : > { %1067 = vmatprep.subr.bf16.mxu0 %v4369_v38 }
  0x61   : > { %4314 = vset.pattern.permute.xlu1 %v4728_v0  ;;  %641 = vperm.xlu0 %4322, %v333_v36  }
  0x62   : > { %629 = vperm.xlu1 %4314, %v330_v19   ;;  %1068 = vmatpush1.bf16.msra.mxu0 %v4371_v41 }
  0x63   : > { %1069 = vmatprep.subr.bf16.mxu0 %v4372_v42 }
  0x65   : > { %649 = vperm.xlu0 %4322, %v335_v39  }
  0x66   : > { %4315 = vset.pattern.permute.xlu1 %v4730_v13  ;;  %1070 = vmatpush1.bf16.msra.mxu0 %v4374_v43 }
  0x67   : > { %374 = vperm.xlu1 %4315, %v331_v33   ;;  %1071 = vmatprep.subr.bf16.mxu0 %v4375_v45 }
  0x69   : > { %657 = vperm.xlu0 %4322, %v337_v40  }
  0x6a   : > { %1072 = vmatpush1.bf16.msra.mxu0 %v4377_v46 }
  0x6b   : > { %4316 = vset.pattern.permute.xlu1 %v4729_v1  ;;  %1073 = vmatprep.subr.bf16.mxu0 %v4378_v48 }
  0x6c   : > { %492 = vperm.xlu1 %4316, %v331_v33  }
  0x6d   : > { %4327 = vset.pattern.permute.xlu0 %v4730_v13 }
  0x6e   : > { %409 = vperm.xlu0 %4327, %v338_v44   ;;  %1074 = vmatpush1.bf16.msra.mxu0 %v4380_v49 }
  0x70   : > { %496 = vperm.xlu1 %4316, %v4849_v22  }
  0x72   : > { %419 = vperm.xlu0 %4327, %v4874_v47  }
  0x74   : > { %4317 = vset.pattern.permute.xlu1 %v4728_v0 }
  0x75   : > { %637 = vperm.xlu1 %4317, %v4849_v22   ;;  %v4970_v22 = vrot.slane %v747_v7, %v4898_v58 }
  0x76   : > { %4331 = vset.pattern.permute.xlu0 %v4728_v0 }
  0x77   : > { %665 = vperm.xlu0 %4331, %v339_v50  }
  0x79   : > { %4318 = vset.pattern.permute.xlu1 %v4730_v13 }
  0x7a   : > { %384 = vperm.xlu1 %4318, %v333_v36  }
  0x7e   : > { %4319 = vset.pattern.permute.xlu1 %v4729_v1 }
  0x7f   : > { %500 = vperm.xlu1 %4319, %v333_v36  }
  0x83   : > { %504 = vperm.xlu1 %4319, %v4853_v25  }
  0x87   : > { %4320 = vset.pattern.permute.xlu1 %v4728_v0 }
  0x88   : > { %645 = vperm.xlu1 %4320, %v4853_v25  }
  0x8c   : > { %4321 = vset.pattern.permute.xlu1 %v4730_v13 }
  0x8d   : > { %394 = vperm.xlu1 %4321, %v335_v39  }
  0x91   : > { %4323 = vset.pattern.permute.xlu1 %v4729_v1 }
  0x92   : > { %508 = vperm.xlu1 %4323, %v335_v39  }
  0x96   : > { %512 = vperm.xlu1 %4323, %v4858_v28  }
  0x9a   : > { %4324 = vset.pattern.permute.xlu1 %v4728_v0 }
  0x9b   : > { %653 = vperm.xlu1 %4324, %v4858_v28  }
  0x9f   : > { %4325 = vset.pattern.permute.xlu1 %v4730_v13 }
  0xa0   : > { %404 = vperm.xlu1 %4325, %v337_v40  }
  0xa4   : > { %4326 = vset.pattern.permute.xlu1 %v4729_v1 }
  0xa5   : > { %516 = vperm.xlu1 %4326, %v337_v40  }
  0xa9   : > { %520 = vperm.xlu1 %4326, %v338_v44  }
  0xad   : > { %4328 = vset.pattern.permute.xlu1 %v4728_v0 }
  0xae   : > { %661 = vperm.xlu1 %4328, %v338_v44  }
  0xb2   : > { %4329 = vset.pattern.permute.xlu1 %v4730_v13  ;;  %v469_v52 = vpop.permute.xlu1 %468  ;;  %v610_v53 = vpop.permute.xlu0 %609  ;;  %v4952_v13 = vrot.slane %v3965_v63, %v4896_v57 }
  0xb3   : > { %414 = vperm.xlu1 %4329, %v339_v50   ;;  %v543_v18 = vmul.f32 %v4919_v2, %v469_v52  ;;  %v2681_v19 = vmul.f32 %v4922_v3, %v469_v52  ;;  %v2682_v20 = vmul.f32 %v4925_v4, %v469_v52  ;;  %v542_v28 = vmul.f32 %v4949_v12, %v469_v52 }
  0xb4   : > { %v683_v29 = vmul.f32 %v4952_v13, %v610_v53  ;;  %v2758_v30 = vmul.f32 %v4958_v15, %v610_v53  ;;  %v2759_v31 = vmul.f32 %v4961_v16, %v610_v53  ;;  %v684_v32 = vmul.f32 %v4955_v14, %v610_v53 }
  0xb6   : > { %v473_v55 = vpop.permute.xlu1 %472  ;;  %v618_v56 = vpop.permute.xlu0 %617 }
  0xb7   : > { %4330 = vset.pattern.permute.xlu1 %v4729_v1  ;;  %v544_v36 = vmul.f32 %v4949_v12, %v473_v55  ;;  %v2683_v37 = vmul.f32 %v4922_v3, %v473_v55  ;;  %v4989_v38 = vmul.f32 %v4925_v4, %v473_v55  ;;  %v687_v40 = vmul.f32 %v4952_v13, %v618_v56 }
  0xb8   : > { %524 = vperm.xlu1 %4330, %v339_v50   ;;  %v688_v44 = vmul.f32 %v4955_v14, %v618_v56  ;;  %v4996_v45 = vmul.f32 %v4958_v15, %v618_v56  ;;  %v5005_v49 = vmul.f32 %v4961_v16, %v618_v56 }
  0xba   : > { %v4916_v1 = vpop.permute.xlu0 %625 }
  0xbb   : > { %v4930_v6 = vpop.permute.xlu1 %613  ;;  %v5019_v56 = vmul.f32 %v4952_v13, %v4916_v1  ;;  %v5023_v61 = vmul.f32 %v4955_v14, %v4916_v1 }
  0xbc   : > { %528 = vperm.xlu1 %4330, %v4874_v47   ;;  %v686_v53 = vmul.f32 %v4955_v14, %v4930_v6  ;;  %v685_v5 = vmul.f32 %v4952_v13, %v4930_v6 }
  0xbf   : > { %v345_v21 = vpop.permute.xlu0 %344 }
  0xc0   : > { %v433_v23 = vmul.f32 %v4937_v8, %v345_v21  ;;  %v434_v24 = vmul.f32 %v4940_v9, %v345_v21  ;;  %v2636_v25 = vmul.f32 %v4943_v10, %v345_v21  ;;  %v2637_v26 = vmul.f32 %v4946_v11, %v345_v21  ;;  %4332 = vset.pattern.permute.xlu1 %v4728_v0  ;;  %v4977_v27 = vpop.permute.xlu1 %354 }
  0xc1   : > { %669 = vperm.xlu1 %4332, %v4874_v47   ;;  %v545_v0 = vmul.f32 %v4919_v2, %v473_v55  ;;  %v438_v54 = vmul.f32 %v4940_v9, %v4977_v27  ;;  %v437_v62 = vmul.f32 %v4937_v8, %v4977_v27 }
  0xc2   : > { %v575_v33 = vadd.f32 %v543_v18, %v434_v24  ;;  %v2713_v34 = vadd.f32 %v2681_v19, %v2636_v25  ;;  %v2714_v35 = vadd.f32 %v2682_v20, %v2637_v26  ;;  %v574_v41 = vadd.f32 %v542_v28, %v433_v23 }
  0xc3   : > { %v350_v39 = vpop.permute.xlu0 %349 }
  0xc4   : > { %v435_v42 = vmul.f32 %v4937_v8, %v350_v39  ;;  %v436_v43 = vmul.f32 %v4940_v9, %v350_v39  ;;  %v5000_v47 = vadd.f32 %v2758_v30, %v2713_v34  ;;  %v5002_v48 = vadd.f32 %v2759_v31, %v2714_v35  ;;  %v4381_v35 = vld [vmem:[#allocation2 + $0x104] ss:$8 sps:$4 sm:$0xff]  }
  0xc5   : > { %v4998_v46 = vpop.permute.xlu1 %476  ;;  %v716_v52 = vadd.f32 %v684_v32, %v575_v33  ;;  %v715_v63 = vadd.f32 %v683_v29, %v574_v41  ;;  %v2638_v7 = vmul.f32 %v4943_v10, %v350_v39  ;;  %v5040_v31 = vmul.f32 %v4958_v15, %v4916_v1  ;;  %1410 = vmatprep.subr.bf16.mxu1 %v4381_v35  ;;  %v4389_v35 = vld [vmem:[#allocation2 + $0x120] ss:$8 sps:$4 sm:$0xff]  }
  0xc6   : > { %v546_v50 = vmul.f32 %v4949_v12, %v4998_v46  ;;  %v547_v51 = vmul.f32 %v4919_v2, %v4998_v46  ;;  %v576_v55 = vadd.f32 %v544_v36, %v435_v42  ;;  %v577_v60 = vadd.f32 %v545_v0, %v436_v43  ;;  %v4383_v36 = vld [vmem:[#allocation2 + $0x100] ss:$8 sps:$4 sm:$0xff]   ;;  %v4384_v0 = vld [vmem:[#allocation2 + $0x114] ss:$8 sps:$4 sm:$0xff]  }
  0xc7   : > { %v5015_v59 = vpop.permute.xlu0 %359  ;;  %v760_v25 = vadd.f32 %v4970_v22, %v716_v52  ;;  %v5044_v32 = vmul.f32 %v4961_v16, %v4916_v1  ;;  %v2760_v33 = vmul.f32 %v4958_v15, %v4930_v6  ;;  %v759_v34 = vadd.f32 %v4964_v17, %v715_v63  ;;  %1411 = vmatpush1.bf16.msra.mxu1 %v4383_v36 }
  0xc8   : > { %v579_v18 = vadd.f32 %v547_v51, %v438_v54  ;;  %v718_v20 = vadd.f32 %v686_v53, %v577_v60  ;;  %v578_v21 = vadd.f32 %v546_v50, %v437_v62  ;;  %v439_v23 = vmul.f32 %v4937_v8, %v5015_v59  ;;  %1412 = vmatprep.subr.bf16.mxu1 %v4384_v0 }
  0xc9   : > { %v481_v19 = vpop.permute.xlu1 %480  ;;  %v440_v24 = vmul.f32 %v4940_v9, %v5015_v59  ;;  %v717_v30 = vadd.f32 %v685_v5, %v576_v55  ;;  %v2639_v41 = vmul.f32 %v4946_v11, %v350_v39  ;;  %v2685_v51 = vmul.f32 %v4922_v3, %v4998_v46  ;;  %v4386_v39 = vld [vmem:[#allocation2 + $0x110] ss:$8 sps:$4 sm:$0xff]  }
  0xca   : > { %v548_v26 = vmul.f32 %v4949_v12, %v481_v19  ;;  %v549_v28 = vmul.f32 %v4919_v2, %v481_v19  ;;  %v762_v29 = vadd.f32 %v4970_v22, %v718_v20  ;;  %v720_v50 = vadd.f32 %v688_v44, %v579_v18 }
  0xcb   : > { %v761_v43 = vadd.f32 %v4964_v17, %v717_v30  ;;  %v792_v1 = vmax.f32 %v760_v25, 0.0  ;;  %v719_v53 = vadd.f32 %v687_v40, %v578_v21  ;;  %v2715_v54 = vadd.f32 %v2683_v37, %v2638_v7  ;;  %1413 = vmatpush1.bf16.msra.mxu1 %v4386_v39 }
  0xcc   : > { %v794_v42 = vmax.f32 %v762_v29, 0.0  ;;  %v580_v55 = vadd.f32 %v548_v26, %v439_v23  ;;  %v581_v60 = vadd.f32 %v549_v28, %v440_v24  ;;  %v2761_v5 = vmul.f32 %v4961_v16, %v4930_v6  ;;  %v5057_v29 = vpop.permute.xlu0 %369  ;;  %v4387_v23 = vld [vmem:[#allocation2 + $0x124] ss:$8 sps:$4 sm:$0xff]  }
  0xcd   : > { %v791_v18 = vmax.f32 %v759_v34, 0.0  ;;  %v793_v20 = vmax.f32 %v761_v43, 0.0  ;;  %v2640_v37 = vmul.f32 %v4943_v10, %v4977_v27  ;;  %v764_v21 = vadd.f32 %v4970_v22, %v720_v50  ;;  %v4390_v50 = vld [vmem:[#allocation2 + $0x134] ss:$8 sps:$4 sm:$0xff]   ;;  %1414 = vmatprep.subr.bf16.mxu1 %v4387_v23 }
  0xce   : > { %v622_v52 = vpop.permute.xlu1 %621  ;;  %v824_v44 = vpack.c.bf16 %v794_v42, %v792_v1  ;;  %v2686_v24 = vmul.f32 %v4925_v4, %v4998_v46  ;;  %v763_v6 = vadd.f32 %v4964_v17, %v719_v53  ;;  %v5065_v26 = vadd.f32 %v2760_v33, %v2715_v54 }
  0xcf   : > { %v689_v62 = vmul.f32 %v4952_v13, %v622_v52  ;;  %v690_v63 = vmul.f32 %v4955_v14, %v622_v52  ;;  %v823_v25 = vpack.c.bf16 %v793_v20, %v791_v18  ;;  %v2716_v36 = vadd.f32 %v4989_v38, %v2639_v41  ;;  %1415 = vmatpush1.bf16.msra.mxu1 %v4389_v35  ;;  %v4395_v35 = vld [vmem:[#allocation2 + $0x140] ss:$8 sps:$4 sm:$0xff]  }
  0xd0   : > { %1075 = vmatprep.mubr.bf16.mxu0 %v824_v44  ;;  %v2717_v0 = vadd.f32 %v2685_v51, %v2640_v37  ;;  %v2641_v42 = vmul.f32 %v4946_v11, %v4977_v27  ;;  %v2642_v46 = vmul.f32 %v4943_v10, %v5015_v59  ;;  %v2643_v33 = vmul.f32 %v4946_v11, %v5015_v59  ;;  %v5080_v41 = vpop.permute.xlu0 %379 }
  0xd1   : > { %v721_v40 = vadd.f32 %v689_v62, %v580_v55  ;;  %v722_v7 = vadd.f32 %v690_v63, %v581_v60  ;;  %v2687_v43 = vmul.f32 %v4922_v3, %v481_v19  ;;  %1076 = vmatmul.mubr.bf16.vlgmr.msra.gmra.mrb[0].mxu0 %v823_v25  ;;  %v2688_v1 = vmul.f32 %v4925_v4, %v481_v19  ;;  %v4392_v63 = vld [vmem:[#allocation2 + $0x130] ss:$8 sps:$4 sm:$0xff]  }
  0xd2   : > { %v796_v53 = vmax.f32 %v764_v21, 0.0  ;;  %v795_v38 = vmax.f32 %v763_v6, 0.0  ;;  %v443_v27 = vmul.f32 %v4937_v8, %v5057_v29  ;;  %v5082_v51 = vadd.f32 %v2761_v5, %v2716_v36  ;;  %1416 = vmatprep.subr.bf16.mxu1 %v4390_v50 }
  0xd3   : > { %v365_v28 = vpop.permute.xlu1 %364  ;;  %v766_v30 = vadd.f32 %v4970_v22, %v722_v7  ;;  %v765_v34 = vadd.f32 %v4964_v17, %v721_v40  ;;  %v5085_v59 = vadd.f32 %v4996_v45, %v2717_v0  ;;  %v2764_v60 = vmul.f32 %v4958_v15, %v622_v52  ;;  %v4393_v40 = vld [vmem:[#allocation2 + $0x144] ss:$8 sps:$4 sm:$0xff]   ;;  %1417 = vmatpush1.bf16.msra.mxu1 %v4392_v63 }
  0xd4   : > { %v2765_v62 = vmul.f32 %v4961_v16, %v622_v52  ;;  %v2718_v39 = vadd.f32 %v2686_v24, %v2641_v42  ;;  %v442_v44 = vmul.f32 %v4940_v9, %v365_v28  ;;  %v2644_v18 = vmul.f32 %v4943_v10, %v365_v28  ;;  %1418 = vmatprep.subr.bf16.mxu1 %v4393_v40  ;;  %v4399_v63 = vld [vmem:[#allocation2 + $0x164] ss:$8 sps:$4 sm:$0xff]  }
  0xd5   : > { %v798_v54 = vmax.f32 %v766_v30, 0.0  ;;  %v797_v55 = vmax.f32 %v765_v34, 0.0  ;;  %v2645_v20 = vmul.f32 %v4946_v11, %v365_v28  ;;  %v441_v23 = vmul.f32 %v4937_v8, %v365_v28  ;;  %v4396_v28 = vld [vmem:[#allocation2 + $0x154] ss:$8 sps:$4 sm:$0xff]  }
  0xd6   : > { %v5098_v24 = vadd.f32 %v5005_v49, %v2718_v39  ;;  %v2719_v25 = vadd.f32 %v2687_v43, %v2642_v46  ;;  %v2720_v6 = vadd.f32 %v2688_v1, %v2643_v33  ;;  %v2646_v34 = vmul.f32 %v4943_v10, %v5057_v29 }
  0xd7   : > { %v826_v19 = vpack.c.bf16 %v798_v54, %v796_v53  ;;  %v825_v5 = vpack.c.bf16 %v797_v55, %v795_v38  ;;  %v5102_v53 = vpop.permute.xlu0 %389  ;;  %v444_v46 = vmul.f32 %v4940_v9, %v5057_v29  ;;  %v2647_v55 = vmul.f32 %v4946_v11, %v5057_v29  ;;  %1419 = vmatpush1.bf16.msra.mxu1 %v4395_v35 }
  0xd8   : > { %v485_v37 = vpop.permute.xlu1 %484  ;;  %v5104_v54 = vadd.f32 %v2764_v60, %v2719_v25  ;;  %v5106_v49 = vadd.f32 %v2765_v62, %v2720_v6  ;;  %v4398_v60 = vld [vmem:[#allocation2 + $0x150] ss:$8 sps:$4 sm:$0xff]   ;;  %1420 = vmatprep.subr.bf16.mxu1 %v4396_v28 }
  0xd9   : > { %v550_v45 = vmul.f32 %v4949_v12, %v485_v37  ;;  %v551_v7 = vmul.f32 %v4919_v2, %v485_v37  ;;  %v2689_v52 = vmul.f32 %v4922_v3, %v485_v37  ;;  %v2690_v21 = vmul.f32 %v4925_v4, %v485_v37  ;;  %1085 = vmatprep.mubr.bf16.mxu0 %v826_v19 }
  0xda   : > { %1086 = vmatmul.mubr.bf16.gmra.mrb[4].mxu0 %v825_v5 }
  0xdb   : > { %v583_v30 = vadd.f32 %v551_v7, %v442_v44  ;;  %v2721_v36 = vadd.f32 %v2689_v52, %v2644_v18  ;;  %v2722_v0 = vadd.f32 %v2690_v21, %v2645_v20  ;;  %v582_v42 = vadd.f32 %v550_v45, %v441_v23  ;;  %v5128_v45 = vpop.permute.xlu0 %399  ;;  %1421 = vmatpush1.bf16.msra.mxu1 %v4398_v60  ;;  %v4401_v7 = vld [vmem:[#allocation2 + $0x160] ss:$8 sps:$4 sm:$0xff]   ;;  %v4402_v23 = vld [vmem:[#allocation2 + $0x174] ss:$8 sps:$4 sm:$0xff]  }
  0xdc   : > { %v489_v50 = vpop.permute.xlu1 %488  ;;  %1422 = vmatprep.subr.bf16.mxu1 %v4399_v63 }
  0xdd   : > { %v552_v33 = vmul.f32 %v4949_v12, %v489_v50  ;;  %v553_v43 = vmul.f32 %v4919_v2, %v489_v50  ;;  %v2691_v1 = vmul.f32 %v4922_v3, %v489_v50  ;;  %v2692_v38 = vmul.f32 %v4925_v4, %v489_v50 }
  0xde   : > { %v724_v19 = vadd.f32 %v5023_v61, %v583_v30  ;;  %v723_v62 = vadd.f32 %v5019_v56, %v582_v42  ;;  %v5119_v39 = vadd.f32 %v5040_v31, %v2721_v36  ;;  %v5122_v44 = vadd.f32 %v5044_v32, %v2722_v0  ;;  %v4404_v36 = vld [vmem:[#allocation2 + $0x170] ss:$8 sps:$4 sm:$0xff]  }
  0xdf   : > { %v2723_v18 = vadd.f32 %v2691_v1, %v2646_v34  ;;  %v584_v20 = vadd.f32 %v552_v33, %v443_v27  ;;  %v585_v37 = vadd.f32 %v553_v43, %v444_v46  ;;  %v2724_v32 = vadd.f32 %v2692_v38, %v2647_v55  ;;  %1423 = vmatpush1.bf16.msra.mxu1 %v4401_v7  ;;  %v634_v50 = vpop.permute.xlu0 %633  ;;  %v4405_v33 = vld [vmem:[#allocation2 + $0x184] ss:$8 sps:$4 sm:$0xff]  }
  0xe0   : > { %v768_v31 = vadd.f32 %v4970_v22, %v724_v19  ;;  %v767_v27 = vadd.f32 %v4964_v17, %v723_v62  ;;  %1424 = vmatprep.subr.bf16.mxu1 %v4402_v23  ;;  %v2770_v19 = vmul.f32 %v4958_v15, %v634_v50  ;;  %v2771_v60 = vmul.f32 %v4961_v16, %v634_v50  ;;  %v4407_v62 = vld [vmem:[#allocation2 + $0x180] ss:$8 sps:$4 sm:$0xff]   ;;  %v4410_v23 = vld [vmem:[#allocation2 + $0x190] ss:$8 sps:$4 sm:$0xff]  }
  0xe1   : > { %v630_v29 = vpop.permute.xlu1 %629  ;;  %v695_v7 = vmul.f32 %v4952_v13, %v634_v50 }
  0xe2   : > { %v693_v5 = vmul.f32 %v4952_v13, %v630_v29  ;;  %v694_v61 = vmul.f32 %v4955_v14, %v630_v29  ;;  %v2768_v40 = vmul.f32 %v4958_v15, %v630_v29  ;;  %v2769_v56 = vmul.f32 %v4961_v16, %v630_v29  ;;  %v4408_v29 = vld [vmem:[#allocation2 + $0x194] ss:$8 sps:$4 sm:$0xff]  }
  0xe3   : > { %v800_v0 = vmax.f32 %v768_v31, 0.0  ;;  %v799_v28 = vmax.f32 %v767_v27, 0.0  ;;  %1425 = vmatpush1.bf16.msra.mxu1 %v4404_v36  ;;  %v448_v31 = vmul.f32 %v4940_v9, %v5080_v41  ;;  %v2651_v36 = vmul.f32 %v4946_v11, %v5080_v41 }
  0xe4   : > { %v725_v52 = vadd.f32 %v693_v5, %v584_v20  ;;  %v726_v21 = vadd.f32 %v694_v61, %v585_v37  ;;  %v5132_v25 = vadd.f32 %v2768_v40, %v2723_v18  ;;  %v5136_v35 = vadd.f32 %v2769_v56, %v2724_v32  ;;  %1426 = vmatprep.subr.bf16.mxu1 %v4405_v33 }
  0xe5   : > { %v447_v56 = vmul.f32 %v4937_v8, %v5080_v41  ;;  %v696_v32 = vmul.f32 %v4955_v14, %v634_v50 }
  0xe6   : > { %v375_v6 = vpop.permute.xlu1 %374  ;;  %v770_v30 = vadd.f32 %v4970_v22, %v726_v21  ;;  %v769_v34 = vadd.f32 %v4964_v17, %v725_v52 }
  0xe7   : > { %v445_v55 = vmul.f32 %v4937_v8, %v375_v6  ;;  %v446_v5 = vmul.f32 %v4940_v9, %v375_v6  ;;  %v2648_v61 = vmul.f32 %v4943_v10, %v375_v6  ;;  %v2649_v40 = vmul.f32 %v4946_v11, %v375_v6  ;;  %1427 = vmatpush1.bf16.msra.mxu1 %v4407_v62 }
  0xe8   : > { %v802_v42 = vmax.f32 %v770_v30, 0.0  ;;  %v801_v46 = vmax.f32 %v769_v34, 0.0  ;;  %v2650_v6 = vmul.f32 %v4943_v10, %v5080_v41  ;;  %1428 = vmatprep.subr.bf16.mxu1 %v4408_v29 }
  0xea   : > { %v828_v43 = vpack.c.bf16 %v802_v42, %v800_v0  ;;  %v827_v1 = vpack.c.bf16 %v801_v46, %v799_v28  ;;  %v4411_v28 = vld [vmem:[#allocation2 + $0x1a4] ss:$8 sps:$4 sm:$0xff]  }
  0xeb   : > { %v493_v38 = vpop.permute.xlu1 %492  ;;  %1429 = vmatpush1.bf16.msra.mxu1 %v4410_v23 }
  0xec   : > { %v554_v63 = vmul.f32 %v4949_v12, %v493_v38  ;;  %v555_v18 = vmul.f32 %v4919_v2, %v493_v38  ;;  %v2693_v20 = vmul.f32 %v4922_v3, %v493_v38  ;;  %v2694_v37 = vmul.f32 %v4925_v4, %v493_v38  ;;  %1095 = vmatprep.mubr.bf16.mxu0 %v828_v43  ;;  %v4413_v38 = vld [vmem:[#allocation2 + $0x1a0] ss:$8 sps:$4 sm:$0xff]  }
  0xed   : > { %1096 = vmatmul.mubr.bf16.gmra.mrb[8].mxu0 %v827_v1  ;;  %1430 = vmatprep.subr.bf16.mxu1 %v4411_v28  ;;  %v4419_v28 = vld [vmem:[#allocation2 + $0x1c0] ss:$8 sps:$4 sm:$0xff]  }
  0xee   : > { %v586_v52 = vadd.f32 %v554_v63, %v445_v55  ;;  %v587_v21 = vadd.f32 %v555_v18, %v446_v5  ;;  %v2725_v30 = vadd.f32 %v2693_v20, %v2648_v61  ;;  %v2726_v34 = vadd.f32 %v2694_v37, %v2649_v40  ;;  %v4414_v18 = vld [vmem:[#allocation2 + $0x1b4] ss:$8 sps:$4 sm:$0xff]  }
  0xef   : > { %v497_v27 = vpop.permute.xlu1 %496  ;;  %1431 = vmatpush1.bf16.msra.mxu1 %v4413_v38 }
  0xf0   : > { %v556_v0 = vmul.f32 %v4949_v12, %v497_v27  ;;  %v557_v42 = vmul.f32 %v4919_v2, %v497_v27  ;;  %v2695_v50 = vmul.f32 %v4922_v3, %v497_v27  ;;  %v2696_v46 = vmul.f32 %v4925_v4, %v497_v27  ;;  %1432 = vmatprep.subr.bf16.mxu1 %v4414_v18 }
  0xf1   : > { %v5162_v33 = vadd.f32 %v2770_v19, %v2725_v30  ;;  %v5164_v43 = vadd.f32 %v2771_v60, %v2726_v34  ;;  %v727_v1 = vadd.f32 %v695_v7, %v586_v52  ;;  %v728_v55 = vadd.f32 %v696_v32, %v587_v21  ;;  %v4417_v32 = vld [vmem:[#allocation2 + $0x1c4] ss:$8 sps:$4 sm:$0xff]   ;;  %v642_v34 = vpop.permute.xlu0 %641 }
  0xf2   : > { %v588_v62 = vadd.f32 %v556_v0, %v447_v56  ;;  %v589_v41 = vadd.f32 %v557_v42, %v448_v31  ;;  %v2727_v20 = vadd.f32 %v2695_v50, %v2650_v6  ;;  %v2728_v37 = vadd.f32 %v2696_v46, %v2651_v36  ;;  %v4416_v31 = vld [vmem:[#allocation2 + $0x1b0] ss:$8 sps:$4 sm:$0xff]  }
  0xf3   : > { %v772_v7 = vadd.f32 %v4970_v22, %v728_v55  ;;  %v771_v56 = vadd.f32 %v4964_v17, %v727_v1  ;;  %1433 = vmatpush1.bf16.msra.mxu1 %v4416_v31  ;;  %v699_v46 = vmul.f32 %v4952_v13, %v642_v34  ;;  %v4420_v55 = vld [vmem:[#allocation2 + $0x1d4] ss:$8 sps:$4 sm:$0xff]  }
  0xf4   : > { %v638_v63 = vpop.permute.xlu1 %637  ;;  %1434 = vmatprep.subr.bf16.mxu1 %v4417_v32  ;;  %v2654_v32 = vmul.f32 %v4943_v10, %v5102_v53 }
  0xf5   : > { %v697_v29 = vmul.f32 %v4952_v13, %v638_v63  ;;  %v698_v5 = vmul.f32 %v4955_v14, %v638_v63  ;;  %v2772_v19 = vmul.f32 %v4958_v15, %v638_v63  ;;  %v2773_v60 = vmul.f32 %v4961_v16, %v638_v63 }
  0xf6   : > { %v804_v6 = vmax.f32 %v772_v7, 0.0  ;;  %v803_v0 = vmax.f32 %v771_v56, 0.0 }
  0xf7   : > { %v729_v61 = vadd.f32 %v697_v29, %v588_v62  ;;  %v730_v40 = vadd.f32 %v698_v5, %v589_v41  ;;  %v5172_v52 = vadd.f32 %v2772_v19, %v2727_v20  ;;  %v5174_v21 = vadd.f32 %v2773_v60, %v2728_v37  ;;  %1435 = vmatpush1.bf16.msra.mxu1 %v4419_v28 }
  0xf8   : > { %v700_v19 = vmul.f32 %v4955_v14, %v642_v34  ;;  %v2774_v60 = vmul.f32 %v4958_v15, %v642_v34  ;;  %1436 = vmatprep.subr.bf16.mxu1 %v4420_v55 }
  0xf9   : > { %v385_v27 = vpop.permute.xlu1 %384  ;;  %v774_v23 = vadd.f32 %v4970_v22, %v730_v40  ;;  %v773_v30 = vadd.f32 %v4964_v17, %v729_v61  ;;  %v2775_v61 = vmul.f32 %v4961_v16, %v642_v34  ;;  %v452_v34 = vmul.f32 %v4940_v9, %v5102_v53 }
  0xfa   : > { %v449_v38 = vmul.f32 %v4937_v8, %v385_v27  ;;  %v450_v62 = vmul.f32 %v4940_v9, %v385_v27  ;;  %v2652_v41 = vmul.f32 %v4943_v10, %v385_v27  ;;  %v2653_v63 = vmul.f32 %v4946_v11, %v385_v27 }
  0xfb   : > { %v806_v36 = vmax.f32 %v774_v23, 0.0  ;;  %v805_v42 = vmax.f32 %v773_v30, 0.0  ;;  %v2655_v27 = vmul.f32 %v4946_v11, %v5102_v53  ;;  %v451_v30 = vmul.f32 %v4937_v8, %v5102_v53 }
  0xfd   : > { %v830_v50 = vpack.c.bf16 %v806_v36, %v804_v6  ;;  %v829_v1 = vpack.c.bf16 %v805_v42, %v803_v0 }
  0xfe   : > { %v501_v18 = vpop.permute.xlu1 %500 }
  0xff   : > { %v558_v20 = vmul.f32 %v4949_v12, %v501_v18  ;;  %v559_v37 = vmul.f32 %v4919_v2, %v501_v18  ;;  %v2697_v29 = vmul.f32 %v4922_v3, %v501_v18  ;;  %v2698_v5 = vmul.f32 %v4925_v4, %v501_v18  ;;  %1105 = vmatprep.mubr.bf16.mxu0 %v830_v50 }
 0x100   : > { %1106 = vmatmul.mubr.bf16.gmra.mrb[12].mxu0 %v829_v1 }
 0x101   : > { %v590_v40 = vadd.f32 %v558_v20, %v449_v38  ;;  %v591_v7 = vadd.f32 %v559_v37, %v450_v62  ;;  %v2729_v56 = vadd.f32 %v2697_v29, %v2652_v41  ;;  %v2730_v31 = vadd.f32 %v2698_v5, %v2653_v63 }
 0x102   : > { %v505_v23 = vpop.permute.xlu1 %504 }
 0x103   : > { %v560_v6 = vmul.f32 %v4949_v12, %v505_v23  ;;  %v561_v36 = vmul.f32 %v4919_v2, %v505_v23  ;;  %v2699_v0 = vmul.f32 %v4922_v3, %v505_v23  ;;  %v2700_v42 = vmul.f32 %v4925_v4, %v505_v23 }
 0x104   : > { %v5202_v28 = vadd.f32 %v2774_v60, %v2729_v56  ;;  %v5204_v50 = vadd.f32 %v2775_v61, %v2730_v31  ;;  %v731_v1 = vadd.f32 %v699_v46, %v590_v40  ;;  %v732_v55 = vadd.f32 %v700_v19, %v591_v7 }
 0x105   : > { %v2731_v38 = vadd.f32 %v2699_v0, %v2654_v32  ;;  %v2732_v62 = vadd.f32 %v2700_v42, %v2655_v27  ;;  %v592_v41 = vadd.f32 %v560_v6, %v451_v30  ;;  %v593_v63 = vadd.f32 %v561_v36, %v452_v34  ;;  %v650_v6 = vpop.permute.xlu0 %649 }
 0x106   : > { %5777 = vst [vmem:[#allocation5_spill] sm:$0xff] %v5204_v50  ;;  %v776_v5 = vadd.f32 %v4970_v22, %v732_v55  ;;  %v775_v60 = vadd.f32 %v4964_v17, %v731_v1 }
 0x107   : > { %v646_v18 = vpop.permute.xlu1 %645 }
 0x108   : > { %v701_v53 = vmul.f32 %v4952_v13, %v646_v18  ;;  %v702_v20 = vmul.f32 %v4955_v14, %v646_v18  ;;  %v2776_v37 = vmul.f32 %v4958_v15, %v646_v18  ;;  %v2777_v29 = vmul.f32 %v4961_v16, %v646_v18 }
 0x109   : > { %v808_v32 = vmax.f32 %v776_v5, 0.0  ;;  %v807_v23 = vmax.f32 %v775_v60, 0.0 }
 0x10a   : > { %v733_v61 = vadd.f32 %v701_v53, %v592_v41  ;;  %v734_v46 = vadd.f32 %v702_v20, %v593_v63  ;;  %v5212_v19 = vadd.f32 %v2776_v37, %v2731_v38  ;;  %v5214_v40 = vadd.f32 %v2777_v29, %v2732_v62 }
 0x10b   : > { %v703_v53 = vmul.f32 %v4952_v13, %v650_v6  ;;  %v704_v20 = vmul.f32 %v4955_v14, %v650_v6  ;;  %v2778_v37 = vmul.f32 %v4958_v15, %v650_v6  ;;  %v2779_v29 = vmul.f32 %v4961_v16, %v650_v6 }
 0x10c   : > { %5778 = vst [vmem:[#allocation6_spill] sm:$0xff] %v5212_v19  ;;  %5779 = vst [vmem:[#allocation7_spill] sm:$0xff] %v5214_v40  ;;  %v395_v7 = vpop.permute.xlu1 %394  ;;  %v778_v56 = vadd.f32 %v4970_v22, %v734_v46  ;;  %v777_v31 = vadd.f32 %v4964_v17, %v733_v61  ;;  %v4426_v40 = vld [vmem:[#allocation2 + $0x1f4] ss:$8 sps:$4 sm:$0xff]  }
 0x10d   : > { %v453_v0 = vmul.f32 %v4937_v8, %v395_v7  ;;  %v454_v42 = vmul.f32 %v4940_v9, %v395_v7  ;;  %v2656_v1 = vmul.f32 %v4943_v10, %v395_v7  ;;  %v2657_v55 = vmul.f32 %v4946_v11, %v395_v7 }
 0x10e   : > { %v810_v27 = vmax.f32 %v778_v56, 0.0  ;;  %v809_v30 = vmax.f32 %v777_v31, 0.0  ;;  %v2658_v56 = vmul.f32 %v4943_v10, %v5128_v45  ;;  %v2659_v31 = vmul.f32 %v4946_v11, %v5128_v45 }
 0x110   : > { %v832_v34 = vpack.c.bf16 %v810_v27, %v808_v32  ;;  %v831_v36 = vpack.c.bf16 %v809_v30, %v807_v23 }
 0x111   : > { %v509_v38 = vpop.permute.xlu1 %508 }
 0x112   : > { %v562_v62 = vmul.f32 %v4949_v12, %v509_v38  ;;  %v563_v41 = vmul.f32 %v4919_v2, %v509_v38  ;;  %v2701_v63 = vmul.f32 %v4922_v3, %v509_v38  ;;  %v2702_v18 = vmul.f32 %v4925_v4, %v509_v38  ;;  %1115 = vmatprep.mubr.bf16.mxu0 %v832_v34 }
 0x113   : > { %1116 = vmatmul.mubr.bf16.gmra.mrb[16].mxu0 %v831_v36  ;;  %v455_v36 = vmul.f32 %v4937_v8, %v5128_v45 }
 0x114   : > { %v594_v5 = vadd.f32 %v562_v62, %v453_v0  ;;  %v595_v60 = vadd.f32 %v563_v41, %v454_v42  ;;  %v2733_v61 = vadd.f32 %v2701_v63, %v2656_v1  ;;  %v2734_v46 = vadd.f32 %v2702_v18, %v2657_v55 }
 0x115   : > { %v513_v7 = vpop.permute.xlu1 %512  ;;  %v456_v0 = vmul.f32 %v4940_v9, %v5128_v45 }
 0x116   : > { %v564_v32 = vmul.f32 %v4949_v12, %v513_v7  ;;  %v565_v27 = vmul.f32 %v4919_v2, %v513_v7  ;;  %v2703_v23 = vmul.f32 %v4922_v3, %v513_v7  ;;  %v2704_v30 = vmul.f32 %v4925_v4, %v513_v7 }
 0x117   : > { %v5238_v34 = vadd.f32 %v2778_v37, %v2733_v61  ;;  %v5240_v6 = vadd.f32 %v2779_v29, %v2734_v46  ;;  %v735_v42 = vadd.f32 %v703_v53, %v594_v5  ;;  %v736_v1 = vadd.f32 %v704_v20, %v595_v60 }
 0x118   : > { %v2735_v55 = vadd.f32 %v2703_v23, %v2658_v56  ;;  %v2736_v38 = vadd.f32 %v2704_v30, %v2659_v31  ;;  %v596_v62 = vadd.f32 %v564_v32, %v455_v36  ;;  %v597_v41 = vadd.f32 %v565_v27, %v456_v0  ;;  %v658_v56 = vpop.permute.xlu0 %657 }
 0x119   : > { %5780 = vst [vmem:[#allocation8_spill] sm:$0xff] %v5238_v34  ;;  %5781 = vst [vmem:[#allocation9_spill] sm:$0xff] %v5240_v6  ;;  %v780_v46 = vadd.f32 %v4970_v22, %v736_v1  ;;  %v779_v7 = vadd.f32 %v4964_v17, %v735_v42 }
 0x11a   : > { %v654_v63 = vpop.permute.xlu1 %653 }
 0x11b   : > { %v705_v18 = vmul.f32 %v4952_v13, %v654_v63  ;;  %v706_v37 = vmul.f32 %v4955_v14, %v654_v63  ;;  %v2780_v29 = vmul.f32 %v4958_v15, %v654_v63  ;;  %v2781_v61 = vmul.f32 %v4961_v16, %v654_v63 }
 0x11c   : > { %v812_v27 = vmax.f32 %v780_v46, 0.0  ;;  %v811_v30 = vmax.f32 %v779_v7, 0.0  ;;  %v410_v63 = vpop.permute.xlu0 %409  ;;  %v707_v46 = vmul.f32 %v4952_v13, %v658_v56  ;;  %v708_v7 = vmul.f32 %v4955_v14, %v658_v56 }
 0x11d   : > { %v737_v45 = vadd.f32 %v705_v18, %v596_v62  ;;  %v738_v53 = vadd.f32 %v706_v37, %v597_v41  ;;  %v5252_v20 = vadd.f32 %v2780_v29, %v2735_v55  ;;  %v5254_v5 = vadd.f32 %v2781_v61, %v2736_v38 }
 0x11f   : > { %5782 = vst [vmem:[#allocation10_spill] sm:$0xff] %v5252_v20  ;;  %5783 = vst [vmem:[#allocation11_spill] sm:$0xff] %v5254_v5  ;;  %v405_v60 = vpop.permute.xlu1 %404  ;;  %v782_v31 = vadd.f32 %v4970_v22, %v738_v53  ;;  %v781_v32 = vadd.f32 %v4964_v17, %v737_v45  ;;  %v2662_v45 = vmul.f32 %v4943_v10, %v410_v63 }
 0x120   : > { %v457_v42 = vmul.f32 %v4937_v8, %v405_v60  ;;  %v458_v55 = vmul.f32 %v4940_v9, %v405_v60  ;;  %v2660_v38 = vmul.f32 %v4943_v10, %v405_v60  ;;  %v2661_v62 = vmul.f32 %v4946_v11, %v405_v60  ;;  %v4422_v60 = vld [vmem:[#allocation2 + $0x1d0] ss:$8 sps:$4 sm:$0xff]  }
 0x121   : > { %v814_v23 = vmax.f32 %v782_v31, 0.0  ;;  %v813_v36 = vmax.f32 %v781_v32, 0.0  ;;  %v2663_v53 = vmul.f32 %v4946_v11, %v410_v63  ;;  %1437 = vmatpush1.bf16.msra.mxu1 %v4422_v60 }
 0x123   : > { %v834_v0 = vpack.c.bf16 %v814_v23, %v812_v27  ;;  %v833_v1 = vpack.c.bf16 %v813_v36, %v811_v30  ;;  %v2782_v30 = vmul.f32 %v4958_v15, %v658_v56  ;;  %v2783_v36 = vmul.f32 %v4961_v16, %v658_v56 }
 0x124   : > { %v517_v41 = vpop.permute.xlu1 %516 }
 0x125   : > { %v566_v18 = vmul.f32 %v4949_v12, %v517_v41  ;;  %v567_v37 = vmul.f32 %v4919_v2, %v517_v41  ;;  %v2705_v29 = vmul.f32 %v4922_v3, %v517_v41  ;;  %v2706_v61 = vmul.f32 %v4925_v4, %v517_v41  ;;  %1125 = vmatprep.mubr.bf16.mxu0 %v834_v0 }
 0x126   : > { %1126 = vmatmul.mubr.bf16.gmra.mrb[20].mxu0 %v833_v1  ;;  %v459_v0 = vmul.f32 %v4937_v8, %v410_v63  ;;  %v460_v41 = vmul.f32 %v4940_v9, %v410_v63 }
 0x127   : > { %v598_v31 = vadd.f32 %v566_v18, %v457_v42  ;;  %v599_v32 = vadd.f32 %v567_v37, %v458_v55  ;;  %v2737_v27 = vadd.f32 %v2705_v29, %v2660_v38  ;;  %v2738_v23 = vadd.f32 %v2706_v61, %v2661_v62  ;;  %v4423_v55 = vld [vmem:[#allocation2 + $0x1e4] ss:$8 sps:$4 sm:$0xff]   ;;  %v4425_v38 = vld [vmem:[#allocation2 + $0x1e0] ss:$8 sps:$4 sm:$0xff]  }
 0x128   : > { %v521_v5 = vpop.permute.xlu1 %520  ;;  %1438 = vmatprep.subr.bf16.mxu1 %v4423_v55 }
 0x129   : > { %v568_v1 = vmul.f32 %v4949_v12, %v521_v5  ;;  %v569_v20 = vmul.f32 %v4919_v2, %v521_v5  ;;  %v2707_v6 = vmul.f32 %v4922_v3, %v521_v5  ;;  %v2708_v42 = vmul.f32 %v4925_v4, %v521_v5  ;;  %1439 = vmatpush1.bf16.msra.mxu1 %v4425_v38 }
 0x12a   : > { %v5278_v62 = vadd.f32 %v2782_v30, %v2737_v27  ;;  %v5280_v18 = vadd.f32 %v2783_v36, %v2738_v23  ;;  %v740_v56 = vadd.f32 %v708_v7, %v599_v32  ;;  %v739_v37 = vadd.f32 %v707_v46, %v598_v31  ;;  %v4428_v23 = vld [vmem:[#allocation2 + $0x1f0] ss:$8 sps:$4 sm:$0xff]   ;;  %1440 = vmatprep.subr.bf16.mxu1 %v4426_v40 }
 0x12b   : > { %v2739_v63 = vadd.f32 %v2707_v6, %v2662_v45  ;;  %v2740_v29 = vadd.f32 %v2708_v42, %v2663_v53  ;;  %v600_v61 = vadd.f32 %v568_v1, %v459_v0  ;;  %v601_v60 = vadd.f32 %v569_v20, %v460_v41  ;;  %v420_v53 = vpop.permute.xlu0 %419 }
 0x12c   : > { %v784_v7 = vadd.f32 %v4970_v22, %v740_v56  ;;  %v783_v46 = vadd.f32 %v4964_v17, %v739_v37 }
 0x12d   : > { %v662_v34 = vpop.permute.xlu1 %661  ;;  %1441 = vmatpush1.bf16.msra.mxu1 %v4428_v23 }
 0x12e   : > { %v709_v19 = vmul.f32 %v4952_v13, %v662_v34  ;;  %v710_v5 = vmul.f32 %v4955_v14, %v662_v34  ;;  %v2784_v50 = vmul.f32 %v4958_v15, %v662_v34  ;;  %v2785_v27 = vmul.f32 %v4961_v16, %v662_v34 }
 0x12f   : > { %v816_v34 = vmax.f32 %v784_v7, 0.0  ;;  %v815_v41 = vmax.f32 %v783_v46, 0.0  ;;  %v666_v55 = vpop.permute.xlu0 %665 }
 0x130   : > { %v741_v6 = vadd.f32 %v709_v19, %v600_v61  ;;  %v742_v45 = vadd.f32 %v710_v5, %v601_v60  ;;  %v5288_v20 = vadd.f32 %v2784_v50, %v2739_v63  ;;  %v5290_v31 = vadd.f32 %v2785_v27, %v2740_v29 }
 0x131   : > { %v711_v5 = vmul.f32 %v4952_v13, %v666_v55  ;;  %v712_v27 = vmul.f32 %v4955_v14, %v666_v55  ;;  %v2786_v23 = vmul.f32 %v4958_v15, %v666_v55  ;;  %v2787_v7 = vmul.f32 %v4961_v16, %v666_v55 }
 0x132   : > { %v415_v32 = vpop.permute.xlu1 %414  ;;  %v786_v30 = vadd.f32 %v4970_v22, %v742_v45  ;;  %v785_v36 = vadd.f32 %v4964_v17, %v741_v6 }
 0x133   : > { %v461_v19 = vmul.f32 %v4937_v8, %v415_v32  ;;  %v462_v38 = vmul.f32 %v4940_v9, %v415_v32  ;;  %v2664_v50 = vmul.f32 %v4943_v10, %v415_v32  ;;  %v2665_v56 = vmul.f32 %v4946_v11, %v415_v32 }
 0x134   : > { %v818_v0 = vmax.f32 %v786_v30, 0.0  ;;  %v817_v1 = vmax.f32 %v785_v36, 0.0  ;;  %v2666_v36 = vmul.f32 %v4943_v10, %v420_v53 }
 0x136   : > { %v836_v42 = vpack.c.bf16 %v818_v0, %v816_v34  ;;  %v835_v40 = vpack.c.bf16 %v817_v1, %v815_v41  ;;  %v2667_v34 = vmul.f32 %v4946_v11, %v420_v53 }
 0x137   : > { %v525_v37 = vpop.permute.xlu1 %524 }
 0x138   : > { %v570_v63 = vmul.f32 %v4949_v12, %v525_v37  ;;  %v571_v29 = vmul.f32 %v4919_v2, %v525_v37  ;;  %v2709_v61 = vmul.f32 %v4922_v3, %v525_v37  ;;  %v2710_v60 = vmul.f32 %v4925_v4, %v525_v37  ;;  %1135 = vmatprep.mubr.bf16.mxu0 %v836_v42 }
 0x139   : > { %1136 = vmatmul.mubr.bf16.gmra.mrb[24].mxu0 %v835_v40  ;;  %v463_v40 = vmul.f32 %v4937_v8, %v420_v53 }
 0x13a   : > { %v602_v46 = vadd.f32 %v570_v63, %v461_v19  ;;  %v603_v6 = vadd.f32 %v571_v29, %v462_v38  ;;  %v2741_v45 = vadd.f32 %v2709_v61, %v2664_v50  ;;  %v2742_v32 = vadd.f32 %v2710_v60, %v2665_v56 }
 0x13b   : > { %v529_v30 = vpop.permute.xlu1 %528  ;;  %v464_v19 = vmul.f32 %v4940_v9, %v420_v53 }
 0x13c   : > { %v572_v0 = vmul.f32 %v4949_v12, %v529_v30  ;;  %v573_v41 = vmul.f32 %v4919_v2, %v529_v30  ;;  %v2711_v1 = vmul.f32 %v4922_v3, %v529_v30  ;;  %v2712_v42 = vmul.f32 %v4925_v4, %v529_v30 }
 0x13d   : > { %v5312_v37 = vadd.f32 %v2786_v23, %v2741_v45  ;;  %v5314_v55 = vadd.f32 %v2787_v7, %v2742_v32  ;;  %v743_v38 = vadd.f32 %v711_v5, %v602_v46  ;;  %v744_v10 = vadd.f32 %v712_v27, %v603_v6  ;;  %v871_v6 = vld [vmem:[%s5765_s5] ss:$8 sm:$0x3] }
 0x13e   : > { %v2743_v50 = vadd.f32 %v2711_v1, %v2666_v36  ;;  %v2744_v11 = vadd.f32 %v2712_v42, %v2667_v34  ;;  %v604_v56 = vadd.f32 %v572_v0, %v463_v40  ;;  %v605_v12 = vadd.f32 %v573_v41, %v464_v19  ;;  %v4429_v1 = vld [vmem:[#allocation2 + $0x200] ss:$8 sps:$4 sm:$0xff]   ;;  %v4431_v42 = vld [vmem:[#allocation2 + $0x204] ss:$8 sps:$4 sm:$0xff]   ;;  %v4434_v19 = vld [vmem:[#allocation2 + $0x214] ss:$8 sps:$4 sm:$0xff]  }
 0x13f   : > { %v788_v61 = vadd.f32 %v4970_v22, %v744_v10  ;;  %v787_v8 = vadd.f32 %v4964_v17, %v743_v38  ;;  %v5334_v45 = vrot.slane %v871_v6, %v4896_v57  ;;  %v5337_v32 = vrot.slane %v871_v6, %v4898_v58  ;;  %1777 = vmatprep.subr.bf16.mxu0 %v4431_v42 }
 0x140   : > { %v670_v63 = vpop.permute.xlu1 %669  ;;  %1778 = vmatpush1.bf16.msra.mxu0 %v4429_v1 }
 0x141   : > { %v713_v2 = vmul.f32 %v4952_v13, %v670_v63  ;;  %v714_v3 = vmul.f32 %v4955_v14, %v670_v63  ;;  %v2788_v4 = vmul.f32 %v4958_v15, %v670_v63  ;;  %v2789_v29 = vmul.f32 %v4961_v16, %v670_v63  ;;  %1779 = vmatprep.subr.bf16.mxu0 %v4434_v19  ;;  %v4437_v63 = vld [vmem:[#allocation2 + $0x224] ss:$8 sps:$4 sm:$0xff]  }
 0x142   : > { %v820_v23 = vmax.f32 %v788_v61, 0.0  ;;  %v819_v7 = vmax.f32 %v787_v8, 0.0 }
 0x143   : > { %v745_v9 = vadd.f32 %v713_v2, %v604_v56  ;;  %v746_v53 = vadd.f32 %v714_v3, %v605_v12  ;;  %v5324_v60 = vadd.f32 %v2788_v4, %v2743_v50  ;;  %v5326_v5 = vadd.f32 %v2789_v29, %v2744_v11  ;;  %v4432_v56 = vld [vmem:[#allocation2 + $0x210] ss:$8 sps:$4 sm:$0xff]  }
 0x144   : > { %1780 = vmatpush1.bf16.msra.mxu0 %v4432_v56 }
 0x145   : > { %v790_v27 = vadd.f32 %v4970_v22, %v746_v53  ;;  %v789_v13 = vadd.f32 %v4964_v17, %v745_v9  ;;  %v4435_v9 = vld [vmem:[#allocation2 + $0x220] ss:$8 sps:$4 sm:$0xff]   ;;  %1781 = vmatprep.subr.bf16.mxu0 %v4437_v63 }
 0x147   : > { %v822_v14 = vmax.f32 %v790_v27, 0.0  ;;  %v821_v15 = vmax.f32 %v789_v13, 0.0  ;;  %v4440_v13 = vld [vmem:[#allocation2 + $0x234] ss:$8 sps:$4 sm:$0xff]  }
 0x148   : > { %1782 = vmatpush1.bf16.msra.mxu0 %v4435_v9  ;;  %v4453_v9 = vld [vmem:[#allocation2 + $0x280] ss:$8 sps:$4 sm:$0xff]  }
 0x149   : > { %v838_v46 = vpack.c.bf16 %v822_v14, %v820_v23  ;;  %v837_v16 = vpack.c.bf16 %v821_v15, %v819_v7  ;;  %1783 = vmatprep.subr.bf16.mxu0 %v4440_v13  ;;  %v4461_v13 = vld [vmem:[#allocation2 + $0x2a4] ss:$8 sps:$4 sm:$0xff]  }
 0x14b   : > { %1145 = vmatprep.mubr.bf16.mxu0 %v838_v46 }
 0x14c   : > { %1146 = vmatmul.mubr.bf16.gmra.mrb[28].mxu0 %v837_v16  ;;  %v4438_v16 = vld [vmem:[#allocation2 + $0x230] ss:$8 sps:$4 sm:$0xff]  }
 0x14d   : > { %1784 = vmatpush1.bf16.msra.mxu0 %v4438_v16 }
 0x1a4   : > { %v1077_v22 = vpop.f32.mrb[0].mxu0 }
 0x1a5   : > { %v1078_v17 = vadd.f32 %v1077_v22, %v5334_v45  ;;  %v1079_v30 = vpop.f32.mrb[1].mxu0  ;;  %v4443_v22 = vld [vmem:[#allocation2 + $0x244] ss:$8 sps:$4 sm:$0xff]  }
 0x1a6   : > { %v1080_v36 = vadd.f32 %v1079_v30, %v5337_v32  ;;  %v1081_v34 = vpop.f32.mrb[2].mxu0  ;;  %v4441_v30 = vld [vmem:[#allocation2 + $0x240] ss:$8 sps:$4 sm:$0xff]   ;;  %1785 = vmatprep.subr.bf16.mxu0 %v4443_v22  ;;  %v4462_v22 = vld [vmem:[#allocation2 + $0x2b0] ss:$8 sps:$4 sm:$0xff]  }
 0x1a7   : > { %v1082_v0 = vadd.f32 %v1081_v34, %v5334_v45  ;;  %v1083_v41 = vpop.f32.mrb[3].mxu0  ;;  %v1156_v38 = vmax.f32 %v1078_v17, 0.0  ;;  %1786 = vmatpush1.bf16.msra.mxu0 %v4441_v30  ;;  %v4444_v34 = vld [vmem:[#allocation2 + $0x250] ss:$8 sps:$4 sm:$0xff]  }
 0x1a8   : > { %v1084_v40 = vadd.f32 %v1083_v41, %v5337_v32  ;;  %v1157_v50 = vmax.f32 %v1080_v36, 0.0  ;;  %v4446_v36 = vld [vmem:[#allocation2 + $0x254] ss:$8 sps:$4 sm:$0xff]  }
 0x1a9   : > { %v1158_v10 = vmax.f32 %v1082_v0, 0.0  ;;  %1787 = vmatprep.subr.bf16.mxu0 %v4446_v36  ;;  %v4449_v0 = vld [vmem:[#allocation2 + $0x264] ss:$8 sps:$4 sm:$0xff]  }
 0x1aa   : > { %v1159_v11 = vmax.f32 %v1084_v40, 0.0  ;;  %v4447_v40 = vld [vmem:[#allocation2 + $0x260] ss:$8 sps:$4 sm:$0xff]   ;;  %v4467_v36 = vld [vmem:[#allocation2 + $0x2c4] ss:$8 sps:$4 sm:$0xff]  }
 0x1ab   : > { %v1188_v12 = vpack.c.bf16 %v1158_v10, %v1156_v38  ;;  %1788 = vmatpush1.bf16.msra.mxu0 %v4444_v34  ;;  %v4452_v10 = vld [vmem:[#allocation2 + $0x274] ss:$8 sps:$4 sm:$0xff]  }
 0x1ac   : > { %v1189_v3 = vpack.c.bf16 %v1159_v11, %v1157_v50  ;;  %1789 = vmatprep.subr.bf16.mxu0 %v4449_v0 }
 0x1ad   : > { %v1087_v2 = vpop.f32.mrb[4].mxu0 }
 0x1ae   : > { %v1088_v4 = vadd.f32 %v1087_v2, %v5334_v45  ;;  %v1089_v29 = vpop.f32.mrb[5].mxu0  ;;  %1442 = vmatprep.mubr.bf16.mxu1 %v1189_v3  ;;  %v4450_v2 = vld [vmem:[#allocation2 + $0x270] ss:$8 sps:$4 sm:$0xff]  }
 0x1af   : > { %v1090_v61 = vadd.f32 %v1089_v29, %v5337_v32  ;;  %v1091_v8 = vpop.f32.mrb[6].mxu0  ;;  %1443 = vmatmul.mubr.bf16.vlgmr.msra.gmra.mrb[0].mxu1 %v1188_v12  ;;  %1790 = vmatpush1.bf16.msra.mxu0 %v4447_v40  ;;  %v4455_v29 = vld [vmem:[#allocation2 + $0x284] ss:$8 sps:$4 sm:$0xff]   ;;  %v4465_v40 = vld [vmem:[#allocation2 + $0x2c0] ss:$8 sps:$4 sm:$0xff]  }
 0x1b0   : > { %v1092_v53 = vadd.f32 %v1091_v8, %v5334_v45  ;;  %v1093_v27 = vpop.f32.mrb[7].mxu0  ;;  %v1160_v14 = vmax.f32 %v1088_v4, 0.0  ;;  %1791 = vmatprep.subr.bf16.mxu0 %v4452_v10 }
 0x1b1   : > { %v1094_v23 = vadd.f32 %v1093_v27, %v5337_v32  ;;  %v1161_v15 = vmax.f32 %v1090_v61, 0.0  ;;  %v4456_v27 = vld [vmem:[#allocation2 + $0x290] ss:$8 sps:$4 sm:$0xff]  }
 0x1b2   : > { %v1162_v7 = vmax.f32 %v1092_v53, 0.0  ;;  %v4458_v53 = vld [vmem:[#allocation2 + $0x294] ss:$8 sps:$4 sm:$0xff]  }
 0x1b3   : > { %v1163_v46 = vmax.f32 %v1094_v23, 0.0  ;;  %1792 = vmatpush1.bf16.msra.mxu0 %v4450_v2  ;;  %v4459_v23 = vld [vmem:[#allocation2 + $0x2a0] ss:$8 sps:$4 sm:$0xff]  }
 0x1b4   : > { %v1190_v6 = vpack.c.bf16 %v1162_v7, %v1160_v14  ;;  %1793 = vmatprep.subr.bf16.mxu0 %v4455_v29  ;;  %v4464_v14 = vld [vmem:[#allocation2 + $0x2b4] ss:$8 sps:$4 sm:$0xff]  }
 0x1b5   : > { %v1191_v17 = vpack.c.bf16 %v1163_v46, %v1161_v15 }
 0x1b7   : > { %1452 = vmatprep.mubr.bf16.mxu1 %v1191_v17  ;;  %1794 = vmatpush1.bf16.msra.mxu0 %v4453_v9 }
 0x1b8   : > { %1453 = vmatmul.mubr.bf16.gmra.mrb[4].mxu1 %v1190_v6  ;;  %1795 = vmatprep.subr.bf16.mxu0 %v4458_v53 }
 0x1bb   : > { %1796 = vmatpush1.bf16.msra.mxu0 %v4456_v27 }
 0x1bc   : > { %1797 = vmatprep.subr.bf16.mxu0 %v4461_v13 }
 0x1bf   : > { %1798 = vmatpush1.bf16.msra.mxu0 %v4459_v23 }
 0x1c0   : > { %v1097_v41 = vpop.f32.mrb[8].mxu0  ;;  %1799 = vmatprep.subr.bf16.mxu0 %v4464_v14 }
 0x1c1   : > { %v1098_v1 = vadd.f32 %v1097_v41, %v5334_v45  ;;  %v1099_v42 = vpop.f32.mrb[9].mxu0 }
 0x1c2   : > { %v1100_v19 = vadd.f32 %v1099_v42, %v5337_v32  ;;  %v1101_v38 = vpop.f32.mrb[10].mxu0 }
 0x1c3   : > { %v1102_v50 = vadd.f32 %v1101_v38, %v5334_v45  ;;  %v1103_v11 = vpop.f32.mrb[11].mxu0  ;;  %v1164_v12 = vmax.f32 %v1098_v1, 0.0  ;;  %1800 = vmatpush1.bf16.msra.mxu0 %v4462_v22  ;;  %v4470_v38 = vld [vmem:[#allocation2 + $0x2d4] ss:$8 sps:$4 sm:$0xff]  }
 0x1c4   : > { %v1104_v56 = vadd.f32 %v1103_v11, %v5337_v32  ;;  %v1165_v3 = vmax.f32 %v1100_v19, 0.0  ;;  %1801 = vmatprep.subr.bf16.mxu0 %v4467_v36 }
 0x1c5   : > { %v1166_v63 = vmax.f32 %v1102_v50, 0.0  ;;  %v4468_v50 = vld [vmem:[#allocation2 + $0x2d0] ss:$8 sps:$4 sm:$0xff]  }
 0x1c6   : > { %v1167_v4 = vmax.f32 %v1104_v56, 0.0 }
 0x1c7   : > { %v1192_v61 = vpack.c.bf16 %v1166_v63, %v1164_v12  ;;  %1802 = vmatpush1.bf16.msra.mxu0 %v4465_v40  ;;  %v4476_v40 = vld [vmem:[#allocation2 + $0x2f4] ss:$8 sps:$4 sm:$0xff]  }
 0x1c8   : > { %v1193_v8 = vpack.c.bf16 %v1167_v4, %v1165_v3  ;;  %1803 = vmatprep.subr.bf16.mxu0 %v4470_v38  ;;  %v4474_v38 = vld [vmem:[#allocation2 + $0x2f0] ss:$8 sps:$4 sm:$0xff]  }
 0x1ca   : > { %1462 = vmatprep.mubr.bf16.mxu1 %v1193_v8 }
 0x1cb   : > { %1463 = vmatmul.mubr.bf16.gmra.mrb[8].mxu1 %v1192_v61  ;;  %1804 = vmatpush1.bf16.msra.mxu0 %v4468_v50 }
 0x1d3   : > { %v1107_v7 = vpop.f32.mrb[12].mxu0 }
 0x1d4   : > { %v1108_v15 = vadd.f32 %v1107_v7, %v5334_v45  ;;  %v1109_v46 = vpop.f32.mrb[13].mxu0 }
 0x1d5   : > { %v1110_v16 = vadd.f32 %v1109_v46, %v5337_v32  ;;  %v1111_v6 = vpop.f32.mrb[14].mxu0 }
 0x1d6   : > { %v1112_v17 = vadd.f32 %v1111_v6, %v5334_v45  ;;  %v1113_v30 = vpop.f32.mrb[15].mxu0  ;;  %v1168_v0 = vmax.f32 %v1108_v15, 0.0 }
 0x1d7   : > { %v1114_v34 = vadd.f32 %v1113_v30, %v5337_v32  ;;  %v1169_v1 = vmax.f32 %v1110_v16, 0.0 }
 0x1d8   : > { %v1170_v41 = vmax.f32 %v1112_v17, 0.0 }
 0x1d9   : > { %v1171_v42 = vmax.f32 %v1114_v34, 0.0 }
 0x1da   : > { %v1194_v19 = vpack.c.bf16 %v1170_v41, %v1168_v0 }
 0x1db   : > { %v1195_v10 = vpack.c.bf16 %v1171_v42, %v1169_v1  ;;  %v4473_v1 = vld [vmem:[#allocation2 + $0x2e4] ss:$8 sps:$4 sm:$0xff]   ;;  %v4471_v42 = vld [vmem:[#allocation2 + $0x2e0] ss:$8 sps:$4 sm:$0xff]  }
 0x1dc   : > { %1805 = vmatprep.subr.bf16.mxu0 %v4473_v1 }
 0x1dd   : > { %1472 = vmatprep.mubr.bf16.mxu1 %v1195_v10  ;;  %1806 = vmatpush1.bf16.msra.mxu0 %v4471_v42 }
 0x1de   : > { %1473 = vmatmul.mubr.bf16.gmra.mrb[12].mxu1 %v1194_v19  ;;  %1807 = vmatprep.subr.bf16.mxu0 %v4476_v40 }
 0x1e1   : > { %1808 = vmatpush1.bf16.msra.mxu0 %v4474_v38 }
 0x1e6   : > { %v1117_v11 = vpop.f32.mrb[16].mxu0 }
 0x1e7   : > { %v1118_v56 = vadd.f32 %v1117_v11, %v5334_v45  ;;  %v1119_v12 = vpop.f32.mrb[17].mxu0 }
 0x1e8   : > { %v1120_v63 = vadd.f32 %v1119_v12, %v5337_v32  ;;  %v1121_v2 = vpop.f32.mrb[18].mxu0 }
 0x1e9   : > { %v1122_v3 = vadd.f32 %v1121_v2, %v5334_v45  ;;  %v1123_v4 = vpop.f32.mrb[19].mxu0  ;;  %v1172_v61 = vmax.f32 %v1118_v56, 0.0 }
 0x1ea   : > { %v1124_v29 = vadd.f32 %v1123_v4, %v5337_v32  ;;  %v1173_v9 = vmax.f32 %v1120_v63, 0.0 }
 0x1eb   : > { %v1174_v8 = vmax.f32 %v1122_v3, 0.0 }
 0x1ec   : > { %v1175_v53 = vmax.f32 %v1124_v29, 0.0 }
 0x1ed   : > { %v1196_v27 = vpack.c.bf16 %v1174_v8, %v1172_v61 }
 0x1ee   : > { %v1197_v13 = vpack.c.bf16 %v1175_v53, %v1173_v9 }
 0x1f0   : > { %1482 = vmatprep.mubr.bf16.mxu1 %v1197_v13 }
 0x1f1   : > { %1483 = vmatmul.mubr.bf16.gmra.mrb[16].mxu1 %v1196_v27 }
 0x1f9   : > { %v1127_v23 = vpop.f32.mrb[20].mxu0 }
 0x1fa   : > { %v1128_v14 = vadd.f32 %v1127_v23, %v5334_v45  ;;  %v1129_v7 = vpop.f32.mrb[21].mxu0 }
 0x1fb   : > { %v1130_v15 = vadd.f32 %v1129_v7, %v5337_v32  ;;  %v1131_v46 = vpop.f32.mrb[22].mxu0 }
 0x1fc   : > { %v1132_v16 = vadd.f32 %v1131_v46, %v5334_v45  ;;  %v1133_v6 = vpop.f32.mrb[23].mxu0  ;;  %v1176_v17 = vmax.f32 %v1128_v14, 0.0 }
 0x1fd   : > { %v1134_v22 = vadd.f32 %v1133_v6, %v5337_v32  ;;  %v1177_v36 = vmax.f32 %v1130_v15, 0.0 }
 0x1fe   : > { %v1178_v30 = vmax.f32 %v1132_v16, 0.0 }
 0x1ff   : > { %v1179_v34 = vmax.f32 %v1134_v22, 0.0 }
 0x200   : > { %v1198_v0 = vpack.c.bf16 %v1178_v30, %v1176_v17 }
 0x201   : > { %v1199_v41 = vpack.c.bf16 %v1179_v34, %v1177_v36  ;;  %v3998_v34 = vld [vmem:[%s5765_s5 + $0x1] ss:$8 sm:$0x3] }
 0x203   : > { %1492 = vmatprep.mubr.bf16.mxu1 %v1199_v41 }
 0x204   : > { %1493 = vmatmul.mubr.bf16.gmra.mrb[20].mxu1 %v1198_v0  ;;  %v5375_v0 = vrot.slane %v3998_v34, %v4896_v57 }
 0x20c   : > { %v1137_v19 = vpop.f32.mrb[24].mxu0 }
 0x20d   : > { %v1138_v10 = vadd.f32 %v1137_v19, %v5334_v45  ;;  %v1139_v50 = vpop.f32.mrb[25].mxu0 }
 0x20e   : > { %v1140_v11 = vadd.f32 %v1139_v50, %v5337_v32  ;;  %v1141_v56 = vpop.f32.mrb[26].mxu0  ;;  %v4479_v50 = vld [vmem:[#allocation2 + $0x304] ss:$8 sps:$4 sm:$0xff]  }
 0x20f   : > { %v1142_v12 = vadd.f32 %v1141_v56, %v5334_v45  ;;  %v1143_v63 = vpop.f32.mrb[27].mxu0  ;;  %v1180_v3 = vmax.f32 %v1138_v10, 0.0  ;;  %v4477_v10 = vld [vmem:[#allocation2 + $0x300] ss:$8 sps:$4 sm:$0xff]   ;;  %v4482_v56 = vld [vmem:[#allocation2 + $0x314] ss:$8 sps:$4 sm:$0xff]   ;;  %2144 = vmatprep.subr.bf16.mxu1 %v4479_v50 }
 0x210   : > { %v1144_v2 = vadd.f32 %v1143_v63, %v5337_v32  ;;  %v1181_v29 = vmax.f32 %v1140_v11, 0.0  ;;  %2145 = vmatpush1.bf16.msra.mxu1 %v4477_v10 }
 0x211   : > { %v1182_v4 = vmax.f32 %v1142_v12, 0.0  ;;  %2146 = vmatprep.subr.bf16.mxu1 %v4482_v56 }
 0x212   : > { %v1183_v61 = vmax.f32 %v1144_v2, 0.0 }
 0x213   : > { %v1200_v8 = vpack.c.bf16 %v1182_v4, %v1180_v3  ;;  %v4480_v4 = vld [vmem:[#allocation2 + $0x310] ss:$8 sps:$4 sm:$0xff]  }
 0x214   : > { %v1201_v9 = vpack.c.bf16 %v1183_v61, %v1181_v29  ;;  %v4485_v61 = vld [vmem:[#allocation2 + $0x324] ss:$8 sps:$4 sm:$0xff]   ;;  %2147 = vmatpush1.bf16.msra.mxu1 %v4480_v4 }
 0x215   : > { %2148 = vmatprep.subr.bf16.mxu1 %v4485_v61 }
 0x216   : > { %1502 = vmatprep.mubr.bf16.mxu1 %v1201_v9 }
 0x217   : > { %1503 = vmatmul.mubr.bf16.gmra.mrb[24].mxu1 %v1200_v8 }
 0x21f   : > { %v1147_v53 = vpop.f32.mrb[28].mxu0 }
 0x220   : > { %v1148_v27 = vadd.f32 %v1147_v53, %v5334_v45  ;;  %v1149_v13 = vpop.f32.mrb[29].mxu0 }
 0x221   : > { %v1150_v23 = vadd.f32 %v1149_v13, %v5337_v32  ;;  %v1151_v14 = vpop.f32.mrb[30].mxu0 }
 0x222   : > { %v1152_v7 = vadd.f32 %v1151_v14, %v5334_v45  ;;  %v1153_v15 = vpop.f32.mrb[31].mxu0  ;;  %v1184_v16 = vmax.f32 %v1148_v27, 0.0  ;;  %v5378_v45 = vrot.slane %v3998_v34, %v4898_v58  ;;  %v4483_v14 = vld [vmem:[#allocation2 + $0x320] ss:$8 sps:$4 sm:$0xff]  }
 0x223   : > { %v1154_v46 = vadd.f32 %v1153_v15, %v5337_v32  ;;  %v1185_v22 = vmax.f32 %v1150_v23, 0.0  ;;  %2149 = vmatpush1.bf16.msra.mxu1 %v4483_v14  ;;  %v4501_v14 = vld [vmem:[#allocation2 + $0x380] ss:$8 sps:$4 sm:$0xff]  }
 0x224   : > { %v1186_v6 = vmax.f32 %v1152_v7, 0.0 }
 0x225   : > { %v1187_v17 = vmax.f32 %v1154_v46, 0.0  ;;  %v4488_v46 = vld [vmem:[#allocation2 + $0x334] ss:$8 sps:$4 sm:$0xff]  }
 0x226   : > { %v1202_v30 = vpack.c.bf16 %v1186_v6, %v1184_v16  ;;  %2150 = vmatprep.subr.bf16.mxu1 %v4488_v46  ;;  %v4509_v46 = vld [vmem:[#allocation2 + $0x3a4] ss:$8 sps:$4 sm:$0xff]  }
 0x227   : > { %v1203_v36 = vpack.c.bf16 %v1187_v17, %v1185_v22 }
 0x229   : > { %1512 = vmatprep.mubr.bf16.mxu1 %v1203_v36  ;;  %v4486_v36 = vld [vmem:[#allocation2 + $0x330] ss:$8 sps:$4 sm:$0xff]  }
 0x22a   : > { %1513 = vmatmul.mubr.bf16.gmra.mrb[28].mxu1 %v1202_v30 }
 0x22b   : > { %2151 = vmatpush1.bf16.msra.mxu1 %v4486_v36 }
 0x282   : > { %v1444_v41 = vpop.f32.mrb[0].mxu1 }
 0x283   : > { %v1445_v32 = vadd.f32 %v1444_v41, %v5375_v0  ;;  %v1446_v1 = vpop.f32.mrb[1].mxu1  ;;  %v4491_v41 = vld [vmem:[#allocation2 + $0x344] ss:$8 sps:$4 sm:$0xff]  }
 0x284   : > { %v1447_v42 = vadd.f32 %v1446_v1, %v5378_v45  ;;  %v1448_v40 = vpop.f32.mrb[2].mxu1  ;;  %v4489_v1 = vld [vmem:[#allocation2 + $0x340] ss:$8 sps:$4 sm:$0xff]   ;;  %2152 = vmatprep.subr.bf16.mxu1 %v4491_v41  ;;  %v4510_v41 = vld [vmem:[#allocation2 + $0x3b0] ss:$8 sps:$4 sm:$0xff]  }
 0x285   : > { %v1449_v19 = vadd.f32 %v1448_v40, %v5375_v0  ;;  %v1450_v38 = vpop.f32.mrb[3].mxu1  ;;  %v1523_v12 = vmax.f32 %v1445_v32, 0.0  ;;  %2153 = vmatpush1.bf16.msra.mxu1 %v4489_v1  ;;  %v4492_v40 = vld [vmem:[#allocation2 + $0x350] ss:$8 sps:$4 sm:$0xff]  }
 0x286   : > { %v1451_v11 = vadd.f32 %v1450_v38, %v5378_v45  ;;  %v1524_v2 = vmax.f32 %v1447_v42, 0.0  ;;  %v4494_v42 = vld [vmem:[#allocation2 + $0x354] ss:$8 sps:$4 sm:$0xff]  }
 0x287   : > { %v1525_v63 = vmax.f32 %v1449_v19, 0.0  ;;  %2154 = vmatprep.subr.bf16.mxu1 %v4494_v42  ;;  %v4497_v19 = vld [vmem:[#allocation2 + $0x364] ss:$8 sps:$4 sm:$0xff]  }
 0x288   : > { %v1526_v3 = vmax.f32 %v1451_v11, 0.0  ;;  %v4495_v11 = vld [vmem:[#allocation2 + $0x360] ss:$8 sps:$4 sm:$0xff]   ;;  %v4515_v42 = vld [vmem:[#allocation2 + $0x3c4] ss:$8 sps:$4 sm:$0xff]  }
 0x289   : > { %v1555_v29 = vpack.c.bf16 %v1525_v63, %v1523_v12  ;;  %2155 = vmatpush1.bf16.msra.mxu1 %v4492_v40  ;;  %v4500_v63 = vld [vmem:[#allocation2 + $0x374] ss:$8 sps:$4 sm:$0xff]  }
 0x28a   : > { %v1556_v8 = vpack.c.bf16 %v1526_v3, %v1524_v2  ;;  %2156 = vmatprep.subr.bf16.mxu1 %v4497_v19 }
 0x28b   : > { %v1454_v9 = vpop.f32.mrb[4].mxu1 }
 0x28c   : > { %v1455_v53 = vadd.f32 %v1454_v9, %v5375_v0  ;;  %v1456_v27 = vpop.f32.mrb[5].mxu1  ;;  %1809 = vmatprep.mubr.bf16.mxu0 %v1556_v8  ;;  %v4498_v8 = vld [vmem:[#allocation2 + $0x370] ss:$8 sps:$4 sm:$0xff]  }
 0x28d   : > { %v1457_v13 = vadd.f32 %v1456_v27, %v5378_v45  ;;  %v1458_v23 = vpop.f32.mrb[6].mxu1  ;;  %1810 = vmatmul.mubr.bf16.vlgmr.msra.gmra.mrb[32].mxu0 %v1555_v29  ;;  %2157 = vmatpush1.bf16.msra.mxu1 %v4495_v11  ;;  %v4503_v27 = vld [vmem:[#allocation2 + $0x384] ss:$8 sps:$4 sm:$0xff]   ;;  %v4513_v11 = vld [vmem:[#allocation2 + $0x3c0] ss:$8 sps:$4 sm:$0xff]  }
 0x28e   : > { %v1459_v7 = vadd.f32 %v1458_v23, %v5375_v0  ;;  %v1460_v15 = vpop.f32.mrb[7].mxu1  ;;  %v1527_v6 = vmax.f32 %v1455_v53, 0.0  ;;  %2158 = vmatprep.subr.bf16.mxu1 %v4500_v63 }
 0x28f   : > { %v1461_v16 = vadd.f32 %v1460_v15, %v5378_v45  ;;  %v1528_v17 = vmax.f32 %v1457_v13, 0.0  ;;  %v4504_v15 = vld [vmem:[#allocation2 + $0x390] ss:$8 sps:$4 sm:$0xff]  }
 0x290   : > { %v1529_v22 = vmax.f32 %v1459_v7, 0.0  ;;  %v4506_v7 = vld [vmem:[#allocation2 + $0x394] ss:$8 sps:$4 sm:$0xff]  }
 0x291   : > { %v1530_v30 = vmax.f32 %v1461_v16, 0.0  ;;  %2159 = vmatpush1.bf16.msra.mxu1 %v4498_v8  ;;  %v4507_v16 = vld [vmem:[#allocation2 + $0x3a0] ss:$8 sps:$4 sm:$0xff]  }
 0x292   : > { %v1557_v34 = vpack.c.bf16 %v1529_v22, %v1527_v6  ;;  %2160 = vmatprep.subr.bf16.mxu1 %v4503_v27  ;;  %v4512_v6 = vld [vmem:[#allocation2 + $0x3b4] ss:$8 sps:$4 sm:$0xff]  }
 0x293   : > { %v1558_v32 = vpack.c.bf16 %v1530_v30, %v1528_v17 }
 0x295   : > { %1819 = vmatprep.mubr.bf16.mxu0 %v1558_v32  ;;  %2161 = vmatpush1.bf16.msra.mxu1 %v4501_v14 }
 0x296   : > { %1820 = vmatmul.mubr.bf16.gmra.mrb[36].mxu0 %v1557_v34  ;;  %2162 = vmatprep.subr.bf16.mxu1 %v4506_v7 }
 0x299   : > { %2163 = vmatpush1.bf16.msra.mxu1 %v4504_v15 }
 0x29a   : > { %2164 = vmatprep.subr.bf16.mxu1 %v4509_v46 }
 0x29d   : > { %2165 = vmatpush1.bf16.msra.mxu1 %v4507_v16 }
 0x29e   : > { %v1464_v38 = vpop.f32.mrb[8].mxu1  ;;  %2166 = vmatprep.subr.bf16.mxu1 %v4512_v6 }
 0x29f   : > { %v1465_v10 = vadd.f32 %v1464_v38, %v5375_v0  ;;  %v1466_v50 = vpop.f32.mrb[9].mxu1 }
 0x2a0   : > { %v1467_v56 = vadd.f32 %v1466_v50, %v5378_v45  ;;  %v1468_v12 = vpop.f32.mrb[10].mxu1 }
 0x2a1   : > { %v1469_v2 = vadd.f32 %v1468_v12, %v5375_v0  ;;  %v1470_v3 = vpop.f32.mrb[11].mxu1  ;;  %v1531_v29 = vmax.f32 %v1465_v10, 0.0  ;;  %2167 = vmatpush1.bf16.msra.mxu1 %v4510_v41  ;;  %v4518_v12 = vld [vmem:[#allocation2 + $0x3d4] ss:$8 sps:$4 sm:$0xff]  }
 0x2a2   : > { %v1471_v4 = vadd.f32 %v1470_v3, %v5378_v45  ;;  %v1532_v9 = vmax.f32 %v1467_v56, 0.0  ;;  %2168 = vmatprep.subr.bf16.mxu1 %v4515_v42 }
 0x2a3   : > { %v1533_v61 = vmax.f32 %v1469_v2, 0.0  ;;  %v4516_v2 = vld [vmem:[#allocation2 + $0x3d0] ss:$8 sps:$4 sm:$0xff]  }
 0x2a4   : > { %v1534_v53 = vmax.f32 %v1471_v4, 0.0 }
 0x2a5   : > { %v1559_v13 = vpack.c.bf16 %v1533_v61, %v1531_v29  ;;  %2169 = vmatpush1.bf16.msra.mxu1 %v4513_v11  ;;  %v4524_v11 = vld [vmem:[#allocation2 + $0x3f4] ss:$8 sps:$4 sm:$0xff]  }
 0x2a6   : > { %v1560_v23 = vpack.c.bf16 %v1534_v53, %v1532_v9  ;;  %2170 = vmatprep.subr.bf16.mxu1 %v4518_v12  ;;  %v4522_v12 = vld [vmem:[#allocation2 + $0x3f0] ss:$8 sps:$4 sm:$0xff]  }
 0x2a8   : > { %1829 = vmatprep.mubr.bf16.mxu0 %v1560_v23 }
 0x2a9   : > { %1830 = vmatmul.mubr.bf16.gmra.mrb[40].mxu0 %v1559_v13  ;;  %2171 = vmatpush1.bf16.msra.mxu1 %v4516_v2 }
 0x2b1   : > { %v1474_v22 = vpop.f32.mrb[12].mxu1 }
 0x2b2   : > { %v1475_v17 = vadd.f32 %v1474_v22, %v5375_v0  ;;  %v1476_v30 = vpop.f32.mrb[13].mxu1 }
 0x2b3   : > { %v1477_v36 = vadd.f32 %v1476_v30, %v5378_v45  ;;  %v1478_v34 = vpop.f32.mrb[14].mxu1 }
 0x2b4   : > { %v1479_v32 = vadd.f32 %v1478_v34, %v5375_v0  ;;  %v1480_v1 = vpop.f32.mrb[15].mxu1  ;;  %v1535_v19 = vmax.f32 %v1475_v17, 0.0 }
 0x2b5   : > { %v1481_v40 = vadd.f32 %v1480_v1, %v5378_v45  ;;  %v1536_v10 = vmax.f32 %v1477_v36, 0.0 }
 0x2b6   : > { %v1537_v38 = vmax.f32 %v1479_v32, 0.0 }
 0x2b7   : > { %v1538_v50 = vmax.f32 %v1481_v40, 0.0 }
 0x2b8   : > { %v1561_v56 = vpack.c.bf16 %v1537_v38, %v1535_v19 }
 0x2b9   : > { %v1562_v63 = vpack.c.bf16 %v1538_v50, %v1536_v10  ;;  %v4521_v10 = vld [vmem:[#allocation2 + $0x3e4] ss:$8 sps:$4 sm:$0xff]   ;;  %v4519_v50 = vld [vmem:[#allocation2 + $0x3e0] ss:$8 sps:$4 sm:$0xff]  }
 0x2ba   : > { %2172 = vmatprep.subr.bf16.mxu1 %v4521_v10 }
 0x2bb   : > { %1839 = vmatprep.mubr.bf16.mxu0 %v1562_v63  ;;  %2173 = vmatpush1.bf16.msra.mxu1 %v4519_v50 }
 0x2bc   : > { %1840 = vmatmul.mubr.bf16.gmra.mrb[44].mxu0 %v1561_v56  ;;  %2174 = vmatprep.subr.bf16.mxu1 %v4524_v11 }
 0x2bf   : > { %2175 = vmatpush1.bf16.msra.mxu1 %v4522_v12 }
 0x2c4   : > { %v1484_v3 = vpop.f32.mrb[16].mxu1 }
 0x2c5   : > { %v1485_v4 = vadd.f32 %v1484_v3, %v5375_v0  ;;  %v1486_v29 = vpop.f32.mrb[17].mxu1 }
 0x2c6   : > { %v1487_v61 = vadd.f32 %v1486_v29, %v5378_v45  ;;  %v1488_v8 = vpop.f32.mrb[18].mxu1 }
 0x2c7   : > { %v1489_v9 = vadd.f32 %v1488_v8, %v5375_v0  ;;  %v1490_v53 = vpop.f32.mrb[19].mxu1  ;;  %v1539_v13 = vmax.f32 %v1485_v4, 0.0 }
 0x2c8   : > { %v1491_v27 = vadd.f32 %v1490_v53, %v5378_v45  ;;  %v1540_v14 = vmax.f32 %v1487_v61, 0.0 }
 0x2c9   : > { %v1541_v23 = vmax.f32 %v1489_v9, 0.0 }
 0x2ca   : > { %v1542_v7 = vmax.f32 %v1491_v27, 0.0 }
 0x2cb   : > { %v1563_v15 = vpack.c.bf16 %v1541_v23, %v1539_v13 }
 0x2cc   : > { %v1564_v46 = vpack.c.bf16 %v1542_v7, %v1540_v14 }
 0x2ce   : > { %1849 = vmatprep.mubr.bf16.mxu0 %v1564_v46 }
 0x2cf   : > { %1850 = vmatmul.mubr.bf16.gmra.mrb[48].mxu0 %v1563_v15 }
 0x2d7   : > { %v1494_v16 = vpop.f32.mrb[20].mxu1 }
 0x2d8   : > { %v1495_v6 = vadd.f32 %v1494_v16, %v5375_v0  ;;  %v1496_v22 = vpop.f32.mrb[21].mxu1 }
 0x2d9   : > { %v1497_v17 = vadd.f32 %v1496_v22, %v5378_v45  ;;  %v1498_v30 = vpop.f32.mrb[22].mxu1 }
 0x2da   : > { %v1499_v36 = vadd.f32 %v1498_v30, %v5375_v0  ;;  %v1500_v34 = vpop.f32.mrb[23].mxu1  ;;  %v1543_v32 = vmax.f32 %v1495_v6, 0.0 }
 0x2db   : > { %v1501_v41 = vadd.f32 %v1500_v34, %v5378_v45  ;;  %v1544_v42 = vmax.f32 %v1497_v17, 0.0 }
 0x2dc   : > { %v1545_v1 = vmax.f32 %v1499_v36, 0.0 }
 0x2dd   : > { %v1546_v40 = vmax.f32 %v1501_v41, 0.0 }
 0x2de   : > { %v1565_v19 = vpack.c.bf16 %v1545_v1, %v1543_v32 }
 0x2df   : > { %v1566_v38 = vpack.c.bf16 %v1546_v40, %v1544_v42  ;;  %v4031_v40 = vld [vmem:[%s5765_s5 + $0x2] ss:$8 sm:$0x3] }
 0x2e1   : > { %1859 = vmatprep.mubr.bf16.mxu0 %v1566_v38 }
 0x2e2   : > { %1860 = vmatmul.mubr.bf16.gmra.mrb[52].mxu0 %v1565_v19  ;;  %v5416_v19 = vrot.slane %v4031_v40, %v4896_v57 }
 0x2ea   : > { %v1504_v56 = vpop.f32.mrb[24].mxu1 }
 0x2eb   : > { %v1505_v63 = vadd.f32 %v1504_v56, %v5375_v0  ;;  %v1506_v2 = vpop.f32.mrb[25].mxu1 }
 0x2ec   : > { %v1507_v3 = vadd.f32 %v1506_v2, %v5378_v45  ;;  %v1508_v4 = vpop.f32.mrb[26].mxu1  ;;  %v4527_v2 = vld [vmem:[#allocation2 + $0x404] ss:$8 sps:$4 sm:$0xff]  }
 0x2ed   : > { %v1509_v29 = vadd.f32 %v1508_v4, %v5375_v0  ;;  %v1510_v61 = vpop.f32.mrb[27].mxu1  ;;  %v1547_v9 = vmax.f32 %v1505_v63, 0.0  ;;  %v4525_v63 = vld [vmem:[#allocation2 + $0x400] ss:$8 sps:$4 sm:$0xff]   ;;  %v4530_v4 = vld [vmem:[#allocation2 + $0x414] ss:$8 sps:$4 sm:$0xff]   ;;  %2511 = vmatprep.subr.bf16.mxu0 %v4527_v2 }
 0x2ee   : > { %v1511_v8 = vadd.f32 %v1510_v61, %v5378_v45  ;;  %v1548_v27 = vmax.f32 %v1507_v3, 0.0  ;;  %2512 = vmatpush1.bf16.msra.mxu0 %v4525_v63 }
 0x2ef   : > { %v1549_v53 = vmax.f32 %v1509_v29, 0.0  ;;  %2513 = vmatprep.subr.bf16.mxu0 %v4530_v4 }
 0x2f0   : > { %v1550_v13 = vmax.f32 %v1511_v8, 0.0 }
 0x2f1   : > { %v1567_v23 = vpack.c.bf16 %v1549_v53, %v1547_v9  ;;  %v4528_v53 = vld [vmem:[#allocation2 + $0x410] ss:$8 sps:$4 sm:$0xff]  }
 0x2f2   : > { %v1568_v14 = vpack.c.bf16 %v1550_v13, %v1548_v27  ;;  %v4533_v13 = vld [vmem:[#allocation2 + $0x424] ss:$8 sps:$4 sm:$0xff]   ;;  %2514 = vmatpush1.bf16.msra.mxu0 %v4528_v53 }
 0x2f3   : > { %2515 = vmatprep.subr.bf16.mxu0 %v4533_v13 }
 0x2f4   : > { %1869 = vmatprep.mubr.bf16.mxu0 %v1568_v14 }
 0x2f5   : > { %1870 = vmatmul.mubr.bf16.gmra.mrb[56].mxu0 %v1567_v23 }
 0x2fd   : > { %v1514_v7 = vpop.f32.mrb[28].mxu1 }
 0x2fe   : > { %v1515_v15 = vadd.f32 %v1514_v7, %v5375_v0  ;;  %v1516_v46 = vpop.f32.mrb[29].mxu1 }
 0x2ff   : > { %v1517_v16 = vadd.f32 %v1516_v46, %v5378_v45  ;;  %v1518_v6 = vpop.f32.mrb[30].mxu1 }
 0x300   : > { %v1519_v22 = vadd.f32 %v1518_v6, %v5375_v0  ;;  %v1520_v17 = vpop.f32.mrb[31].mxu1  ;;  %v1551_v36 = vmax.f32 %v1515_v15, 0.0  ;;  %v5419_v0 = vrot.slane %v4031_v40, %v4898_v58  ;;  %v4531_v6 = vld [vmem:[#allocation2 + $0x420] ss:$8 sps:$4 sm:$0xff]  }
 0x301   : > { %v1521_v30 = vadd.f32 %v1520_v17, %v5378_v45  ;;  %v1552_v41 = vmax.f32 %v1517_v16, 0.0  ;;  %2516 = vmatpush1.bf16.msra.mxu0 %v4531_v6  ;;  %v4549_v6 = vld [vmem:[#allocation2 + $0x480] ss:$8 sps:$4 sm:$0xff]  }
 0x302   : > { %v1553_v34 = vmax.f32 %v1519_v22, 0.0 }
 0x303   : > { %v1554_v32 = vmax.f32 %v1521_v30, 0.0  ;;  %v4536_v30 = vld [vmem:[#allocation2 + $0x434] ss:$8 sps:$4 sm:$0xff]  }
 0x304   : > { %v1569_v1 = vpack.c.bf16 %v1553_v34, %v1551_v36  ;;  %2517 = vmatprep.subr.bf16.mxu0 %v4536_v30  ;;  %v4557_v30 = vld [vmem:[#allocation2 + $0x4a4] ss:$8 sps:$4 sm:$0xff]  }
 0x305   : > { %v1570_v42 = vpack.c.bf16 %v1554_v32, %v1552_v41 }
 0x307   : > { %1879 = vmatprep.mubr.bf16.mxu0 %v1570_v42  ;;  %v4534_v42 = vld [vmem:[#allocation2 + $0x430] ss:$8 sps:$4 sm:$0xff]  }
 0x308   : > { %1880 = vmatmul.mubr.bf16.gmra.mrb[60].mxu0 %v1569_v1 }
 0x309   : > { %2518 = vmatpush1.bf16.msra.mxu0 %v4534_v42 }
 0x360   : > { %v1811_v38 = vpop.f32.mrb[32].mxu0 }
 0x361   : > { %v1812_v45 = vadd.f32 %v1811_v38, %v5416_v19  ;;  %v1813_v10 = vpop.f32.mrb[33].mxu0  ;;  %v4539_v38 = vld [vmem:[#allocation2 + $0x444] ss:$8 sps:$4 sm:$0xff]  }
 0x362   : > { %v1814_v50 = vadd.f32 %v1813_v10, %v5419_v0  ;;  %v1815_v11 = vpop.f32.mrb[34].mxu0  ;;  %v4537_v10 = vld [vmem:[#allocation2 + $0x440] ss:$8 sps:$4 sm:$0xff]   ;;  %2519 = vmatprep.subr.bf16.mxu0 %v4539_v38  ;;  %v4558_v38 = vld [vmem:[#allocation2 + $0x4b0] ss:$8 sps:$4 sm:$0xff]  }
 0x363   : > { %v1816_v56 = vadd.f32 %v1815_v11, %v5416_v19  ;;  %v1817_v12 = vpop.f32.mrb[35].mxu0  ;;  %v1890_v29 = vmax.f32 %v1812_v45, 0.0  ;;  %2520 = vmatpush1.bf16.msra.mxu0 %v4537_v10  ;;  %v4540_v11 = vld [vmem:[#allocation2 + $0x450] ss:$8 sps:$4 sm:$0xff]  }
 0x364   : > { %v1818_v3 = vadd.f32 %v1817_v12, %v5419_v0  ;;  %v1891_v8 = vmax.f32 %v1814_v50, 0.0  ;;  %v4542_v50 = vld [vmem:[#allocation2 + $0x454] ss:$8 sps:$4 sm:$0xff]  }
 0x365   : > { %v1892_v61 = vmax.f32 %v1816_v56, 0.0  ;;  %2521 = vmatprep.subr.bf16.mxu0 %v4542_v50  ;;  %v4545_v56 = vld [vmem:[#allocation2 + $0x464] ss:$8 sps:$4 sm:$0xff]  }
 0x366   : > { %v1893_v9 = vmax.f32 %v1818_v3, 0.0  ;;  %v4543_v3 = vld [vmem:[#allocation2 + $0x460] ss:$8 sps:$4 sm:$0xff]   ;;  %v4563_v50 = vld [vmem:[#allocation2 + $0x4c4] ss:$8 sps:$4 sm:$0xff]  }
 0x367   : > { %v1922_v27 = vpack.c.bf16 %v1892_v61, %v1890_v29  ;;  %2522 = vmatpush1.bf16.msra.mxu0 %v4540_v11  ;;  %v4548_v61 = vld [vmem:[#allocation2 + $0x474] ss:$8 sps:$4 sm:$0xff]  }
 0x368   : > { %v1923_v23 = vpack.c.bf16 %v1893_v9, %v1891_v8  ;;  %2523 = vmatprep.subr.bf16.mxu0 %v4545_v56 }
 0x369   : > { %v1821_v14 = vpop.f32.mrb[36].mxu0 }
 0x36a   : > { %v1822_v7 = vadd.f32 %v1821_v14, %v5416_v19  ;;  %v1823_v15 = vpop.f32.mrb[37].mxu0  ;;  %2176 = vmatprep.mubr.bf16.mxu1 %v1923_v23  ;;  %v4546_v23 = vld [vmem:[#allocation2 + $0x470] ss:$8 sps:$4 sm:$0xff]  }
 0x36b   : > { %v1824_v46 = vadd.f32 %v1823_v15, %v5419_v0  ;;  %v1825_v16 = vpop.f32.mrb[38].mxu0  ;;  %2177 = vmatmul.mubr.bf16.vlgmr.msra.gmra.mrb[32].mxu1 %v1922_v27  ;;  %2524 = vmatpush1.bf16.msra.mxu0 %v4543_v3  ;;  %v4551_v15 = vld [vmem:[#allocation2 + $0x484] ss:$8 sps:$4 sm:$0xff]   ;;  %v4561_v3 = vld [vmem:[#allocation2 + $0x4c0] ss:$8 sps:$4 sm:$0xff]  }
 0x36c   : > { %v1826_v22 = vadd.f32 %v1825_v16, %v5416_v19  ;;  %v1827_v17 = vpop.f32.mrb[39].mxu0  ;;  %v1894_v34 = vmax.f32 %v1822_v7, 0.0  ;;  %2525 = vmatprep.subr.bf16.mxu0 %v4548_v61 }
 0x36d   : > { %v1828_v36 = vadd.f32 %v1827_v17, %v5419_v0  ;;  %v1895_v32 = vmax.f32 %v1824_v46, 0.0  ;;  %v4552_v17 = vld [vmem:[#allocation2 + $0x490] ss:$8 sps:$4 sm:$0xff]  }
 0x36e   : > { %v1896_v41 = vmax.f32 %v1826_v22, 0.0  ;;  %v4554_v22 = vld [vmem:[#allocation2 + $0x494] ss:$8 sps:$4 sm:$0xff]  }
 0x36f   : > { %v1897_v1 = vmax.f32 %v1828_v36, 0.0  ;;  %2526 = vmatpush1.bf16.msra.mxu0 %v4546_v23  ;;  %v4555_v36 = vld [vmem:[#allocation2 + $0x4a0] ss:$8 sps:$4 sm:$0xff]  }
 0x370   : > { %v1924_v40 = vpack.c.bf16 %v1896_v41, %v1894_v34  ;;  %2527 = vmatprep.subr.bf16.mxu0 %v4551_v15  ;;  %v4560_v34 = vld [vmem:[#allocation2 + $0x4b4] ss:$8 sps:$4 sm:$0xff]  }
 0x371   : > { %v1925_v45 = vpack.c.bf16 %v1897_v1, %v1895_v32 }
 0x373   : > { %2186 = vmatprep.mubr.bf16.mxu1 %v1925_v45  ;;  %2528 = vmatpush1.bf16.msra.mxu0 %v4549_v6 }
 0x374   : > { %2187 = vmatmul.mubr.bf16.gmra.mrb[36].mxu1 %v1924_v40  ;;  %2529 = vmatprep.subr.bf16.mxu0 %v4554_v22 }
 0x377   : > { %2530 = vmatpush1.bf16.msra.mxu0 %v4552_v17 }
 0x378   : > { %2531 = vmatprep.subr.bf16.mxu0 %v4557_v30 }
 0x37b   : > { %2532 = vmatpush1.bf16.msra.mxu0 %v4555_v36 }
 0x37c   : > { %v1831_v12 = vpop.f32.mrb[40].mxu0  ;;  %2533 = vmatprep.subr.bf16.mxu0 %v4560_v34 }
 0x37d   : > { %v1832_v63 = vadd.f32 %v1831_v12, %v5416_v19  ;;  %v1833_v2 = vpop.f32.mrb[41].mxu0 }
 0x37e   : > { %v1834_v4 = vadd.f32 %v1833_v2, %v5419_v0  ;;  %v1835_v29 = vpop.f32.mrb[42].mxu0 }
 0x37f   : > { %v1836_v8 = vadd.f32 %v1835_v29, %v5416_v19  ;;  %v1837_v9 = vpop.f32.mrb[43].mxu0  ;;  %v1898_v27 = vmax.f32 %v1832_v63, 0.0  ;;  %2534 = vmatpush1.bf16.msra.mxu0 %v4558_v38  ;;  %v4566_v29 = vld [vmem:[#allocation2 + $0x4d4] ss:$8 sps:$4 sm:$0xff]  }
 0x380   : > { %v1838_v53 = vadd.f32 %v1837_v9, %v5419_v0  ;;  %v1899_v14 = vmax.f32 %v1834_v4, 0.0  ;;  %2535 = vmatprep.subr.bf16.mxu0 %v4563_v50 }
 0x381   : > { %v1900_v13 = vmax.f32 %v1836_v8, 0.0  ;;  %v4564_v8 = vld [vmem:[#allocation2 + $0x4d0] ss:$8 sps:$4 sm:$0xff]  }
 0x382   : > { %v1901_v7 = vmax.f32 %v1838_v53, 0.0 }
 0x383   : > { %v1926_v46 = vpack.c.bf16 %v1900_v13, %v1898_v27  ;;  %2536 = vmatpush1.bf16.msra.mxu0 %v4561_v3  ;;  %v4572_v3 = vld [vmem:[#allocation2 + $0x4f4] ss:$8 sps:$4 sm:$0xff]  }
 0x384   : > { %v1927_v16 = vpack.c.bf16 %v1901_v7, %v1899_v14  ;;  %2537 = vmatprep.subr.bf16.mxu0 %v4566_v29  ;;  %v4570_v29 = vld [vmem:[#allocation2 + $0x4f0] ss:$8 sps:$4 sm:$0xff]  }
 0x386   : > { %2196 = vmatprep.mubr.bf16.mxu1 %v1927_v16 }
 0x387   : > { %2197 = vmatmul.mubr.bf16.gmra.mrb[40].mxu1 %v1926_v46  ;;  %2538 = vmatpush1.bf16.msra.mxu0 %v4564_v8 }
 0x38f   : > { %v1841_v41 = vpop.f32.mrb[44].mxu0 }
 0x390   : > { %v1842_v32 = vadd.f32 %v1841_v41, %v5416_v19  ;;  %v1843_v1 = vpop.f32.mrb[45].mxu0 }
 0x391   : > { %v1844_v42 = vadd.f32 %v1843_v1, %v5419_v0  ;;  %v1845_v40 = vpop.f32.mrb[46].mxu0 }
 0x392   : > { %v1846_v45 = vadd.f32 %v1845_v40, %v5416_v19  ;;  %v1847_v10 = vpop.f32.mrb[47].mxu0  ;;  %v1902_v56 = vmax.f32 %v1842_v32, 0.0 }
 0x393   : > { %v1848_v11 = vadd.f32 %v1847_v10, %v5419_v0  ;;  %v1903_v63 = vmax.f32 %v1844_v42, 0.0 }
 0x394   : > { %v1904_v12 = vmax.f32 %v1846_v45, 0.0 }
 0x395   : > { %v1905_v2 = vmax.f32 %v1848_v11, 0.0 }
 0x396   : > { %v1928_v4 = vpack.c.bf16 %v1904_v12, %v1902_v56 }
 0x397   : > { %v1929_v61 = vpack.c.bf16 %v1905_v2, %v1903_v63  ;;  %v4569_v63 = vld [vmem:[#allocation2 + $0x4e4] ss:$8 sps:$4 sm:$0xff]   ;;  %v4567_v2 = vld [vmem:[#allocation2 + $0x4e0] ss:$8 sps:$4 sm:$0xff]  }
 0x398   : > { %2539 = vmatprep.subr.bf16.mxu0 %v4569_v63 }
 0x399   : > { %2206 = vmatprep.mubr.bf16.mxu1 %v1929_v61  ;;  %2540 = vmatpush1.bf16.msra.mxu0 %v4567_v2 }
 0x39a   : > { %2207 = vmatmul.mubr.bf16.gmra.mrb[44].mxu1 %v1928_v4  ;;  %2541 = vmatprep.subr.bf16.mxu0 %v4572_v3 }
 0x39d   : > { %2542 = vmatpush1.bf16.msra.mxu0 %v4570_v29 }
 0x3a2   : > { %v1851_v9 = vpop.f32.mrb[48].mxu0 }
 0x3a3   : > { %v1852_v53 = vadd.f32 %v1851_v9, %v5416_v19  ;;  %v1853_v27 = vpop.f32.mrb[49].mxu0 }
 0x3a4   : > { %v1854_v13 = vadd.f32 %v1853_v27, %v5419_v0  ;;  %v1855_v23 = vpop.f32.mrb[50].mxu0 }
 0x3a5   : > { %v1856_v14 = vadd.f32 %v1855_v23, %v5416_v19  ;;  %v1857_v7 = vpop.f32.mrb[51].mxu0  ;;  %v1906_v46 = vmax.f32 %v1852_v53, 0.0 }
 0x3a6   : > { %v1858_v15 = vadd.f32 %v1857_v7, %v5419_v0  ;;  %v1907_v6 = vmax.f32 %v1854_v13, 0.0 }
 0x3a7   : > { %v1908_v16 = vmax.f32 %v1856_v14, 0.0 }
 0x3a8   : > { %v1909_v22 = vmax.f32 %v1858_v15, 0.0 }
 0x3a9   : > { %v1930_v17 = vpack.c.bf16 %v1908_v16, %v1906_v46 }
 0x3aa   : > { %v1931_v30 = vpack.c.bf16 %v1909_v22, %v1907_v6 }
 0x3ac   : > { %2216 = vmatprep.mubr.bf16.mxu1 %v1931_v30 }
 0x3ad   : > { %2217 = vmatmul.mubr.bf16.gmra.mrb[48].mxu1 %v1930_v17 }
 0x3b5   : > { %v1861_v36 = vpop.f32.mrb[52].mxu0 }
 0x3b6   : > { %v1862_v34 = vadd.f32 %v1861_v36, %v5416_v19  ;;  %v1863_v41 = vpop.f32.mrb[53].mxu0 }
 0x3b7   : > { %v1864_v32 = vadd.f32 %v1863_v41, %v5419_v0  ;;  %v1865_v1 = vpop.f32.mrb[54].mxu0 }
 0x3b8   : > { %v1866_v42 = vadd.f32 %v1865_v1, %v5416_v19  ;;  %v1867_v40 = vpop.f32.mrb[55].mxu0  ;;  %v1910_v45 = vmax.f32 %v1862_v34, 0.0 }
 0x3b9   : > { %v1868_v38 = vadd.f32 %v1867_v40, %v5419_v0  ;;  %v1911_v50 = vmax.f32 %v1864_v32, 0.0 }
 0x3ba   : > { %v1912_v10 = vmax.f32 %v1866_v42, 0.0 }
 0x3bb   : > { %v1913_v11 = vmax.f32 %v1868_v38, 0.0 }
 0x3bc   : > { %v1932_v56 = vpack.c.bf16 %v1912_v10, %v1910_v45 }
 0x3bd   : > { %v1933_v12 = vpack.c.bf16 %v1913_v11, %v1911_v50  ;;  %v4064_v11 = vld [vmem:[%s5765_s5 + $0x3] ss:$8 sm:$0x3] }
 0x3bf   : > { %2226 = vmatprep.mubr.bf16.mxu1 %v1933_v12 }
 0x3c0   : > { %2227 = vmatmul.mubr.bf16.gmra.mrb[52].mxu1 %v1932_v56  ;;  %v5457_v56 = vrot.slane %v4064_v11, %v4896_v57 }
 0x3c8   : > { %v1871_v4 = vpop.f32.mrb[56].mxu0 }
 0x3c9   : > { %v1872_v61 = vadd.f32 %v1871_v4, %v5416_v19  ;;  %v1873_v8 = vpop.f32.mrb[57].mxu0 }
 0x3ca   : > { %v1874_v9 = vadd.f32 %v1873_v8, %v5419_v0  ;;  %v1875_v53 = vpop.f32.mrb[58].mxu0  ;;  %v4575_v8 = vld [vmem:[#allocation2 + $0x504] ss:$8 sps:$4 sm:$0xff]  }
 0x3cb   : > { %v1876_v27 = vadd.f32 %v1875_v53, %v5416_v19  ;;  %v1877_v13 = vpop.f32.mrb[59].mxu0  ;;  %v1914_v14 = vmax.f32 %v1872_v61, 0.0  ;;  %v4573_v61 = vld [vmem:[#allocation2 + $0x500] ss:$8 sps:$4 sm:$0xff]   ;;  %v4578_v53 = vld [vmem:[#allocation2 + $0x514] ss:$8 sps:$4 sm:$0xff]   ;;  %3108 = vmatprep.subr.bf16.mxu1 %v4575_v8 }
 0x3cc   : > { %v1878_v23 = vadd.f32 %v1877_v13, %v5419_v0  ;;  %v1915_v15 = vmax.f32 %v1874_v9, 0.0  ;;  %3109 = vmatpush1.bf16.msra.mxu1 %v4573_v61 }
 0x3cd   : > { %v1916_v7 = vmax.f32 %v1876_v27, 0.0  ;;  %3110 = vmatprep.subr.bf16.mxu1 %v4578_v53 }
 0x3ce   : > { %v1917_v46 = vmax.f32 %v1878_v23, 0.0 }
 0x3cf   : > { %v1934_v16 = vpack.c.bf16 %v1916_v7, %v1914_v14  ;;  %v4576_v7 = vld [vmem:[#allocation2 + $0x510] ss:$8 sps:$4 sm:$0xff]  }
 0x3d0   : > { %v1935_v6 = vpack.c.bf16 %v1917_v46, %v1915_v15  ;;  %v4581_v46 = vld [vmem:[#allocation2 + $0x524] ss:$8 sps:$4 sm:$0xff]   ;;  %3111 = vmatpush1.bf16.msra.mxu1 %v4576_v7 }
 0x3d1   : > { %3112 = vmatprep.subr.bf16.mxu1 %v4581_v46 }
 0x3d2   : > { %2236 = vmatprep.mubr.bf16.mxu1 %v1935_v6 }
 0x3d3   : > { %2237 = vmatmul.mubr.bf16.gmra.mrb[56].mxu1 %v1934_v16 }
 0x3db   : > { %v1881_v22 = vpop.f32.mrb[60].mxu0 }
 0x3dc   : > { %v1882_v17 = vadd.f32 %v1881_v22, %v5416_v19  ;;  %v1883_v30 = vpop.f32.mrb[61].mxu0 }
 0x3dd   : > { %v1884_v36 = vadd.f32 %v1883_v30, %v5419_v0  ;;  %v1885_v34 = vpop.f32.mrb[62].mxu0 }
 0x3de   : > { %v1886_v41 = vadd.f32 %v1885_v34, %v5416_v19  ;;  %v1887_v32 = vpop.f32.mrb[63].mxu0  ;;  %v1918_v42 = vmax.f32 %v1882_v17, 0.0  ;;  %v5460_v19 = vrot.slane %v4064_v11, %v4898_v58  ;;  %v4579_v34 = vld [vmem:[#allocation2 + $0x520] ss:$8 sps:$4 sm:$0xff]  }
 0x3df   : > { %v1888_v1 = vadd.f32 %v1887_v32, %v5419_v0  ;;  %v1919_v38 = vmax.f32 %v1884_v36, 0.0  ;;  %3113 = vmatpush1.bf16.msra.mxu1 %v4579_v34  ;;  %v4597_v34 = vld [vmem:[#allocation2 + $0x580] ss:$8 sps:$4 sm:$0xff]  }
 0x3e0   : > { %v1920_v40 = vmax.f32 %v1886_v41, 0.0 }
 0x3e1   : > { %v1921_v45 = vmax.f32 %v1888_v1, 0.0  ;;  %v4584_v1 = vld [vmem:[#allocation2 + $0x534] ss:$8 sps:$4 sm:$0xff]  }
 0x3e2   : > { %v1936_v10 = vpack.c.bf16 %v1920_v40, %v1918_v42  ;;  %3114 = vmatprep.subr.bf16.mxu1 %v4584_v1  ;;  %v4605_v1 = vld [vmem:[#allocation2 + $0x5a4] ss:$8 sps:$4 sm:$0xff]  }
 0x3e3   : > { %v1937_v50 = vpack.c.bf16 %v1921_v45, %v1919_v38 }
 0x3e5   : > { %2246 = vmatprep.mubr.bf16.mxu1 %v1937_v50  ;;  %v4582_v50 = vld [vmem:[#allocation2 + $0x530] ss:$8 sps:$4 sm:$0xff]  }
 0x3e6   : > { %2247 = vmatmul.mubr.bf16.gmra.mrb[60].mxu1 %v1936_v10 }
 0x3e7   : > { %3115 = vmatpush1.bf16.msra.mxu1 %v4582_v50 }
 0x43e   : > { %v2178_v12 = vpop.f32.mrb[32].mxu1 }
 0x43f   : > { %v2179_v0 = vadd.f32 %v2178_v12, %v5457_v56  ;;  %v2180_v63 = vpop.f32.mrb[33].mxu1  ;;  %v4587_v12 = vld [vmem:[#allocation2 + $0x544] ss:$8 sps:$4 sm:$0xff]  }
 0x440   : > { %v2181_v2 = vadd.f32 %v2180_v63, %v5460_v19  ;;  %v2182_v3 = vpop.f32.mrb[34].mxu1  ;;  %v4585_v63 = vld [vmem:[#allocation2 + $0x540] ss:$8 sps:$4 sm:$0xff]   ;;  %3116 = vmatprep.subr.bf16.mxu1 %v4587_v12  ;;  %v4606_v12 = vld [vmem:[#allocation2 + $0x5b0] ss:$8 sps:$4 sm:$0xff]  }
 0x441   : > { %v2183_v4 = vadd.f32 %v2182_v3, %v5457_v56  ;;  %v2184_v29 = vpop.f32.mrb[35].mxu1  ;;  %v2257_v27 = vmax.f32 %v2179_v0, 0.0  ;;  %3117 = vmatpush1.bf16.msra.mxu1 %v4585_v63  ;;  %v4588_v3 = vld [vmem:[#allocation2 + $0x550] ss:$8 sps:$4 sm:$0xff]  }
 0x442   : > { %v2185_v9 = vadd.f32 %v2184_v29, %v5460_v19  ;;  %v2258_v23 = vmax.f32 %v2181_v2, 0.0  ;;  %v4590_v2 = vld [vmem:[#allocation2 + $0x554] ss:$8 sps:$4 sm:$0xff]  }
 0x443   : > { %v2259_v13 = vmax.f32 %v2183_v4, 0.0  ;;  %3118 = vmatprep.subr.bf16.mxu1 %v4590_v2  ;;  %v4593_v4 = vld [vmem:[#allocation2 + $0x564] ss:$8 sps:$4 sm:$0xff]  }
 0x444   : > { %v2260_v14 = vmax.f32 %v2185_v9, 0.0  ;;  %v4591_v9 = vld [vmem:[#allocation2 + $0x560] ss:$8 sps:$4 sm:$0xff]   ;;  %v4611_v2 = vld [vmem:[#allocation2 + $0x5c4] ss:$8 sps:$4 sm:$0xff]  }
 0x445   : > { %v2289_v15 = vpack.c.bf16 %v2259_v13, %v2257_v27  ;;  %3119 = vmatpush1.bf16.msra.mxu1 %v4588_v3  ;;  %v4596_v13 = vld [vmem:[#allocation2 + $0x574] ss:$8 sps:$4 sm:$0xff]  }
 0x446   : > { %v2290_v16 = vpack.c.bf16 %v2260_v14, %v2258_v23  ;;  %3120 = vmatprep.subr.bf16.mxu1 %v4593_v4 }
 0x447   : > { %v2188_v6 = vpop.f32.mrb[36].mxu1 }
 0x448   : > { %v2189_v22 = vadd.f32 %v2188_v6, %v5457_v56  ;;  %v2190_v17 = vpop.f32.mrb[37].mxu1  ;;  %2543 = vmatprep.mubr.bf16.mxu0 %v2290_v16  ;;  %v4594_v16 = vld [vmem:[#allocation2 + $0x570] ss:$8 sps:$4 sm:$0xff]  }
 0x449   : > { %v2191_v30 = vadd.f32 %v2190_v17, %v5460_v19  ;;  %v2192_v36 = vpop.f32.mrb[38].mxu1  ;;  %2544 = vmatmul.mubr.bf16.vlgmr.msra.gmra.mrb[64].mxu0 %v2289_v15  ;;  %3121 = vmatpush1.bf16.msra.mxu1 %v4591_v9  ;;  %v4599_v17 = vld [vmem:[#allocation2 + $0x584] ss:$8 sps:$4 sm:$0xff]   ;;  %v4609_v9 = vld [vmem:[#allocation2 + $0x5c0] ss:$8 sps:$4 sm:$0xff]  }
 0x44a   : > { %v2193_v41 = vadd.f32 %v2192_v36, %v5457_v56  ;;  %v2194_v32 = vpop.f32.mrb[39].mxu1  ;;  %v2261_v40 = vmax.f32 %v2189_v22, 0.0  ;;  %3122 = vmatprep.subr.bf16.mxu1 %v4596_v13 }
 0x44b   : > { %v2195_v42 = vadd.f32 %v2194_v32, %v5460_v19  ;;  %v2262_v45 = vmax.f32 %v2191_v30, 0.0  ;;  %v4600_v32 = vld [vmem:[#allocation2 + $0x590] ss:$8 sps:$4 sm:$0xff]  }
 0x44c   : > { %v2263_v38 = vmax.f32 %v2193_v41, 0.0  ;;  %v4602_v41 = vld [vmem:[#allocation2 + $0x594] ss:$8 sps:$4 sm:$0xff]  }
 0x44d   : > { %v2264_v10 = vmax.f32 %v2195_v42, 0.0  ;;  %3123 = vmatpush1.bf16.msra.mxu1 %v4594_v16  ;;  %v4603_v42 = vld [vmem:[#allocation2 + $0x5a0] ss:$8 sps:$4 sm:$0xff]  }
 0x44e   : > { %v2291_v11 = vpack.c.bf16 %v2263_v38, %v2261_v40  ;;  %3124 = vmatprep.subr.bf16.mxu1 %v4599_v17  ;;  %v4608_v40 = vld [vmem:[#allocation2 + $0x5b4] ss:$8 sps:$4 sm:$0xff]  }
 0x44f   : > { %v2292_v0 = vpack.c.bf16 %v2264_v10, %v2262_v45 }
 0x451   : > { %2553 = vmatprep.mubr.bf16.mxu0 %v2292_v0  ;;  %3125 = vmatpush1.bf16.msra.mxu1 %v4597_v34 }
 0x452   : > { %2554 = vmatmul.mubr.bf16.gmra.mrb[68].mxu0 %v2291_v11  ;;  %3126 = vmatprep.subr.bf16.mxu1 %v4602_v41 }
 0x455   : > { %3127 = vmatpush1.bf16.msra.mxu1 %v4600_v32 }
 0x456   : > { %3128 = vmatprep.subr.bf16.mxu1 %v4605_v1 }
 0x459   : > { %3129 = vmatpush1.bf16.msra.mxu1 %v4603_v42 }
 0x45a   : > { %v2198_v29 = vpop.f32.mrb[40].mxu1  ;;  %3130 = vmatprep.subr.bf16.mxu1 %v4608_v40 }
 0x45b   : > { %v2199_v61 = vadd.f32 %v2198_v29, %v5457_v56  ;;  %v2200_v8 = vpop.f32.mrb[41].mxu1 }
 0x45c   : > { %v2201_v53 = vadd.f32 %v2200_v8, %v5460_v19  ;;  %v2202_v27 = vpop.f32.mrb[42].mxu1 }
 0x45d   : > { %v2203_v23 = vadd.f32 %v2202_v27, %v5457_v56  ;;  %v2204_v14 = vpop.f32.mrb[43].mxu1  ;;  %v2265_v15 = vmax.f32 %v2199_v61, 0.0  ;;  %3131 = vmatpush1.bf16.msra.mxu1 %v4606_v12 }
 0x45e   : > { %v2205_v7 = vadd.f32 %v2204_v14, %v5460_v19  ;;  %v2266_v6 = vmax.f32 %v2201_v53, 0.0  ;;  %3132 = vmatprep.subr.bf16.mxu1 %v4611_v2 }
 0x45f   : > { %v2267_v46 = vmax.f32 %v2203_v23, 0.0 }
 0x460   : > { %v2268_v22 = vmax.f32 %v2205_v7, 0.0 }
 0x461   : > { %v2293_v30 = vpack.c.bf16 %v2267_v46, %v2265_v15  ;;  %3133 = vmatpush1.bf16.msra.mxu1 %v4609_v9 }
 0x462   : > { %v2294_v36 = vpack.c.bf16 %v2268_v22, %v2266_v6 }
 0x464   : > { %2563 = vmatprep.mubr.bf16.mxu0 %v2294_v36 }
 0x465   : > { %2564 = vmatmul.mubr.bf16.gmra.mrb[72].mxu0 %v2293_v30 }
 0x46d   : > { %v2208_v38 = vpop.f32.mrb[44].mxu1 }
 0x46e   : > { %v2209_v45 = vadd.f32 %v2208_v38, %v5457_v56  ;;  %v2210_v10 = vpop.f32.mrb[45].mxu1 }
 0x46f   : > { %v2211_v50 = vadd.f32 %v2210_v10, %v5460_v19  ;;  %v2212_v11 = vpop.f32.mrb[46].mxu1 }
 0x470   : > { %v2213_v0 = vadd.f32 %v2212_v11, %v5457_v56  ;;  %v2214_v63 = vpop.f32.mrb[47].mxu1  ;;  %v2269_v4 = vmax.f32 %v2209_v45, 0.0 }
 0x471   : > { %v2215_v3 = vadd.f32 %v2214_v63, %v5460_v19  ;;  %v2270_v61 = vmax.f32 %v2211_v50, 0.0 }
 0x472   : > { %v2271_v29 = vmax.f32 %v2213_v0, 0.0 }
 0x473   : > { %v2272_v8 = vmax.f32 %v2215_v3, 0.0 }
 0x474   : > { %v2295_v53 = vpack.c.bf16 %v2271_v29, %v2269_v4  ;;  %v4614_v4 = vld [vmem:[#allocation2 + $0x5d4] ss:$8 sps:$4 sm:$0xff]   ;;  %v4612_v29 = vld [vmem:[#allocation2 + $0x5d0] ss:$8 sps:$4 sm:$0xff]  }
 0x475   : > { %v2296_v27 = vpack.c.bf16 %v2272_v8, %v2270_v61  ;;  %3134 = vmatprep.subr.bf16.mxu1 %v4614_v4 }
 0x476   : > { %3135 = vmatpush1.bf16.msra.mxu1 %v4612_v29 }
 0x477   : > { %2573 = vmatprep.mubr.bf16.mxu0 %v2296_v27 }
 0x478   : > { %2574 = vmatmul.mubr.bf16.gmra.mrb[76].mxu0 %v2295_v53 }
 0x480   : > { %v2218_v13 = vpop.f32.mrb[48].mxu1 }
 0x481   : > { %v2219_v23 = vadd.f32 %v2218_v13, %v5457_v56  ;;  %v2220_v14 = vpop.f32.mrb[49].mxu1  ;;  %v4615_v13 = vld [vmem:[#allocation2 + $0x5e0] ss:$8 sps:$4 sm:$0xff]  }
 0x482   : > { %v2221_v7 = vadd.f32 %v2220_v14, %v5460_v19  ;;  %v2222_v15 = vpop.f32.mrb[50].mxu1 }
 0x483   : > { %v2223_v46 = vadd.f32 %v2222_v15, %v5457_v56  ;;  %v2224_v16 = vpop.f32.mrb[51].mxu1  ;;  %v2273_v22 = vmax.f32 %v2219_v23, 0.0  ;;  %v4617_v23 = vld [vmem:[#allocation2 + $0x5e4] ss:$8 sps:$4 sm:$0xff]  }
 0x484   : > { %v2225_v6 = vadd.f32 %v2224_v16, %v5460_v19  ;;  %v2274_v30 = vmax.f32 %v2221_v7, 0.0  ;;  %3136 = vmatprep.subr.bf16.mxu1 %v4617_v23 }
 0x485   : > { %v2275_v17 = vmax.f32 %v2223_v46, 0.0  ;;  %3137 = vmatpush1.bf16.msra.mxu1 %v4615_v13 }
 0x486   : > { %v2276_v36 = vmax.f32 %v2225_v6, 0.0 }
 0x487   : > { %v2297_v34 = vpack.c.bf16 %v2275_v17, %v2273_v22  ;;  %v4618_v17 = vld [vmem:[#allocation2 + $0x5f0] ss:$8 sps:$4 sm:$0xff]  }
 0x488   : > { %v2298_v41 = vpack.c.bf16 %v2276_v36, %v2274_v30  ;;  %v4620_v30 = vld [vmem:[#allocation2 + $0x5f4] ss:$8 sps:$4 sm:$0xff]  }
 0x489   : > { %3138 = vmatprep.subr.bf16.mxu1 %v4620_v30 }
 0x48a   : > { %2583 = vmatprep.mubr.bf16.mxu0 %v2298_v41  ;;  %3139 = vmatpush1.bf16.msra.mxu1 %v4618_v17 }
 0x48b   : > { %2584 = vmatmul.mubr.bf16.gmra.mrb[80].mxu0 %v2297_v34 }
 0x493   : > { %v2228_v32 = vpop.f32.mrb[52].mxu1 }
 0x494   : > { %v2229_v1 = vadd.f32 %v2228_v32, %v5457_v56  ;;  %v2230_v42 = vpop.f32.mrb[53].mxu1 }
 0x495   : > { %v2231_v40 = vadd.f32 %v2230_v42, %v5460_v19  ;;  %v2232_v38 = vpop.f32.mrb[54].mxu1 }
 0x496   : > { %v2233_v45 = vadd.f32 %v2232_v38, %v5457_v56  ;;  %v2234_v10 = vpop.f32.mrb[55].mxu1  ;;  %v2277_v11 = vmax.f32 %v2229_v1, 0.0 }
 0x497   : > { %v2235_v50 = vadd.f32 %v2234_v10, %v5460_v19  ;;  %v2278_v0 = vmax.f32 %v2231_v40, 0.0 }
 0x498   : > { %v2279_v12 = vmax.f32 %v2233_v45, 0.0 }
 0x499   : > { %v2280_v63 = vmax.f32 %v2235_v50, 0.0 }
 0x49a   : > { %v2299_v2 = vpack.c.bf16 %v2279_v12, %v2277_v11 }
 0x49b   : > { %v2300_v3 = vpack.c.bf16 %v2280_v63, %v2278_v0 }
 0x49d   : > { %2593 = vmatprep.mubr.bf16.mxu0 %v2300_v3  ;;  %v4097_v3 = vld [vmem:[%s5765_s5 + $0x4] ss:$8 sm:$0x3] }
 0x49e   : > { %2594 = vmatmul.mubr.bf16.gmra.mrb[84].mxu0 %v2299_v2  ;;  %v5498_v4 = vrot.slane %v4097_v3, %v4896_v57 }
 0x4a6   : > { %v2238_v61 = vpop.f32.mrb[56].mxu1 }
 0x4a7   : > { %v2239_v8 = vadd.f32 %v2238_v61, %v5457_v56  ;;  %v2240_v9 = vpop.f32.mrb[57].mxu1 }
 0x4a8   : > { %v2241_v53 = vadd.f32 %v2240_v9, %v5460_v19  ;;  %v2242_v27 = vpop.f32.mrb[58].mxu1 }
 0x4a9   : > { %v2243_v14 = vadd.f32 %v2242_v27, %v5457_v56  ;;  %v2244_v7 = vpop.f32.mrb[59].mxu1  ;;  %v2281_v46 = vmax.f32 %v2239_v8, 0.0 }
 0x4aa   : > { %v2245_v15 = vadd.f32 %v2244_v7, %v5460_v19  ;;  %v2282_v6 = vmax.f32 %v2241_v53, 0.0 }
 0x4ab   : > { %v2283_v16 = vmax.f32 %v2243_v14, 0.0 }
 0x4ac   : > { %v2284_v22 = vmax.f32 %v2245_v15, 0.0  ;;  %v4621_v15 = vld [vmem:[#allocation2 + $0x600] ss:$8 sps:$4 sm:$0xff]  }
 0x4ad   : > { %v2301_v36 = vpack.c.bf16 %v2283_v16, %v2281_v46  ;;  %v4623_v46 = vld [vmem:[#allocation2 + $0x604] ss:$8 sps:$4 sm:$0xff]  }
 0x4ae   : > { %v2302_v34 = vpack.c.bf16 %v2284_v22, %v2282_v6  ;;  %v4626_v6 = vld [vmem:[#allocation2 + $0x614] ss:$8 sps:$4 sm:$0xff]   ;;  %3475 = vmatprep.subr.bf16.mxu0 %v4623_v46 }
 0x4af   : > { %3476 = vmatpush1.bf16.msra.mxu0 %v4621_v15 }
 0x4b0   : > { %2603 = vmatprep.mubr.bf16.mxu0 %v2302_v34  ;;  %v4624_v34 = vld [vmem:[#allocation2 + $0x610] ss:$8 sps:$4 sm:$0xff]   ;;  %3477 = vmatprep.subr.bf16.mxu0 %v4626_v6  ;;  %v4639_v6 = vld [vmem:[#allocation2 + $0x660] ss:$8 sps:$4 sm:$0xff]  }
 0x4b1   : > { %2604 = vmatmul.mubr.bf16.gmra.mrb[88].mxu0 %v2301_v36 }
 0x4b3   : > { %3478 = vmatpush1.bf16.msra.mxu0 %v4624_v34 }
 0x4b9   : > { %v2248_v41 = vpop.f32.mrb[60].mxu1 }
 0x4ba   : > { %v2249_v32 = vadd.f32 %v2248_v41, %v5457_v56  ;;  %v2250_v1 = vpop.f32.mrb[61].mxu1 }
 0x4bb   : > { %v2251_v42 = vadd.f32 %v2250_v1, %v5460_v19  ;;  %v2252_v40 = vpop.f32.mrb[62].mxu1  ;;  %v4629_v1 = vld [vmem:[#allocation2 + $0x624] ss:$8 sps:$4 sm:$0xff]  }
 0x4bc   : > { %v2253_v38 = vadd.f32 %v2252_v40, %v5457_v56  ;;  %v2254_v45 = vpop.f32.mrb[63].mxu1  ;;  %v2285_v50 = vmax.f32 %v2249_v32, 0.0  ;;  %v5501_v56 = vrot.slane %v4097_v3, %v4898_v58  ;;  %3479 = vmatprep.subr.bf16.mxu0 %v4629_v1  ;;  %v4647_v1 = vld [vmem:[#allocation2 + $0x684] ss:$8 sps:$4 sm:$0xff]  }
 0x4bd   : > { %v2255_v10 = vadd.f32 %v2254_v45, %v5460_v19  ;;  %v2286_v12 = vmax.f32 %v2251_v42, 0.0 }
 0x4be   : > { %v2287_v11 = vmax.f32 %v2253_v38, 0.0 }
 0x4bf   : > { %v2288_v0 = vmax.f32 %v2255_v10, 0.0 }
 0x4c0   : > { %v2303_v63 = vpack.c.bf16 %v2287_v11, %v2285_v50  ;;  %v4627_v11 = vld [vmem:[#allocation2 + $0x620] ss:$8 sps:$4 sm:$0xff]  }
 0x4c1   : > { %v2304_v2 = vpack.c.bf16 %v2288_v0, %v2286_v12  ;;  %v4632_v0 = vld [vmem:[#allocation2 + $0x634] ss:$8 sps:$4 sm:$0xff]   ;;  %3480 = vmatpush1.bf16.msra.mxu0 %v4627_v11 }
 0x4c2   : > { %3481 = vmatprep.subr.bf16.mxu0 %v4632_v0 }
 0x4c3   : > { %2613 = vmatprep.mubr.bf16.mxu0 %v2304_v2 }
 0x4c4   : > { %2614 = vmatmul.mubr.bf16.gmra.mrb[92].mxu0 %v2303_v63 }
 0x51c   : > { %v2545_v29 = vpop.f32.mrb[64].mxu0 }
 0x51d   : > { %v2546_v19 = vadd.f32 %v2545_v29, %v5498_v4  ;;  %v2547_v61 = vpop.f32.mrb[65].mxu0 }
 0x51e   : > { %v2548_v8 = vadd.f32 %v2547_v61, %v5501_v56  ;;  %v2549_v9 = vpop.f32.mrb[66].mxu0 }
 0x51f   : > { %v2822_v53 = vadd.f32 %v5000_v47, %v2546_v19  ;;  %v2550_v27 = vadd.f32 %v2549_v9, %v5498_v4  ;;  %v2551_v13 = vpop.f32.mrb[67].mxu0  ;;  %v4630_v19 = vld [vmem:[#allocation2 + $0x630] ss:$8 sps:$4 sm:$0xff]   ;;  %v4633_v9 = vld [vmem:[#allocation2 + $0x640] ss:$8 sps:$4 sm:$0xff]  }
 0x520   : > { %v2823_v23 = vadd.f32 %v5002_v48, %v2548_v8  ;;  %v2552_v14 = vadd.f32 %v2551_v13, %v5501_v56  ;;  %3482 = vmatpush1.bf16.msra.mxu0 %v4630_v19 }
 0x521   : > { %v2824_v7 = vadd.f32 %v5065_v26, %v2550_v27  ;;  %v2854_v22 = vmax.f32 %v2822_v53, 0.0  ;;  %v4636_v53 = vld [vmem:[#allocation2 + $0x650] ss:$8 sps:$4 sm:$0xff]  }
 0x522   : > { %v2825_v16 = vadd.f32 %v5082_v51, %v2552_v14  ;;  %v2855_v30 = vmax.f32 %v2823_v23, 0.0 }
 0x523   : > { %v2856_v17 = vmax.f32 %v2824_v7, 0.0 }
 0x524   : > { %v2857_v36 = vmax.f32 %v2825_v16, 0.0 }
 0x525   : > { %v2555_v47 = vpop.f32.mrb[68].mxu0  ;;  %v2886_v41 = vpack.c.bf16 %v2856_v17, %v2854_v22 }
 0x526   : > { %v2556_v48 = vadd.f32 %v2555_v47, %v5498_v4  ;;  %v2557_v32 = vpop.f32.mrb[69].mxu0  ;;  %v2887_v40 = vpack.c.bf16 %v2857_v36, %v2855_v30  ;;  %v4644_v30 = vld [vmem:[#allocation2 + $0x674] ss:$8 sps:$4 sm:$0xff]  }
 0x527   : > { %v2558_v26 = vadd.f32 %v2557_v32, %v5501_v56  ;;  %v2559_v42 = vpop.f32.mrb[70].mxu0 }
 0x528   : > { %v2826_v51 = vadd.f32 %v5085_v59, %v2556_v48  ;;  %v2560_v38 = vadd.f32 %v2559_v42, %v5498_v4  ;;  %v2561_v45 = vpop.f32.mrb[71].mxu0  ;;  %3140 = vmatprep.mubr.bf16.mxu1 %v2887_v40  ;;  %v4642_v48 = vld [vmem:[#allocation2 + $0x670] ss:$8 sps:$4 sm:$0xff]   ;;  %v4650_v40 = vld [vmem:[#allocation2 + $0x694] ss:$8 sps:$4 sm:$0xff]  }
 0x529   : > { %v2827_v10 = vadd.f32 %v5098_v24, %v2558_v26  ;;  %v2562_v50 = vadd.f32 %v2561_v45, %v5501_v56  ;;  %3141 = vmatmul.mubr.bf16.vlgmr.msra.gmra.mrb[64].mxu1 %v2886_v41  ;;  %v4635_v24 = vld [vmem:[#allocation2 + $0x644] ss:$8 sps:$4 sm:$0xff]  }
 0x52a   : > { %v2828_v12 = vadd.f32 %v5104_v54, %v2560_v38  ;;  %v2858_v2 = vmax.f32 %v2826_v51, 0.0  ;;  %3483 = vmatprep.subr.bf16.mxu0 %v4635_v24  ;;  %v4638_v54 = vld [vmem:[#allocation2 + $0x654] ss:$8 sps:$4 sm:$0xff]   ;;  %v4651_v38 = vld [vmem:[#allocation2 + $0x6a0] ss:$8 sps:$4 sm:$0xff]  }
 0x52b   : > { %v2829_v63 = vadd.f32 %v5106_v49, %v2562_v50  ;;  %v2859_v59 = vmax.f32 %v2827_v10, 0.0  ;;  %3484 = vmatpush1.bf16.msra.mxu0 %v4633_v9  ;;  %v4641_v49 = vld [vmem:[#allocation2 + $0x664] ss:$8 sps:$4 sm:$0xff]   ;;  %v4656_v50 = vld [vmem:[#allocation2 + $0x6b4] ss:$8 sps:$4 sm:$0xff]  }
 0x52c   : > { %v2860_v3 = vmax.f32 %v2828_v12, 0.0  ;;  %3485 = vmatprep.subr.bf16.mxu0 %v4638_v54 }
 0x52d   : > { %v2861_v29 = vmax.f32 %v2829_v63, 0.0 }
 0x52e   : > { %v2888_v61 = vpack.c.bf16 %v2860_v3, %v2858_v2 }
 0x52f   : > { %v2889_v8 = vpack.c.bf16 %v2861_v29, %v2859_v59  ;;  %3486 = vmatpush1.bf16.msra.mxu0 %v4636_v53  ;;  %v4654_v29 = vld [vmem:[#allocation2 + $0x6b0] ss:$8 sps:$4 sm:$0xff]  }
 0x530   : > { %3487 = vmatprep.subr.bf16.mxu0 %v4641_v49  ;;  %v4662_v49 = vld [vmem:[#allocation2 + $0x6d4] ss:$8 sps:$4 sm:$0xff]  }
 0x531   : > { %3150 = vmatprep.mubr.bf16.mxu1 %v2889_v8 }
 0x532   : > { %3151 = vmatmul.mubr.bf16.gmra.mrb[68].mxu1 %v2888_v61  ;;  %v4659_v61 = vld [vmem:[#allocation2 + $0x6c4] ss:$8 sps:$4 sm:$0xff]  }
 0x533   : > { %3488 = vmatpush1.bf16.msra.mxu0 %v4639_v6  ;;  %v5784_v6 = vld [vmem:[#allocation5_spill] sm:$0xff] }
 0x534   : > { %3489 = vmatprep.subr.bf16.mxu0 %v4644_v30  ;;  %v5785_v30 = vld [vmem:[#allocation6_spill] sm:$0xff] }
 0x537   : > { %3490 = vmatpush1.bf16.msra.mxu0 %v4642_v48 }
 0x538   : > { %v2565_v27 = vpop.f32.mrb[72].mxu0  ;;  %3491 = vmatprep.subr.bf16.mxu0 %v4647_v1 }
 0x539   : > { %v2566_v13 = vadd.f32 %v2565_v27, %v5498_v4  ;;  %v2567_v23 = vpop.f32.mrb[73].mxu0 }
 0x53a   : > { %v2568_v14 = vadd.f32 %v2567_v23, %v5501_v56  ;;  %v2569_v7 = vpop.f32.mrb[74].mxu0 }
 0x53b   : > { %v2830_v15 = vadd.f32 %v5119_v39, %v2566_v13  ;;  %v2570_v46 = vadd.f32 %v2569_v7, %v5498_v4  ;;  %v2571_v16 = vpop.f32.mrb[75].mxu0  ;;  %v4660_v13 = vld [vmem:[#allocation2 + $0x6d0] ss:$8 sps:$4 sm:$0xff]  }
 0x53c   : > { %v2831_v22 = vadd.f32 %v5122_v44, %v2568_v14  ;;  %v2572_v17 = vadd.f32 %v2571_v16, %v5501_v56  ;;  %v4645_v44 = vld [vmem:[#allocation2 + $0x680] ss:$8 sps:$4 sm:$0xff]  }
 0x53d   : > { %v2832_v36 = vadd.f32 %v5132_v25, %v2570_v46  ;;  %v2862_v34 = vmax.f32 %v2830_v15, 0.0  ;;  %3492 = vmatpush1.bf16.msra.mxu0 %v4645_v44  ;;  %v4648_v25 = vld [vmem:[#allocation2 + $0x690] ss:$8 sps:$4 sm:$0xff]  }
 0x53e   : > { %v2833_v47 = vadd.f32 %v5136_v35, %v2572_v17  ;;  %v2863_v39 = vmax.f32 %v2831_v22, 0.0  ;;  %3493 = vmatprep.subr.bf16.mxu0 %v4650_v40  ;;  %v4653_v35 = vld [vmem:[#allocation2 + $0x6a4] ss:$8 sps:$4 sm:$0xff]  }
 0x53f   : > { %v2864_v41 = vmax.f32 %v2832_v36, 0.0 }
 0x540   : > { %v2865_v32 = vmax.f32 %v2833_v47, 0.0  ;;  %v5786_v47 = vld [vmem:[#allocation7_spill] sm:$0xff] }
 0x541   : > { %v2890_v26 = vpack.c.bf16 %v2864_v41, %v2862_v34  ;;  %3494 = vmatpush1.bf16.msra.mxu0 %v4648_v25 }
 0x542   : > { %v2891_v42 = vpack.c.bf16 %v2865_v32, %v2863_v39  ;;  %3495 = vmatprep.subr.bf16.mxu0 %v4653_v35  ;;  %v5787_v35 = vld [vmem:[#allocation8_spill] sm:$0xff] }
 0x544   : > { %3160 = vmatprep.mubr.bf16.mxu1 %v2891_v42 }
 0x545   : > { %3161 = vmatmul.mubr.bf16.gmra.mrb[72].mxu1 %v2890_v26  ;;  %3496 = vmatpush1.bf16.msra.mxu0 %v4651_v38 }
 0x546   : > { %3497 = vmatprep.subr.bf16.mxu0 %v4656_v50 }
 0x549   : > { %3498 = vmatpush1.bf16.msra.mxu0 %v4654_v29 }
 0x54a   : > { %3499 = vmatprep.subr.bf16.mxu0 %v4659_v61 }
 0x54b   : > { %v2575_v51 = vpop.f32.mrb[76].mxu0 }
 0x54c   : > { %v2576_v45 = vadd.f32 %v2575_v51, %v5498_v4  ;;  %v2577_v10 = vpop.f32.mrb[77].mxu0 }
 0x54d   : > { %v2578_v11 = vadd.f32 %v2577_v10, %v5501_v56  ;;  %v2579_v12 = vpop.f32.mrb[78].mxu0  ;;  %v5788_v10 = vld [vmem:[#allocation9_spill] sm:$0xff] }
 0x54e   : > { %v2834_v0 = vadd.f32 %v5162_v33, %v2576_v45  ;;  %v2580_v63 = vadd.f32 %v2579_v12, %v5498_v4  ;;  %v2581_v2 = vpop.f32.mrb[79].mxu0  ;;  %v4657_v33 = vld [vmem:[#allocation2 + $0x6c0] ss:$8 sps:$4 sm:$0xff]  }
 0x54f   : > { %v2835_v3 = vadd.f32 %v5164_v43, %v2578_v11  ;;  %v2582_v59 = vadd.f32 %v2581_v2, %v5501_v56  ;;  %3500 = vmatpush1.bf16.msra.mxu0 %v4657_v33  ;;  %v5789_v12 = vld [vmem:[#allocation10_spill] sm:$0xff] }
 0x550   : > { %v2836_v19 = vadd.f32 %v5172_v52, %v2580_v63  ;;  %v2866_v8 = vmax.f32 %v2834_v0, 0.0  ;;  %3501 = vmatprep.subr.bf16.mxu0 %v4662_v49  ;;  %v5790_v63 = vld [vmem:[#allocation11_spill] sm:$0xff] }
 0x551   : > { %v2837_v24 = vadd.f32 %v5174_v21, %v2582_v59  ;;  %v2867_v54 = vmax.f32 %v2835_v3, 0.0 }
 0x552   : > { %v2868_v9 = vmax.f32 %v2836_v19, 0.0 }
 0x553   : > { %v2869_v53 = vmax.f32 %v2837_v24, 0.0  ;;  %3502 = vmatpush1.bf16.msra.mxu0 %v4660_v13  ;;  %v4663_v13 = vld [vmem:[#allocation2 + $0x6e0] ss:$8 sps:$4 sm:$0xff]  }
 0x554   : > { %v2892_v27 = vpack.c.bf16 %v2868_v9, %v2866_v8 }
 0x555   : > { %v2893_v43 = vpack.c.bf16 %v2869_v53, %v2867_v54 }
 0x557   : > { %3170 = vmatprep.mubr.bf16.mxu1 %v2893_v43 }
 0x558   : > { %3171 = vmatmul.mubr.bf16.gmra.mrb[76].mxu1 %v2892_v27 }
 0x55e   : > { %v2585_v52 = vpop.f32.mrb[80].mxu0 }
 0x55f   : > { %v2586_v23 = vadd.f32 %v2585_v52, %v5498_v4  ;;  %v2587_v21 = vpop.f32.mrb[81].mxu0  ;;  %v4665_v52 = vld [vmem:[#allocation2 + $0x6e4] ss:$8 sps:$4 sm:$0xff]  }
 0x560   : > { %v2588_v14 = vadd.f32 %v2587_v21, %v5501_v56  ;;  %v2589_v7 = vpop.f32.mrb[82].mxu0  ;;  %3503 = vmatprep.subr.bf16.mxu0 %v4665_v52 }
 0x561   : > { %v2838_v15 = vadd.f32 %v5202_v28, %v2586_v23  ;;  %v2590_v46 = vadd.f32 %v2589_v7, %v5498_v4  ;;  %v2591_v16 = vpop.f32.mrb[83].mxu0  ;;  %3504 = vmatpush1.bf16.msra.mxu0 %v4663_v13  ;;  %v4675_v13 = vld [vmem:[%s5766_s6 + $0x58] sm:$0xff]  }
 0x562   : > { %v2839_v22 = vadd.f32 %v5784_v6, %v2588_v14  ;;  %v2592_v17 = vadd.f32 %v2591_v16, %v5501_v56  ;;  %v4668_v14 = vld [vmem:[#allocation2 + $0x6f4] ss:$8 sps:$4 sm:$0xff]  }
 0x563   : > { %v2840_v36 = vadd.f32 %v5785_v30, %v2590_v46  ;;  %v2870_v41 = vmax.f32 %v2838_v15, 0.0  ;;  %v4666_v46 = vld [vmem:[#allocation2 + $0x6f0] ss:$8 sps:$4 sm:$0xff]   ;;  %3505 = vmatprep.subr.bf16.mxu0 %v4668_v14 }
 0x564   : > { %v2841_v34 = vadd.f32 %v5786_v47, %v2592_v17  ;;  %v2871_v39 = vmax.f32 %v2839_v22, 0.0 }
 0x565   : > { %v2872_v48 = vmax.f32 %v2840_v36, 0.0  ;;  %3506 = vmatpush1.bf16.msra.mxu0 %v4666_v46 }
 0x566   : > { %v2873_v32 = vmax.f32 %v2841_v34, 0.0 }
 0x567   : > { %v2894_v1 = vpack.c.bf16 %v2872_v48, %v2870_v41 }
 0x568   : > { %v2895_v26 = vpack.c.bf16 %v2873_v32, %v2871_v39 }
 0x56a   : > { %3180 = vmatprep.mubr.bf16.mxu1 %v2895_v26 }
 0x56b   : > { %3181 = vmatmul.mubr.bf16.gmra.mrb[80].mxu1 %v2894_v1 }
 0x571   : > { %v2595_v28 = vpop.f32.mrb[84].mxu0 }
 0x572   : > { %v2596_v42 = vadd.f32 %v2595_v28, %v5498_v4  ;;  %v2597_v44 = vpop.f32.mrb[85].mxu0 }
 0x573   : > { %v2598_v40 = vadd.f32 %v2597_v44, %v5501_v56  ;;  %v2599_v25 = vpop.f32.mrb[86].mxu0 }
 0x574   : > { %v2842_v51 = vadd.f32 %v5787_v35, %v2596_v42  ;;  %v2600_v38 = vadd.f32 %v2599_v25, %v5498_v4  ;;  %v2601_v45 = vpop.f32.mrb[87].mxu0 }
 0x575   : > { %v2843_v50 = vadd.f32 %v5788_v10, %v2598_v40  ;;  %v2602_v11 = vadd.f32 %v2601_v45, %v5501_v56 }
 0x576   : > { %v2844_v0 = vadd.f32 %v5789_v12, %v2600_v38  ;;  %v2874_v3 = vmax.f32 %v2842_v51, 0.0  ;;  %v4671_v12 = vld [vmem:[%s5766_s6 + $0x48] sm:$0xff]  }
 0x577   : > { %v2845_v2 = vadd.f32 %v5790_v63, %v2602_v11  ;;  %v2875_v29 = vmax.f32 %v2843_v50, 0.0  ;;  %v4669_v50 = vld [vmem:[%s5766_s6 + $0x40] sm:$0xff]  }
 0x578   : > { %v2876_v59 = vmax.f32 %v2844_v0, 0.0  ;;  %v4670_v11 = vld [vmem:[%s5766_s6] sm:$0xff]   ;;  %4217 = vmatprep.subr.bf16.mxu1 %v4669_v50 }
 0x579   : > { %v2877_v19 = vmax.f32 %v2845_v2, 0.0  ;;  %4218 = vmatpush3.bf16.msra.mxu1 %v4670_v11 }
 0x57a   : > { %v2896_v61 = vpack.c.bf16 %v2876_v59, %v2874_v3  ;;  %4219 = vmatprep.subr.bf16.mxu1 %v4671_v12 }
 0x57b   : > { %v2897_v24 = vpack.c.bf16 %v2877_v19, %v2875_v29  ;;  %v4672_v29 = vld [vmem:[%s5766_s6 + $0x8] sm:$0xff]  }
 0x57d   : > { %3190 = vmatprep.mubr.bf16.mxu1 %v2897_v24  ;;  %4220 = vmatpush3.bf16.msra.mxu1 %v4672_v29 }
 0x57e   : > { %3191 = vmatmul.mubr.bf16.gmra.mrb[84].mxu1 %v2896_v61  ;;  %v4673_v61 = vld [vmem:[%s5766_s6 + $0x50] sm:$0xff]  }
 0x57f   : > { %4221 = vmatprep.subr.bf16.mxu1 %v4673_v61 }
 0x584   : > { %v2605_v8 = vpop.f32.mrb[88].mxu0 }
 0x585   : > { %v2606_v9 = vadd.f32 %v2605_v8, %v5498_v4  ;;  %v2607_v54 = vpop.f32.mrb[89].mxu0 }
 0x586   : > { %v2608_v53 = vadd.f32 %v2607_v54, %v5501_v56  ;;  %v2609_v33 = vpop.f32.mrb[90].mxu0 }
 0x587   : > { %v2846_v27 = vadd.f32 %v5278_v62, %v2606_v9  ;;  %v2610_v49 = vadd.f32 %v2609_v33, %v5498_v4  ;;  %v2611_v43 = vpop.f32.mrb[91].mxu0 }
 0x588   : > { %v2847_v23 = vadd.f32 %v5280_v18, %v2608_v53  ;;  %v2612_v21 = vadd.f32 %v2611_v43, %v5501_v56 }
 0x589   : > { %v2848_v7 = vadd.f32 %v5288_v20, %v2610_v49  ;;  %v2878_v16 = vmax.f32 %v2846_v27, 0.0  ;;  %v4674_v27 = vld [vmem:[%s5766_s6 + $0x10] sm:$0xff]  }
 0x58a   : > { %v2849_v15 = vadd.f32 %v5290_v31, %v2612_v21  ;;  %v2879_v62 = vmax.f32 %v2847_v23, 0.0  ;;  %4222 = vmatpush3.bf16.msra.mxu1 %v4674_v27 }
 0x58b   : > { %v2880_v6 = vmax.f32 %v2848_v7, 0.0  ;;  %4223 = vmatprep.subr.bf16.mxu1 %v4675_v13 }
 0x58c   : > { %v2881_v22 = vmax.f32 %v2849_v15, 0.0  ;;  %v4676_v15 = vld [vmem:[%s5766_s6 + $0x18] sm:$0xff]  }
 0x58d   : > { %v2898_v17 = vpack.c.bf16 %v2880_v6, %v2878_v16  ;;  %v4677_v16 = vld [vmem:[%s5766_s6 + $0x60] sm:$0xff]  }
 0x58e   : > { %v2899_v30 = vpack.c.bf16 %v2881_v22, %v2879_v62  ;;  %4224 = vmatpush3.bf16.msra.mxu1 %v4676_v15  ;;  %v4678_v62 = vld [vmem:[%s5766_s6 + $0x20] sm:$0xff]   ;;  %v4679_v22 = vld [vmem:[%s5766_s6 + $0x68] sm:$0xff]  }
 0x58f   : > { %4225 = vmatprep.subr.bf16.mxu1 %v4677_v16  ;;  %v4680_v16 = vld [vmem:[%s5766_s6 + $0x28] sm:$0xff]  }
 0x590   : > { %3200 = vmatprep.mubr.bf16.mxu1 %v2899_v30 }
 0x591   : > { %3201 = vmatmul.mubr.bf16.gmra.mrb[88].mxu1 %v2898_v17 }
 0x592   : > { %4226 = vmatpush3.bf16.msra.mxu1 %v4678_v62 }
 0x593   : > { %4227 = vmatprep.subr.bf16.mxu1 %v4679_v22 }
 0x596   : > { %4228 = vmatpush3.bf16.msra.mxu1 %v4680_v16 }
 0x597   : > { %v2615_v18 = vpop.f32.mrb[92].mxu0 }
 0x598   : > { %v2616_v36 = vadd.f32 %v2615_v18, %v5498_v4  ;;  %v2617_v47 = vpop.f32.mrb[93].mxu0 }
 0x599   : > { %v2618_v20 = vadd.f32 %v2617_v47, %v5501_v56  ;;  %v2619_v34 = vpop.f32.mrb[94].mxu0 }
 0x59a   : > { %v2850_v31 = vadd.f32 %v5312_v37, %v2616_v36  ;;  %v2620_v41 = vadd.f32 %v2619_v34, %v5498_v4  ;;  %v2621_v48 = vpop.f32.mrb[95].mxu0  ;;  %v4132_v37 = vld [vmem:[%s5765_s5 + $0x5] ss:$8 sm:$0x3] }
 0x59b   : > { %v2851_v39 = vadd.f32 %v5314_v55, %v2618_v20  ;;  %v2622_v32 = vadd.f32 %v2621_v48, %v5501_v56  ;;  %v5571_v55 = vrot.slane %v4132_v37, %v4896_v57  ;;  %v5574_v4 = vrot.slane %v4132_v37, %v4898_v58 }
 0x59c   : > { %v2852_v1 = vadd.f32 %v5324_v60, %v2620_v41  ;;  %v2882_v28 = vmax.f32 %v2850_v31, 0.0 }
 0x59d   : > { %v2853_v26 = vadd.f32 %v5326_v5, %v2622_v32  ;;  %v2883_v44 = vmax.f32 %v2851_v39, 0.0 }
 0x59e   : > { %v2884_v42 = vmax.f32 %v2852_v1, 0.0 }
 0x59f   : > { %v2885_v40 = vmax.f32 %v2853_v26, 0.0 }
 0x5a0   : > { %v2900_v25 = vpack.c.bf16 %v2884_v42, %v2882_v28 }
 0x5a1   : > { %v2901_v35 = vpack.c.bf16 %v2885_v40, %v2883_v44 }
 0x5a3   : > { %3210 = vmatprep.mubr.bf16.mxu1 %v2901_v35 }
 0x5a4   : > { %3211 = vmatmul.mubr.bf16.gmra.mrb[92].mxu1 %v2900_v25 }
 0x5fc   : > { %v3142_v60 = vpop.f32.mrb[64].mxu1 }
 0x5fd   : > { %v3143_v5 = vadd.f32 %v3142_v60, %v5571_v55  ;;  %v3144_v56 = vpop.f32.mrb[65].mxu1 }
 0x5fe   : > { %v3145_v51 = vadd.f32 %v3144_v56, %v5574_v4  ;;  %v3146_v38 = vpop.f32.mrb[66].mxu1 }
 0x5ff   : > { %v3147_v45 = vadd.f32 %v3146_v38, %v5571_v55  ;;  %v3148_v10 = vpop.f32.mrb[67].mxu1  ;;  %v3221_v63 = vmax.f32 %v3143_v5, 0.0 }
 0x600   : > { %v3149_v0 = vadd.f32 %v3148_v10, %v5574_v4  ;;  %v3222_v3 = vmax.f32 %v3145_v51, 0.0 }
 0x601   : > { %v3223_v2 = vmax.f32 %v3147_v45, 0.0 }
 0x602   : > { %v3224_v59 = vmax.f32 %v3149_v0, 0.0 }
 0x603   : > { %v3253_v19 = vpack.c.bf16 %v3223_v2, %v3221_v63 }
 0x604   : > { %v3254_v24 = vpack.c.bf16 %v3224_v59, %v3222_v3 }
 0x605   : > { %v3152_v8 = vpop.f32.mrb[68].mxu1 }
 0x606   : > { %v3153_v9 = vadd.f32 %v3152_v8, %v5571_v55  ;;  %v3154_v54 = vpop.f32.mrb[69].mxu1  ;;  %3507 = vmatprep.mubr.bf16.mxu0 %v3254_v24 }
 0x607   : > { %v3155_v53 = vadd.f32 %v3154_v54, %v5574_v4  ;;  %v3156_v33 = vpop.f32.mrb[70].mxu1  ;;  %3508 = vmatmul.mubr.bf16.vlgmr.msra.gmra.mrb[96].mxu0 %v3253_v19 }
 0x608   : > { %v3157_v49 = vadd.f32 %v3156_v33, %v5571_v55  ;;  %v3158_v43 = vpop.f32.mrb[71].mxu1  ;;  %v3225_v23 = vmax.f32 %v3153_v9, 0.0 }
 0x609   : > { %v3159_v52 = vadd.f32 %v3158_v43, %v5574_v4  ;;  %v3226_v14 = vmax.f32 %v3155_v53, 0.0 }
 0x60a   : > { %v3227_v21 = vmax.f32 %v3157_v49, 0.0 }
 0x60b   : > { %v3228_v7 = vmax.f32 %v3159_v52, 0.0 }
 0x60c   : > { %v3255_v46 = vpack.c.bf16 %v3227_v21, %v3225_v23 }
 0x60d   : > { %v3256_v6 = vpack.c.bf16 %v3228_v7, %v3226_v14 }
 0x60f   : > { %3517 = vmatprep.mubr.bf16.mxu0 %v3256_v6 }
 0x610   : > { %3518 = vmatmul.mubr.bf16.gmra.mrb[100].mxu0 %v3255_v46 }
 0x618   : > { %v3162_v17 = vpop.f32.mrb[72].mxu1 }
 0x619   : > { %v3163_v30 = vadd.f32 %v3162_v17, %v5571_v55  ;;  %v3164_v18 = vpop.f32.mrb[73].mxu1  ;;  %v4681_v17 = vld [vmem:[%s5766_s6 + $0x70] sm:$0xff]  }
 0x61a   : > { %v3165_v36 = vadd.f32 %v3164_v18, %v5574_v4  ;;  %v3166_v47 = vpop.f32.mrb[74].mxu1  ;;  %v4683_v18 = vld [vmem:[%s5766_s6 + $0x78] sm:$0xff]   ;;  %4229 = vmatprep.subr.bf16.mxu1 %v4681_v17 }
 0x61b   : > { %v3167_v20 = vadd.f32 %v3166_v47, %v5571_v55  ;;  %v3168_v34 = vpop.f32.mrb[75].mxu1  ;;  %v3229_v41 = vmax.f32 %v3163_v30, 0.0  ;;  %v4682_v30 = vld [vmem:[%s5766_s6 + $0x30] sm:$0xff]  }
 0x61c   : > { %v3169_v31 = vadd.f32 %v3168_v34, %v5574_v4  ;;  %v3230_v39 = vmax.f32 %v3165_v36, 0.0  ;;  %4230 = vmatpush3.bf16.msra.mxu1 %v4682_v30 }
 0x61d   : > { %v3231_v48 = vmax.f32 %v3167_v20, 0.0  ;;  %4231 = vmatprep.subr.bf16.mxu1 %v4683_v18 }
 0x61e   : > { %v3232_v32 = vmax.f32 %v3169_v31, 0.0 }
 0x61f   : > { %v3257_v1 = vpack.c.bf16 %v3231_v48, %v3229_v41  ;;  %v4684_v41 = vld [vmem:[%s5766_s6 + $0x38] sm:$0xff]  }
 0x620   : > { %v3258_v26 = vpack.c.bf16 %v3232_v32, %v3230_v39  ;;  %4232 = vmatpush3.bf16.msra.mxu1 %v4684_v41 }
 0x622   : > { %3527 = vmatprep.mubr.bf16.mxu0 %v3258_v26 }
 0x623   : > { %3528 = vmatmul.mubr.bf16.gmra.mrb[104].mxu0 %v3257_v1 }
 0x62b   : > { %v3172_v28 = vpop.f32.mrb[76].mxu1 }
 0x62c   : > { %v3173_v42 = vadd.f32 %v3172_v28, %v5571_v55  ;;  %v3174_v44 = vpop.f32.mrb[77].mxu1 }
 0x62d   : > { %v3175_v40 = vadd.f32 %v3174_v44, %v5574_v4  ;;  %v3176_v25 = vpop.f32.mrb[78].mxu1 }
 0x62e   : > { %v3177_v35 = vadd.f32 %v3176_v25, %v5571_v55  ;;  %v3178_v37 = vpop.f32.mrb[79].mxu1  ;;  %v3233_v5 = vmax.f32 %v3173_v42, 0.0 }
 0x62f   : > { %v3179_v60 = vadd.f32 %v3178_v37, %v5574_v4  ;;  %v3234_v51 = vmax.f32 %v3175_v40, 0.0 }
 0x630   : > { %v3235_v56 = vmax.f32 %v3177_v35, 0.0 }
 0x631   : > { %v3236_v38 = vmax.f32 %v3179_v60, 0.0 }
 0x632   : > { %v3259_v45 = vpack.c.bf16 %v3235_v56, %v3233_v5 }
 0x633   : > { %v3260_v10 = vpack.c.bf16 %v3236_v38, %v3234_v51 }
 0x635   : > { %3537 = vmatprep.mubr.bf16.mxu0 %v3260_v10 }
 0x636   : > { %3538 = vmatmul.mubr.bf16.gmra.mrb[108].mxu0 %v3259_v45 }
 0x63e   : > { %v3182_v50 = vpop.f32.mrb[80].mxu1 }
 0x63f   : > { %v3183_v11 = vadd.f32 %v3182_v50, %v5571_v55  ;;  %v3184_v12 = vpop.f32.mrb[81].mxu1 }
 0x640   : > { %v3185_v0 = vadd.f32 %v3184_v12, %v5574_v4  ;;  %v3186_v63 = vpop.f32.mrb[82].mxu1 }
 0x641   : > { %v3187_v2 = vadd.f32 %v3186_v63, %v5571_v55  ;;  %v3188_v3 = vpop.f32.mrb[83].mxu1  ;;  %v3237_v29 = vmax.f32 %v3183_v11, 0.0  ;;  %v4165_v11 = vld [vmem:[%s5765_s5 + $0x6] ss:$8 sm:$0x3] }
 0x642   : > { %v3189_v59 = vadd.f32 %v3188_v3, %v5574_v4  ;;  %v3238_v61 = vmax.f32 %v3185_v0, 0.0  ;;  %v5660_v12 = vrot.slane %v4165_v11, %v4896_v57 }
 0x643   : > { %v3239_v19 = vmax.f32 %v3187_v2, 0.0 }
 0x644   : > { %v3240_v24 = vmax.f32 %v3189_v59, 0.0 }
 0x645   : > { %v3261_v8 = vpack.c.bf16 %v3239_v19, %v3237_v29 }
 0x646   : > { %v3262_v9 = vpack.c.bf16 %v3240_v24, %v3238_v61 }
 0x648   : > { %3547 = vmatprep.mubr.bf16.mxu0 %v3262_v9 }
 0x649   : > { %3548 = vmatmul.mubr.bf16.gmra.mrb[112].mxu0 %v3261_v8 }
 0x651   : > { %v3192_v54 = vpop.f32.mrb[84].mxu1 }
 0x652   : > { %v3193_v53 = vadd.f32 %v3192_v54, %v5571_v55  ;;  %v3194_v33 = vpop.f32.mrb[85].mxu1 }
 0x653   : > { %v3195_v27 = vadd.f32 %v3194_v33, %v5574_v4  ;;  %v3196_v49 = vpop.f32.mrb[86].mxu1 }
 0x654   : > { %v3197_v43 = vadd.f32 %v3196_v49, %v5571_v55  ;;  %v3198_v13 = vpop.f32.mrb[87].mxu1  ;;  %v3241_v23 = vmax.f32 %v3193_v53, 0.0 }
 0x655   : > { %v3199_v52 = vadd.f32 %v3198_v13, %v5574_v4  ;;  %v3242_v14 = vmax.f32 %v3195_v27, 0.0 }
 0x656   : > { %v3243_v21 = vmax.f32 %v3197_v43, 0.0 }
 0x657   : > { %v3244_v7 = vmax.f32 %v3199_v52, 0.0 }
 0x658   : > { %v3263_v15 = vpack.c.bf16 %v3243_v21, %v3241_v23 }
 0x659   : > { %v3264_v46 = vpack.c.bf16 %v3244_v7, %v3242_v14 }
 0x65b   : > { %3557 = vmatprep.mubr.bf16.mxu0 %v3264_v46 }
 0x65c   : > { %3558 = vmatmul.mubr.bf16.gmra.mrb[116].mxu0 %v3263_v15 }
 0x664   : > { %v3202_v6 = vpop.f32.mrb[88].mxu1 }
 0x665   : > { %v3203_v62 = vadd.f32 %v3202_v6, %v5571_v55  ;;  %v3204_v22 = vpop.f32.mrb[89].mxu1 }
 0x666   : > { %v3205_v36 = vadd.f32 %v3204_v22, %v5574_v4  ;;  %v3206_v47 = vpop.f32.mrb[90].mxu1 }
 0x667   : > { %v3207_v20 = vadd.f32 %v3206_v47, %v5571_v55  ;;  %v3208_v34 = vpop.f32.mrb[91].mxu1  ;;  %v3245_v48 = vmax.f32 %v3203_v62, 0.0 }
 0x668   : > { %v3209_v31 = vadd.f32 %v3208_v34, %v5574_v4  ;;  %v3246_v32 = vmax.f32 %v3205_v36, 0.0 }
 0x669   : > { %v3247_v39 = vmax.f32 %v3207_v20, 0.0 }
 0x66a   : > { %v3248_v1 = vmax.f32 %v3209_v31, 0.0 }
 0x66b   : > { %v3265_v26 = vpack.c.bf16 %v3247_v39, %v3245_v48 }
 0x66c   : > { %v3266_v28 = vpack.c.bf16 %v3248_v1, %v3246_v32 }
 0x66e   : > { %3567 = vmatprep.mubr.bf16.mxu0 %v3266_v28 }
 0x66f   : > { %3568 = vmatmul.mubr.bf16.gmra.mrb[120].mxu0 %v3265_v26 }
 0x677   : > { %v3212_v42 = vpop.f32.mrb[92].mxu1 }
 0x678   : > { %v3213_v44 = vadd.f32 %v3212_v42, %v5571_v55  ;;  %v3214_v40 = vpop.f32.mrb[93].mxu1 }
 0x679   : > { %v3215_v25 = vadd.f32 %v3214_v40, %v5574_v4  ;;  %v3216_v35 = vpop.f32.mrb[94].mxu1 }
 0x67a   : > { %v3217_v37 = vadd.f32 %v3216_v35, %v5571_v55  ;;  %v3218_v60 = vpop.f32.mrb[95].mxu1  ;;  %v3249_v56 = vmax.f32 %v3213_v44, 0.0  ;;  %v5663_v55 = vrot.slane %v4165_v11, %v4898_v58 }
 0x67b   : > { %v3219_v5 = vadd.f32 %v3218_v60, %v5574_v4  ;;  %v3250_v38 = vmax.f32 %v3215_v25, 0.0 }
 0x67c   : > { %v3251_v51 = vmax.f32 %v3217_v37, 0.0 }
 0x67d   : > { %v3252_v45 = vmax.f32 %v3219_v5, 0.0 }
 0x67e   : > { %v3267_v10 = vpack.c.bf16 %v3251_v51, %v3249_v56 }
 0x67f   : > { %v3268_v50 = vpack.c.bf16 %v3252_v45, %v3250_v38 }
 0x681   : > { %3577 = vmatprep.mubr.bf16.mxu0 %v3268_v50 }
 0x682   : > { %3578 = vmatmul.mubr.bf16.gmra.mrb[124].mxu0 %v3267_v10 }
 0x6da   : > { %v3509_v0 = vpop.f32.mrb[96].mxu0 }
 0x6db   : > { %v3510_v4 = vadd.f32 %v3509_v0, %v5660_v12  ;;  %v3511_v63 = vpop.f32.mrb[97].mxu0 }
 0x6dc   : > { %v3512_v2 = vadd.f32 %v3511_v63, %v5663_v55  ;;  %v3513_v3 = vpop.f32.mrb[98].mxu0 }
 0x6dd   : > { %v3514_v59 = vadd.f32 %v3513_v3, %v5660_v12  ;;  %v3515_v29 = vpop.f32.mrb[99].mxu0  ;;  %v3588_v61 = vmax.f32 %v3510_v4, 0.0 }
 0x6de   : > { %v3516_v19 = vadd.f32 %v3515_v29, %v5663_v55  ;;  %v3589_v8 = vmax.f32 %v3512_v2, 0.0 }
 0x6df   : > { %v3590_v24 = vmax.f32 %v3514_v59, 0.0 }
 0x6e0   : > { %v3591_v57 = vmax.f32 %v3516_v19, 0.0 }
 0x6e1   : > { %v3620_v9 = vpack.c.bf16 %v3590_v24, %v3588_v61 }
 0x6e2   : > { %v3621_v54 = vpack.c.bf16 %v3591_v57, %v3589_v8 }
 0x6e3   : > { %v3519_v58 = vpop.f32.mrb[100].mxu0 }
 0x6e4   : > { %v3520_v53 = vadd.f32 %v3519_v58, %v5660_v12  ;;  %v3521_v33 = vpop.f32.mrb[101].mxu0  ;;  %3803 = vmatprep.mubr.bf16.mxu1 %v3621_v54 }
 0x6e5   : > { %v3522_v27 = vadd.f32 %v3521_v33, %v5663_v55  ;;  %v3523_v49 = vpop.f32.mrb[102].mxu0  ;;  %3804 = vmatmul.mubr.bf16.vlgmr.msra.gmra.mrb[96].mxu1 %v3620_v9 }
 0x6e6   : > { %v3524_v43 = vadd.f32 %v3523_v49, %v5660_v12  ;;  %v3525_v13 = vpop.f32.mrb[103].mxu0  ;;  %v3592_v23 = vmax.f32 %v3520_v53, 0.0 }
 0x6e7   : > { %v3526_v52 = vadd.f32 %v3525_v13, %v5663_v55  ;;  %v3593_v14 = vmax.f32 %v3522_v27, 0.0 }
 0x6e8   : > { %v3594_v21 = vmax.f32 %v3524_v43, 0.0 }
 0x6e9   : > { %v3595_v7 = vmax.f32 %v3526_v52, 0.0 }
 0x6ea   : > { %v3622_v15 = vpack.c.bf16 %v3594_v21, %v3592_v23 }
 0x6eb   : > { %v3623_v46 = vpack.c.bf16 %v3595_v7, %v3593_v14 }
 0x6ed   : > { %3811 = vmatprep.mubr.bf16.mxu1 %v3623_v46 }
 0x6ee   : > { %3812 = vmatmul.mubr.bf16.gmra.mrb[100].mxu1 %v3622_v15 }
 0x6f6   : > { %v3529_v16 = vpop.f32.mrb[104].mxu0 }
 0x6f7   : > { %v3530_v6 = vadd.f32 %v3529_v16, %v5660_v12  ;;  %v3531_v62 = vpop.f32.mrb[105].mxu0 }
 0x6f8   : > { %v3532_v22 = vadd.f32 %v3531_v62, %v5663_v55  ;;  %v3533_v17 = vpop.f32.mrb[106].mxu0 }
 0x6f9   : > { %v3534_v30 = vadd.f32 %v3533_v17, %v5660_v12  ;;  %v3535_v18 = vpop.f32.mrb[107].mxu0  ;;  %v3596_v47 = vmax.f32 %v3530_v6, 0.0 }
 0x6fa   : > { %v3536_v36 = vadd.f32 %v3535_v18, %v5663_v55  ;;  %v3597_v34 = vmax.f32 %v3532_v22, 0.0 }
 0x6fb   : > { %v3598_v20 = vmax.f32 %v3534_v30, 0.0 }
 0x6fc   : > { %v3599_v31 = vmax.f32 %v3536_v36, 0.0 }
 0x6fd   : > { %v3624_v41 = vpack.c.bf16 %v3598_v20, %v3596_v47 }
 0x6fe   : > { %v3625_v48 = vpack.c.bf16 %v3599_v31, %v3597_v34 }
 0x700   : > { %3819 = vmatprep.mubr.bf16.mxu1 %v3625_v48 }
 0x701   : > { %3820 = vmatmul.mubr.bf16.gmra.mrb[104].mxu1 %v3624_v41 }
 0x709   : > { %v3539_v39 = vpop.f32.mrb[108].mxu0 }
 0x70a   : > { %v3540_v32 = vadd.f32 %v3539_v39, %v5660_v12  ;;  %v3541_v1 = vpop.f32.mrb[109].mxu0 }
 0x70b   : > { %v3542_v26 = vadd.f32 %v3541_v1, %v5663_v55  ;;  %v3543_v28 = vpop.f32.mrb[110].mxu0 }
 0x70c   : > { %v3544_v42 = vadd.f32 %v3543_v28, %v5660_v12  ;;  %v3545_v44 = vpop.f32.mrb[111].mxu0  ;;  %v3600_v25 = vmax.f32 %v3540_v32, 0.0 }
 0x70d   : > { %v3546_v40 = vadd.f32 %v3545_v44, %v5663_v55  ;;  %v3601_v37 = vmax.f32 %v3542_v26, 0.0 }
 0x70e   : > { %v3602_v35 = vmax.f32 %v3544_v42, 0.0 }
 0x70f   : > { %v3603_v60 = vmax.f32 %v3546_v40, 0.0 }
 0x710   : > { %v3626_v5 = vpack.c.bf16 %v3602_v35, %v3600_v25  ;;  %v5700_v35 = vld [vmem:[%s5767_s7] ss:$0 sm:$0xff] }
 0x711   : > { %v3627_v56 = vpack.c.bf16 %v3603_v60, %v3601_v37 }
 0x713   : > { %3827 = vmatprep.mubr.bf16.mxu1 %v3627_v56 }
 0x714   : > { %3828 = vmatmul.mubr.bf16.gmra.mrb[108].mxu1 %v3626_v5 }
 0x71c   : > { %v3549_v51 = vpop.f32.mrb[112].mxu0 }
 0x71d   : > { %v3550_v38 = vadd.f32 %v3549_v51, %v5660_v12  ;;  %v3551_v45 = vpop.f32.mrb[113].mxu0 }
 0x71e   : > { %v3552_v10 = vadd.f32 %v3551_v45, %v5663_v55  ;;  %v3553_v50 = vpop.f32.mrb[114].mxu0 }
 0x71f   : > { %v3554_v11 = vadd.f32 %v3553_v50, %v5660_v12  ;;  %v3555_v0 = vpop.f32.mrb[115].mxu0  ;;  %v3604_v63 = vmax.f32 %v3550_v38, 0.0 }
 0x720   : > { %v3556_v4 = vadd.f32 %v3555_v0, %v5663_v55  ;;  %v3605_v3 = vmax.f32 %v3552_v10, 0.0 }
 0x721   : > { %v3606_v2 = vmax.f32 %v3554_v11, 0.0 }
 0x722   : > { %v3607_v59 = vmax.f32 %v3556_v4, 0.0 }
 0x723   : > { %v3628_v29 = vpack.c.bf16 %v3606_v2, %v3604_v63 }
 0x724   : > { %v3629_v19 = vpack.c.bf16 %v3607_v59, %v3605_v3 }
 0x726   : > { %3835 = vmatprep.mubr.bf16.mxu1 %v3629_v19 }
 0x727   : > { %3836 = vmatmul.mubr.bf16.gmra.mrb[112].mxu1 %v3628_v29 }
 0x72f   : > { %v3559_v61 = vpop.f32.mrb[116].mxu0 }
 0x730   : > { %v3560_v24 = vadd.f32 %v3559_v61, %v5660_v12  ;;  %v3561_v8 = vpop.f32.mrb[117].mxu0 }
 0x731   : > { %v3562_v57 = vadd.f32 %v3561_v8, %v5663_v55  ;;  %v3563_v9 = vpop.f32.mrb[118].mxu0 }
 0x732   : > { %v3564_v54 = vadd.f32 %v3563_v9, %v5660_v12  ;;  %v3565_v58 = vpop.f32.mrb[119].mxu0  ;;  %v3608_v33 = vmax.f32 %v3560_v24, 0.0 }
 0x733   : > { %v3566_v53 = vadd.f32 %v3565_v58, %v5663_v55  ;;  %v3609_v49 = vmax.f32 %v3562_v57, 0.0 }
 0x734   : > { %v3610_v27 = vmax.f32 %v3564_v54, 0.0 }
 0x735   : > { %v3611_v43 = vmax.f32 %v3566_v53, 0.0 }
 0x736   : > { %v3630_v13 = vpack.c.bf16 %v3610_v27, %v3608_v33 }
 0x737   : > { %v3631_v52 = vpack.c.bf16 %v3611_v43, %v3609_v49 }
 0x739   : > { %3843 = vmatprep.mubr.bf16.mxu1 %v3631_v52 }
 0x73a   : > { %3844 = vmatmul.mubr.bf16.gmra.mrb[116].mxu1 %v3630_v13 }
 0x742   : > { %v3569_v23 = vpop.f32.mrb[120].mxu0 }
 0x743   : > { %v3570_v21 = vadd.f32 %v3569_v23, %v5660_v12  ;;  %v3571_v14 = vpop.f32.mrb[121].mxu0 }
 0x744   : > { %v3572_v7 = vadd.f32 %v3571_v14, %v5663_v55  ;;  %v3573_v15 = vpop.f32.mrb[122].mxu0 }
 0x745   : > { %v3574_v46 = vadd.f32 %v3573_v15, %v5660_v12  ;;  %v3575_v16 = vpop.f32.mrb[123].mxu0  ;;  %v3612_v62 = vmax.f32 %v3570_v21, 0.0 }
 0x746   : > { %v3576_v6 = vadd.f32 %v3575_v16, %v5663_v55  ;;  %v3613_v17 = vmax.f32 %v3572_v7, 0.0 }
 0x747   : > { %v3614_v22 = vmax.f32 %v3574_v46, 0.0 }
 0x748   : > { %v3615_v30 = vmax.f32 %v3576_v6, 0.0 }
 0x749   : > { %v3632_v18 = vpack.c.bf16 %v3614_v22, %v3612_v62 }
 0x74a   : > { %v3633_v36 = vpack.c.bf16 %v3615_v30, %v3613_v17 }
 0x74c   : > { %3851 = vmatprep.mubr.bf16.mxu1 %v3633_v36 }
 0x74d   : > { %3852 = vmatmul.mubr.bf16.gmra.mrb[120].mxu1 %v3632_v18 }
 0x755   : > { %v3579_v47 = vpop.f32.mrb[124].mxu0 }
 0x756   : > { %v3580_v20 = vadd.f32 %v3579_v47, %v5660_v12  ;;  %v3581_v34 = vpop.f32.mrb[125].mxu0 }
 0x757   : > { %v3582_v31 = vadd.f32 %v3581_v34, %v5663_v55  ;;  %v3583_v41 = vpop.f32.mrb[126].mxu0 }
 0x758   : > { %v3584_v48 = vadd.f32 %v3583_v41, %v5660_v12  ;;  %v3585_v39 = vpop.f32.mrb[127].mxu0  ;;  %v3616_v1 = vmax.f32 %v3580_v20, 0.0 }
 0x759   : > { %v3586_v32 = vadd.f32 %v3585_v39, %v5663_v55  ;;  %v3617_v28 = vmax.f32 %v3582_v31, 0.0 }
 0x75a   : > { %v3618_v26 = vmax.f32 %v3584_v48, 0.0 }
 0x75b   : > { %v3619_v42 = vmax.f32 %v3586_v32, 0.0 }
 0x75c   : > { %v3634_v44 = vpack.c.bf16 %v3618_v26, %v3616_v1 }
 0x75d   : > { %v3635_v40 = vpack.c.bf16 %v3619_v42, %v3617_v28 }
 0x75f   : > { %3859 = vmatprep.mubr.bf16.mxu1 %v3635_v40 }
 0x760   : > { %3860 = vmatmul.mubr.bf16.gmra.mrb[124].mxu1 %v3634_v44 }
 0x7b8   : > { %v4233_v25 = vpop.f32.mrb[96].mxu1 }
 0x7b9   : > { %v4234_v37 = vpop.f32.mrb[97].mxu1 }
 0x7ba   : > { %v4235_v12 = vadd.f32 %v4234_v37, %v4233_v25  ;;  %v4236_v60 = vpop.f32.mrb[98].mxu1 }
 0x7bb   : > { %v4237_v55 = vpop.f32.mrb[99].mxu1 }
 0x7bc   : > { %v3806_v5 = vadd.f32 %v4235_v12, %v5700_v35  ;;  %v4238_v56 = vadd.f32 %v4237_v55, %v4236_v60 }
 0x7be   : > { %3869 = vst.msk [vmem:[%s5707_s15] sm:$0xff] %vm3868_vm0, %v3806_v5  ;;  %v3809_v51 = vadd.f32 %v4238_v56, %v5700_v35 }
 0x7c0   : > { %3870 = vst.msk [vmem:[%s5707_s15 + $0x8] sm:$0xff] %vm3868_vm0, %v3809_v51 }
 0x7c1   : > { %v4239_v38 = vpop.f32.mrb[100].mxu1 }
 0x7c2   : > { %v4240_v45 = vpop.f32.mrb[101].mxu1 }
 0x7c3   : > { %v4241_v10 = vadd.f32 %v4240_v45, %v4239_v38  ;;  %v4242_v50 = vpop.f32.mrb[102].mxu1 }
 0x7c4   : > { %v4243_v11 = vpop.f32.mrb[103].mxu1 }
 0x7c5   : > { %v3814_v0 = vadd.f32 %v4241_v10, %v5700_v35  ;;  %v4244_v4 = vadd.f32 %v4243_v11, %v4242_v50 }
 0x7c7   : > { %3871 = vst.msk [vmem:[%s5707_s15 + $0x10] sm:$0xff] %vm3868_vm0, %v3814_v0  ;;  %v3817_v63 = vadd.f32 %v4244_v4, %v5700_v35 }
 0x7c9   : > { %3872 = vst.msk [vmem:[%s5707_s15 + $0x18] sm:$0xff] %vm3868_vm0, %v3817_v63 }
 0x7d4   : > { %v4245_v2 = vpop.f32.mrb[104].mxu1 }
 0x7d5   : > { %v4246_v3 = vpop.f32.mrb[105].mxu1 }
 0x7d6   : > { %v4247_v59 = vadd.f32 %v4246_v3, %v4245_v2  ;;  %v4248_v29 = vpop.f32.mrb[106].mxu1 }
 0x7d7   : > { %v4249_v19 = vpop.f32.mrb[107].mxu1 }
 0x7d8   : > { %v3822_v61 = vadd.f32 %v4247_v59, %v5700_v35  ;;  %v4250_v24 = vadd.f32 %v4249_v19, %v4248_v29 }
 0x7da   : > { %3873 = vst.msk [vmem:[%s5707_s15 + $0x20] sm:$0xff] %vm3868_vm0, %v3822_v61  ;;  %v3825_v8 = vadd.f32 %v4250_v24, %v5700_v35 }
 0x7dc   : > { %3874 = vst.msk [vmem:[%s5707_s15 + $0x28] sm:$0xff] %vm3868_vm0, %v3825_v8 }
 0x7e7   : > { %v4251_v57 = vpop.f32.mrb[108].mxu1 }
 0x7e8   : > { %v4252_v9 = vpop.f32.mrb[109].mxu1 }
 0x7e9   : > { %v4253_v54 = vadd.f32 %v4252_v9, %v4251_v57  ;;  %v4254_v58 = vpop.f32.mrb[110].mxu1 }
 0x7ea   : > { %v4255_v53 = vpop.f32.mrb[111].mxu1 }
 0x7eb   : > { %v3830_v33 = vadd.f32 %v4253_v54, %v5700_v35  ;;  %v4256_v27 = vadd.f32 %v4255_v53, %v4254_v58 }
 0x7ed   : > { %3875 = vst.msk [vmem:[%s5707_s15 + $0x30] sm:$0xff] %vm3868_vm0, %v3830_v33  ;;  %v3833_v49 = vadd.f32 %v4256_v27, %v5700_v35 }
 0x7ef   : > { %3876 = vst.msk [vmem:[%s5707_s15 + $0x38] sm:$0xff] %vm3868_vm0, %v3833_v49 }
 0x7fa   : > { %v4257_v43 = vpop.f32.mrb[112].mxu1 }
 0x7fb   : > { %v4258_v13 = vpop.f32.mrb[113].mxu1 }
 0x7fc   : > { %v4259_v52 = vadd.f32 %v4258_v13, %v4257_v43  ;;  %v4260_v23 = vpop.f32.mrb[114].mxu1 }
 0x7fd   : > { %v4261_v21 = vpop.f32.mrb[115].mxu1 }
 0x7fe   : > { %v3838_v14 = vadd.f32 %v4259_v52, %v5700_v35  ;;  %v4262_v7 = vadd.f32 %v4261_v21, %v4260_v23 }
 0x800   : > { %3877 = vst.msk [vmem:[%s5707_s15 + $0x40] sm:$0xff] %vm3868_vm0, %v3838_v14  ;;  %v3841_v15 = vadd.f32 %v4262_v7, %v5700_v35 }
 0x802   : > { %3878 = vst.msk [vmem:[%s5707_s15 + $0x48] sm:$0xff] %vm3868_vm0, %v3841_v15 }
 0x80d   : > { %v4263_v46 = vpop.f32.mrb[116].mxu1 }
 0x80e   : > { %v4264_v16 = vpop.f32.mrb[117].mxu1 }
 0x80f   : > { %v4265_v6 = vadd.f32 %v4264_v16, %v4263_v46  ;;  %v4266_v62 = vpop.f32.mrb[118].mxu1 }
 0x810   : > { %v4267_v22 = vpop.f32.mrb[119].mxu1 }
 0x811   : > { %v3846_v17 = vadd.f32 %v4265_v6, %v5700_v35  ;;  %v4268_v30 = vadd.f32 %v4267_v22, %v4266_v62 }
 0x813   : > { %3879 = vst.msk [vmem:[%s5707_s15 + $0x50] sm:$0xff] %vm3868_vm0, %v3846_v17  ;;  %v3849_v18 = vadd.f32 %v4268_v30, %v5700_v35 }
 0x815   : > { %3880 = vst.msk [vmem:[%s5707_s15 + $0x58] sm:$0xff] %vm3868_vm0, %v3849_v18 }
 0x820   : > { %v4269_v36 = vpop.f32.mrb[120].mxu1 }
 0x821   : > { %v4270_v47 = vpop.f32.mrb[121].mxu1 }
 0x822   : > { %v4271_v20 = vadd.f32 %v4270_v47, %v4269_v36  ;;  %v4272_v34 = vpop.f32.mrb[122].mxu1 }
 0x823   : > { %v4273_v31 = vpop.f32.mrb[123].mxu1 }
 0x824   : > { %v3854_v41 = vadd.f32 %v4271_v20, %v5700_v35  ;;  %v4274_v48 = vadd.f32 %v4273_v31, %v4272_v34 }
 0x826   : > { %3881 = vst.msk [vmem:[%s5707_s15 + $0x60] sm:$0xff] %vm3868_vm0, %v3854_v41  ;;  %v3857_v39 = vadd.f32 %v4274_v48, %v5700_v35 }
 0x828   : > { %3882 = vst.msk [vmem:[%s5707_s15 + $0x68] sm:$0xff] %vm3868_vm0, %v3857_v39 }
 0x833   : > { %v4275_v32 = vpop.f32.mrb[124].mxu1 }
 0x834   : > { %v4276_v1 = vpop.f32.mrb[125].mxu1 }
 0x835   : > { %v4277_v26 = vadd.f32 %v4276_v1, %v4275_v32  ;;  %v4278_v28 = vpop.f32.mrb[126].mxu1 }
 0x836   : > { %v4279_v42 = vpop.f32.mrb[127].mxu1 }
 0x837   : > { %v3862_v44 = vadd.f32 %v4277_v26, %v5700_v35  ;;  %v4280_v40 = vadd.f32 %v4279_v42, %v4278_v28 }
 0x839   : > { %3883 = vst.msk [vmem:[%s5707_s15 + $0x70] sm:$0xff] %vm3868_vm0, %v3862_v44  ;;  %v3865_v25 = vadd.f32 %v4280_v40, %v5700_v35 }
 0x83b   : > { %3884 = vst.msk [vmem:[%s5707_s15 + $0x78] sm:$0xff] %vm3868_vm0, %v3865_v25 }
 0x83c PF: > { %s19_s27 = sadd.s32 1, %s4723_s27  }
 0x83d   : > { %p16_p3 = scmp.ge.s32.totalorder %s19_s27, 6  }
 0x83f   :  { %18 = sbr.rel (!%p16_p3) target bundleno = 1 (0x1), region = 103 }
 0x846   :  { %3907 = vsyncpa [#allocation3], 1 }
 0x847   :  { %3909 = vsyncpa [#allocation3 + $0x1], 1 }

</bundles_post_ra>
